<compile_context>
chip_gen: v7x
topology: tpu7x:2x2x1
jax: 0.10.0
libtpu: 0.0.40
codegen_flags: <defaults>
</compile_context>

<pallas_src>
import functools

import jax
import jax.numpy as jnp
from jax import lax
from jax.experimental import pallas as pl
from jax.experimental.pallas import tpu as pltpu

LANE = 128            # padded conv1-out-channel / class width (TPU lane count)
C1 = 36               # conv1 output channels (real)
C2 = 48               # conv2 output channels
POOL1_H, POOL1_W = 12, 16   # pooled conv1 grid kept in VMEM (W padded 12 -> 16)
CONV2_H, CONV2_W = 10, 16   # conv2 output grid kept in VMEM (W padded 10 -> 16)
COLS1_ROWS = 4 * POOL1_H * POOL1_W   # 768 parity-ordered im2col rows per image


def _pad_axis(a, axis, size):
    pad = [(0, 0)] * a.ndim
    pad[axis] = (0, size - a.shape[axis])
    return jnp.pad(a, pad)


def _pick_block_b(n, cap=8):
    """Images per grid step: a divisor of n, <= cap, preferring >= 2 grid steps."""
    best = 1
    for d in range(1, min(cap, n) + 1):
        if n % d == 0 and n // d >= 2:
            best = d
    return best


# ----------------------------------------------------------------------------
# Fused forward kernel: conv1+pool1 -> conv2+pool2 -> fc1 -> fc2 -> fc3+logsm
# ----------------------------------------------------------------------------
def _sccnn_kernel(cols_ref, w1_ref, b1_ref, w2_ref, b2_ref,
                  f1_ref, fb1_ref, m1_ref, f2_ref, fb2_ref, m2_ref,
                  f3_ref, fb3_ref, out_ref, p1_ref, c2_ref,
                  *, bb, num_classes):
    f32 = jnp.float32
    bf16 = jnp.bfloat16

    # --- conv1: one K=48 MXU matmul over parity-pre-ordered im2col rows -----
    cols = cols_ref[...].reshape(bb * COLS1_ROWS, 48)
    y = jnp.dot(cols, w1_ref[...], preferred_element_type=f32)   # (bb*768, 128)
    y = y.reshape(bb, 4, POOL1_H * POOL1_W, LANE)
    # 2x2/2 max pool == max over the four parity row-groups.
    z = jnp.maximum(jnp.maximum(y[:, 0], y[:, 1]),
                    jnp.maximum(y[:, 2], y[:, 3]))                # (bb, 192, 128)
    # bias + ReLU after the max is identical to pool(relu(conv + b)).
    z = jnp.maximum(z + b1_ref[...], 0.0)
    p1 = z.reshape(bb, POOL1_H, POOL1_W, LANE)[..., :C1].astype(bf16)
    p1_ref[:, :, 0:POOL1_W, :] = p1
    p1_ref[:, :, POOL1_W:, :] = jnp.zeros(
        (bb, POOL1_H, p1_ref.shape[2] - POOL1_W, C1), bf16)

    # --- conv2: direct conv, 9 shifted K=36 matmuls (no im2col tensor) ------
    acc2 = jnp.zeros((bb * CONV2_H * CONV2_W, C2), f32)
    for i in range(3):
        for j in range(3):
            piece = p1_ref[:, i:i + CONV2_H, j:j + CONV2_W, :]   # (bb,10,16,36)
            acc2 = acc2 + jnp.dot(
                piece.reshape(bb * CONV2_H * CONV2_W, C1),
                w2_ref[3 * i + j],
                preferred_element_type=f32)
    acc2 = jnp.maximum(acc2 + b2_ref[...], 0.0)                   # relu(conv2+b)
    c2_ref[...] = acc2.reshape(bb, CONV2_H, CONV2_W, C2).astype(bf16)

    # --- 2x2 pool + flatten + fc1 folded into 25 K=48 matmuls ---------------
    h = jnp.zeros((bb, 512), f32)
    for ph in range(5):
        for pw in range(5):
            q00 = c2_ref[:, 2 * ph,     2 * pw,     :]
            q01 = c2_ref[:, 2 * ph,     2 * pw + 1, :]
            q10 = c2_ref[:, 2 * ph + 1, 2 * pw,     :]
            q11 = c2_ref[:, 2 * ph + 1, 2 * pw + 1, :]
            slab = jnp.maximum(jnp.maximum(q00, q01),
                               jnp.maximum(q10, q11))             # (bb, 48)
            h = h + jnp.dot(slab, f1_ref[5 * ph + pw],
                            preferred_element_type=f32)
    h = jnp.maximum(h + fb1_ref[...], 0.0) * m1_ref[0].astype(f32)

    # --- fc2 + ReLU + dropout ------------------------------------------------
    h = jnp.dot(h.astype(bf16), f2_ref[...], preferred_element_type=f32)
    h = jnp.maximum(h + fb2_ref[...], 0.0) * m2_ref[0].astype(f32)

    # --- fc3 + log_softmax (pad lanes masked before the reduction) ----------
    logits = jnp.dot(h.astype(bf16), f3_ref[...], preferred_element_type=f32)
    logits = logits + fb3_ref[...]
    lane = lax.broadcasted_iota(jnp.int32, logits.shape, dimension=1)
    logits = jnp.where(lane < num_classes, logits, -1e30)
    zmax = jnp.max(logits, axis=-1, keepdims=True)
    s = logits - zmax
    out_ref[0] = s - jnp.log(jnp.sum(jnp.exp(s), axis=-1, keepdims=True))


def sccnn_fused(cols, w1, b1, w2, b2, f1, fb1, m1, f2, fb2, m2, f3, fb3,
                *, bb, num_classes):
    n = cols.shape[0]
    g = n // bb
    kernel = functools.partial(_sccnn_kernel, bb=bb, num_classes=num_classes)
    return pl.pallas_call(
        kernel,
        out_shape=jax.ShapeDtypeStruct((g, bb, LANE), jnp.float32),
        grid=(g,),
        in_specs=[
            pl.BlockSpec((bb, COLS1_ROWS, 48), lambda i: (i, 0, 0)),  # cols1
            pl.BlockSpec((48, LANE), lambda i: (0, 0)),               # w1
            pl.BlockSpec((1, LANE), lambda i: (0, 0)),                # b1
            pl.BlockSpec((9, C1, C2), lambda i: (0, 0, 0)),           # w2
            pl.BlockSpec((1, C2), lambda i: (0, 0)),                  # b2
            pl.BlockSpec((25, C2, 512), lambda i: (0, 0, 0)),         # fc1 w
            pl.BlockSpec((1, 512), lambda i: (0, 0)),                 # fc1 b
            pl.BlockSpec((1, bb, 512), lambda i: (i, 0, 0)),          # mask1
            pl.BlockSpec((512, 512), lambda i: (0, 0)),               # fc2 w
            pl.BlockSpec((1, 512), lambda i: (0, 0)),                 # fc2 b
            pl.BlockSpec((1, bb, 512), lambda i: (i, 0, 0)),          # mask2
            pl.BlockSpec((512, LANE), lambda i: (0, 0)),              # fc3 w
            pl.BlockSpec((1, LANE), lambda i: (0, 0)),                # fc3 b
        ],
        out_specs=pl.BlockSpec((1, bb, LANE), lambda i: (i, 0, 0)),
        scratch_shapes=[
            pltpu.VMEM((bb, POOL1_H, 24, C1), jnp.bfloat16),          # pooled conv1
            pltpu.VMEM((bb, CONV2_H, CONV2_W, C2), jnp.bfloat16),     # conv2 out
        ],
        compiler_params=pltpu.CompilerParams(
            dimension_semantics=("parallel",),
            vmem_limit_bytes=32 * 1024 * 1024),
    )(cols, w1, b1, w2, b2, f1, fb1, m1, f2, fb2, m2, f3, fb3)


# ----------------------------------------------------------------------------
# Parameters (deterministic synthetic init: normal(std=0.02), zero bias,
# mirroring init_weights in the reference; PyTorch-style conv layouts).
# ----------------------------------------------------------------------------
def init_params(key, num_classes=4):
    ks = jax.random.split(key, 5)
    std = 0.02
    return {
        "c1_w": std * jax.random.normal(ks[0], (36, 3, 4, 4), jnp.float32),
        "c1_b": jnp.zeros((36,), jnp.float32),
        "c2_w": std * jax.random.normal(ks[1], (48, 36, 3, 3), jnp.float32),
        "c2_b": jnp.zeros((48,), jnp.float32),
        # fc weights generated as (in, out); rows of fc1 are in torch's
        # flatten order (c, h, w).  Real torch Linear weights are (out, in)
        # and would need a transpose when porting.
        "fc1_w": std * jax.random.normal(ks[2], (5 * 5 * 48, 512), jnp.float32),
        "fc1_b": jnp.zeros((512,), jnp.float32),
        "fc2_w": std * jax.random.normal(ks[3], (512, 512), jnp.float32),
        "fc2_b": jnp.zeros((512,), jnp.float32),
        "fc3_w": std * jax.random.normal(ks[4], (512, num_classes), jnp.float32),
        "fc3_b": jnp.zeros((num_classes,), jnp.float32),
    }


def prepare_params(params, num_classes):
    """One-time conversion to matmul-ready layouts (hoisted out of forward)."""
    assert num_classes <= LANE
    # conv1: (36,3,4,4) -> rows (kh,kw,cin) = 48, cols = out channel padded 128
    w1 = jnp.transpose(params["c1_w"], (2, 3, 1, 0)).reshape(16 * 3, C1)
    w1 = _pad_axis(w1, 1, LANE).astype(jnp.bfloat16)
    b1 = _pad_axis(params["c1_b"], 0, LANE).astype(jnp.float32).reshape(1, LANE)
    # conv2: (48,36,3,3) -> (9 taps, 36 cin, 48 cout); Cin NOT lane-padded.
    w2 = jnp.transpose(params["c2_w"], (2, 3, 1, 0)).reshape(9, C1, C2)
    w2 = w2.astype(jnp.bfloat16)
    b2 = params["c2_b"].astype(jnp.float32).reshape(1, C2)
    # fc1: rows are torch (c,h,w) order -> (25 spatial, 48 ch, 512); K de-padded.
    f1 = jnp.transpose(params["fc1_w"].reshape(C2, 5, 5, 512), (1, 2, 0, 3))
    f1 = f1.reshape(25, C2, 512).astype(jnp.bfloat16)
    fb1 = params["fc1_b"].astype(jnp.float32).reshape(1, 512)
    f2 = params["fc2_w"].astype(jnp.bfloat16)
    fb2 = params["fc2_b"].astype(jnp.float32).reshape(1, 512)
    f3 = _pad_axis(params["fc3_w"], 1, LANE).astype(jnp.bfloat16)
    fb3 = _pad_axis(params["fc3_b"], 0, LANE).astype(jnp.float32).reshape(1, LANE)
    return dict(w1=w1, b1=b1, w2=w2, b2=b2, f1=f1, fb1=fb1,
                f2=f2, fb2=fb2, f3=f3, fb3=fb3)


# ----------------------------------------------------------------------------
# SC-CNN forward (input is NCHW like the PyTorch module; 27x27 patches)
# ----------------------------------------------------------------------------
def sccnn_forward(prep, x_nchw, rng, *, dropout_p=0.2, num_classes=4):
    n = x_nchw.shape[0]
    bb = _pick_block_b(n)
    g = n // bb

    # NCHW -> NHWC with a single bf16 cast; zero-pad W so the pooled grid is
    # 16 wide (makes every in-kernel reshape (8,128)-layout safe).
    x = jnp.transpose(x_nchw, (0, 2, 3, 1)).astype(jnp.bfloat16)   # (n,27,27,3)
    x = jnp.pad(x, ((0, 0), (0, 0), (0, 8), (0, 0)))               # (n,27,35,3)

    # conv1 im2col (only JAX-side restructuring; inflates only the tiny
    # 3-channel input).  Rows are pre-ordered (pool-parity, pooled row,
    # pooled col) so the in-kernel 2x2 pool is a max over 4 row groups.
    pats = [x[:, i:i + 24, j:j + 32, :] for i in range(4) for j in range(4)]
    cols = jnp.concatenate(pats, axis=-1)                          # (n,24,32,48)
    cols = cols.reshape(n, POOL1_H, 2, POOL1_W, 2, 48)
    cols = jnp.transpose(cols, (0, 2, 4, 1, 3, 5)).reshape(n, COLS1_ROWS, 48)

    # Inverted dropout (F.dropout defaults to training=True); bf16 masks
    # (0 or 1/(1-p)) generated host-side with jax.random.
    # TODO(synk): generate the masks in-kernel with pltpu.prng_random_bits on
    # hardware to remove this HBM stream entirely.
    keep = 1.0 - dropout_p
    if dropout_p > 0.0:
        k1, k2 = jax.random.split(rng)
        m1 = (jax.random.bernoulli(k1, keep, (n, 512)) / keep).astype(jnp.bfloat16)
        m2 = (jax.random.bernoulli(k2, keep, (n, 512)) / keep).astype(jnp.bfloat16)
    else:
        m1 = jnp.ones((n, 512), jnp.bfloat16)
        m2 = jnp.ones((n, 512), jnp.bfloat16)
    m1 = m1.reshape(g, bb, 512)
    m2 = m2.reshape(g, bb, 512)

    out = sccnn_fused(cols, prep["w1"], prep["b1"], prep["w2"], prep["b2"],
                      prep["f1"], prep["fb1"], m1, prep["f2"], prep["fb2"], m2,
                      prep["f3"], prep["fb3"], bb=bb, num_classes=num_classes)
    return out.reshape(n, LANE)[:, :num_classes]


if __name__ == "__main__":
    key = jax.random.PRNGKey(0)
    kx, kp, kd = jax.random.split(key, 3)
    params = init_params(kp, num_classes=4)
    prep = prepare_params(params, num_classes=4)   # one-time weight repack
    x = jax.random.normal(kx, (2, 3, 27, 27), jnp.float32)   # NCHW input

    fwd = jax.jit(functools.partial(sccnn_forward, dropout_p=0.2, num_classes=4))
    out = fwd(prep, x, kd)
    jax.block_until_ready(out)
    assert out.shape == (2, 4), out.shape
    assert bool(jnp.all(jnp.isfinite(out)))
    print("KERNEL_OK")
</pallas_src>

<mosaic_0001>
module attributes {stable_mosaic.version = 11 : i64} {
  func.func @_sccnn_kernel(%arg0: i32, %arg1: memref<1x768x48xbf16, #tpu.memory_space<vmem>>, %arg2: memref<48x128xbf16, #tpu.memory_space<vmem>>, %arg3: memref<1x128xf32, #tpu.memory_space<vmem>>, %arg4: memref<9x36x48xbf16, #tpu.memory_space<vmem>>, %arg5: memref<1x48xf32, #tpu.memory_space<vmem>>, %arg6: memref<25x48x512xbf16, #tpu.memory_space<vmem>>, %arg7: memref<1x512xf32, #tpu.memory_space<vmem>>, %arg8: memref<1x1x512xbf16, #tpu.memory_space<vmem>>, %arg9: memref<512x512xbf16, #tpu.memory_space<vmem>>, %arg10: memref<1x512xf32, #tpu.memory_space<vmem>>, %arg11: memref<1x1x512xbf16, #tpu.memory_space<vmem>>, %arg12: memref<512x128xbf16, #tpu.memory_space<vmem>>, %arg13: memref<1x128xf32, #tpu.memory_space<vmem>>, %arg14: memref<1x1x128xf32, #tpu.memory_space<vmem>>, %arg15: memref<1x12x24x36xbf16, #tpu.memory_space<vmem>>, %arg16: memref<1x10x16x48xbf16, #tpu.memory_space<vmem>>) attributes {dimension_semantics = [#tpu.dimension_semantics<parallel>], iteration_bounds = array<i64: 2>, scalar_prefetch = 0 : i64, scratch_operands = 2 : i64, tpu.core_type = #tpu.core_type<tc>, window_params = [{transform_indices = @transform_0, window_bounds = array<i64: 1, 768, 48>}, {pipeline_mode = #tpu.pipeline_mode<synchronous>, transform_indices = @transform_1, window_bounds = array<i64: 48, 128>}, {pipeline_mode = #tpu.pipeline_mode<synchronous>, transform_indices = @transform_2, window_bounds = array<i64: 1, 128>}, {pipeline_mode = #tpu.pipeline_mode<synchronous>, transform_indices = @transform_3, window_bounds = array<i64: 9, 36, 48>}, {pipeline_mode = #tpu.pipeline_mode<synchronous>, transform_indices = @transform_4, window_bounds = array<i64: 1, 48>}, {pipeline_mode = #tpu.pipeline_mode<synchronous>, transform_indices = @transform_5, window_bounds = array<i64: 25, 48, 512>}, {pipeline_mode = #tpu.pipeline_mode<synchronous>, transform_indices = @transform_6, window_bounds = array<i64: 1, 512>}, {transform_indices = @transform_7, window_bounds = array<i64: 1, 1, 512>}, {pipeline_mode = #tpu.pipeline_mode<synchronous>, transform_indices = @transform_8, window_bounds = array<i64: 512, 512>}, {pipeline_mode = #tpu.pipeline_mode<synchronous>, transform_indices = @transform_9, window_bounds = array<i64: 1, 512>}, {transform_indices = @transform_10, window_bounds = array<i64: 1, 1, 512>}, {pipeline_mode = #tpu.pipeline_mode<synchronous>, transform_indices = @transform_11, window_bounds = array<i64: 512, 128>}, {pipeline_mode = #tpu.pipeline_mode<synchronous>, transform_indices = @transform_12, window_bounds = array<i64: 1, 128>}, {transform_indices = @transform_13, window_bounds = array<i64: 1, 1, 128>}]} {
    %c0 = arith.constant 0 : index
    %c0_0 = arith.constant 0 : index
    %c0_1 = arith.constant 0 : index
    %0 = vector.load %arg1[%c0, %c0_0, %c0_1] : memref<1x768x48xbf16, #tpu.memory_space<vmem>>, vector<1x768x48xbf16>
    %1 = vector.shape_cast %0 : vector<1x768x48xbf16> to vector<768x48xbf16>
    %c0_2 = arith.constant 0 : index
    %c0_3 = arith.constant 0 : index
    %2 = vector.load %arg2[%c0_2, %c0_3] : memref<48x128xbf16, #tpu.memory_space<vmem>>, vector<48x128xbf16>
    %cst = arith.constant dense<0.000000e+00> : vector<768x128xf32>
    %3 = tpu.matmul %1, %2, %cst {dimension_numbers = #tpu.dot_dimension_numbers<[1], [0], [0], [1], [0, 0, 1, 1], [], []>} : vector<768x48xbf16>, vector<48x128xbf16>, vector<768x128xf32> -> vector<768x128xf32>
    %4 = vector.shape_cast %3 : vector<768x128xf32> to vector<1x4x192x128xf32>
    %5 = vector.extract_strided_slice %4 {offsets = [0, 0, 0, 0], sizes = [1, 1, 192, 128], strides = [1, 1, 1, 1]} : vector<1x4x192x128xf32> to vector<1x1x192x128xf32>
    %6 = vector.shape_cast %5 : vector<1x1x192x128xf32> to vector<1x192x128xf32>
    %7 = vector.extract_strided_slice %4 {offsets = [0, 1, 0, 0], sizes = [1, 1, 192, 128], strides = [1, 1, 1, 1]} : vector<1x4x192x128xf32> to vector<1x1x192x128xf32>
    %8 = vector.shape_cast %7 : vector<1x1x192x128xf32> to vector<1x192x128xf32>
    %9 = arith.maximumf %6, %8 : vector<1x192x128xf32>
    %10 = vector.extract_strided_slice %4 {offsets = [0, 2, 0, 0], sizes = [1, 1, 192, 128], strides = [1, 1, 1, 1]} : vector<1x4x192x128xf32> to vector<1x1x192x128xf32>
    %11 = vector.shape_cast %10 : vector<1x1x192x128xf32> to vector<1x192x128xf32>
    %12 = vector.extract_strided_slice %4 {offsets = [0, 3, 0, 0], sizes = [1, 1, 192, 128], strides = [1, 1, 1, 1]} : vector<1x4x192x128xf32> to vector<1x1x192x128xf32>
    %13 = vector.shape_cast %12 : vector<1x1x192x128xf32> to vector<1x192x128xf32>
    %14 = arith.maximumf %11, %13 : vector<1x192x128xf32>
    %15 = arith.maximumf %9, %14 : vector<1x192x128xf32>
    %c0_4 = arith.constant 0 : index
    %c0_5 = arith.constant 0 : index
    %16 = vector.load %arg3[%c0_4, %c0_5] : memref<1x128xf32, #tpu.memory_space<vmem>>, vector<1x128xf32>
    %17 = vector.shape_cast %16 : vector<1x128xf32> to vector<1x1x128xf32>
    %18 = vector.broadcast %17 : vector<1x1x128xf32> to vector<1x192x128xf32>
    %19 = arith.addf %15, %18 : vector<1x192x128xf32>
    %cst_6 = arith.constant 0.000000e+00 : f32
    %20 = vector.broadcast %cst_6 : f32 to vector<1x192x128xf32>
    %21 = arith.maximumf %19, %20 : vector<1x192x128xf32>
    %22 = vector.shape_cast %21 : vector<1x192x128xf32> to vector<1x12x16x128xf32>
    %23 = vector.extract_strided_slice %22 {offsets = [0, 0, 0, 0], sizes = [1, 12, 16, 36], strides = [1, 1, 1, 1]} : vector<1x12x16x128xf32> to vector<1x12x16x36xf32>
    %24 = arith.truncf %23 : vector<1x12x16x36xf32> to vector<1x12x16x36xbf16>
    %c0_7 = arith.constant 0 : index
    %c0_8 = arith.constant 0 : index
    %c0_9 = arith.constant 0 : index
    %c0_10 = arith.constant 0 : index
    %25 = vector.load %arg15[%c0_7, %c0_8, %c0_9, %c0_10] : memref<1x12x24x36xbf16, #tpu.memory_space<vmem>>, vector<1x12x16x36xbf16>
    tpu.vector_store %arg15[%c0_7, %c0_8, %c0_9, %c0_10], %24 {strides = array<i32>} : memref<1x12x24x36xbf16, #tpu.memory_space<vmem>>, vector<1x12x16x36xbf16>,
    %cst_11 = arith.constant 0.000000e+00 : bf16
    %26 = vector.broadcast %cst_11 : bf16 to vector<1x12x8x36xbf16>
    %c0_12 = arith.constant 0 : index
    %c0_13 = arith.constant 0 : index
    %c16 = arith.constant 16 : index
    %c0_14 = arith.constant 0 : index
    %27 = vector.load %arg15[%c0_12, %c0_13, %c16, %c0_14] : memref<1x12x24x36xbf16, #tpu.memory_space<vmem>>, vector<1x12x8x36xbf16>
    tpu.vector_store %arg15[%c0_12, %c0_13, %c16, %c0_14], %26 {strides = array<i32>} : memref<1x12x24x36xbf16, #tpu.memory_space<vmem>>, vector<1x12x8x36xbf16>,
    %cst_15 = arith.constant 0.000000e+00 : f32
    %28 = vector.broadcast %cst_15 : f32 to vector<160x48xf32>
    %c0_16 = arith.constant 0 : index
    %c0_17 = arith.constant 0 : index
    %c0_18 = arith.constant 0 : index
    %c0_19 = arith.constant 0 : index
    %29 = vector.load %arg15[%c0_16, %c0_17, %c0_18, %c0_19] : memref<1x12x24x36xbf16, #tpu.memory_space<vmem>>, vector<1x10x16x36xbf16>
    %30 = vector.shape_cast %29 : vector<1x10x16x36xbf16> to vector<160x36xbf16>
    %c0_20 = arith.constant 0 : index
    %c0_21 = arith.constant 0 : index
    %c0_22 = arith.constant 0 : index
    %31 = vector.load %arg4[%c0_20, %c0_21, %c0_22] : memref<9x36x48xbf16, #tpu.memory_space<vmem>>, vector<1x36x48xbf16>
    %32 = vector.shape_cast %31 : vector<1x36x48xbf16> to vector<36x48xbf16>
    %cst_23 = arith.constant dense<0.000000e+00> : vector<160x48xf32>
    %33 = tpu.matmul %30, %32, %cst_23 {dimension_numbers = #tpu.dot_dimension_numbers<[1], [0], [0], [1], [0, 0, 1, 1], [], []>} : vector<160x36xbf16>, vector<36x48xbf16>, vector<160x48xf32> -> vector<160x48xf32>
    %34 = arith.addf %28, %33 : vector<160x48xf32>
    %c0_24 = arith.constant 0 : index
    %c0_25 = arith.constant 0 : index
    %c1 = arith.constant 1 : index
    %c0_26 = arith.constant 0 : index
    %35 = vector.load %arg15[%c0_24, %c0_25, %c1, %c0_26] : memref<1x12x24x36xbf16, #tpu.memory_space<vmem>>, vector<1x10x16x36xbf16>
    %36 = vector.shape_cast %35 : vector<1x10x16x36xbf16> to vector<160x36xbf16>
    %c1_27 = arith.constant 1 : index
    %c0_28 = arith.constant 0 : index
    %c0_29 = arith.constant 0 : index
    %37 = vector.load %arg4[%c1_27, %c0_28, %c0_29] : memref<9x36x48xbf16, #tpu.memory_space<vmem>>, vector<1x36x48xbf16>
    %38 = vector.shape_cast %37 : vector<1x36x48xbf16> to vector<36x48xbf16>
    %cst_30 = arith.constant dense<0.000000e+00> : vector<160x48xf32>
    %39 = tpu.matmul %36, %38, %cst_30 {dimension_numbers = #tpu.dot_dimension_numbers<[1], [0], [0], [1], [0, 0, 1, 1], [], []>} : vector<160x36xbf16>, vector<36x48xbf16>, vector<160x48xf32> -> vector<160x48xf32>
    %40 = arith.addf %34, %39 : vector<160x48xf32>
    %c0_31 = arith.constant 0 : index
    %c0_32 = arith.constant 0 : index
    %c2 = arith.constant 2 : index
    %c0_33 = arith.constant 0 : index
    %41 = vector.load %arg15[%c0_31, %c0_32, %c2, %c0_33] : memref<1x12x24x36xbf16, #tpu.memory_space<vmem>>, vector<1x10x16x36xbf16>
    %42 = vector.shape_cast %41 : vector<1x10x16x36xbf16> to vector<160x36xbf16>
    %c2_34 = arith.constant 2 : index
    %c0_35 = arith.constant 0 : index
    %c0_36 = arith.constant 0 : index
    %43 = vector.load %arg4[%c2_34, %c0_35, %c0_36] : memref<9x36x48xbf16, #tpu.memory_space<vmem>>, vector<1x36x48xbf16>
    %44 = vector.shape_cast %43 : vector<1x36x48xbf16> to vector<36x48xbf16>
    %cst_37 = arith.constant dense<0.000000e+00> : vector<160x48xf32>
    %45 = tpu.matmul %42, %44, %cst_37 {dimension_numbers = #tpu.dot_dimension_numbers<[1], [0], [0], [1], [0, 0, 1, 1], [], []>} : vector<160x36xbf16>, vector<36x48xbf16>, vector<160x48xf32> -> vector<160x48xf32>
    %46 = arith.addf %40, %45 : vector<160x48xf32>
    %c0_38 = arith.constant 0 : index
    %c1_39 = arith.constant 1 : index
    %c0_40 = arith.constant 0 : index
    %c0_41 = arith.constant 0 : index
    %47 = vector.load %arg15[%c0_38, %c1_39, %c0_40, %c0_41] : memref<1x12x24x36xbf16, #tpu.memory_space<vmem>>, vector<1x10x16x36xbf16>
    %48 = vector.shape_cast %47 : vector<1x10x16x36xbf16> to vector<160x36xbf16>
    %c3 = arith.constant 3 : index
    %c0_42 = arith.constant 0 : index
    %c0_43 = arith.constant 0 : index
    %49 = vector.load %arg4[%c3, %c0_42, %c0_43] : memref<9x36x48xbf16, #tpu.memory_space<vmem>>, vector<1x36x48xbf16>
    %50 = vector.shape_cast %49 : vector<1x36x48xbf16> to vector<36x48xbf16>
    %cst_44 = arith.constant dense<0.000000e+00> : vector<160x48xf32>
    %51 = tpu.matmul %48, %50, %cst_44 {dimension_numbers = #tpu.dot_dimension_numbers<[1], [0], [0], [1], [0, 0, 1, 1], [], []>} : vector<160x36xbf16>, vector<36x48xbf16>, vector<160x48xf32> -> vector<160x48xf32>
    %52 = arith.addf %46, %51 : vector<160x48xf32>
    %c0_45 = arith.constant 0 : index
    %c1_46 = arith.constant 1 : index
    %c1_47 = arith.constant 1 : index
    %c0_48 = arith.constant 0 : index
    %53 = vector.load %arg15[%c0_45, %c1_46, %c1_47, %c0_48] : memref<1x12x24x36xbf16, #tpu.memory_space<vmem>>, vector<1x10x16x36xbf16>
    %54 = vector.shape_cast %53 : vector<1x10x16x36xbf16> to vector<160x36xbf16>
    %c4 = arith.constant 4 : index
    %c0_49 = arith.constant 0 : index
    %c0_50 = arith.constant 0 : index
    %55 = vector.load %arg4[%c4, %c0_49, %c0_50] : memref<9x36x48xbf16, #tpu.memory_space<vmem>>, vector<1x36x48xbf16>
    %56 = vector.shape_cast %55 : vector<1x36x48xbf16> to vector<36x48xbf16>
    %cst_51 = arith.constant dense<0.000000e+00> : vector<160x48xf32>
    %57 = tpu.matmul %54, %56, %cst_51 {dimension_numbers = #tpu.dot_dimension_numbers<[1], [0], [0], [1], [0, 0, 1, 1], [], []>} : vector<160x36xbf16>, vector<36x48xbf16>, vector<160x48xf32> -> vector<160x48xf32>
    %58 = arith.addf %52, %57 : vector<160x48xf32>
    %c0_52 = arith.constant 0 : index
    %c1_53 = arith.constant 1 : index
    %c2_54 = arith.constant 2 : index
    %c0_55 = arith.constant 0 : index
    %59 = vector.load %arg15[%c0_52, %c1_53, %c2_54, %c0_55] : memref<1x12x24x36xbf16, #tpu.memory_space<vmem>>, vector<1x10x16x36xbf16>
    %60 = vector.shape_cast %59 : vector<1x10x16x36xbf16> to vector<160x36xbf16>
    %c5 = arith.constant 5 : index
    %c0_56 = arith.constant 0 : index
    %c0_57 = arith.constant 0 : index
    %61 = vector.load %arg4[%c5, %c0_56, %c0_57] : memref<9x36x48xbf16, #tpu.memory_space<vmem>>, vector<1x36x48xbf16>
    %62 = vector.shape_cast %61 : vector<1x36x48xbf16> to vector<36x48xbf16>
    %cst_58 = arith.constant dense<0.000000e+00> : vector<160x48xf32>
    %63 = tpu.matmul %60, %62, %cst_58 {dimension_numbers = #tpu.dot_dimension_numbers<[1], [0], [0], [1], [0, 0, 1, 1], [], []>} : vector<160x36xbf16>, vector<36x48xbf16>, vector<160x48xf32> -> vector<160x48xf32>
    %64 = arith.addf %58, %63 : vector<160x48xf32>
    %c0_59 = arith.constant 0 : index
    %c2_60 = arith.constant 2 : index
    %c0_61 = arith.constant 0 : index
    %c0_62 = arith.constant 0 : index
    %65 = vector.load %arg15[%c0_59, %c2_60, %c0_61, %c0_62] : memref<1x12x24x36xbf16, #tpu.memory_space<vmem>>, vector<1x10x16x36xbf16>
    %66 = vector.shape_cast %65 : vector<1x10x16x36xbf16> to vector<160x36xbf16>
    %c6 = arith.constant 6 : index
    %c0_63 = arith.constant 0 : index
    %c0_64 = arith.constant 0 : index
    %67 = vector.load %arg4[%c6, %c0_63, %c0_64] : memref<9x36x48xbf16, #tpu.memory_space<vmem>>, vector<1x36x48xbf16>
    %68 = vector.shape_cast %67 : vector<1x36x48xbf16> to vector<36x48xbf16>
    %cst_65 = arith.constant dense<0.000000e+00> : vector<160x48xf32>
    %69 = tpu.matmul %66, %68, %cst_65 {dimension_numbers = #tpu.dot_dimension_numbers<[1], [0], [0], [1], [0, 0, 1, 1], [], []>} : vector<160x36xbf16>, vector<36x48xbf16>, vector<160x48xf32> -> vector<160x48xf32>
    %70 = arith.addf %64, %69 : vector<160x48xf32>
    %c0_66 = arith.constant 0 : index
    %c2_67 = arith.constant 2 : index
    %c1_68 = arith.constant 1 : index
    %c0_69 = arith.constant 0 : index
    %71 = vector.load %arg15[%c0_66, %c2_67, %c1_68, %c0_69] : memref<1x12x24x36xbf16, #tpu.memory_space<vmem>>, vector<1x10x16x36xbf16>
    %72 = vector.shape_cast %71 : vector<1x10x16x36xbf16> to vector<160x36xbf16>
    %c7 = arith.constant 7 : index
    %c0_70 = arith.constant 0 : index
    %c0_71 = arith.constant 0 : index
    %73 = vector.load %arg4[%c7, %c0_70, %c0_71] : memref<9x36x48xbf16, #tpu.memory_space<vmem>>, vector<1x36x48xbf16>
    %74 = vector.shape_cast %73 : vector<1x36x48xbf16> to vector<36x48xbf16>
    %cst_72 = arith.constant dense<0.000000e+00> : vector<160x48xf32>
    %75 = tpu.matmul %72, %74, %cst_72 {dimension_numbers = #tpu.dot_dimension_numbers<[1], [0], [0], [1], [0, 0, 1, 1], [], []>} : vector<160x36xbf16>, vector<36x48xbf16>, vector<160x48xf32> -> vector<160x48xf32>
    %76 = arith.addf %70, %75 : vector<160x48xf32>
    %c0_73 = arith.constant 0 : index
    %c2_74 = arith.constant 2 : index
    %c2_75 = arith.constant 2 : index
    %c0_76 = arith.constant 0 : index
    %77 = vector.load %arg15[%c0_73, %c2_74, %c2_75, %c0_76] : memref<1x12x24x36xbf16, #tpu.memory_space<vmem>>, vector<1x10x16x36xbf16>
    %78 = vector.shape_cast %77 : vector<1x10x16x36xbf16> to vector<160x36xbf16>
    %c8 = arith.constant 8 : index
    %c0_77 = arith.constant 0 : index
    %c0_78 = arith.constant 0 : index
    %79 = vector.load %arg4[%c8, %c0_77, %c0_78] : memref<9x36x48xbf16, #tpu.memory_space<vmem>>, vector<1x36x48xbf16>
    %80 = vector.shape_cast %79 : vector<1x36x48xbf16> to vector<36x48xbf16>
    %cst_79 = arith.constant dense<0.000000e+00> : vector<160x48xf32>
    %81 = tpu.matmul %78, %80, %cst_79 {dimension_numbers = #tpu.dot_dimension_numbers<[1], [0], [0], [1], [0, 0, 1, 1], [], []>} : vector<160x36xbf16>, vector<36x48xbf16>, vector<160x48xf32> -> vector<160x48xf32>
    %82 = arith.addf %76, %81 : vector<160x48xf32>
    %c0_80 = arith.constant 0 : index
    %c0_81 = arith.constant 0 : index
    %83 = vector.load %arg5[%c0_80, %c0_81] : memref<1x48xf32, #tpu.memory_space<vmem>>, vector<1x48xf32>
    %84 = vector.broadcast %83 : vector<1x48xf32> to vector<160x48xf32>
    %85 = arith.addf %82, %84 : vector<160x48xf32>
    %cst_82 = arith.constant 0.000000e+00 : f32
    %86 = vector.broadcast %cst_82 : f32 to vector<160x48xf32>
    %87 = arith.maximumf %85, %86 : vector<160x48xf32>
    %88 = vector.shape_cast %87 : vector<160x48xf32> to vector<1x10x16x48xf32>
    %89 = arith.truncf %88 : vector<1x10x16x48xf32> to vector<1x10x16x48xbf16>
    %c0_83 = arith.constant 0 : index
    %c0_84 = arith.constant 0 : index
    %c0_85 = arith.constant 0 : index
    %c0_86 = arith.constant 0 : index
    %90 = vector.load %arg16[%c0_83, %c0_84, %c0_85, %c0_86] : memref<1x10x16x48xbf16, #tpu.memory_space<vmem>>, vector<1x10x16x48xbf16>
    tpu.vector_store %arg16[%c0_83, %c0_84, %c0_85, %c0_86], %89 {strides = array<i32>} : memref<1x10x16x48xbf16, #tpu.memory_space<vmem>>, vector<1x10x16x48xbf16>,
    %cst_87 = arith.constant 0.000000e+00 : f32
    %91 = vector.broadcast %cst_87 : f32 to vector<1x512xf32>
    %c0_88 = arith.constant 0 : index
    %c0_89 = arith.constant 0 : index
    %c0_90 = arith.constant 0 : index
    %c0_91 = arith.constant 0 : index
    %92 = vector.load %arg16[%c0_88, %c0_89, %c0_90, %c0_91] : memref<1x10x16x48xbf16, #tpu.memory_space<vmem>>, vector<1x1x1x48xbf16>
    %93 = vector.shape_cast %92 : vector<1x1x1x48xbf16> to vector<1x48xbf16>
    %c0_92 = arith.constant 0 : index
    %c0_93 = arith.constant 0 : index
    %c1_94 = arith.constant 1 : index
    %c0_95 = arith.constant 0 : index
    %94 = vector.load %arg16[%c0_92, %c0_93, %c1_94, %c0_95] : memref<1x10x16x48xbf16, #tpu.memory_space<vmem>>, vector<1x1x1x48xbf16>
    %95 = vector.shape_cast %94 : vector<1x1x1x48xbf16> to vector<1x48xbf16>
    %c0_96 = arith.constant 0 : index
    %c1_97 = arith.constant 1 : index
    %c0_98 = arith.constant 0 : index
    %c0_99 = arith.constant 0 : index
    %96 = vector.load %arg16[%c0_96, %c1_97, %c0_98, %c0_99] : memref<1x10x16x48xbf16, #tpu.memory_space<vmem>>, vector<1x1x1x48xbf16>
    %97 = vector.shape_cast %96 : vector<1x1x1x48xbf16> to vector<1x48xbf16>
    %c0_100 = arith.constant 0 : index
    %c1_101 = arith.constant 1 : index
    %c1_102 = arith.constant 1 : index
    %c0_103 = arith.constant 0 : index
    %98 = vector.load %arg16[%c0_100, %c1_101, %c1_102, %c0_103] : memref<1x10x16x48xbf16, #tpu.memory_space<vmem>>, vector<1x1x1x48xbf16>
    %99 = vector.shape_cast %98 : vector<1x1x1x48xbf16> to vector<1x48xbf16>
    %100 = arith.maximumf %93, %95 : vector<1x48xbf16>
    %101 = arith.maximumf %97, %99 : vector<1x48xbf16>
    %102 = arith.maximumf %100, %101 : vector<1x48xbf16>
    %c0_104 = arith.constant 0 : index
    %c0_105 = arith.constant 0 : index
    %c0_106 = arith.constant 0 : index
    %103 = vector.load %arg6[%c0_104, %c0_105, %c0_106] : memref<25x48x512xbf16, #tpu.memory_space<vmem>>, vector<1x48x512xbf16>
    %104 = vector.shape_cast %103 : vector<1x48x512xbf16> to vector<48x512xbf16>
    %cst_107 = arith.constant dense<0.000000e+00> : vector<1x512xf32>
    %105 = tpu.matmul %102, %104, %cst_107 {dimension_numbers = #tpu.dot_dimension_numbers<[1], [0], [0], [1], [0, 0, 1, 1], [], []>} : vector<1x48xbf16>, vector<48x512xbf16>, vector<1x512xf32> -> vector<1x512xf32>
    %106 = arith.addf %91, %105 : vector<1x512xf32>
    %c0_108 = arith.constant 0 : index
    %c0_109 = arith.constant 0 : index
    %c2_110 = arith.constant 2 : index
    %c0_111 = arith.constant 0 : index
    %107 = vector.load %arg16[%c0_108, %c0_109, %c2_110, %c0_111] : memref<1x10x16x48xbf16, #tpu.memory_space<vmem>>, vector<1x1x1x48xbf16>
    %108 = vector.shape_cast %107 : vector<1x1x1x48xbf16> to vector<1x48xbf16>
    %c0_112 = arith.constant 0 : index
    %c0_113 = arith.constant 0 : index
    %c3_114 = arith.constant 3 : index
    %c0_115 = arith.constant 0 : index
    %109 = vector.load %arg16[%c0_112, %c0_113, %c3_114, %c0_115] : memref<1x10x16x48xbf16, #tpu.memory_space<vmem>>, vector<1x1x1x48xbf16>
    %110 = vector.shape_cast %109 : vector<1x1x1x48xbf16> to vector<1x48xbf16>
    %c0_116 = arith.constant 0 : index
    %c1_117 = arith.constant 1 : index
    %c2_118 = arith.constant 2 : index
    %c0_119 = arith.constant 0 : index
    %111 = vector.load %arg16[%c0_116, %c1_117, %c2_118, %c0_119] : memref<1x10x16x48xbf16, #tpu.memory_space<vmem>>, vector<1x1x1x48xbf16>
    %112 = vector.shape_cast %111 : vector<1x1x1x48xbf16> to vector<1x48xbf16>
    %c0_120 = arith.constant 0 : index
    %c1_121 = arith.constant 1 : index
    %c3_122 = arith.constant 3 : index
    %c0_123 = arith.constant 0 : index
    %113 = vector.load %arg16[%c0_120, %c1_121, %c3_122, %c0_123] : memref<1x10x16x48xbf16, #tpu.memory_space<vmem>>, vector<1x1x1x48xbf16>
    %114 = vector.shape_cast %113 : vector<1x1x1x48xbf16> to vector<1x48xbf16>
    %115 = arith.maximumf %108, %110 : vector<1x48xbf16>
    %116 = arith.maximumf %112, %114 : vector<1x48xbf16>
    %117 = arith.maximumf %115, %116 : vector<1x48xbf16>
    %c1_124 = arith.constant 1 : index
    %c0_125 = arith.constant 0 : index
    %c0_126 = arith.constant 0 : index
    %118 = vector.load %arg6[%c1_124, %c0_125, %c0_126] : memref<25x48x512xbf16, #tpu.memory_space<vmem>>, vector<1x48x512xbf16>
    %119 = vector.shape_cast %118 : vector<1x48x512xbf16> to vector<48x512xbf16>
    %cst_127 = arith.constant dense<0.000000e+00> : vector<1x512xf32>
    %120 = tpu.matmul %117, %119, %cst_127 {dimension_numbers = #tpu.dot_dimension_numbers<[1], [0], [0], [1], [0, 0, 1, 1], [], []>} : vector<1x48xbf16>, vector<48x512xbf16>, vector<1x512xf32> -> vector<1x512xf32>
    %121 = arith.addf %106, %120 : vector<1x512xf32>
    %c0_128 = arith.constant 0 : index
    %c0_129 = arith.constant 0 : index
    %c4_130 = arith.constant 4 : index
    %c0_131 = arith.constant 0 : index
    %122 = vector.load %arg16[%c0_128, %c0_129, %c4_130, %c0_131] : memref<1x10x16x48xbf16, #tpu.memory_space<vmem>>, vector<1x1x1x48xbf16>
    %123 = vector.shape_cast %122 : vector<1x1x1x48xbf16> to vector<1x48xbf16>
    %c0_132 = arith.constant 0 : index
    %c0_133 = arith.constant 0 : index
    %c5_134 = arith.constant 5 : index
    %c0_135 = arith.constant 0 : index
    %124 = vector.load %arg16[%c0_132, %c0_133, %c5_134, %c0_135] : memref<1x10x16x48xbf16, #tpu.memory_space<vmem>>, vector<1x1x1x48xbf16>
    %125 = vector.shape_cast %124 : vector<1x1x1x48xbf16> to vector<1x48xbf16>
    %c0_136 = arith.constant 0 : index
    %c1_137 = arith.constant 1 : index
    %c4_138 = arith.constant 4 : index
    %c0_139 = arith.constant 0 : index
    %126 = vector.load %arg16[%c0_136, %c1_137, %c4_138, %c0_139] : memref<1x10x16x48xbf16, #tpu.memory_space<vmem>>, vector<1x1x1x48xbf16>
    %127 = vector.shape_cast %126 : vector<1x1x1x48xbf16> to vector<1x48xbf16>
    %c0_140 = arith.constant 0 : index
    %c1_141 = arith.constant 1 : index
    %c5_142 = arith.constant 5 : index
    %c0_143 = arith.constant 0 : index
    %128 = vector.load %arg16[%c0_140, %c1_141, %c5_142, %c0_143] : memref<1x10x16x48xbf16, #tpu.memory_space<vmem>>, vector<1x1x1x48xbf16>
    %129 = vector.shape_cast %128 : vector<1x1x1x48xbf16> to vector<1x48xbf16>
    %130 = arith.maximumf %123, %125 : vector<1x48xbf16>
    %131 = arith.maximumf %127, %129 : vector<1x48xbf16>
    %132 = arith.maximumf %130, %131 : vector<1x48xbf16>
    %c2_144 = arith.constant 2 : index
    %c0_145 = arith.constant 0 : index
    %c0_146 = arith.constant 0 : index
    %133 = vector.load %arg6[%c2_144, %c0_145, %c0_146] : memref<25x48x512xbf16, #tpu.memory_space<vmem>>, vector<1x48x512xbf16>
    %134 = vector.shape_cast %133 : vector<1x48x512xbf16> to vector<48x512xbf16>
    %cst_147 = arith.constant dense<0.000000e+00> : vector<1x512xf32>
    %135 = tpu.matmul %132, %134, %cst_147 {dimension_numbers = #tpu.dot_dimension_numbers<[1], [0], [0], [1], [0, 0, 1, 1], [], []>} : vector<1x48xbf16>, vector<48x512xbf16>, vector<1x512xf32> -> vector<1x512xf32>
    %136 = arith.addf %121, %135 : vector<1x512xf32>
    %c0_148 = arith.constant 0 : index
    %c0_149 = arith.constant 0 : index
    %c6_150 = arith.constant 6 : index
    %c0_151 = arith.constant 0 : index
    %137 = vector.load %arg16[%c0_148, %c0_149, %c6_150, %c0_151] : memref<1x10x16x48xbf16, #tpu.memory_space<vmem>>, vector<1x1x1x48xbf16>
    %138 = vector.shape_cast %137 : vector<1x1x1x48xbf16> to vector<1x48xbf16>
    %c0_152 = arith.constant 0 : index
    %c0_153 = arith.constant 0 : index
    %c7_154 = arith.constant 7 : index
    %c0_155 = arith.constant 0 : index
    %139 = vector.load %arg16[%c0_152, %c0_153, %c7_154, %c0_155] : memref<1x10x16x48xbf16, #tpu.memory_space<vmem>>, vector<1x1x1x48xbf16>
    %140 = vector.shape_cast %139 : vector<1x1x1x48xbf16> to vector<1x48xbf16>
    %c0_156 = arith.constant 0 : index
    %c1_157 = arith.constant 1 : index
    %c6_158 = arith.constant 6 : index
    %c0_159 = arith.constant 0 : index
    %141 = vector.load %arg16[%c0_156, %c1_157, %c6_158, %c0_159] : memref<1x10x16x48xbf16, #tpu.memory_space<vmem>>, vector<1x1x1x48xbf16>
    %142 = vector.shape_cast %141 : vector<1x1x1x48xbf16> to vector<1x48xbf16>
    %c0_160 = arith.constant 0 : index
    %c1_161 = arith.constant 1 : index
    %c7_162 = arith.constant 7 : index
    %c0_163 = arith.constant 0 : index
    %143 = vector.load %arg16[%c0_160, %c1_161, %c7_162, %c0_163] : memref<1x10x16x48xbf16, #tpu.memory_space<vmem>>, vector<1x1x1x48xbf16>
    %144 = vector.shape_cast %143 : vector<1x1x1x48xbf16> to vector<1x48xbf16>
    %145 = arith.maximumf %138, %140 : vector<1x48xbf16>
    %146 = arith.maximumf %142, %144 : vector<1x48xbf16>
    %147 = arith.maximumf %145, %146 : vector<1x48xbf16>
    %c3_164 = arith.constant 3 : index
    %c0_165 = arith.constant 0 : index
    %c0_166 = arith.constant 0 : index
    %148 = vector.load %arg6[%c3_164, %c0_165, %c0_166] : memref<25x48x512xbf16, #tpu.memory_space<vmem>>, vector<1x48x512xbf16>
    %149 = vector.shape_cast %148 : vector<1x48x512xbf16> to vector<48x512xbf16>
    %cst_167 = arith.constant dense<0.000000e+00> : vector<1x512xf32>
    %150 = tpu.matmul %147, %149, %cst_167 {dimension_numbers = #tpu.dot_dimension_numbers<[1], [0], [0], [1], [0, 0, 1, 1], [], []>} : vector<1x48xbf16>, vector<48x512xbf16>, vector<1x512xf32> -> vector<1x512xf32>
    %151 = arith.addf %136, %150 : vector<1x512xf32>
    %c0_168 = arith.constant 0 : index
    %c0_169 = arith.constant 0 : index
    %c8_170 = arith.constant 8 : index
    %c0_171 = arith.constant 0 : index
    %152 = vector.load %arg16[%c0_168, %c0_169, %c8_170, %c0_171] : memref<1x10x16x48xbf16, #tpu.memory_space<vmem>>, vector<1x1x1x48xbf16>
    %153 = vector.shape_cast %152 : vector<1x1x1x48xbf16> to vector<1x48xbf16>
    %c0_172 = arith.constant 0 : index
    %c0_173 = arith.constant 0 : index
    %c9 = arith.constant 9 : index
    %c0_174 = arith.constant 0 : index
    %154 = vector.load %arg16[%c0_172, %c0_173, %c9, %c0_174] : memref<1x10x16x48xbf16, #tpu.memory_space<vmem>>, vector<1x1x1x48xbf16>
    %155 = vector.shape_cast %154 : vector<1x1x1x48xbf16> to vector<1x48xbf16>
    %c0_175 = arith.constant 0 : index
    %c1_176 = arith.constant 1 : index
    %c8_177 = arith.constant 8 : index
    %c0_178 = arith.constant 0 : index
    %156 = vector.load %arg16[%c0_175, %c1_176, %c8_177, %c0_178] : memref<1x10x16x48xbf16, #tpu.memory_space<vmem>>, vector<1x1x1x48xbf16>
    %157 = vector.shape_cast %156 : vector<1x1x1x48xbf16> to vector<1x48xbf16>
    %c0_179 = arith.constant 0 : index
    %c1_180 = arith.constant 1 : index
    %c9_181 = arith.constant 9 : index
    %c0_182 = arith.constant 0 : index
    %158 = vector.load %arg16[%c0_179, %c1_180, %c9_181, %c0_182] : memref<1x10x16x48xbf16, #tpu.memory_space<vmem>>, vector<1x1x1x48xbf16>
    %159 = vector.shape_cast %158 : vector<1x1x1x48xbf16> to vector<1x48xbf16>
    %160 = arith.maximumf %153, %155 : vector<1x48xbf16>
    %161 = arith.maximumf %157, %159 : vector<1x48xbf16>
    %162 = arith.maximumf %160, %161 : vector<1x48xbf16>
    %c4_183 = arith.constant 4 : index
    %c0_184 = arith.constant 0 : index
    %c0_185 = arith.constant 0 : index
    %163 = vector.load %arg6[%c4_183, %c0_184, %c0_185] : memref<25x48x512xbf16, #tpu.memory_space<vmem>>, vector<1x48x512xbf16>
    %164 = vector.shape_cast %163 : vector<1x48x512xbf16> to vector<48x512xbf16>
    %cst_186 = arith.constant dense<0.000000e+00> : vector<1x512xf32>
    %165 = tpu.matmul %162, %164, %cst_186 {dimension_numbers = #tpu.dot_dimension_numbers<[1], [0], [0], [1], [0, 0, 1, 1], [], []>} : vector<1x48xbf16>, vector<48x512xbf16>, vector<1x512xf32> -> vector<1x512xf32>
    %166 = arith.addf %151, %165 : vector<1x512xf32>
    %c0_187 = arith.constant 0 : index
    %c2_188 = arith.constant 2 : index
    %c0_189 = arith.constant 0 : index
    %c0_190 = arith.constant 0 : index
    %167 = vector.load %arg16[%c0_187, %c2_188, %c0_189, %c0_190] : memref<1x10x16x48xbf16, #tpu.memory_space<vmem>>, vector<1x1x1x48xbf16>
    %168 = vector.shape_cast %167 : vector<1x1x1x48xbf16> to vector<1x48xbf16>
    %c0_191 = arith.constant 0 : index
    %c2_192 = arith.constant 2 : index
    %c1_193 = arith.constant 1 : index
    %c0_194 = arith.constant 0 : index
    %169 = vector.load %arg16[%c0_191, %c2_192, %c1_193, %c0_194] : memref<1x10x16x48xbf16, #tpu.memory_space<vmem>>, vector<1x1x1x48xbf16>
    %170 = vector.shape_cast %169 : vector<1x1x1x48xbf16> to vector<1x48xbf16>
    %c0_195 = arith.constant 0 : index
    %c3_196 = arith.constant 3 : index
    %c0_197 = arith.constant 0 : index
    %c0_198 = arith.constant 0 : index
    %171 = vector.load %arg16[%c0_195, %c3_196, %c0_197, %c0_198] : memref<1x10x16x48xbf16, #tpu.memory_space<vmem>>, vector<1x1x1x48xbf16>
    %172 = vector.shape_cast %171 : vector<1x1x1x48xbf16> to vector<1x48xbf16>
    %c0_199 = arith.constant 0 : index
    %c3_200 = arith.constant 3 : index
    %c1_201 = arith.constant 1 : index
    %c0_202 = arith.constant 0 : index
    %173 = vector.load %arg16[%c0_199, %c3_200, %c1_201, %c0_202] : memref<1x10x16x48xbf16, #tpu.memory_space<vmem>>, vector<1x1x1x48xbf16>
    %174 = vector.shape_cast %173 : vector<1x1x1x48xbf16> to vector<1x48xbf16>
    %175 = arith.maximumf %168, %170 : vector<1x48xbf16>
    %176 = arith.maximumf %172, %174 : vector<1x48xbf16>
    %177 = arith.maximumf %175, %176 : vector<1x48xbf16>
    %c5_203 = arith.constant 5 : index
    %c0_204 = arith.constant 0 : index
    %c0_205 = arith.constant 0 : index
    %178 = vector.load %arg6[%c5_203, %c0_204, %c0_205] : memref<25x48x512xbf16, #tpu.memory_space<vmem>>, vector<1x48x512xbf16>
    %179 = vector.shape_cast %178 : vector<1x48x512xbf16> to vector<48x512xbf16>
    %cst_206 = arith.constant dense<0.000000e+00> : vector<1x512xf32>
    %180 = tpu.matmul %177, %179, %cst_206 {dimension_numbers = #tpu.dot_dimension_numbers<[1], [0], [0], [1], [0, 0, 1, 1], [], []>} : vector<1x48xbf16>, vector<48x512xbf16>, vector<1x512xf32> -> vector<1x512xf32>
    %181 = arith.addf %166, %180 : vector<1x512xf32>
    %c0_207 = arith.constant 0 : index
    %c2_208 = arith.constant 2 : index
    %c2_209 = arith.constant 2 : index
    %c0_210 = arith.constant 0 : index
    %182 = vector.load %arg16[%c0_207, %c2_208, %c2_209, %c0_210] : memref<1x10x16x48xbf16, #tpu.memory_space<vmem>>, vector<1x1x1x48xbf16>
    %183 = vector.shape_cast %182 : vector<1x1x1x48xbf16> to vector<1x48xbf16>
    %c0_211 = arith.constant 0 : index
    %c2_212 = arith.constant 2 : index
    %c3_213 = arith.constant 3 : index
    %c0_214 = arith.constant 0 : index
    %184 = vector.load %arg16[%c0_211, %c2_212, %c3_213, %c0_214] : memref<1x10x16x48xbf16, #tpu.memory_space<vmem>>, vector<1x1x1x48xbf16>
    %185 = vector.shape_cast %184 : vector<1x1x1x48xbf16> to vector<1x48xbf16>
    %c0_215 = arith.constant 0 : index
    %c3_216 = arith.constant 3 : index
    %c2_217 = arith.constant 2 : index
    %c0_218 = arith.constant 0 : index
    %186 = vector.load %arg16[%c0_215, %c3_216, %c2_217, %c0_218] : memref<1x10x16x48xbf16, #tpu.memory_space<vmem>>, vector<1x1x1x48xbf16>
    %187 = vector.shape_cast %186 : vector<1x1x1x48xbf16> to vector<1x48xbf16>
    %c0_219 = arith.constant 0 : index
    %c3_220 = arith.constant 3 : index
    %c3_221 = arith.constant 3 : index
    %c0_222 = arith.constant 0 : index
    %188 = vector.load %arg16[%c0_219, %c3_220, %c3_221, %c0_222] : memref<1x10x16x48xbf16, #tpu.memory_space<vmem>>, vector<1x1x1x48xbf16>
    %189 = vector.shape_cast %188 : vector<1x1x1x48xbf16> to vector<1x48xbf16>
    %190 = arith.maximumf %183, %185 : vector<1x48xbf16>
    %191 = arith.maximumf %187, %189 : vector<1x48xbf16>
    %192 = arith.maximumf %190, %191 : vector<1x48xbf16>
    %c6_223 = arith.constant 6 : index
    %c0_224 = arith.constant 0 : index
    %c0_225 = arith.constant 0 : index
    %193 = vector.load %arg6[%c6_223, %c0_224, %c0_225] : memref<25x48x512xbf16, #tpu.memory_space<vmem>>, vector<1x48x512xbf16>
    %194 = vector.shape_cast %193 : vector<1x48x512xbf16> to vector<48x512xbf16>
    %cst_226 = arith.constant dense<0.000000e+00> : vector<1x512xf32>
    %195 = tpu.matmul %192, %194, %cst_226 {dimension_numbers = #tpu.dot_dimension_numbers<[1], [0], [0], [1], [0, 0, 1, 1], [], []>} : vector<1x48xbf16>, vector<48x512xbf16>, vector<1x512xf32> -> vector<1x512xf32>
    %196 = arith.addf %181, %195 : vector<1x512xf32>
    %c0_227 = arith.constant 0 : index
    %c2_228 = arith.constant 2 : index
    %c4_229 = arith.constant 4 : index
    %c0_230 = arith.constant 0 : index
    %197 = vector.load %arg16[%c0_227, %c2_228, %c4_229, %c0_230] : memref<1x10x16x48xbf16, #tpu.memory_space<vmem>>, vector<1x1x1x48xbf16>
    %198 = vector.shape_cast %197 : vector<1x1x1x48xbf16> to vector<1x48xbf16>
    %c0_231 = arith.constant 0 : index
    %c2_232 = arith.constant 2 : index
    %c5_233 = arith.constant 5 : index
    %c0_234 = arith.constant 0 : index
    %199 = vector.load %arg16[%c0_231, %c2_232, %c5_233, %c0_234] : memref<1x10x16x48xbf16, #tpu.memory_space<vmem>>, vector<1x1x1x48xbf16>
    %200 = vector.shape_cast %199 : vector<1x1x1x48xbf16> to vector<1x48xbf16>
    %c0_235 = arith.constant 0 : index
    %c3_236 = arith.constant 3 : index
    %c4_237 = arith.constant 4 : index
    %c0_238 = arith.constant 0 : index
    %201 = vector.load %arg16[%c0_235, %c3_236, %c4_237, %c0_238] : memref<1x10x16x48xbf16, #tpu.memory_space<vmem>>, vector<1x1x1x48xbf16>
    %202 = vector.shape_cast %201 : vector<1x1x1x48xbf16> to vector<1x48xbf16>
    %c0_239 = arith.constant 0 : index
    %c3_240 = arith.constant 3 : index
    %c5_241 = arith.constant 5 : index
    %c0_242 = arith.constant 0 : index
    %203 = vector.load %arg16[%c0_239, %c3_240, %c5_241, %c0_242] : memref<1x10x16x48xbf16, #tpu.memory_space<vmem>>, vector<1x1x1x48xbf16>
    %204 = vector.shape_cast %203 : vector<1x1x1x48xbf16> to vector<1x48xbf16>
    %205 = arith.maximumf %198, %200 : vector<1x48xbf16>
    %206 = arith.maximumf %202, %204 : vector<1x48xbf16>
    %207 = arith.maximumf %205, %206 : vector<1x48xbf16>
    %c7_243 = arith.constant 7 : index
    %c0_244 = arith.constant 0 : index
    %c0_245 = arith.constant 0 : index
    %208 = vector.load %arg6[%c7_243, %c0_244, %c0_245] : memref<25x48x512xbf16, #tpu.memory_space<vmem>>, vector<1x48x512xbf16>
    %209 = vector.shape_cast %208 : vector<1x48x512xbf16> to vector<48x512xbf16>
    %cst_246 = arith.constant dense<0.000000e+00> : vector<1x512xf32>
    %210 = tpu.matmul %207, %209, %cst_246 {dimension_numbers = #tpu.dot_dimension_numbers<[1], [0], [0], [1], [0, 0, 1, 1], [], []>} : vector<1x48xbf16>, vector<48x512xbf16>, vector<1x512xf32> -> vector<1x512xf32>
    %211 = arith.addf %196, %210 : vector<1x512xf32>
    %c0_247 = arith.constant 0 : index
    %c2_248 = arith.constant 2 : index
    %c6_249 = arith.constant 6 : index
    %c0_250 = arith.constant 0 : index
    %212 = vector.load %arg16[%c0_247, %c2_248, %c6_249, %c0_250] : memref<1x10x16x48xbf16, #tpu.memory_space<vmem>>, vector<1x1x1x48xbf16>
    %213 = vector.shape_cast %212 : vector<1x1x1x48xbf16> to vector<1x48xbf16>
    %c0_251 = arith.constant 0 : index
    %c2_252 = arith.constant 2 : index
    %c7_253 = arith.constant 7 : index
    %c0_254 = arith.constant 0 : index
    %214 = vector.load %arg16[%c0_251, %c2_252, %c7_253, %c0_254] : memref<1x10x16x48xbf16, #tpu.memory_space<vmem>>, vector<1x1x1x48xbf16>
    %215 = vector.shape_cast %214 : vector<1x1x1x48xbf16> to vector<1x48xbf16>
    %c0_255 = arith.constant 0 : index
    %c3_256 = arith.constant 3 : index
    %c6_257 = arith.constant 6 : index
    %c0_258 = arith.constant 0 : index
    %216 = vector.load %arg16[%c0_255, %c3_256, %c6_257, %c0_258] : memref<1x10x16x48xbf16, #tpu.memory_space<vmem>>, vector<1x1x1x48xbf16>
    %217 = vector.shape_cast %216 : vector<1x1x1x48xbf16> to vector<1x48xbf16>
    %c0_259 = arith.constant 0 : index
    %c3_260 = arith.constant 3 : index
    %c7_261 = arith.constant 7 : index
    %c0_262 = arith.constant 0 : index
    %218 = vector.load %arg16[%c0_259, %c3_260, %c7_261, %c0_262] : memref<1x10x16x48xbf16, #tpu.memory_space<vmem>>, vector<1x1x1x48xbf16>
    %219 = vector.shape_cast %218 : vector<1x1x1x48xbf16> to vector<1x48xbf16>
    %220 = arith.maximumf %213, %215 : vector<1x48xbf16>
    %221 = arith.maximumf %217, %219 : vector<1x48xbf16>
    %222 = arith.maximumf %220, %221 : vector<1x48xbf16>
    %c8_263 = arith.constant 8 : index
    %c0_264 = arith.constant 0 : index
    %c0_265 = arith.constant 0 : index
    %223 = vector.load %arg6[%c8_263, %c0_264, %c0_265] : memref<25x48x512xbf16, #tpu.memory_space<vmem>>, vector<1x48x512xbf16>
    %224 = vector.shape_cast %223 : vector<1x48x512xbf16> to vector<48x512xbf16>
    %cst_266 = arith.constant dense<0.000000e+00> : vector<1x512xf32>
    %225 = tpu.matmul %222, %224, %cst_266 {dimension_numbers = #tpu.dot_dimension_numbers<[1], [0], [0], [1], [0, 0, 1, 1], [], []>} : vector<1x48xbf16>, vector<48x512xbf16>, vector<1x512xf32> -> vector<1x512xf32>
    %226 = arith.addf %211, %225 : vector<1x512xf32>
    %c0_267 = arith.constant 0 : index
    %c2_268 = arith.constant 2 : index
    %c8_269 = arith.constant 8 : index
    %c0_270 = arith.constant 0 : index
    %227 = vector.load %arg16[%c0_267, %c2_268, %c8_269, %c0_270] : memref<1x10x16x48xbf16, #tpu.memory_space<vmem>>, vector<1x1x1x48xbf16>
    %228 = vector.shape_cast %227 : vector<1x1x1x48xbf16> to vector<1x48xbf16>
    %c0_271 = arith.constant 0 : index
    %c2_272 = arith.constant 2 : index
    %c9_273 = arith.constant 9 : index
    %c0_274 = arith.constant 0 : index
    %229 = vector.load %arg16[%c0_271, %c2_272, %c9_273, %c0_274] : memref<1x10x16x48xbf16, #tpu.memory_space<vmem>>, vector<1x1x1x48xbf16>
    %230 = vector.shape_cast %229 : vector<1x1x1x48xbf16> to vector<1x48xbf16>
    %c0_275 = arith.constant 0 : index
    %c3_276 = arith.constant 3 : index
    %c8_277 = arith.constant 8 : index
    %c0_278 = arith.constant 0 : index
    %231 = vector.load %arg16[%c0_275, %c3_276, %c8_277, %c0_278] : memref<1x10x16x48xbf16, #tpu.memory_space<vmem>>, vector<1x1x1x48xbf16>
    %232 = vector.shape_cast %231 : vector<1x1x1x48xbf16> to vector<1x48xbf16>
    %c0_279 = arith.constant 0 : index
    %c3_280 = arith.constant 3 : index
    %c9_281 = arith.constant 9 : index
    %c0_282 = arith.constant 0 : index
    %233 = vector.load %arg16[%c0_279, %c3_280, %c9_281, %c0_282] : memref<1x10x16x48xbf16, #tpu.memory_space<vmem>>, vector<1x1x1x48xbf16>
    %234 = vector.shape_cast %233 : vector<1x1x1x48xbf16> to vector<1x48xbf16>
    %235 = arith.maximumf %228, %230 : vector<1x48xbf16>
    %236 = arith.maximumf %232, %234 : vector<1x48xbf16>
    %237 = arith.maximumf %235, %236 : vector<1x48xbf16>
    %c9_283 = arith.constant 9 : index
    %c0_284 = arith.constant 0 : index
    %c0_285 = arith.constant 0 : index
    %238 = vector.load %arg6[%c9_283, %c0_284, %c0_285] : memref<25x48x512xbf16, #tpu.memory_space<vmem>>, vector<1x48x512xbf16>
    %239 = vector.shape_cast %238 : vector<1x48x512xbf16> to vector<48x512xbf16>
    %cst_286 = arith.constant dense<0.000000e+00> : vector<1x512xf32>
    %240 = tpu.matmul %237, %239, %cst_286 {dimension_numbers = #tpu.dot_dimension_numbers<[1], [0], [0], [1], [0, 0, 1, 1], [], []>} : vector<1x48xbf16>, vector<48x512xbf16>, vector<1x512xf32> -> vector<1x512xf32>
    %241 = arith.addf %226, %240 : vector<1x512xf32>
    %c0_287 = arith.constant 0 : index
    %c4_288 = arith.constant 4 : index
    %c0_289 = arith.constant 0 : index
    %c0_290 = arith.constant 0 : index
    %242 = vector.load %arg16[%c0_287, %c4_288, %c0_289, %c0_290] : memref<1x10x16x48xbf16, #tpu.memory_space<vmem>>, vector<1x1x1x48xbf16>
    %243 = vector.shape_cast %242 : vector<1x1x1x48xbf16> to vector<1x48xbf16>
    %c0_291 = arith.constant 0 : index
    %c4_292 = arith.constant 4 : index
    %c1_293 = arith.constant 1 : index
    %c0_294 = arith.constant 0 : index
    %244 = vector.load %arg16[%c0_291, %c4_292, %c1_293, %c0_294] : memref<1x10x16x48xbf16, #tpu.memory_space<vmem>>, vector<1x1x1x48xbf16>
    %245 = vector.shape_cast %244 : vector<1x1x1x48xbf16> to vector<1x48xbf16>
    %c0_295 = arith.constant 0 : index
    %c5_296 = arith.constant 5 : index
    %c0_297 = arith.constant 0 : index
    %c0_298 = arith.constant 0 : index
    %246 = vector.load %arg16[%c0_295, %c5_296, %c0_297, %c0_298] : memref<1x10x16x48xbf16, #tpu.memory_space<vmem>>, vector<1x1x1x48xbf16>
    %247 = vector.shape_cast %246 : vector<1x1x1x48xbf16> to vector<1x48xbf16>
    %c0_299 = arith.constant 0 : index
    %c5_300 = arith.constant 5 : index
    %c1_301 = arith.constant 1 : index
    %c0_302 = arith.constant 0 : index
    %248 = vector.load %arg16[%c0_299, %c5_300, %c1_301, %c0_302] : memref<1x10x16x48xbf16, #tpu.memory_space<vmem>>, vector<1x1x1x48xbf16>
    %249 = vector.shape_cast %248 : vector<1x1x1x48xbf16> to vector<1x48xbf16>
    %250 = arith.maximumf %243, %245 : vector<1x48xbf16>
    %251 = arith.maximumf %247, %249 : vector<1x48xbf16>
    %252 = arith.maximumf %250, %251 : vector<1x48xbf16>
    %c10 = arith.constant 10 : index
    %c0_303 = arith.constant 0 : index
    %c0_304 = arith.constant 0 : index
    %253 = vector.load %arg6[%c10, %c0_303, %c0_304] : memref<25x48x512xbf16, #tpu.memory_space<vmem>>, vector<1x48x512xbf16>
    %254 = vector.shape_cast %253 : vector<1x48x512xbf16> to vector<48x512xbf16>
    %cst_305 = arith.constant dense<0.000000e+00> : vector<1x512xf32>
    %255 = tpu.matmul %252, %254, %cst_305 {dimension_numbers = #tpu.dot_dimension_numbers<[1], [0], [0], [1], [0, 0, 1, 1], [], []>} : vector<1x48xbf16>, vector<48x512xbf16>, vector<1x512xf32> -> vector<1x512xf32>
    %256 = arith.addf %241, %255 : vector<1x512xf32>
    %c0_306 = arith.constant 0 : index
    %c4_307 = arith.constant 4 : index
    %c2_308 = arith.constant 2 : index
    %c0_309 = arith.constant 0 : index
    %257 = vector.load %arg16[%c0_306, %c4_307, %c2_308, %c0_309] : memref<1x10x16x48xbf16, #tpu.memory_space<vmem>>, vector<1x1x1x48xbf16>
    %258 = vector.shape_cast %257 : vector<1x1x1x48xbf16> to vector<1x48xbf16>
    %c0_310 = arith.constant 0 : index
    %c4_311 = arith.constant 4 : index
    %c3_312 = arith.constant 3 : index
    %c0_313 = arith.constant 0 : index
    %259 = vector.load %arg16[%c0_310, %c4_311, %c3_312, %c0_313] : memref<1x10x16x48xbf16, #tpu.memory_space<vmem>>, vector<1x1x1x48xbf16>
    %260 = vector.shape_cast %259 : vector<1x1x1x48xbf16> to vector<1x48xbf16>
    %c0_314 = arith.constant 0 : index
    %c5_315 = arith.constant 5 : index
    %c2_316 = arith.constant 2 : index
    %c0_317 = arith.constant 0 : index
    %261 = vector.load %arg16[%c0_314, %c5_315, %c2_316, %c0_317] : memref<1x10x16x48xbf16, #tpu.memory_space<vmem>>, vector<1x1x1x48xbf16>
    %262 = vector.shape_cast %261 : vector<1x1x1x48xbf16> to vector<1x48xbf16>
    %c0_318 = arith.constant 0 : index
    %c5_319 = arith.constant 5 : index
    %c3_320 = arith.constant 3 : index
    %c0_321 = arith.constant 0 : index
    %263 = vector.load %arg16[%c0_318, %c5_319, %c3_320, %c0_321] : memref<1x10x16x48xbf16, #tpu.memory_space<vmem>>, vector<1x1x1x48xbf16>
    %264 = vector.shape_cast %263 : vector<1x1x1x48xbf16> to vector<1x48xbf16>
    %265 = arith.maximumf %258, %260 : vector<1x48xbf16>
    %266 = arith.maximumf %262, %264 : vector<1x48xbf16>
    %267 = arith.maximumf %265, %266 : vector<1x48xbf16>
    %c11 = arith.constant 11 : index
    %c0_322 = arith.constant 0 : index
    %c0_323 = arith.constant 0 : index
    %268 = vector.load %arg6[%c11, %c0_322, %c0_323] : memref<25x48x512xbf16, #tpu.memory_space<vmem>>, vector<1x48x512xbf16>
    %269 = vector.shape_cast %268 : vector<1x48x512xbf16> to vector<48x512xbf16>
    %cst_324 = arith.constant dense<0.000000e+00> : vector<1x512xf32>
    %270 = tpu.matmul %267, %269, %cst_324 {dimension_numbers = #tpu.dot_dimension_numbers<[1], [0], [0], [1], [0, 0, 1, 1], [], []>} : vector<1x48xbf16>, vector<48x512xbf16>, vector<1x512xf32> -> vector<1x512xf32>
    %271 = arith.addf %256, %270 : vector<1x512xf32>
    %c0_325 = arith.constant 0 : index
    %c4_326 = arith.constant 4 : index
    %c4_327 = arith.constant 4 : index
    %c0_328 = arith.constant 0 : index
    %272 = vector.load %arg16[%c0_325, %c4_326, %c4_327, %c0_328] : memref<1x10x16x48xbf16, #tpu.memory_space<vmem>>, vector<1x1x1x48xbf16>
    %273 = vector.shape_cast %272 : vector<1x1x1x48xbf16> to vector<1x48xbf16>
    %c0_329 = arith.constant 0 : index
    %c4_330 = arith.constant 4 : index
    %c5_331 = arith.constant 5 : index
    %c0_332 = arith.constant 0 : index
    %274 = vector.load %arg16[%c0_329, %c4_330, %c5_331, %c0_332] : memref<1x10x16x48xbf16, #tpu.memory_space<vmem>>, vector<1x1x1x48xbf16>
    %275 = vector.shape_cast %274 : vector<1x1x1x48xbf16> to vector<1x48xbf16>
    %c0_333 = arith.constant 0 : index
    %c5_334 = arith.constant 5 : index
    %c4_335 = arith.constant 4 : index
    %c0_336 = arith.constant 0 : index
    %276 = vector.load %arg16[%c0_333, %c5_334, %c4_335, %c0_336] : memref<1x10x16x48xbf16, #tpu.memory_space<vmem>>, vector<1x1x1x48xbf16>
    %277 = vector.shape_cast %276 : vector<1x1x1x48xbf16> to vector<1x48xbf16>
    %c0_337 = arith.constant 0 : index
    %c5_338 = arith.constant 5 : index
    %c5_339 = arith.constant 5 : index
    %c0_340 = arith.constant 0 : index
    %278 = vector.load %arg16[%c0_337, %c5_338, %c5_339, %c0_340] : memref<1x10x16x48xbf16, #tpu.memory_space<vmem>>, vector<1x1x1x48xbf16>
    %279 = vector.shape_cast %278 : vector<1x1x1x48xbf16> to vector<1x48xbf16>
    %280 = arith.maximumf %273, %275 : vector<1x48xbf16>
    %281 = arith.maximumf %277, %279 : vector<1x48xbf16>
    %282 = arith.maximumf %280, %281 : vector<1x48xbf16>
    %c12 = arith.constant 12 : index
    %c0_341 = arith.constant 0 : index
    %c0_342 = arith.constant 0 : index
    %283 = vector.load %arg6[%c12, %c0_341, %c0_342] : memref<25x48x512xbf16, #tpu.memory_space<vmem>>, vector<1x48x512xbf16>
    %284 = vector.shape_cast %283 : vector<1x48x512xbf16> to vector<48x512xbf16>
    %cst_343 = arith.constant dense<0.000000e+00> : vector<1x512xf32>
    %285 = tpu.matmul %282, %284, %cst_343 {dimension_numbers = #tpu.dot_dimension_numbers<[1], [0], [0], [1], [0, 0, 1, 1], [], []>} : vector<1x48xbf16>, vector<48x512xbf16>, vector<1x512xf32> -> vector<1x512xf32>
    %286 = arith.addf %271, %285 : vector<1x512xf32>
    %c0_344 = arith.constant 0 : index
    %c4_345 = arith.constant 4 : index
    %c6_346 = arith.constant 6 : index
    %c0_347 = arith.constant 0 : index
    %287 = vector.load %arg16[%c0_344, %c4_345, %c6_346, %c0_347] : memref<1x10x16x48xbf16, #tpu.memory_space<vmem>>, vector<1x1x1x48xbf16>
    %288 = vector.shape_cast %287 : vector<1x1x1x48xbf16> to vector<1x48xbf16>
    %c0_348 = arith.constant 0 : index
    %c4_349 = arith.constant 4 : index
    %c7_350 = arith.constant 7 : index
    %c0_351 = arith.constant 0 : index
    %289 = vector.load %arg16[%c0_348, %c4_349, %c7_350, %c0_351] : memref<1x10x16x48xbf16, #tpu.memory_space<vmem>>, vector<1x1x1x48xbf16>
    %290 = vector.shape_cast %289 : vector<1x1x1x48xbf16> to vector<1x48xbf16>
    %c0_352 = arith.constant 0 : index
    %c5_353 = arith.constant 5 : index
    %c6_354 = arith.constant 6 : index
    %c0_355 = arith.constant 0 : index
    %291 = vector.load %arg16[%c0_352, %c5_353, %c6_354, %c0_355] : memref<1x10x16x48xbf16, #tpu.memory_space<vmem>>, vector<1x1x1x48xbf16>
    %292 = vector.shape_cast %291 : vector<1x1x1x48xbf16> to vector<1x48xbf16>
    %c0_356 = arith.constant 0 : index
    %c5_357 = arith.constant 5 : index
    %c7_358 = arith.constant 7 : index
    %c0_359 = arith.constant 0 : index
    %293 = vector.load %arg16[%c0_356, %c5_357, %c7_358, %c0_359] : memref<1x10x16x48xbf16, #tpu.memory_space<vmem>>, vector<1x1x1x48xbf16>
    %294 = vector.shape_cast %293 : vector<1x1x1x48xbf16> to vector<1x48xbf16>
    %295 = arith.maximumf %288, %290 : vector<1x48xbf16>
    %296 = arith.maximumf %292, %294 : vector<1x48xbf16>
    %297 = arith.maximumf %295, %296 : vector<1x48xbf16>
    %c13 = arith.constant 13 : index
    %c0_360 = arith.constant 0 : index
    %c0_361 = arith.constant 0 : index
    %298 = vector.load %arg6[%c13, %c0_360, %c0_361] : memref<25x48x512xbf16, #tpu.memory_space<vmem>>, vector<1x48x512xbf16>
    %299 = vector.shape_cast %298 : vector<1x48x512xbf16> to vector<48x512xbf16>
    %cst_362 = arith.constant dense<0.000000e+00> : vector<1x512xf32>
    %300 = tpu.matmul %297, %299, %cst_362 {dimension_numbers = #tpu.dot_dimension_numbers<[1], [0], [0], [1], [0, 0, 1, 1], [], []>} : vector<1x48xbf16>, vector<48x512xbf16>, vector<1x512xf32> -> vector<1x512xf32>
    %301 = arith.addf %286, %300 : vector<1x512xf32>
    %c0_363 = arith.constant 0 : index
    %c4_364 = arith.constant 4 : index
    %c8_365 = arith.constant 8 : index
    %c0_366 = arith.constant 0 : index
    %302 = vector.load %arg16[%c0_363, %c4_364, %c8_365, %c0_366] : memref<1x10x16x48xbf16, #tpu.memory_space<vmem>>, vector<1x1x1x48xbf16>
    %303 = vector.shape_cast %302 : vector<1x1x1x48xbf16> to vector<1x48xbf16>
    %c0_367 = arith.constant 0 : index
    %c4_368 = arith.constant 4 : index
    %c9_369 = arith.constant 9 : index
    %c0_370 = arith.constant 0 : index
    %304 = vector.load %arg16[%c0_367, %c4_368, %c9_369, %c0_370] : memref<1x10x16x48xbf16, #tpu.memory_space<vmem>>, vector<1x1x1x48xbf16>
    %305 = vector.shape_cast %304 : vector<1x1x1x48xbf16> to vector<1x48xbf16>
    %c0_371 = arith.constant 0 : index
    %c5_372 = arith.constant 5 : index
    %c8_373 = arith.constant 8 : index
    %c0_374 = arith.constant 0 : index
    %306 = vector.load %arg16[%c0_371, %c5_372, %c8_373, %c0_374] : memref<1x10x16x48xbf16, #tpu.memory_space<vmem>>, vector<1x1x1x48xbf16>
    %307 = vector.shape_cast %306 : vector<1x1x1x48xbf16> to vector<1x48xbf16>
    %c0_375 = arith.constant 0 : index
    %c5_376 = arith.constant 5 : index
    %c9_377 = arith.constant 9 : index
    %c0_378 = arith.constant 0 : index
    %308 = vector.load %arg16[%c0_375, %c5_376, %c9_377, %c0_378] : memref<1x10x16x48xbf16, #tpu.memory_space<vmem>>, vector<1x1x1x48xbf16>
    %309 = vector.shape_cast %308 : vector<1x1x1x48xbf16> to vector<1x48xbf16>
    %310 = arith.maximumf %303, %305 : vector<1x48xbf16>
    %311 = arith.maximumf %307, %309 : vector<1x48xbf16>
    %312 = arith.maximumf %310, %311 : vector<1x48xbf16>
    %c14 = arith.constant 14 : index
    %c0_379 = arith.constant 0 : index
    %c0_380 = arith.constant 0 : index
    %313 = vector.load %arg6[%c14, %c0_379, %c0_380] : memref<25x48x512xbf16, #tpu.memory_space<vmem>>, vector<1x48x512xbf16>
    %314 = vector.shape_cast %313 : vector<1x48x512xbf16> to vector<48x512xbf16>
    %cst_381 = arith.constant dense<0.000000e+00> : vector<1x512xf32>
    %315 = tpu.matmul %312, %314, %cst_381 {dimension_numbers = #tpu.dot_dimension_numbers<[1], [0], [0], [1], [0, 0, 1, 1], [], []>} : vector<1x48xbf16>, vector<48x512xbf16>, vector<1x512xf32> -> vector<1x512xf32>
    %316 = arith.addf %301, %315 : vector<1x512xf32>
    %c0_382 = arith.constant 0 : index
    %c6_383 = arith.constant 6 : index
    %c0_384 = arith.constant 0 : index
    %c0_385 = arith.constant 0 : index
    %317 = vector.load %arg16[%c0_382, %c6_383, %c0_384, %c0_385] : memref<1x10x16x48xbf16, #tpu.memory_space<vmem>>, vector<1x1x1x48xbf16>
    %318 = vector.shape_cast %317 : vector<1x1x1x48xbf16> to vector<1x48xbf16>
    %c0_386 = arith.constant 0 : index
    %c6_387 = arith.constant 6 : index
    %c1_388 = arith.constant 1 : index
    %c0_389 = arith.constant 0 : index
    %319 = vector.load %arg16[%c0_386, %c6_387, %c1_388, %c0_389] : memref<1x10x16x48xbf16, #tpu.memory_space<vmem>>, vector<1x1x1x48xbf16>
    %320 = vector.shape_cast %319 : vector<1x1x1x48xbf16> to vector<1x48xbf16>
    %c0_390 = arith.constant 0 : index
    %c7_391 = arith.constant 7 : index
    %c0_392 = arith.constant 0 : index
    %c0_393 = arith.constant 0 : index
    %321 = vector.load %arg16[%c0_390, %c7_391, %c0_392, %c0_393] : memref<1x10x16x48xbf16, #tpu.memory_space<vmem>>, vector<1x1x1x48xbf16>
    %322 = vector.shape_cast %321 : vector<1x1x1x48xbf16> to vector<1x48xbf16>
    %c0_394 = arith.constant 0 : index
    %c7_395 = arith.constant 7 : index
    %c1_396 = arith.constant 1 : index
    %c0_397 = arith.constant 0 : index
    %323 = vector.load %arg16[%c0_394, %c7_395, %c1_396, %c0_397] : memref<1x10x16x48xbf16, #tpu.memory_space<vmem>>, vector<1x1x1x48xbf16>
    %324 = vector.shape_cast %323 : vector<1x1x1x48xbf16> to vector<1x48xbf16>
    %325 = arith.maximumf %318, %320 : vector<1x48xbf16>
    %326 = arith.maximumf %322, %324 : vector<1x48xbf16>
    %327 = arith.maximumf %325, %326 : vector<1x48xbf16>
    %c15 = arith.constant 15 : index
    %c0_398 = arith.constant 0 : index
    %c0_399 = arith.constant 0 : index
    %328 = vector.load %arg6[%c15, %c0_398, %c0_399] : memref<25x48x512xbf16, #tpu.memory_space<vmem>>, vector<1x48x512xbf16>
    %329 = vector.shape_cast %328 : vector<1x48x512xbf16> to vector<48x512xbf16>
    %cst_400 = arith.constant dense<0.000000e+00> : vector<1x512xf32>
    %330 = tpu.matmul %327, %329, %cst_400 {dimension_numbers = #tpu.dot_dimension_numbers<[1], [0], [0], [1], [0, 0, 1, 1], [], []>} : vector<1x48xbf16>, vector<48x512xbf16>, vector<1x512xf32> -> vector<1x512xf32>
    %331 = arith.addf %316, %330 : vector<1x512xf32>
    %c0_401 = arith.constant 0 : index
    %c6_402 = arith.constant 6 : index
    %c2_403 = arith.constant 2 : index
    %c0_404 = arith.constant 0 : index
    %332 = vector.load %arg16[%c0_401, %c6_402, %c2_403, %c0_404] : memref<1x10x16x48xbf16, #tpu.memory_space<vmem>>, vector<1x1x1x48xbf16>
    %333 = vector.shape_cast %332 : vector<1x1x1x48xbf16> to vector<1x48xbf16>
    %c0_405 = arith.constant 0 : index
    %c6_406 = arith.constant 6 : index
    %c3_407 = arith.constant 3 : index
    %c0_408 = arith.constant 0 : index
    %334 = vector.load %arg16[%c0_405, %c6_406, %c3_407, %c0_408] : memref<1x10x16x48xbf16, #tpu.memory_space<vmem>>, vector<1x1x1x48xbf16>
    %335 = vector.shape_cast %334 : vector<1x1x1x48xbf16> to vector<1x48xbf16>
    %c0_409 = arith.constant 0 : index
    %c7_410 = arith.constant 7 : index
    %c2_411 = arith.constant 2 : index
    %c0_412 = arith.constant 0 : index
    %336 = vector.load %arg16[%c0_409, %c7_410, %c2_411, %c0_412] : memref<1x10x16x48xbf16, #tpu.memory_space<vmem>>, vector<1x1x1x48xbf16>
    %337 = vector.shape_cast %336 : vector<1x1x1x48xbf16> to vector<1x48xbf16>
    %c0_413 = arith.constant 0 : index
    %c7_414 = arith.constant 7 : index
    %c3_415 = arith.constant 3 : index
    %c0_416 = arith.constant 0 : index
    %338 = vector.load %arg16[%c0_413, %c7_414, %c3_415, %c0_416] : memref<1x10x16x48xbf16, #tpu.memory_space<vmem>>, vector<1x1x1x48xbf16>
    %339 = vector.shape_cast %338 : vector<1x1x1x48xbf16> to vector<1x48xbf16>
    %340 = arith.maximumf %333, %335 : vector<1x48xbf16>
    %341 = arith.maximumf %337, %339 : vector<1x48xbf16>
    %342 = arith.maximumf %340, %341 : vector<1x48xbf16>
    %c16_417 = arith.constant 16 : index
    %c0_418 = arith.constant 0 : index
    %c0_419 = arith.constant 0 : index
    %343 = vector.load %arg6[%c16_417, %c0_418, %c0_419] : memref<25x48x512xbf16, #tpu.memory_space<vmem>>, vector<1x48x512xbf16>
    %344 = vector.shape_cast %343 : vector<1x48x512xbf16> to vector<48x512xbf16>
    %cst_420 = arith.constant dense<0.000000e+00> : vector<1x512xf32>
    %345 = tpu.matmul %342, %344, %cst_420 {dimension_numbers = #tpu.dot_dimension_numbers<[1], [0], [0], [1], [0, 0, 1, 1], [], []>} : vector<1x48xbf16>, vector<48x512xbf16>, vector<1x512xf32> -> vector<1x512xf32>
    %346 = arith.addf %331, %345 : vector<1x512xf32>
    %c0_421 = arith.constant 0 : index
    %c6_422 = arith.constant 6 : index
    %c4_423 = arith.constant 4 : index
    %c0_424 = arith.constant 0 : index
    %347 = vector.load %arg16[%c0_421, %c6_422, %c4_423, %c0_424] : memref<1x10x16x48xbf16, #tpu.memory_space<vmem>>, vector<1x1x1x48xbf16>
    %348 = vector.shape_cast %347 : vector<1x1x1x48xbf16> to vector<1x48xbf16>
    %c0_425 = arith.constant 0 : index
    %c6_426 = arith.constant 6 : index
    %c5_427 = arith.constant 5 : index
    %c0_428 = arith.constant 0 : index
    %349 = vector.load %arg16[%c0_425, %c6_426, %c5_427, %c0_428] : memref<1x10x16x48xbf16, #tpu.memory_space<vmem>>, vector<1x1x1x48xbf16>
    %350 = vector.shape_cast %349 : vector<1x1x1x48xbf16> to vector<1x48xbf16>
    %c0_429 = arith.constant 0 : index
    %c7_430 = arith.constant 7 : index
    %c4_431 = arith.constant 4 : index
    %c0_432 = arith.constant 0 : index
    %351 = vector.load %arg16[%c0_429, %c7_430, %c4_431, %c0_432] : memref<1x10x16x48xbf16, #tpu.memory_space<vmem>>, vector<1x1x1x48xbf16>
    %352 = vector.shape_cast %351 : vector<1x1x1x48xbf16> to vector<1x48xbf16>
    %c0_433 = arith.constant 0 : index
    %c7_434 = arith.constant 7 : index
    %c5_435 = arith.constant 5 : index
    %c0_436 = arith.constant 0 : index
    %353 = vector.load %arg16[%c0_433, %c7_434, %c5_435, %c0_436] : memref<1x10x16x48xbf16, #tpu.memory_space<vmem>>, vector<1x1x1x48xbf16>
    %354 = vector.shape_cast %353 : vector<1x1x1x48xbf16> to vector<1x48xbf16>
    %355 = arith.maximumf %348, %350 : vector<1x48xbf16>
    %356 = arith.maximumf %352, %354 : vector<1x48xbf16>
    %357 = arith.maximumf %355, %356 : vector<1x48xbf16>
    %c17 = arith.constant 17 : index
    %c0_437 = arith.constant 0 : index
    %c0_438 = arith.constant 0 : index
    %358 = vector.load %arg6[%c17, %c0_437, %c0_438] : memref<25x48x512xbf16, #tpu.memory_space<vmem>>, vector<1x48x512xbf16>
    %359 = vector.shape_cast %358 : vector<1x48x512xbf16> to vector<48x512xbf16>
    %cst_439 = arith.constant dense<0.000000e+00> : vector<1x512xf32>
    %360 = tpu.matmul %357, %359, %cst_439 {dimension_numbers = #tpu.dot_dimension_numbers<[1], [0], [0], [1], [0, 0, 1, 1], [], []>} : vector<1x48xbf16>, vector<48x512xbf16>, vector<1x512xf32> -> vector<1x512xf32>
    %361 = arith.addf %346, %360 : vector<1x512xf32>
    %c0_440 = arith.constant 0 : index
    %c6_441 = arith.constant 6 : index
    %c6_442 = arith.constant 6 : index
    %c0_443 = arith.constant 0 : index
    %362 = vector.load %arg16[%c0_440, %c6_441, %c6_442, %c0_443] : memref<1x10x16x48xbf16, #tpu.memory_space<vmem>>, vector<1x1x1x48xbf16>
    %363 = vector.shape_cast %362 : vector<1x1x1x48xbf16> to vector<1x48xbf16>
    %c0_444 = arith.constant 0 : index
    %c6_445 = arith.constant 6 : index
    %c7_446 = arith.constant 7 : index
    %c0_447 = arith.constant 0 : index
    %364 = vector.load %arg16[%c0_444, %c6_445, %c7_446, %c0_447] : memref<1x10x16x48xbf16, #tpu.memory_space<vmem>>, vector<1x1x1x48xbf16>
    %365 = vector.shape_cast %364 : vector<1x1x1x48xbf16> to vector<1x48xbf16>
    %c0_448 = arith.constant 0 : index
    %c7_449 = arith.constant 7 : index
    %c6_450 = arith.constant 6 : index
    %c0_451 = arith.constant 0 : index
    %366 = vector.load %arg16[%c0_448, %c7_449, %c6_450, %c0_451] : memref<1x10x16x48xbf16, #tpu.memory_space<vmem>>, vector<1x1x1x48xbf16>
    %367 = vector.shape_cast %366 : vector<1x1x1x48xbf16> to vector<1x48xbf16>
    %c0_452 = arith.constant 0 : index
    %c7_453 = arith.constant 7 : index
    %c7_454 = arith.constant 7 : index
    %c0_455 = arith.constant 0 : index
    %368 = vector.load %arg16[%c0_452, %c7_453, %c7_454, %c0_455] : memref<1x10x16x48xbf16, #tpu.memory_space<vmem>>, vector<1x1x1x48xbf16>
    %369 = vector.shape_cast %368 : vector<1x1x1x48xbf16> to vector<1x48xbf16>
    %370 = arith.maximumf %363, %365 : vector<1x48xbf16>
    %371 = arith.maximumf %367, %369 : vector<1x48xbf16>
    %372 = arith.maximumf %370, %371 : vector<1x48xbf16>
    %c18 = arith.constant 18 : index
    %c0_456 = arith.constant 0 : index
    %c0_457 = arith.constant 0 : index
    %373 = vector.load %arg6[%c18, %c0_456, %c0_457] : memref<25x48x512xbf16, #tpu.memory_space<vmem>>, vector<1x48x512xbf16>
    %374 = vector.shape_cast %373 : vector<1x48x512xbf16> to vector<48x512xbf16>
    %cst_458 = arith.constant dense<0.000000e+00> : vector<1x512xf32>
    %375 = tpu.matmul %372, %374, %cst_458 {dimension_numbers = #tpu.dot_dimension_numbers<[1], [0], [0], [1], [0, 0, 1, 1], [], []>} : vector<1x48xbf16>, vector<48x512xbf16>, vector<1x512xf32> -> vector<1x512xf32>
    %376 = arith.addf %361, %375 : vector<1x512xf32>
    %c0_459 = arith.constant 0 : index
    %c6_460 = arith.constant 6 : index
    %c8_461 = arith.constant 8 : index
    %c0_462 = arith.constant 0 : index
    %377 = vector.load %arg16[%c0_459, %c6_460, %c8_461, %c0_462] : memref<1x10x16x48xbf16, #tpu.memory_space<vmem>>, vector<1x1x1x48xbf16>
    %378 = vector.shape_cast %377 : vector<1x1x1x48xbf16> to vector<1x48xbf16>
    %c0_463 = arith.constant 0 : index
    %c6_464 = arith.constant 6 : index
    %c9_465 = arith.constant 9 : index
    %c0_466 = arith.constant 0 : index
    %379 = vector.load %arg16[%c0_463, %c6_464, %c9_465, %c0_466] : memref<1x10x16x48xbf16, #tpu.memory_space<vmem>>, vector<1x1x1x48xbf16>
    %380 = vector.shape_cast %379 : vector<1x1x1x48xbf16> to vector<1x48xbf16>
    %c0_467 = arith.constant 0 : index
    %c7_468 = arith.constant 7 : index
    %c8_469 = arith.constant 8 : index
    %c0_470 = arith.constant 0 : index
    %381 = vector.load %arg16[%c0_467, %c7_468, %c8_469, %c0_470] : memref<1x10x16x48xbf16, #tpu.memory_space<vmem>>, vector<1x1x1x48xbf16>
    %382 = vector.shape_cast %381 : vector<1x1x1x48xbf16> to vector<1x48xbf16>
    %c0_471 = arith.constant 0 : index
    %c7_472 = arith.constant 7 : index
    %c9_473 = arith.constant 9 : index
    %c0_474 = arith.constant 0 : index
    %383 = vector.load %arg16[%c0_471, %c7_472, %c9_473, %c0_474] : memref<1x10x16x48xbf16, #tpu.memory_space<vmem>>, vector<1x1x1x48xbf16>
    %384 = vector.shape_cast %383 : vector<1x1x1x48xbf16> to vector<1x48xbf16>
    %385 = arith.maximumf %378, %380 : vector<1x48xbf16>
    %386 = arith.maximumf %382, %384 : vector<1x48xbf16>
    %387 = arith.maximumf %385, %386 : vector<1x48xbf16>
    %c19 = arith.constant 19 : index
    %c0_475 = arith.constant 0 : index
    %c0_476 = arith.constant 0 : index
    %388 = vector.load %arg6[%c19, %c0_475, %c0_476] : memref<25x48x512xbf16, #tpu.memory_space<vmem>>, vector<1x48x512xbf16>
    %389 = vector.shape_cast %388 : vector<1x48x512xbf16> to vector<48x512xbf16>
    %cst_477 = arith.constant dense<0.000000e+00> : vector<1x512xf32>
    %390 = tpu.matmul %387, %389, %cst_477 {dimension_numbers = #tpu.dot_dimension_numbers<[1], [0], [0], [1], [0, 0, 1, 1], [], []>} : vector<1x48xbf16>, vector<48x512xbf16>, vector<1x512xf32> -> vector<1x512xf32>
    %391 = arith.addf %376, %390 : vector<1x512xf32>
    %c0_478 = arith.constant 0 : index
    %c8_479 = arith.constant 8 : index
    %c0_480 = arith.constant 0 : index
    %c0_481 = arith.constant 0 : index
    %392 = vector.load %arg16[%c0_478, %c8_479, %c0_480, %c0_481] : memref<1x10x16x48xbf16, #tpu.memory_space<vmem>>, vector<1x1x1x48xbf16>
    %393 = vector.shape_cast %392 : vector<1x1x1x48xbf16> to vector<1x48xbf16>
    %c0_482 = arith.constant 0 : index
    %c8_483 = arith.constant 8 : index
    %c1_484 = arith.constant 1 : index
    %c0_485 = arith.constant 0 : index
    %394 = vector.load %arg16[%c0_482, %c8_483, %c1_484, %c0_485] : memref<1x10x16x48xbf16, #tpu.memory_space<vmem>>, vector<1x1x1x48xbf16>
    %395 = vector.shape_cast %394 : vector<1x1x1x48xbf16> to vector<1x48xbf16>
    %c0_486 = arith.constant 0 : index
    %c9_487 = arith.constant 9 : index
    %c0_488 = arith.constant 0 : index
    %c0_489 = arith.constant 0 : index
    %396 = vector.load %arg16[%c0_486, %c9_487, %c0_488, %c0_489] : memref<1x10x16x48xbf16, #tpu.memory_space<vmem>>, vector<1x1x1x48xbf16>
    %397 = vector.shape_cast %396 : vector<1x1x1x48xbf16> to vector<1x48xbf16>
    %c0_490 = arith.constant 0 : index
    %c9_491 = arith.constant 9 : index
    %c1_492 = arith.constant 1 : index
    %c0_493 = arith.constant 0 : index
    %398 = vector.load %arg16[%c0_490, %c9_491, %c1_492, %c0_493] : memref<1x10x16x48xbf16, #tpu.memory_space<vmem>>, vector<1x1x1x48xbf16>
    %399 = vector.shape_cast %398 : vector<1x1x1x48xbf16> to vector<1x48xbf16>
    %400 = arith.maximumf %393, %395 : vector<1x48xbf16>
    %401 = arith.maximumf %397, %399 : vector<1x48xbf16>
    %402 = arith.maximumf %400, %401 : vector<1x48xbf16>
    %c20 = arith.constant 20 : index
    %c0_494 = arith.constant 0 : index
    %c0_495 = arith.constant 0 : index
    %403 = vector.load %arg6[%c20, %c0_494, %c0_495] : memref<25x48x512xbf16, #tpu.memory_space<vmem>>, vector<1x48x512xbf16>
    %404 = vector.shape_cast %403 : vector<1x48x512xbf16> to vector<48x512xbf16>
    %cst_496 = arith.constant dense<0.000000e+00> : vector<1x512xf32>
    %405 = tpu.matmul %402, %404, %cst_496 {dimension_numbers = #tpu.dot_dimension_numbers<[1], [0], [0], [1], [0, 0, 1, 1], [], []>} : vector<1x48xbf16>, vector<48x512xbf16>, vector<1x512xf32> -> vector<1x512xf32>
    %406 = arith.addf %391, %405 : vector<1x512xf32>
    %c0_497 = arith.constant 0 : index
    %c8_498 = arith.constant 8 : index
    %c2_499 = arith.constant 2 : index
    %c0_500 = arith.constant 0 : index
    %407 = vector.load %arg16[%c0_497, %c8_498, %c2_499, %c0_500] : memref<1x10x16x48xbf16, #tpu.memory_space<vmem>>, vector<1x1x1x48xbf16>
    %408 = vector.shape_cast %407 : vector<1x1x1x48xbf16> to vector<1x48xbf16>
    %c0_501 = arith.constant 0 : index
    %c8_502 = arith.constant 8 : index
    %c3_503 = arith.constant 3 : index
    %c0_504 = arith.constant 0 : index
    %409 = vector.load %arg16[%c0_501, %c8_502, %c3_503, %c0_504] : memref<1x10x16x48xbf16, #tpu.memory_space<vmem>>, vector<1x1x1x48xbf16>
    %410 = vector.shape_cast %409 : vector<1x1x1x48xbf16> to vector<1x48xbf16>
    %c0_505 = arith.constant 0 : index
    %c9_506 = arith.constant 9 : index
    %c2_507 = arith.constant 2 : index
    %c0_508 = arith.constant 0 : index
    %411 = vector.load %arg16[%c0_505, %c9_506, %c2_507, %c0_508] : memref<1x10x16x48xbf16, #tpu.memory_space<vmem>>, vector<1x1x1x48xbf16>
    %412 = vector.shape_cast %411 : vector<1x1x1x48xbf16> to vector<1x48xbf16>
    %c0_509 = arith.constant 0 : index
    %c9_510 = arith.constant 9 : index
    %c3_511 = arith.constant 3 : index
    %c0_512 = arith.constant 0 : index
    %413 = vector.load %arg16[%c0_509, %c9_510, %c3_511, %c0_512] : memref<1x10x16x48xbf16, #tpu.memory_space<vmem>>, vector<1x1x1x48xbf16>
    %414 = vector.shape_cast %413 : vector<1x1x1x48xbf16> to vector<1x48xbf16>
    %415 = arith.maximumf %408, %410 : vector<1x48xbf16>
    %416 = arith.maximumf %412, %414 : vector<1x48xbf16>
    %417 = arith.maximumf %415, %416 : vector<1x48xbf16>
    %c21 = arith.constant 21 : index
    %c0_513 = arith.constant 0 : index
    %c0_514 = arith.constant 0 : index
    %418 = vector.load %arg6[%c21, %c0_513, %c0_514] : memref<25x48x512xbf16, #tpu.memory_space<vmem>>, vector<1x48x512xbf16>
    %419 = vector.shape_cast %418 : vector<1x48x512xbf16> to vector<48x512xbf16>
    %cst_515 = arith.constant dense<0.000000e+00> : vector<1x512xf32>
    %420 = tpu.matmul %417, %419, %cst_515 {dimension_numbers = #tpu.dot_dimension_numbers<[1], [0], [0], [1], [0, 0, 1, 1], [], []>} : vector<1x48xbf16>, vector<48x512xbf16>, vector<1x512xf32> -> vector<1x512xf32>
    %421 = arith.addf %406, %420 : vector<1x512xf32>
    %c0_516 = arith.constant 0 : index
    %c8_517 = arith.constant 8 : index
    %c4_518 = arith.constant 4 : index
    %c0_519 = arith.constant 0 : index
    %422 = vector.load %arg16[%c0_516, %c8_517, %c4_518, %c0_519] : memref<1x10x16x48xbf16, #tpu.memory_space<vmem>>, vector<1x1x1x48xbf16>
    %423 = vector.shape_cast %422 : vector<1x1x1x48xbf16> to vector<1x48xbf16>
    %c0_520 = arith.constant 0 : index
    %c8_521 = arith.constant 8 : index
    %c5_522 = arith.constant 5 : index
    %c0_523 = arith.constant 0 : index
    %424 = vector.load %arg16[%c0_520, %c8_521, %c5_522, %c0_523] : memref<1x10x16x48xbf16, #tpu.memory_space<vmem>>, vector<1x1x1x48xbf16>
    %425 = vector.shape_cast %424 : vector<1x1x1x48xbf16> to vector<1x48xbf16>
    %c0_524 = arith.constant 0 : index
    %c9_525 = arith.constant 9 : index
    %c4_526 = arith.constant 4 : index
    %c0_527 = arith.constant 0 : index
    %426 = vector.load %arg16[%c0_524, %c9_525, %c4_526, %c0_527] : memref<1x10x16x48xbf16, #tpu.memory_space<vmem>>, vector<1x1x1x48xbf16>
    %427 = vector.shape_cast %426 : vector<1x1x1x48xbf16> to vector<1x48xbf16>
    %c0_528 = arith.constant 0 : index
    %c9_529 = arith.constant 9 : index
    %c5_530 = arith.constant 5 : index
    %c0_531 = arith.constant 0 : index
    %428 = vector.load %arg16[%c0_528, %c9_529, %c5_530, %c0_531] : memref<1x10x16x48xbf16, #tpu.memory_space<vmem>>, vector<1x1x1x48xbf16>
    %429 = vector.shape_cast %428 : vector<1x1x1x48xbf16> to vector<1x48xbf16>
    %430 = arith.maximumf %423, %425 : vector<1x48xbf16>
    %431 = arith.maximumf %427, %429 : vector<1x48xbf16>
    %432 = arith.maximumf %430, %431 : vector<1x48xbf16>
    %c22 = arith.constant 22 : index
    %c0_532 = arith.constant 0 : index
    %c0_533 = arith.constant 0 : index
    %433 = vector.load %arg6[%c22, %c0_532, %c0_533] : memref<25x48x512xbf16, #tpu.memory_space<vmem>>, vector<1x48x512xbf16>
    %434 = vector.shape_cast %433 : vector<1x48x512xbf16> to vector<48x512xbf16>
    %cst_534 = arith.constant dense<0.000000e+00> : vector<1x512xf32>
    %435 = tpu.matmul %432, %434, %cst_534 {dimension_numbers = #tpu.dot_dimension_numbers<[1], [0], [0], [1], [0, 0, 1, 1], [], []>} : vector<1x48xbf16>, vector<48x512xbf16>, vector<1x512xf32> -> vector<1x512xf32>
    %436 = arith.addf %421, %435 : vector<1x512xf32>
    %c0_535 = arith.constant 0 : index
    %c8_536 = arith.constant 8 : index
    %c6_537 = arith.constant 6 : index
    %c0_538 = arith.constant 0 : index
    %437 = vector.load %arg16[%c0_535, %c8_536, %c6_537, %c0_538] : memref<1x10x16x48xbf16, #tpu.memory_space<vmem>>, vector<1x1x1x48xbf16>
    %438 = vector.shape_cast %437 : vector<1x1x1x48xbf16> to vector<1x48xbf16>
    %c0_539 = arith.constant 0 : index
    %c8_540 = arith.constant 8 : index
    %c7_541 = arith.constant 7 : index
    %c0_542 = arith.constant 0 : index
    %439 = vector.load %arg16[%c0_539, %c8_540, %c7_541, %c0_542] : memref<1x10x16x48xbf16, #tpu.memory_space<vmem>>, vector<1x1x1x48xbf16>
    %440 = vector.shape_cast %439 : vector<1x1x1x48xbf16> to vector<1x48xbf16>
    %c0_543 = arith.constant 0 : index
    %c9_544 = arith.constant 9 : index
    %c6_545 = arith.constant 6 : index
    %c0_546 = arith.constant 0 : index
    %441 = vector.load %arg16[%c0_543, %c9_544, %c6_545, %c0_546] : memref<1x10x16x48xbf16, #tpu.memory_space<vmem>>, vector<1x1x1x48xbf16>
    %442 = vector.shape_cast %441 : vector<1x1x1x48xbf16> to vector<1x48xbf16>
    %c0_547 = arith.constant 0 : index
    %c9_548 = arith.constant 9 : index
    %c7_549 = arith.constant 7 : index
    %c0_550 = arith.constant 0 : index
    %443 = vector.load %arg16[%c0_547, %c9_548, %c7_549, %c0_550] : memref<1x10x16x48xbf16, #tpu.memory_space<vmem>>, vector<1x1x1x48xbf16>
    %444 = vector.shape_cast %443 : vector<1x1x1x48xbf16> to vector<1x48xbf16>
    %445 = arith.maximumf %438, %440 : vector<1x48xbf16>
    %446 = arith.maximumf %442, %444 : vector<1x48xbf16>
    %447 = arith.maximumf %445, %446 : vector<1x48xbf16>
    %c23 = arith.constant 23 : index
    %c0_551 = arith.constant 0 : index
    %c0_552 = arith.constant 0 : index
    %448 = vector.load %arg6[%c23, %c0_551, %c0_552] : memref<25x48x512xbf16, #tpu.memory_space<vmem>>, vector<1x48x512xbf16>
    %449 = vector.shape_cast %448 : vector<1x48x512xbf16> to vector<48x512xbf16>
    %cst_553 = arith.constant dense<0.000000e+00> : vector<1x512xf32>
    %450 = tpu.matmul %447, %449, %cst_553 {dimension_numbers = #tpu.dot_dimension_numbers<[1], [0], [0], [1], [0, 0, 1, 1], [], []>} : vector<1x48xbf16>, vector<48x512xbf16>, vector<1x512xf32> -> vector<1x512xf32>
    %451 = arith.addf %436, %450 : vector<1x512xf32>
    %c0_554 = arith.constant 0 : index
    %c8_555 = arith.constant 8 : index
    %c8_556 = arith.constant 8 : index
    %c0_557 = arith.constant 0 : index
    %452 = vector.load %arg16[%c0_554, %c8_555, %c8_556, %c0_557] : memref<1x10x16x48xbf16, #tpu.memory_space<vmem>>, vector<1x1x1x48xbf16>
    %453 = vector.shape_cast %452 : vector<1x1x1x48xbf16> to vector<1x48xbf16>
    %c0_558 = arith.constant 0 : index
    %c8_559 = arith.constant 8 : index
    %c9_560 = arith.constant 9 : index
    %c0_561 = arith.constant 0 : index
    %454 = vector.load %arg16[%c0_558, %c8_559, %c9_560, %c0_561] : memref<1x10x16x48xbf16, #tpu.memory_space<vmem>>, vector<1x1x1x48xbf16>
    %455 = vector.shape_cast %454 : vector<1x1x1x48xbf16> to vector<1x48xbf16>
    %c0_562 = arith.constant 0 : index
    %c9_563 = arith.constant 9 : index
    %c8_564 = arith.constant 8 : index
    %c0_565 = arith.constant 0 : index
    %456 = vector.load %arg16[%c0_562, %c9_563, %c8_564, %c0_565] : memref<1x10x16x48xbf16, #tpu.memory_space<vmem>>, vector<1x1x1x48xbf16>
    %457 = vector.shape_cast %456 : vector<1x1x1x48xbf16> to vector<1x48xbf16>
    %c0_566 = arith.constant 0 : index
    %c9_567 = arith.constant 9 : index
    %c9_568 = arith.constant 9 : index
    %c0_569 = arith.constant 0 : index
    %458 = vector.load %arg16[%c0_566, %c9_567, %c9_568, %c0_569] : memref<1x10x16x48xbf16, #tpu.memory_space<vmem>>, vector<1x1x1x48xbf16>
    %459 = vector.shape_cast %458 : vector<1x1x1x48xbf16> to vector<1x48xbf16>
    %460 = arith.maximumf %453, %455 : vector<1x48xbf16>
    %461 = arith.maximumf %457, %459 : vector<1x48xbf16>
    %462 = arith.maximumf %460, %461 : vector<1x48xbf16>
    %c24 = arith.constant 24 : index
    %c0_570 = arith.constant 0 : index
    %c0_571 = arith.constant 0 : index
    %463 = vector.load %arg6[%c24, %c0_570, %c0_571] : memref<25x48x512xbf16, #tpu.memory_space<vmem>>, vector<1x48x512xbf16>
    %464 = vector.shape_cast %463 : vector<1x48x512xbf16> to vector<48x512xbf16>
    %cst_572 = arith.constant dense<0.000000e+00> : vector<1x512xf32>
    %465 = tpu.matmul %462, %464, %cst_572 {dimension_numbers = #tpu.dot_dimension_numbers<[1], [0], [0], [1], [0, 0, 1, 1], [], []>} : vector<1x48xbf16>, vector<48x512xbf16>, vector<1x512xf32> -> vector<1x512xf32>
    %466 = arith.addf %451, %465 : vector<1x512xf32>
    %c0_573 = arith.constant 0 : index
    %c0_574 = arith.constant 0 : index
    %467 = vector.load %arg7[%c0_573, %c0_574] : memref<1x512xf32, #tpu.memory_space<vmem>>, vector<1x512xf32>
    %468 = arith.addf %466, %467 : vector<1x512xf32>
    %cst_575 = arith.constant 0.000000e+00 : f32
    %469 = vector.broadcast %cst_575 : f32 to vector<1x512xf32>
    %470 = arith.maximumf %468, %469 : vector<1x512xf32>
    %c0_576 = arith.constant 0 : index
    %c0_577 = arith.constant 0 : index
    %c0_578 = arith.constant 0 : index
    %471 = vector.load %arg8[%c0_576, %c0_577, %c0_578] : memref<1x1x512xbf16, #tpu.memory_space<vmem>>, vector<1x1x512xbf16>
    %472 = vector.shape_cast %471 : vector<1x1x512xbf16> to vector<1x512xbf16>
    %473 = arith.extf %472 : vector<1x512xbf16> to vector<1x512xf32>
    %474 = arith.mulf %470, %473 : vector<1x512xf32>
    %475 = arith.truncf %474 : vector<1x512xf32> to vector<1x512xbf16>
    %c0_579 = arith.constant 0 : index
    %c0_580 = arith.constant 0 : index
    %476 = vector.load %arg9[%c0_579, %c0_580] : memref<512x512xbf16, #tpu.memory_space<vmem>>, vector<512x512xbf16>
    %cst_581 = arith.constant dense<0.000000e+00> : vector<1x512xf32>
    %477 = tpu.matmul %475, %476, %cst_581 {dimension_numbers = #tpu.dot_dimension_numbers<[1], [0], [0], [1], [0, 0, 1, 1], [], []>} : vector<1x512xbf16>, vector<512x512xbf16>, vector<1x512xf32> -> vector<1x512xf32>
    %c0_582 = arith.constant 0 : index
    %c0_583 = arith.constant 0 : index
    %478 = vector.load %arg10[%c0_582, %c0_583] : memref<1x512xf32, #tpu.memory_space<vmem>>, vector<1x512xf32>
    %479 = arith.addf %477, %478 : vector<1x512xf32>
    %cst_584 = arith.constant 0.000000e+00 : f32
    %480 = vector.broadcast %cst_584 : f32 to vector<1x512xf32>
    %481 = arith.maximumf %479, %480 : vector<1x512xf32>
    %c0_585 = arith.constant 0 : index
    %c0_586 = arith.constant 0 : index
    %c0_587 = arith.constant 0 : index
    %482 = vector.load %arg11[%c0_585, %c0_586, %c0_587] : memref<1x1x512xbf16, #tpu.memory_space<vmem>>, vector<1x1x512xbf16>
    %483 = vector.shape_cast %482 : vector<1x1x512xbf16> to vector<1x512xbf16>
    %484 = arith.extf %483 : vector<1x512xbf16> to vector<1x512xf32>
    %485 = arith.mulf %481, %484 : vector<1x512xf32>
    %486 = arith.truncf %485 : vector<1x512xf32> to vector<1x512xbf16>
    %c0_588 = arith.constant 0 : index
    %c0_589 = arith.constant 0 : index
    %487 = vector.load %arg12[%c0_588, %c0_589] : memref<512x128xbf16, #tpu.memory_space<vmem>>, vector<512x128xbf16>
    %cst_590 = arith.constant dense<0.000000e+00> : vector<1x128xf32>
    %488 = tpu.matmul %486, %487, %cst_590 {dimension_numbers = #tpu.dot_dimension_numbers<[1], [0], [0], [1], [0, 0, 1, 1], [], []>} : vector<1x512xbf16>, vector<512x128xbf16>, vector<1x128xf32> -> vector<1x128xf32>
    %c0_591 = arith.constant 0 : index
    %c0_592 = arith.constant 0 : index
    %489 = vector.load %arg13[%c0_591, %c0_592] : memref<1x128xf32, #tpu.memory_space<vmem>>, vector<1x128xf32>
    %490 = arith.addf %488, %489 : vector<1x128xf32>
    %491 = tpu.iota {dimensions = array<i32: 1>} : vector<1x128xi32>
    %c4_i32 = arith.constant 4 : i32
    %492 = vector.broadcast %c4_i32 : i32 to vector<1x128xi32>
    %493 = arith.cmpi slt, %491, %492 : vector<1x128xi32>
    %cst_593 = arith.constant -1.000000e+30 : f32
    %494 = vector.broadcast %cst_593 : f32 to vector<1x128xf32>
    %495 = arith.select %493, %490, %494 : vector<1x128xi1>, vector<1x128xf32>
    %cst_594 = arith.constant dense<0xFF800000> : vector<1xf32>
    %496 = vector.multi_reduction <maximumf>, %495, %cst_594 [1] : vector<1x128xf32> to vector<1xf32>
    %497 = vector.shape_cast %496 : vector<1xf32> to vector<1x1xf32>
    %498 = vector.broadcast %497 : vector<1x1xf32> to vector<1x128xf32>
    %499 = arith.subf %495, %498 : vector<1x128xf32>
    %500 = math.exp %499 : vector<1x128xf32>
    %cst_595 = arith.constant dense<0.000000e+00> : vector<1xf32>
    %501 = vector.multi_reduction <add>, %500, %cst_595 [1] : vector<1x128xf32> to vector<1xf32>
    %502 = vector.shape_cast %501 : vector<1xf32> to vector<1x1xf32>
    %503 = math.log %502 : vector<1x1xf32>
    %504 = vector.broadcast %503 : vector<1x1xf32> to vector<1x128xf32>
    %505 = arith.subf %499, %504 : vector<1x128xf32>
    %c0_596 = arith.constant 0 : index
    %c0_597 = arith.constant 0 : index
    %c0_598 = arith.constant 0 : index
    %506 = vector.load %arg14[%c0_596, %c0_597, %c0_598] : memref<1x1x128xf32, #tpu.memory_space<vmem>>, vector<1x1x128xf32>
    %507 = vector.shape_cast %506 : vector<1x1x128xf32> to vector<1x128xf32>
    %508 = vector.shape_cast %505 : vector<1x128xf32> to vector<1x1x128xf32>
    tpu.vector_store %arg14[%c0_596, %c0_597, %c0_598], %508 {strides = array<i32>} : memref<1x1x128xf32, #tpu.memory_space<vmem>>, vector<1x1x128xf32>,
    return
  }
  func.func @transform_0(%arg0: i32) -> (i32, i32, i32) {
    %c0_i32 = arith.constant 0 : i32
    %c0_i32_0 = arith.constant 0 : i32
    %c0_i32_1 = arith.constant 0 : i32
    return %arg0, %c0_i32, %c0_i32_0 : i32, i32, i32
  }
  func.func @transform_1(%arg0: i32) -> (i32, i32) {
    %c0_i32 = arith.constant 0 : i32
    %c0_i32_0 = arith.constant 0 : i32
    %c0_i32_1 = arith.constant 0 : i32
    return %c0_i32, %c0_i32_0 : i32, i32
  }
  func.func @transform_2(%arg0: i32) -> (i32, i32) {
    %c0_i32 = arith.constant 0 : i32
    %c0_i32_0 = arith.constant 0 : i32
    %c0_i32_1 = arith.constant 0 : i32
    return %c0_i32, %c0_i32_0 : i32, i32
  }
  func.func @transform_3(%arg0: i32) -> (i32, i32, i32) {
    %c0_i32 = arith.constant 0 : i32
    %c0_i32_0 = arith.constant 0 : i32
    %c0_i32_1 = arith.constant 0 : i32
    %c0_i32_2 = arith.constant 0 : i32
    return %c0_i32, %c0_i32_0, %c0_i32_1 : i32, i32, i32
  }
  func.func @transform_4(%arg0: i32) -> (i32, i32) {
    %c0_i32 = arith.constant 0 : i32
    %c0_i32_0 = arith.constant 0 : i32
    %c0_i32_1 = arith.constant 0 : i32
    return %c0_i32, %c0_i32_0 : i32, i32
  }
  func.func @transform_5(%arg0: i32) -> (i32, i32, i32) {
    %c0_i32 = arith.constant 0 : i32
    %c0_i32_0 = arith.constant 0 : i32
    %c0_i32_1 = arith.constant 0 : i32
    %c0_i32_2 = arith.constant 0 : i32
    return %c0_i32, %c0_i32_0, %c0_i32_1 : i32, i32, i32
  }
  func.func @transform_6(%arg0: i32) -> (i32, i32) {
    %c0_i32 = arith.constant 0 : i32
    %c0_i32_0 = arith.constant 0 : i32
    %c0_i32_1 = arith.constant 0 : i32
    return %c0_i32, %c0_i32_0 : i32, i32
  }
  func.func @transform_7(%arg0: i32) -> (i32, i32, i32) {
    %c0_i32 = arith.constant 0 : i32
    %c0_i32_0 = arith.constant 0 : i32
    %c0_i32_1 = arith.constant 0 : i32
    return %arg0, %c0_i32, %c0_i32_0 : i32, i32, i32
  }
  func.func @transform_8(%arg0: i32) -> (i32, i32) {
    %c0_i32 = arith.constant 0 : i32
    %c0_i32_0 = arith.constant 0 : i32
    %c0_i32_1 = arith.constant 0 : i32
    return %c0_i32, %c0_i32_0 : i32, i32
  }
  func.func @transform_9(%arg0: i32) -> (i32, i32) {
    %c0_i32 = arith.constant 0 : i32
    %c0_i32_0 = arith.constant 0 : i32
    %c0_i32_1 = arith.constant 0 : i32
    return %c0_i32, %c0_i32_0 : i32, i32
  }
  func.func @transform_10(%arg0: i32) -> (i32, i32, i32) {
    %c0_i32 = arith.constant 0 : i32
    %c0_i32_0 = arith.constant 0 : i32
    %c0_i32_1 = arith.constant 0 : i32
    return %arg0, %c0_i32, %c0_i32_0 : i32, i32, i32
  }
  func.func @transform_11(%arg0: i32) -> (i32, i32) {
    %c0_i32 = arith.constant 0 : i32
    %c0_i32_0 = arith.constant 0 : i32
    %c0_i32_1 = arith.constant 0 : i32
    return %c0_i32, %c0_i32_0 : i32, i32
  }
  func.func @transform_12(%arg0: i32) -> (i32, i32) {
    %c0_i32 = arith.constant 0 : i32
    %c0_i32_0 = arith.constant 0 : i32
    %c0_i32_1 = arith.constant 0 : i32
    return %c0_i32, %c0_i32_0 : i32, i32
  }
  func.func @transform_13(%arg0: i32) -> (i32, i32, i32) {
    %c0_i32 = arith.constant 0 : i32
    %c0_i32_0 = arith.constant 0 : i32
    %c0_i32_1 = arith.constant 0 : i32
    return %arg0, %c0_i32, %c0_i32_0 : i32, i32, i32
  }
}

</mosaic_0001>

<bundles_post_ra>
// kernel: sccnn_forward.3
= control target key start
LH: loop header
LB: loop body
LE: loop exit
PB: predicated region body
PF: predicated region fallthrough
CT: control target
= control target key end

     0   :  { %s16982_s0 = inlined_call_operand.vmem [shape: bf16[2,768,48], index: 0, kind: input, shape index: {}]   ;;  %s16983_s1 = inlined_call_operand.vmem [shape: bf16[48,128], index: 1, kind: input, shape index: {}]   ;;  %s16984_s2 = inlined_call_operand.vmem [shape: f32[1,128], index: 2, kind: input, shape index: {}]   ;;  %s16985_s3 = inlined_call_operand.vmem [shape: bf16[9,36,48], index: 3, kind: input, shape index: {}]   ;;  %s16986_s4 = inlined_call_operand.vmem [shape: f32[1,48], index: 4, kind: input, shape index: {}]   ;;  %s16987_s5 = inlined_call_operand.vmem [shape: bf16[25,48,512], index: 5, kind: input, shape index: {}]   ;;  %s16988_s6 = inlined_call_operand.vmem [shape: f32[1,512], index: 6, kind: input, shape index: {}]   ;;  %s16989_s7 = inlined_call_operand.vmem [shape: bf16[2,1,512], index: 7, kind: input, shape index: {}]   ;;  %s16990_s8 = inlined_call_operand.vmem [shape: bf16[512,512], index: 8, kind: input, shape index: {}]   ;;  %s16991_s9 = inlined_call_operand.vmem [shape: f32[1,512], index: 9, kind: input, shape index: {}]   ;;  %s16992_s10 = inlined_call_operand.vmem [shape: bf16[2,1,512], index: 10, kind: input, shape index: {}]   ;;  %s16993_s11 = inlined_call_operand.vmem [shape: bf16[512,128], index: 11, kind: input, shape index: {}]   ;;  %s16994_s12 = inlined_call_operand.vmem [shape: f32[1,128], index: 12, kind: input, shape index: {}]   ;;  %s16995_s13 = inlined_call_operand.hbm [shape: f32[2,1,128], index: 13, kind: output, shape index: {}]  }
   0x1   :  { %17022 = sst [smem:[#allocation40_spill]] %s16982_s0 }
   0x2   :  { %17023 = sst [smem:[#allocation41_spill]] %s16983_s1 }
   0x3   :  { %18 = vsyncpa [#allocation5], 0 }
   0x4   :  { %20 = vsyncpa [#allocation5 + $0x1], 0  ;;  %s13708_s25 = smov 0   ;;  %s13710_s26 = smov 0  }
   0x5   :  { %s13712_s27 = smov 0   ;;  %s13714_s28 = smov 0  }
   0x6 LB: > { %s13729_s29 = sadd.s32 4294967295, %s13634_s28   ;;  %s10786_s30 = sadd.s32 4294967294, %s13634_s28   ;;  %s13634_s28 = sphi %s13714_s28, %s17130_s28   ;;  %s13630_s27 = sphi %s13712_s27, %s17129_s27   ;;  %s13626_s26 = sphi %s13710_s26, %s17128_s26   ;;  %s13622_s25 = sphi %s13708_s25, %s17127_s25  }
   0x7   : > { %s13733_s14 = sadd.s32 1, %s13634_s28   ;;  %s321_s15 = sadd.s32 1, %s13630_s27 }
   0x8   : > { %s318_s16 = ssub.s32 %s13634_s28, %s13733_s14  ;;  %p331_p0 = scmp.ne.s32.totalorder %s13630_s27, %s13626_s26 }
   0x9   : > { %p319_p1 = scmp.eq.s32.totalorder %s318_s16, 0  ;;  %p332_p2 = scmp.eq.s32.totalorder %s13729_s29, 1 }
   0xa   : > { %p337_p3 = scmp.ne.s32.totalorder %s13626_s26, %s13622_s25  ;;  %p338_p4 = scmp.eq.s32.totalorder %s10786_s30, 1 }
   0xb   : > { %s13744_s17 = scalar_select %p319_p1, %s13630_s27, %s321_s15  }
   0xc   : > { %p13746_p5 = por %p332_p2, %p331_p0  ;;  %p13750_p6 = por %p338_p4, %p337_p3 }
   0xd   : > { %17024 = sst [smem:[#allocation7_spill]] %s13744_s17  ;;  %p10789_p7 = scmp.ge.s32.totalorder %s13634_s28, 1 }
   0xe   : > { %p408_p8 = scmp.lt.s32.totalorder %s13634_s28, 3 }
  0x10   : > { %p409_p9 = pnand %p10789_p7, %p408_p8 }
  0x12   : > { %412 = sbr.rel (%p409_p9) target bundleno = 2445 (0x98d), region = 72 }
  0x19   : > { %s17027_s1 = sld [smem:[#allocation41_spill]]  ;;  %p459_p10 = scmp.lt.s32.totalorder %s13729_s29, 1  ;;  %vm833_vm0 = vcmask 392192   ;;  %vm1618_vm1 = vcmask 289792   ;;  %vm2015_vm2 = vcmask 1041408   ;;  %vm1984_vm5 = vcmask 293888  }
  0x1a   : > { %s17028_s0 = sld [smem:[#allocation40_spill]]  ;;  %vm1690_vm3 = vsmask.f32 3328  ;;  %vm1691_vm4 = vsmask.f32 7440  ;;  %vm2373_vm7 = vcmask 1042432  }
  0x1b   : > { %s13767_s15 = scalar_select %p459_p10, %s13729_s29, 1  ;;  %vm14248_vm6 = vmor %vm1690_vm3, %vm1691_vm4  ;;  %vm2374_vm8 = vcmask 1046532   ;;  %vm10680_vm11 = vcmask 1040384  }
  0x1c   : > { %vm14475_vm9 = vmor %vm2373_vm7, %vm2374_vm8  ;;  %s457_s22 = sand.u32 1, %s13626_s26  }
  0x1d   : > { %s12749_s16 = smul.u32 384, %s13767_s15  ;;  %s17021_s20 = sshll.u32 %s13767_s15, 2 }
  0x1e   : > { %s17125_s23 = sshll.u32 %s13767_s15, 2  ;;  %s10695_s21 = scalar_lea.sflag [#allocation5], %s457_s22 }
  0x1f   : > { %v12790_v0 = vld [vmem:[%s17027_s1] sm:$0xff]   ;;  %v12791_v1 = vld [vmem:[%s17027_s1 + $0x8] sm:$0xff]   ;;  %v12792_v2 = vld [vmem:[%s17027_s1 + $0x10] sm:$0xff]   ;;  %s467_s1 = scalar_lea.vmem %s16989_s7, %s17021_s20 }
  0x20   : > { %12232 = vmatprep.subr.bf16.mxu0 %v12790_v0  ;;  %s13773_s17 = scalar_lea.vmem %s17028_s0, %s12749_s16  ;;  %s471_s16 = scalar_lea.vmem %s16992_s10, %s17125_s23 }
  0x21   : > { %12233 = vmatpush3.bf16.msra.mxu0 %v12790_v0  ;;  %v12793_v3 = vld [vmem:[%s13773_s17] sm:$0xff]   ;;  %v12794_v4 = vld [vmem:[%s13773_s17 + $0x8] sm:$0xff]   ;;  %v12795_v5 = vld [vmem:[%s13773_s17 + $0x10] sm:$0xff]   ;;  %s11993_s0 = sshll.u32 %s13729_s29, 4  ;;  %s13637_s29 = smov [#allocation4]  }
  0x22   : > { %12234 = vmatprep.subr.bf16.mxu0 %v12791_v1  ;;  %12238 = vmatprep.mubr.msk.bf16.mxu0 %vm833_vm0, %v12793_v3  ;;  %v12796_v6 = vld [vmem:[%s13773_s17 + $0x18] sm:$0xff]   ;;  %v12797_v7 = vld [vmem:[%s13773_s17 + $0x20] sm:$0xff]   ;;  %v12798_v8 = vld [vmem:[%s13773_s17 + $0x28] sm:$0xff]   ;;  %v16996_v3 = vmov 0   ;;  %s13576_s15 = sshll.u32 %s13637_s29, 4  ;;  %s13577_s15 = int_to_ptr.vmem [resolvable:$false] %s13576_s15 }
  0x23   : > { %v12799_v9 = vld [vmem:[%s13773_s17 + $0x30] sm:$0xff]   ;;  %v12800_v10 = vld [vmem:[%s13773_s17 + $0x38] sm:$0xff]   ;;  %v12801_v11 = vld [vmem:[%s13773_s17 + $0x40] sm:$0xff]   ;;  %1643 = vst.msk [vmem:[#allocation2 + $0x8] sm:$0xf] %vm1618_vm1, %v16996_v3  ;;  %s13578_s20 = scalar_lea.vmem %s13577_s15, 32 }
  0x24   : > { %v12802_v12 = vld [vmem:[%s13773_s17 + $0x48] sm:$0xff]   ;;  %v12803_v13 = vld [vmem:[%s13773_s17 + $0x50] sm:$0xff]   ;;  %v12804_v14 = vld [vmem:[%s13773_s17 + $0x58] sm:$0xff]   ;;  %1644 = vst.msk [vmem:[#allocation2 + $0x14] sm:$0xf] %vm1618_vm1, %v16996_v3 }
  0x25   : > { %12235 = vmatpush3.bf16.msra.mxu0 %v12791_v1  ;;  %v12805_v15 = vld [vmem:[%s13773_s17 + $0x60] sm:$0xff]   ;;  %v12806_v16 = vld [vmem:[%s13773_s17 + $0x68] sm:$0xff]   ;;  %v12807_v17 = vld [vmem:[%s13773_s17 + $0x70] sm:$0xff]   ;;  %1645 = vst.msk [vmem:[#allocation2 + $0x20] sm:$0xf] %vm1618_vm1, %v16996_v3 }
  0x26   : > { %12236 = vmatprep.subr.bf16.mxu0 %v12792_v2  ;;  %v12808_v18 = vld [vmem:[%s13773_s17 + $0x78] sm:$0xff]   ;;  %v12809_v19 = vld [vmem:[%s13773_s17 + $0x80] sm:$0xff]   ;;  %v12810_v20 = vld [vmem:[%s13773_s17 + $0x88] sm:$0xff]   ;;  %1646 = vst.msk [vmem:[#allocation2 + $0x2c] sm:$0xf] %vm1618_vm1, %v16996_v3 }
  0x27   : > { %v12811_v21 = vld [vmem:[%s13773_s17 + $0x90] sm:$0xff]   ;;  %v12812_v22 = vld [vmem:[%s13773_s17 + $0x98] sm:$0xff]   ;;  %v12813_v23 = vld [vmem:[%s13773_s17 + $0xa0] sm:$0xff]   ;;  %1647 = vst.msk [vmem:[#allocation2 + $0x38] sm:$0xf] %vm1618_vm1, %v16996_v3 }
  0x28   : > { %v12814_v24 = vld [vmem:[%s13773_s17 + $0xa8] sm:$0xff]   ;;  %v12815_v25 = vld [vmem:[%s13773_s17 + $0xb0] sm:$0xff]   ;;  %v12816_v26 = vld [vmem:[%s13773_s17 + $0xb8] sm:$0xff]   ;;  %1648 = vst.msk [vmem:[#allocation2 + $0x44] sm:$0xf] %vm1618_vm1, %v16996_v3 }
  0x29   : > { %12237 = vmatpush3.bf16.msra.mxu0 %v12792_v2  ;;  %v12817_v27 = vld [vmem:[%s13773_s17 + $0xc0] sm:$0xff]   ;;  %v12818_v28 = vld [vmem:[%s13773_s17 + $0xc8] sm:$0xff]   ;;  %v12819_v29 = vld [vmem:[%s13773_s17 + $0xd0] sm:$0xff]   ;;  %1649 = vst.msk [vmem:[#allocation2 + $0x50] sm:$0xf] %vm1618_vm1, %v16996_v3 }
  0x2a   : > { %v12820_v30 = vld [vmem:[%s13773_s17 + $0xd8] sm:$0xff]   ;;  %v12821_v31 = vld [vmem:[%s13773_s17 + $0xe0] sm:$0xff]   ;;  %v12822_v32 = vld [vmem:[%s13773_s17 + $0xe8] sm:$0xff]   ;;  %1650 = vst.msk [vmem:[#allocation2 + $0x5c] sm:$0xf] %vm1618_vm1, %v16996_v3 }
  0x2b   : > { %v12823_v33 = vld [vmem:[%s13773_s17 + $0xf0] sm:$0xff]   ;;  %v12824_v34 = vld [vmem:[%s13773_s17 + $0xf8] sm:$0xff]   ;;  %v12825_v35 = vld [vmem:[%s13773_s17 + $0x100] sm:$0xff]   ;;  %1651 = vst.msk [vmem:[#allocation2 + $0x68] sm:$0xf] %vm1618_vm1, %v16996_v3 }
  0x2c   : > { %12239 = vmatmul.mubr.msk.bf16.vlgmr.msra.gmra.mrb[0].mxu0 %vm833_vm0, %v12794_v4  ;;  %v12826_v36 = vld [vmem:[%s13773_s17 + $0x108] sm:$0xff]   ;;  %v12827_v37 = vld [vmem:[%s13773_s17 + $0x110] sm:$0xff]   ;;  %v12828_v38 = vld [vmem:[%s13773_s17 + $0x118] sm:$0xff]   ;;  %1652 = vst.msk [vmem:[#allocation2 + $0x74] sm:$0xf] %vm1618_vm1, %v16996_v3 }
  0x2d   : > { %12242 = vmatprep.mubr.msk.bf16.mxu0 %vm833_vm0, %v12795_v5  ;;  %v12829_v39 = vld [vmem:[%s13773_s17 + $0x120] sm:$0xff]   ;;  %v12830_v40 = vld [vmem:[%s13773_s17 + $0x128] sm:$0xff]   ;;  %v12831_v41 = vld [vmem:[%s13773_s17 + $0x130] sm:$0xff]   ;;  %1653 = vst.msk [vmem:[#allocation2 + $0x80] sm:$0xf] %vm1618_vm1, %v16996_v3 }
  0x2e   : > { %v12832_v42 = vld [vmem:[%s13773_s17 + $0x138] sm:$0xff]   ;;  %v12833_v43 = vld [vmem:[%s13773_s17 + $0x140] sm:$0xff]   ;;  %v12834_v44 = vld [vmem:[%s13773_s17 + $0x148] sm:$0xff]   ;;  %1654 = vst.msk [vmem:[#allocation2 + $0x8c] sm:$0xf] %vm1618_vm1, %v16996_v3 }
  0x2f   : > { %v12835_v45 = vld [vmem:[%s13773_s17 + $0x150] sm:$0xff]   ;;  %v12836_v46 = vld [vmem:[%s13773_s17 + $0x158] sm:$0xff]   ;;  %v12837_v47 = vld [vmem:[%s13773_s17 + $0x160] sm:$0xff]  }
  0x30   : > { %v12838_v48 = vld [vmem:[%s13773_s17 + $0x168] sm:$0xff]   ;;  %v12839_v49 = vld [vmem:[%s13773_s17 + $0x170] sm:$0xff]   ;;  %v12840_v50 = vld [vmem:[%s13773_s17 + $0x178] sm:$0xff]  }
  0x34   : > { %12243 = vmatmul.mubr.msk.bf16.gmra.mrb[4].mxu0 %vm833_vm0, %v12796_v6 }
  0x35   : > { %12246 = vmatprep.mubr.msk.bf16.mxu0 %vm833_vm0, %v12797_v7 }
  0x3c   : > { %12247 = vmatmul.mubr.msk.bf16.gmra.mrb[8].mxu0 %vm833_vm0, %v12798_v8  ;;  %v12841_v8 = vld [vmem:[%s16985_s3 + $0x14] sm:$0xff]  }
  0x3d   : > { %12250 = vmatprep.mubr.msk.bf16.mxu0 %vm833_vm0, %v12799_v9  ;;  %12334 = vmatprep.subr.bf16.mxu1 %v12841_v8 }
  0x3e   : > { %12335 = vmatpush3.bf16.msra.mxu1 %v12841_v8 }
  0x44   : > { %12251 = vmatmul.mubr.msk.bf16.gmra.mrb[12].mxu0 %vm833_vm0, %v12800_v10  ;;  %v12842_v10 = vld [vmem:[%s16985_s3 + $0x1c] sm:$0xff]  }
  0x45   : > { %12254 = vmatprep.mubr.msk.bf16.mxu0 %vm833_vm0, %v12801_v11  ;;  %12336 = vmatprep.subr.bf16.mxu1 %v12842_v10 }
  0x46   : > { %12337 = vmatpush3.bf16.msra.mxu1 %v12842_v10 }
  0x4c   : > { %12255 = vmatmul.mubr.msk.bf16.gmra.mrb[16].mxu0 %vm833_vm0, %v12802_v12 }
  0x4d   : > { %12258 = vmatprep.mubr.msk.bf16.mxu0 %vm833_vm0, %v12803_v13 }
  0x54   : > { %12259 = vmatmul.mubr.msk.bf16.gmra.mrb[20].mxu0 %vm833_vm0, %v12804_v14  ;;  %v12843_v14 = vld [vmem:[%s16985_s3 + $0x24] ss:$0 sps:$4 sm:$0x33]  }
  0x55   : > { %12262 = vmatprep.mubr.msk.bf16.mxu0 %vm833_vm0, %v12805_v15  ;;  %12740 = vmatprep.subr.msk.bf16.mxu1 %vm2015_vm2, %v12843_v14  ;;  %v2017_v15 = vsel %vm2015_vm2, %v12843_v14, 0 }
  0x56   : > { %12339 = vmatpush3.bf16.msra.mxu1 %v2017_v15 }
  0x5c   : > { %12263 = vmatmul.mubr.msk.bf16.gmra.mrb[24].mxu0 %vm833_vm0, %v12806_v16 }
  0x5d   : > { %12266 = vmatprep.mubr.msk.bf16.mxu0 %vm833_vm0, %v12807_v17 }
  0x64   : > { %12267 = vmatmul.mubr.msk.bf16.gmra.mrb[28].mxu0 %vm833_vm0, %v12808_v18 }
  0x65   : > { %12270 = vmatprep.mubr.msk.bf16.mxu0 %vm833_vm0, %v12809_v19 }
  0x6c   : > { %12271 = vmatmul.mubr.msk.bf16.gmra.mrb[32].mxu0 %vm833_vm0, %v12810_v20 }
  0x6d   : > { %12274 = vmatprep.mubr.msk.bf16.mxu0 %vm833_vm0, %v12811_v21 }
  0x74   : > { %12275 = vmatmul.mubr.msk.bf16.gmra.mrb[36].mxu0 %vm833_vm0, %v12812_v22 }
  0x75   : > { %12278 = vmatprep.mubr.msk.bf16.mxu0 %vm833_vm0, %v12813_v23 }
  0x7c   : > { %12279 = vmatmul.mubr.msk.bf16.gmra.mrb[40].mxu0 %vm833_vm0, %v12814_v24 }
  0x7d   : > { %12282 = vmatprep.mubr.msk.bf16.mxu0 %vm833_vm0, %v12815_v25 }
  0x84   : > { %12283 = vmatmul.mubr.msk.bf16.gmra.mrb[44].mxu0 %vm833_vm0, %v12816_v26 }
  0x85   : > { %12286 = vmatprep.mubr.msk.bf16.mxu0 %vm833_vm0, %v12817_v27 }
  0x8c   : > { %12287 = vmatmul.mubr.msk.bf16.gmra.mrb[48].mxu0 %vm833_vm0, %v12818_v28 }
  0x8d   : > { %12290 = vmatprep.mubr.msk.bf16.mxu0 %vm833_vm0, %v12819_v29 }
  0x94   : > { %12291 = vmatmul.mubr.msk.bf16.gmra.mrb[52].mxu0 %vm833_vm0, %v12820_v30 }
  0x95   : > { %12294 = vmatprep.mubr.msk.bf16.mxu0 %vm833_vm0, %v12821_v31 }
  0x9c   : > { %12295 = vmatmul.mubr.msk.bf16.gmra.mrb[56].mxu0 %vm833_vm0, %v12822_v32  ;;  %v13990_v32 = vld [vmem:[%s16985_s3] sm:$0xff]  }
  0x9d   : > { %12298 = vmatprep.mubr.msk.bf16.mxu0 %vm833_vm0, %v12823_v33  ;;  %17040 = vst [vmem:[#allocation19_spill] sm:$0xff] %v13990_v32  ;;  %12360 = vmatprep.subr.bf16.mxu1 %v13990_v32 }
  0xa4   : > { %12299 = vmatmul.mubr.msk.bf16.gmra.mrb[60].mxu0 %vm833_vm0, %v12824_v34 }
  0xa5   : > { %12302 = vmatprep.mubr.msk.bf16.mxu0 %vm833_vm0, %v12825_v35 }
  0xac   : > { %12303 = vmatmul.mubr.msk.bf16.gmra.mrb[64].mxu0 %vm833_vm0, %v12826_v36 }
  0xad   : > { %12306 = vmatprep.mubr.msk.bf16.mxu0 %vm833_vm0, %v12827_v37 }
  0xb4   : > { %12307 = vmatmul.mubr.msk.bf16.gmra.mrb[68].mxu0 %vm833_vm0, %v12828_v38 }
  0xb5   : > { %12310 = vmatprep.mubr.msk.bf16.mxu0 %vm833_vm0, %v12829_v39 }
  0xbc   : > { %12311 = vmatmul.mubr.msk.bf16.gmra.mrb[72].mxu0 %vm833_vm0, %v12830_v40 }
  0xbd   : > { %12314 = vmatprep.mubr.msk.bf16.mxu0 %vm833_vm0, %v12831_v41 }
  0xc4   : > { %12315 = vmatmul.mubr.msk.bf16.gmra.mrb[76].mxu0 %vm833_vm0, %v12832_v42 }
  0xc5   : > { %12318 = vmatprep.mubr.msk.bf16.mxu0 %vm833_vm0, %v12833_v43 }
  0xcc   : > { %12319 = vmatmul.mubr.msk.bf16.gmra.mrb[80].mxu0 %vm833_vm0, %v12834_v44 }
  0xcd   : > { %12322 = vmatprep.mubr.msk.bf16.mxu0 %vm833_vm0, %v12835_v45 }
  0xd4   : > { %12323 = vmatmul.mubr.msk.bf16.gmra.mrb[84].mxu0 %vm833_vm0, %v12836_v46 }
  0xd5   : > { %12326 = vmatprep.mubr.msk.bf16.mxu0 %vm833_vm0, %v12837_v47 }
  0xdc   : > { %12327 = vmatmul.mubr.msk.bf16.gmra.mrb[88].mxu0 %vm833_vm0, %v12838_v48 }
  0xdd   : > { %12330 = vmatprep.mubr.msk.bf16.mxu0 %vm833_vm0, %v12839_v49 }
  0xe4   : > { %12331 = vmatmul.mubr.msk.bf16.gmra.mrb[92].mxu0 %vm833_vm0, %v12840_v50 }
  0xe5   : > { %5023 = vmatprep.mubr.bf16.mxu0 %v16996_v3 }
  0xff   : > { %v13871_v51 = vpop.f32.mrb[0].mxu0 }
 0x100   : > { %v13873_v52 = vpop.f32.mrb[1].mxu0 }
 0x101   : > { %v13875_v53 = vpop.f32.mrb[2].mxu0 }
 0x102   : > { %v13877_v54 = vpop.f32.mrb[3].mxu0 }
 0x107   : > { %v13879_v55 = vpop.f32.mrb[4].mxu0 }
 0x108   : > { %v13881_v56 = vpop.f32.mrb[5].mxu0 }
 0x109   : > { %v13883_v57 = vpop.f32.mrb[6].mxu0 }
 0x10a   : > { %v13885_v58 = vpop.f32.mrb[7].mxu0 }
 0x10f   : > { %v13887_v59 = vpop.f32.mrb[8].mxu0 }
 0x110   : > { %v13889_v60 = vpop.f32.mrb[9].mxu0 }
 0x111   : > { %v13891_v61 = vpop.f32.mrb[10].mxu0 }
 0x112   : > { %v13893_v62 = vpop.f32.mrb[11].mxu0 }
 0x117   : > { %v13895_v63 = vpop.f32.mrb[12].mxu0 }
 0x118   : > { %v13897_v0 = vpop.f32.mrb[13].mxu0 }
 0x119   : > { %17029 = vst [vmem:[#allocation8_spill] sm:$0xff] %v13897_v0  ;;  %v13899_v1 = vpop.f32.mrb[14].mxu0 }
 0x11a   : > { %17030 = vst [vmem:[#allocation9_spill] sm:$0xff] %v13899_v1  ;;  %v13901_v2 = vpop.f32.mrb[15].mxu0 }
 0x11b   : > { %17031 = vst [vmem:[#allocation10_spill] sm:$0xff] %v13901_v2 }
 0x11f   : > { %v13928_v4 = vpop.f32.mrb[16].mxu0 }
 0x120   : > { %17032 = vst [vmem:[#allocation11_spill] sm:$0xff] %v13928_v4  ;;  %v13930_v5 = vpop.f32.mrb[17].mxu0 }
 0x121   : > { %17033 = vst [vmem:[#allocation12_spill] sm:$0xff] %v13930_v5  ;;  %v13932_v6 = vpop.f32.mrb[18].mxu0 }
 0x122   : > { %17034 = vst [vmem:[#allocation13_spill] sm:$0xff] %v13932_v6  ;;  %v13934_v7 = vpop.f32.mrb[19].mxu0  ;;  %v14100_v6 = vld [vmem:[#allocation2 + $0x14] sm:$0x1] }
 0x123   : > { %17035 = vst [vmem:[#allocation14_spill] sm:$0xff] %v13934_v7 }
 0x127   : > { %v13939_v9 = vpop.f32.mrb[20].mxu0 }
 0x128   : > { %17036 = vst [vmem:[#allocation15_spill] sm:$0xff] %v13939_v9  ;;  %v13944_v11 = vpop.f32.mrb[21].mxu0 }
 0x129   : > { %17037 = vst [vmem:[#allocation16_spill] sm:$0xff] %v13944_v11  ;;  %v13946_v12 = vpop.f32.mrb[22].mxu0 }
 0x12a   : > { %17038 = vst [vmem:[#allocation17_spill] sm:$0xff] %v13946_v12  ;;  %v13948_v13 = vpop.f32.mrb[23].mxu0 }
 0x12b   : > { %17039 = vst [vmem:[#allocation18_spill] sm:$0xff] %v13948_v13 }
 0x12f   : > { %v13955_v16 = vpop.f32.mrb[24].mxu0 }
 0x130   : > { %v13959_v18 = vpop.f32.mrb[25].mxu0 }
 0x131   : > { %v13963_v20 = vpop.f32.mrb[26].mxu0 }
 0x132   : > { %v13967_v22 = vpop.f32.mrb[27].mxu0 }
 0x137   : > { %v13971_v24 = vpop.f32.mrb[28].mxu0 }
 0x138   : > { %v13975_v26 = vpop.f32.mrb[29].mxu0 }
 0x139   : > { %v13979_v28 = vpop.f32.mrb[30].mxu0 }
 0x13a   : > { %v13983_v30 = vpop.f32.mrb[31].mxu0 }
 0x13f   : > { %v13993_v33 = vpop.f32.mrb[32].mxu0 }
 0x140   : > { %v13997_v35 = vpop.f32.mrb[33].mxu0 }
 0x141   : > { %v14001_v37 = vpop.f32.mrb[34].mxu0 }
 0x142   : > { %v14005_v39 = vpop.f32.mrb[35].mxu0 }
 0x147   : > { %v14009_v41 = vpop.f32.mrb[36].mxu0 }
 0x148   : > { %v14013_v43 = vpop.f32.mrb[37].mxu0 }
 0x149   : > { %17041 = vst [vmem:[#allocation20_spill] sm:$0xff] %v14013_v43  ;;  %v14017_v45 = vpop.f32.mrb[38].mxu0 }
 0x14a   : > { %17042 = vst [vmem:[#allocation21_spill] sm:$0xff] %v14017_v45  ;;  %v14021_v47 = vpop.f32.mrb[39].mxu0 }
 0x14b   : > { %17043 = vst [vmem:[#allocation22_spill] sm:$0xff] %v14021_v47  ;;  %v17062_v47 = vmax.f32 %v13873_v52, %v13959_v18  ;;  %v17064_v52 = vmax.f32 %v13877_v54, %v13967_v22  ;;  %v14138_v18 = vld [vmem:[#allocation2 + $0x38] sm:$0x1] }
 0x14f   : > { %v14025_v49 = vpop.f32.mrb[40].mxu0 }
 0x150   : > { %17044 = vst [vmem:[#allocation23_spill] sm:$0xff] %v14025_v49  ;;  %v14029_v8 = vpop.f32.mrb[41].mxu0 }
 0x151   : > { %17045 = vst [vmem:[#allocation24_spill] sm:$0xff] %v14029_v8  ;;  %v14033_v14 = vpop.f32.mrb[42].mxu0 }
 0x152   : > { %17046 = vst [vmem:[#allocation25_spill] sm:$0xff] %v14033_v14  ;;  %v14037_v3 = vpop.f32.mrb[43].mxu0 }
 0x153   : > { %17047 = vst [vmem:[#allocation26_spill] sm:$0xff] %v14037_v3  ;;  %v14097_v3 = vld [vmem:[#allocation2 + $0x8] sm:$0x1] }
 0x154   : > { %v1713_v14 = vshll.u32 %v14097_v3, 16 }
 0x156   : > { %v14120_v1 = vrot.slane %v1713_v14, 5 }
 0x157   : > { %v14041_v46 = vpop.f32.mrb[44].mxu0 }
 0x158   : > { %17048 = vst [vmem:[#allocation27_spill] sm:$0xff] %v14041_v46  ;;  %v14045_v44 = vpop.f32.mrb[45].mxu0 }
 0x159   : > { %17049 = vst [vmem:[#allocation28_spill] sm:$0xff] %v14045_v44  ;;  %v14049_v42 = vpop.f32.mrb[46].mxu0 }
 0x15a   : > { %17050 = vst [vmem:[#allocation29_spill] sm:$0xff] %v14049_v42  ;;  %v14053_v40 = vpop.f32.mrb[47].mxu0 }
 0x15b   : > { %17051 = vst [vmem:[#allocation30_spill] sm:$0xff] %v14053_v40 }
 0x15f   : > { %v12288_v38 = vpop.f32.mrb[48].mxu0 }
 0x160   : > { %v1204_v36 = vpop.f32.mrb[49].mxu0 }
 0x161   : > { %v12289_v34 = vpop.f32.mrb[50].mxu0 }
 0x162   : > { %v1207_v31 = vpop.f32.mrb[51].mxu0 }
 0x167   : > { %v14057_v50 = vpop.f32.mrb[52].mxu0 }
 0x168   : > { %v14059_v29 = vpop.f32.mrb[53].mxu0 }
 0x169   : > { %v14061_v27 = vpop.f32.mrb[54].mxu0 }
 0x16a   : > { %v14063_v10 = vpop.f32.mrb[55].mxu0 }
 0x16f   : > { %v14065_v25 = vpop.f32.mrb[56].mxu0 }
 0x170   : > { %v14067_v15 = vpop.f32.mrb[57].mxu0 }
 0x171   : > { %v14069_v23 = vpop.f32.mrb[58].mxu0 }
 0x172   : > { %v14071_v21 = vpop.f32.mrb[59].mxu0 }
 0x177   : > { %v14073_v48 = vpop.f32.mrb[60].mxu0 }
 0x178   : > { %v14075_v19 = vpop.f32.mrb[61].mxu0 }
 0x179   : > { %v14077_v17 = vpop.f32.mrb[62].mxu0 }
 0x17a   : > { %v14079_v40 = vpop.f32.mrb[63].mxu0 }
 0x17b   : > { %17052 = vst [vmem:[#allocation31_spill] sm:$0xff] %v14079_v40  ;;  %v17063_v40 = vmax.f32 %v13875_v53, %v13963_v20  ;;  %v14142_v20 = vld [vmem:[#allocation2 + $0x44] sm:$0x1] }
 0x17c   : > { %v1833_v22 = vshll.u32 %v14142_v20, 16 }
 0x17f   : > { %v14081_v13 = vpop.f32.mrb[64].mxu0 }
 0x180   : > { %17053 = vst [vmem:[#allocation32_spill] sm:$0xff] %v14081_v13  ;;  %v14083_v42 = vpop.f32.mrb[65].mxu0 }
 0x181   : > { %17054 = vst [vmem:[#allocation33_spill] sm:$0xff] %v14083_v42  ;;  %v14085_v12 = vpop.f32.mrb[66].mxu0 }
 0x182   : > { %17055 = vst [vmem:[#allocation34_spill] sm:$0xff] %v14085_v12  ;;  %v14087_v32 = vpop.f32.mrb[67].mxu0  ;;  %v1737_v12 = vshll.u32 %v14100_v6, 16 }
 0x183   : > { %17056 = vst [vmem:[#allocation35_spill] sm:$0xff] %v14087_v32  ;;  %v14103_v32 = vld [vmem:[#allocation2 + $0x20] sm:$0x1] }
 0x184   : > { %v1761_v49 = vshll.u32 %v14103_v32, 16  ;;  %v14127_v0 = vrot.slane %v1737_v12, 5  ;;  %v1809_v12 = vshll.u32 %v14138_v18, 16 }
 0x187   : > { %v14089_v44 = vpop.f32.mrb[68].mxu0 }
 0x188   : > { %17057 = vst [vmem:[#allocation36_spill] sm:$0xff] %v14089_v44  ;;  %v14091_v11 = vpop.f32.mrb[69].mxu0  ;;  %v14105_v44 = vld [vmem:[#allocation2 + $0x2c] sm:$0x1] }
 0x189   : > { %17058 = vst [vmem:[#allocation37_spill] sm:$0xff] %v14091_v11  ;;  %v14093_v46 = vpop.f32.mrb[70].mxu0  ;;  %v1785_v4 = vshll.u32 %v14105_v44, 16 }
 0x18a   : > { %17059 = vst [vmem:[#allocation38_spill] sm:$0xff] %v14093_v46  ;;  %v14095_v9 = vpop.f32.mrb[71].mxu0  ;;  %v14110_v46 = vld [vmem:[%s16984_s2] ss:$0 sm:$0xff] }
 0x18b   : > { %17060 = vst [vmem:[#allocation39_spill] sm:$0xff] %v14095_v9 }
 0x18f   : > { %v12312_v7 = vpop.f32.mrb[72].mxu0 }
 0x190   : > { %v1421_v8 = vmax.f32 %v12288_v38, %v12312_v7  ;;  %v1300_v5 = vpop.f32.mrb[73].mxu0  ;;  %v17061_v7 = vmax.f32 %v13871_v51, %v13955_v16  ;;  %v2388_v51 = vrot.slane %v14100_v6, 5  ;;  %v14136_v16 = vrot.slane %v1785_v4, 5 }
 0x191   : > { %v1419_v9 = vmax.f32 %v1204_v36, %v1300_v5  ;;  %v12313_v11 = vpop.f32.mrb[74].mxu0  ;;  %v2381_v5 = vrot.slane %v14097_v3, 5 }
 0x192   : > { %v1445_v38 = vmax.f32 %v17061_v7, %v1421_v8  ;;  %v1422_v42 = vmax.f32 %v12289_v34, %v12313_v11  ;;  %v1303_v13 = vpop.f32.mrb[75].mxu0  ;;  %v14144_v34 = vld [vmem:[#allocation2 + $0x50] sm:$0x1] }
 0x193   : > { %v1443_v2 = vmax.f32 %v17062_v47, %v1419_v9  ;;  %v1420_v45 = vmax.f32 %v1207_v31, %v1303_v13  ;;  %v14134_v13 = vrot.slane %v1761_v49, 5  ;;  %v1857_v4 = vshll.u32 %v14144_v34, 16 }
 0x194   : > { %v1476_v36 = vadd.f32 %v14110_v46, %v1445_v38  ;;  %v1446_v43 = vmax.f32 %v17063_v40, %v1422_v42  ;;  %v14149_v42 = vld [vmem:[#allocation2 + $0x5c] sm:$0x1] }
 0x195   : > { %v1474_v11 = vadd.f32 %v14110_v46, %v1443_v2  ;;  %v1444_v9 = vmax.f32 %v17064_v52, %v1420_v45  ;;  %v1881_v8 = vshll.u32 %v14149_v42, 16  ;;  %v14156_v52 = vld [vmem:[#allocation2 + $0x74] sm:$0x1] }
 0x196   : > { %v1500_v31 = vmax.f32 %v1476_v36, 0.0  ;;  %v1477_v53 = vadd.f32 %v14110_v46, %v1446_v43 }
 0x197   : > { %v1498_v2 = vmax.f32 %v1474_v11, 0.0  ;;  %v1475_v40 = vadd.f32 %v14110_v46, %v1444_v9  ;;  %v12316_v54 = vpop.f32.mrb[76].mxu0  ;;  %v14154_v11 = vld [vmem:[#allocation2 + $0x68] sm:$0x1] }
 0x198   : > { %v11998_v45 = vpack.c.bf16 %v1500_v31, %v1500_v31  ;;  %v1501_v47 = vmax.f32 %v1477_v53, 0.0  ;;  %v1425_v43 = vmax.f32 %v14057_v50, %v12316_v54  ;;  %v1316_v49 = vpop.f32.mrb[77].mxu0  ;;  %v17065_v31 = vmax.f32 %v13879_v55, %v13971_v24 }
 0x199   : > { %v11996_v14 = vpack.c.bf16 %v1498_v2, %v1498_v2  ;;  %v1499_v7 = vmax.f32 %v1475_v40, 0.0  ;;  %v1423_v38 = vmax.f32 %v14059_v29, %v1316_v49  ;;  %v12317_v36 = vpop.f32.mrb[78].mxu0  ;;  %v14166_v2 = vld [vmem:[%s16985_s3 + $0x10] ss:$0 sps:$4 sm:$0x33]   ;;  %v1905_v29 = vshll.u32 %v14154_v11, 16 }
 0x19a   : > { %1621 = vst.msk [vmem:[#allocation2 + $0xc] sm:$0xf] %vm1618_vm1, %v11998_v45  ;;  %v11999_v9 = vpack.c.bf16 %v1501_v47, %v1501_v47  ;;  %v1449_v53 = vmax.f32 %v17065_v31, %v1425_v43  ;;  %v1426_v50 = vmax.f32 %v14061_v27, %v12317_v36  ;;  %v1319_v54 = vpop.f32.mrb[79].mxu0  ;;  %v17066_v45 = vmax.f32 %v13881_v56, %v13975_v26 }
 0x19b   : > { %1619 = vst.msk [vmem:[#allocation2] sm:$0xf] %vm1618_vm1, %v11996_v14  ;;  %v11997_v40 = vpack.c.bf16 %v1499_v7, %v1499_v7  ;;  %v1424_v55 = vmax.f32 %v14063_v10, %v1319_v54  ;;  %v1929_v24 = vshll.u32 %v14156_v52, 16  ;;  %v17067_v43 = vmax.f32 %v13883_v57, %v13979_v28 }
 0x19c   : > { %v1447_v47 = vmax.f32 %v17066_v45, %v1423_v38  ;;  %1622 = vst.msk [vmem:[#allocation2 + $0x10] sm:$0xf] %vm1618_vm1, %v11999_v9  ;;  %v1480_v27 = vadd.f32 %v14110_v46, %v1449_v53  ;;  %v14180_v36 = vrot.slane %v1809_v12, 5  ;;  %v14182_v14 = vrot.slane %v1833_v22, 5 }
 0x19d   : > { %v1450_v49 = vmax.f32 %v17067_v43, %v1426_v50  ;;  %1620 = vst.msk [vmem:[#allocation2 + $0x4] sm:$0xf] %vm1618_vm1, %v11997_v40  ;;  %v17068_v26 = vmax.f32 %v13885_v58, %v13983_v30  ;;  %v14189_v7 = vrot.slane %v1857_v4, 5  ;;  %v14191_v38 = vrot.slane %v1881_v8, 5 }
 0x19e   : > { %v1478_v56 = vadd.f32 %v14110_v46, %v1447_v47  ;;  %v1504_v9 = vmax.f32 %v1480_v27, 0.0  ;;  %v14196_v28 = vsel %vm2015_vm2, %v14166_v2, 0  ;;  %v14198_v12 = vrot.slane %v1905_v29, 5 }
 0x19f   : > { %v1448_v10 = vmax.f32 %v17068_v26, %v1424_v55  ;;  %v1481_v57 = vadd.f32 %v14110_v46, %v1450_v49  ;;  %v12320_v58 = vpop.f32.mrb[80].mxu0  ;;  %v14201_v30 = vrot.slane %v1929_v24, 5  ;;  %v2402_v4 = vrot.slane %v14105_v44, 5 }
 0x1a0   : > { %v1502_v22 = vmax.f32 %v1478_v56, 0.0  ;;  %v12002_v8 = vpack.c.bf16 %v1504_v9, %v1504_v9  ;;  %v1429_v50 = vmax.f32 %v14065_v25, %v12320_v58  ;;  %v1332_v54 = vpop.f32.mrb[81].mxu0  ;;  %v2395_v40 = vrot.slane %v14103_v32, 5 }
 0x1a1   : > { %v1479_v31 = vadd.f32 %v14110_v46, %v1448_v10  ;;  %v1505_v53 = vmax.f32 %v1481_v57, 0.0  ;;  %v1427_v29 = vmax.f32 %v14067_v15, %v1332_v54  ;;  %v12321_v55 = vpop.f32.mrb[82].mxu0  ;;  %v14207_v27 = vld [vmem:[#allocation2 + $0xc] sm:$0xf]  ;;  %v17069_v49 = vmax.f32 %v13887_v59, %v13993_v33 }
 0x1a2   : > { %v12000_v45 = vpack.c.bf16 %v1502_v22, %v1502_v22  ;;  %1625 = vst.msk [vmem:[#allocation2 + $0x24] sm:$0xf] %vm1618_vm1, %v12002_v8  ;;  %v1430_v25 = vmax.f32 %v14069_v23, %v12321_v55  ;;  %v1335_v26 = vpop.f32.mrb[83].mxu0  ;;  %v14215_v10 = vld [vmem:[#allocation2] sm:$0xf]  ;;  %v1718_v9 = vshrl.u32 %v14207_v27, 16  ;;  %v17070_v57 = vmax.f32 %v13889_v60, %v13997_v35 }
 0x1a3   : > { %v1503_v47 = vmax.f32 %v1479_v31, 0.0  ;;  %v12003_v24 = vpack.c.bf16 %v1505_v53, %v1505_v53  ;;  %v1453_v56 = vmax.f32 %v17069_v49, %v1429_v50  ;;  %v1428_v31 = vmax.f32 %v14071_v21, %v1335_v26 }
 0x1a4   : > { %1623 = vst.msk [vmem:[#allocation2 + $0x18] sm:$0xf] %vm1618_vm1, %v12000_v45  ;;  %v1451_v22 = vmax.f32 %v17070_v57, %v1427_v29  ;;  %v1694_v58 = vshrl.u32 %v14215_v10, 16  ;;  %v17071_v23 = vmax.f32 %v13891_v61, %v14001_v37  ;;  %v14229_v8 = vld [vmem:[#allocation2 + $0x4] sm:$0xf]  ;;  %v1697_v53 = vshll.u32 %v14215_v10, 16 }
 0x1a5   : > { %v12001_v15 = vpack.c.bf16 %v1503_v47, %v1503_v47  ;;  %1626 = vst.msk [vmem:[#allocation2 + $0x28] sm:$0xf] %vm1618_vm1, %v12003_v24  ;;  %v1484_v59 = vadd.f32 %v14110_v46, %v1453_v56  ;;  %v14232_v50 = vrot.slane %v1718_v9, 4  ;;  %v17072_v21 = vmax.f32 %v13893_v62, %v14005_v39 }
 0x1a6   : > { %v1454_v33 = vmax.f32 %v17071_v23, %v1430_v25  ;;  %v1482_v60 = vadd.f32 %v14110_v46, %v1451_v22  ;;  %v1696_v54 = vrot.slane %v1694_v58, 4  ;;  %v1703_v45 = vshll.u32 %v14229_v8, 16 }
 0x1a7   : > { %1624 = vst.msk [vmem:[#allocation2 + $0x1c] sm:$0xf] %vm1618_vm1, %v12001_v15  ;;  %v1452_v35 = vmax.f32 %v17072_v21, %v1428_v31  ;;  %v1508_v47 = vmax.f32 %v1484_v59, 0.0  ;;  %v1699_v37 = vrot.slane %v1697_v53, 5  ;;  %v1707_v29 = vshrl.u32 %v14229_v8, 16  ;;  %v12324_v49 = vpop.f32.mrb[84].mxu0 }
 0x1a8   : > { %v1485_v61 = vadd.f32 %v14110_v46, %v1454_v33  ;;  %v1506_v55 = vmax.f32 %v1482_v60, 0.0  ;;  %v1705_v56 = vrot.slane %v1703_v45, 5  ;;  %v1721_v25 = vshll.u32 %v14207_v27, 16  ;;  %v1348_v9 = vpop.f32.mrb[85].mxu0  ;;  %v17076_v45 = vld [vmem:[#allocation8_spill] sm:$0xff] }
 0x1a9   : > { %v1483_v24 = vadd.f32 %v14110_v46, %v1452_v35  ;;  %v12006_v26 = vpack.c.bf16 %v1508_v47, %v1508_v47  ;;  %v1433_v39 = vmax.f32 %v14073_v48, %v12324_v49  ;;  %v1700_v15 = vor.u32 %v1699_v37, %v1696_v54  ;;  %v12325_v58 = vpop.f32.mrb[86].mxu0  ;;  %v17077_v47 = vld [vmem:[#allocation20_spill] sm:$0xff] }
 0x1aa   : > { %v1509_v62 = vmax.f32 %v1485_v61, 0.0  ;;  %v12004_v57 = vpack.c.bf16 %v1506_v55, %v1506_v55  ;;  %v1431_v31 = vmax.f32 %v14075_v19, %v1348_v9  ;;  %v1709_v23 = vrot.slane %v1707_v29, 4  ;;  %v1351_v21 = vpop.f32.mrb[87].mxu0  ;;  %v14257_v19 = vld [vmem:[#allocation2 + $0x10] sm:$0xf]  ;;  %v17079_v29 = vld [vmem:[#allocation31_spill] sm:$0xff] }
 0x1ab   : > { %v1507_v22 = vmax.f32 %v1483_v24, 0.0  ;;  %1629 = vst.msk [vmem:[#allocation2 + $0x3c] sm:$0xf] %vm1618_vm1, %v12006_v26  ;;  %v17075_v48 = vmax.f32 %v13895_v63, %v14009_v41  ;;  %v1434_v60 = vmax.f32 %v14077_v17, %v12325_v58  ;;  %v1701_v35 = vrot.slane %v1700_v15, 4  ;;  %v17080_v41 = vld [vmem:[#allocation9_spill] sm:$0xff]  ;;  %v17083_v15 = vld [vmem:[#allocation10_spill] sm:$0xff] }
 0x1ac   : > { %v12007_v33 = vpack.c.bf16 %v1509_v62, %v1509_v62  ;;  %1627 = vst.msk [vmem:[#allocation2 + $0x30] sm:$0xf] %vm1618_vm1, %v12004_v57  ;;  %v17078_v61 = vmax.f32 %v17076_v45, %v17077_v47  ;;  %v1432_v55 = vmax.f32 %v17079_v29, %v1351_v21  ;;  %v1710_v24 = vor.u32 %v1709_v23, %v1705_v56  ;;  %v17081_v17 = vld [vmem:[#allocation21_spill] sm:$0xff]  ;;  %v17084_v57 = vld [vmem:[#allocation22_spill] sm:$0xff] }
 0x1ad   : > { %v1457_v53 = vmax.f32 %v17075_v48, %v1433_v39  ;;  %v12005_v54 = vpack.c.bf16 %v1507_v22, %v1507_v22  ;;  %v17082_v49 = vmax.f32 %v17080_v41, %v17081_v17  ;;  %v1706_v62 = vsel %vm14248_vm6, %v1701_v35, %v1705_v56 }
 0x1ae   : > { %v1455_v37 = vmax.f32 %v17078_v61, %v1431_v31  ;;  %1630 = vst.msk [vmem:[#allocation2 + $0x40] sm:$0xf] %vm1618_vm1, %v12007_v33  ;;  %v1723_v39 = vrot.slane %v1721_v25, 5  ;;  %v17085_v22 = vmax.f32 %v17083_v15, %v17084_v57  ;;  %v1711_v58 = vrot.slane %v1710_v24, 4  ;;  %v17086_v61 = vld [vmem:[#allocation32_spill] sm:$0xff]  ;;  %v17091_v57 = vld [vmem:[#allocation34_spill] sm:$0xff] }
 0x1af   : > { %v1488_v63 = vadd.f32 %v14110_v46, %v1457_v53  ;;  %v1458_v26 = vmax.f32 %v17082_v49, %v1434_v60  ;;  %1628 = vst.msk [vmem:[#allocation2 + $0x34] sm:$0xf] %vm1618_vm1, %v12005_v54  ;;  %v1727_v23 = vshll.u32 %v14257_v19, 16  ;;  %v1731_v60 = vshrl.u32 %v14257_v19, 16  ;;  %v12328_v21 = vpop.f32.mrb[88].mxu0 }
 0x1b0   : > { %v1486_v9 = vadd.f32 %v14110_v46, %v1455_v37  ;;  %v1456_v31 = vmax.f32 %v17085_v22, %v1432_v55  ;;  %v1724_v53 = vor.u32 %v1723_v39, %v14232_v50  ;;  %v1716_v35 = vsel %vm14248_vm6, %v1711_v58, %v14120_v1  ;;  %v1364_v29 = vpop.f32.mrb[89].mxu0  ;;  %v17087_v50 = vld [vmem:[#allocation33_spill] sm:$0xff]  ;;  %v17088_v39 = vld [vmem:[#allocation11_spill] sm:$0xff] }
 0x1b1   : > { %v1512_v33 = vmax.f32 %v1488_v63, 0.0  ;;  %v1489_v48 = vadd.f32 %v14110_v46, %v1458_v26  ;;  %v1729_v54 = vrot.slane %v1727_v23, 5  ;;  %v1437_v37 = vmax.f32 %v17086_v61, %v12328_v21  ;;  %v12329_v17 = vpop.f32.mrb[90].mxu0  ;;  %v14294_v23 = vld [vmem:[#allocation2 + $0x1c] sm:$0xf] }
 0x1b2   : > { %v1510_v56 = vmax.f32 %v1486_v9, 0.0  ;;  %v1487_v25 = vadd.f32 %v14110_v46, %v1456_v31  ;;  %v10922_v55 = vcombine.low %v1706_v62, %v1716_v35  ;;  %v1435_v41 = vmax.f32 %v17087_v50, %v1364_v29  ;;  %v17089_v9 = vld [vmem:[#allocation23_spill] sm:$0xff]  ;;  %v1367_v58 = vpop.f32.mrb[91].mxu0 }
 0x1b3   : > { %v12010_v45 = vpack.c.bf16 %v1512_v33, %v1512_v33  ;;  %v1513_v47 = vmax.f32 %v1489_v48, 0.0  ;;  %v1725_v49 = vrot.slane %v1724_v53, 4  ;;  %v17090_v15 = vmax.f32 %v17088_v39, %v17089_v9  ;;  %v14292_v62 = vld [vmem:[#allocation2 + $0x18] sm:$0xf]  ;;  %v17092_v48 = vld [vmem:[#allocation12_spill] sm:$0xff] }
 0x1b4   : > { %v12008_v24 = vpack.c.bf16 %v1510_v56, %v1510_v56  ;;  %v1511_v63 = vmax.f32 %v1487_v25, 0.0  ;;  %12340 = vmatprep.mubr.msk.bf16.mxu1 %vm1984_vm5, %v10922_v55  ;;  %v1438_v22 = vmax.f32 %v17091_v57, %v12329_v17  ;;  %v1733_v31 = vrot.slane %v1731_v60, 4  ;;  %v17093_v53 = vld [vmem:[#allocation24_spill] sm:$0xff]  ;;  %v17098_v55 = vld [vmem:[#allocation35_spill] sm:$0xff]  ;;  %v17099_v9 = vld [vmem:[#allocation14_spill] sm:$0xff] }
 0x1b5   : > { %1633 = vst.msk [vmem:[#allocation2 + $0x54] sm:$0xf] %vm1618_vm1, %v12010_v45  ;;  %v12011_v26 = vpack.c.bf16 %v1513_v47, %v1513_v47  ;;  %v1461_v1 = vmax.f32 %v17090_v15, %v1437_v37  ;;  %v17094_v56 = vmax.f32 %v17092_v48, %v17093_v53  ;;  %v1730_v21 = vsel %vm14248_vm6, %v1725_v49, %v1729_v54  ;;  %v17095_v45 = vld [vmem:[#allocation13_spill] sm:$0xff]  ;;  %v17100_v15 = vld [vmem:[#allocation26_spill] sm:$0xff]  ;;  %v2348_v6 = vld [vmem:[#allocation2 + $0x3c] sm:$0xe] }
 0x1b6   : > { %1631 = vst.msk [vmem:[#allocation2 + $0x48] sm:$0xf] %vm1618_vm1, %v12008_v24  ;;  %v12009_v33 = vpack.c.bf16 %v1511_v63, %v1511_v63  ;;  %v17096_v47 = vld [vmem:[#allocation25_spill] sm:$0xff]  ;;  %v1734_v29 = vor.u32 %v1733_v31, %v1729_v54  ;;  %v1436_v24 = vmax.f32 %v17098_v55, %v1367_v58  ;;  %v1742_v50 = vshrl.u32 %v14292_v62, 16 }
 0x1b7   : > { %v1459_v25 = vmax.f32 %v17094_v56, %v1435_v41  ;;  %1634 = vst.msk [vmem:[#allocation2 + $0x58] sm:$0xf] %vm1618_vm1, %v12011_v26  ;;  %v1492_v60 = vadd.f32 %v14110_v46, %v1461_v1  ;;  %v17097_v61 = vmax.f32 %v17095_v45, %v17096_v47  ;;  %v1745_v41 = vshll.u32 %v14292_v62, 16  ;;  %v14324_v45 = vld [vmem:[#allocation2 + $0x24] sm:$0xf]  ;;  %v17103_v55 = vld [vmem:[#allocation37_spill] sm:$0xff] }
 0x1b8   : > { %1632 = vst.msk [vmem:[#allocation2 + $0x4c] sm:$0xf] %vm1618_vm1, %v12009_v33  ;;  %v1751_v17 = vshll.u32 %v14294_v23, 16  ;;  %v1735_v39 = vrot.slane %v1734_v29, 4  ;;  %v17101_v1 = vmax.f32 %v17099_v9, %v17100_v15  ;;  %v1744_v31 = vrot.slane %v1742_v50, 4  ;;  %v12845_v50 = vld [vmem:[%s16985_s3 + $0x8] sm:$0xff]  }
 0x1b9   : > { %v1462_v37 = vmax.f32 %v17097_v61, %v1438_v22  ;;  %v1490_v63 = vadd.f32 %v14110_v46, %v1459_v25  ;;  %v1516_v49 = vmax.f32 %v1492_v60, 0.0  ;;  %v12332_v22 = vpop.f32.mrb[92].mxu0  ;;  %v1747_v58 = vrot.slane %v1745_v41, 5 }
 0x1ba   : > { %v1460_v54 = vmax.f32 %v17101_v1, %v1436_v24  ;;  %v14318_v33 = vrot.slane %v1751_v17, 5  ;;  %v1740_v56 = vsel %vm14248_vm6, %v1735_v39, %v14127_v0  ;;  %v1380_v60 = vpop.f32.mrb[93].mxu0  ;;  %v17105_v39 = vld [vmem:[#allocation27_spill] sm:$0xff]  ;;  %v17107_v1 = vld [vmem:[#allocation16_spill] sm:$0xff]  ;;  %v2444_v35 = vrot.slane %v14156_v52, 5 }
 0x1bb   : > { %v1493_v26 = vadd.f32 %v14110_v46, %v1462_v37  ;;  %v1514_v57 = vmax.f32 %v1490_v63, 0.0  ;;  %v12014_v48 = vpack.c.bf16 %v1516_v49, %v1516_v49  ;;  %v10923_v61 = vcombine.low %v1730_v21, %v1740_v56  ;;  %v17102_v37 = vld [vmem:[#allocation36_spill] sm:$0xff]  ;;  %v12333_v63 = vpop.f32.mrb[94].mxu0  ;;  %v17104_v21 = vld [vmem:[#allocation15_spill] sm:$0xff]  ;;  %v17110_v56 = vld [vmem:[#allocation38_spill] sm:$0xff] }
 0x1bc   : > { %v1491_v25 = vadd.f32 %v14110_v46, %v1460_v54  ;;  %v1441_v29 = vmax.f32 %v17102_v37, %v12332_v22  ;;  %v1439_v24 = vmax.f32 %v17103_v55, %v1380_v60  ;;  %v1748_v17 = vor.u32 %v1747_v58, %v1744_v31  ;;  %v17108_v54 = vld [vmem:[#allocation28_spill] sm:$0xff]  ;;  %v17111_v58 = vld [vmem:[#allocation19_spill] sm:$0xff]  ;;  %v17112_v55 = vld [vmem:[#allocation17_spill] sm:$0xff] }
 0x1bd   : > { %v1517_v53 = vmax.f32 %v1493_v26, 0.0  ;;  %v12012_v47 = vpack.c.bf16 %v1514_v57, %v1514_v57  ;;  %1637 = vst.msk [vmem:[#allocation2 + $0x6c] sm:$0xf] %vm1618_vm1, %v12014_v48  ;;  %v1755_v49 = vshrl.u32 %v14294_v23, 16  ;;  %v1383_v26 = vpop.f32.mrb[95].mxu0  ;;  %12341 = vmatmul.mubr.msk.bf16.vlgmr.msra.gmra.mrb[0].mxu1 %vm1984_vm5, %v10923_v61  ;;  %v17106_v9 = vmax.f32 %v17104_v21, %v17105_v39 }
 0x1be   : > { %v1515_v0 = vmax.f32 %v1491_v25, 0.0  ;;  %v17109_v57 = vmax.f32 %v17107_v1, %v17108_v54  ;;  %v1442_v48 = vmax.f32 %v17110_v56, %v12333_v63  ;;  %v1766_v31 = vshrl.u32 %v14324_v45, 16  ;;  %12361 = vmatpush3.bf16.msra.mxu1 %v17111_v58 }
 0x1bf   : > { %v12015_v41 = vpack.c.bf16 %v1517_v53, %v1517_v53  ;;  %1635 = vst.msk [vmem:[#allocation2 + $0x60] sm:$0xf] %vm1618_vm1, %v12012_v47  ;;  %v1465_v15 = vmax.f32 %v17106_v9, %v1441_v29  ;;  %v14342_v53 = vld [vmem:[#allocation2 + $0x28] sm:$0xf]  ;;  %v1749_v60 = vrot.slane %v1748_v17, 4  ;;  %v1757_v47 = vrot.slane %v1755_v49, 4  ;;  %12362 = vmatprep.subr.bf16.mxu1 %v12845_v50 }
 0x1c0   : > { %v1463_v22 = vmax.f32 %v17109_v57, %v1439_v24  ;;  %v12013_v25 = vpack.c.bf16 %v1515_v0, %v1515_v0  ;;  %v1769_v61 = vshll.u32 %v14324_v45, 16  ;;  %v17113_v24 = vld [vmem:[#allocation29_spill] sm:$0xff]  ;;  %v1768_v39 = vrot.slane %v1766_v31, 4  ;;  %v17115_v31 = vld [vmem:[#allocation39_spill] sm:$0xff] }
 0x1c1   : > { %1638 = vst.msk [vmem:[#allocation2 + $0x70] sm:$0xf] %vm1618_vm1, %v12015_v41  ;;  %v1496_v37 = vadd.f32 %v14110_v46, %v1465_v15  ;;  %v17114_v63 = vmax.f32 %v17112_v55, %v17113_v24  ;;  %v1754_v41 = vsel %vm14248_vm6, %v1749_v60, %v14318_v33  ;;  %v1758_v0 = vor.u32 %v1757_v47, %v14318_v33  ;;  %v14361_v57 = vld [vmem:[#allocation2 + $0x30] sm:$0xf] }
 0x1c2   : > { %v1494_v29 = vadd.f32 %v14110_v46, %v1463_v22  ;;  %1636 = vst.msk [vmem:[#allocation2 + $0x64] sm:$0xf] %vm1618_vm1, %v12013_v25  ;;  %v1771_v17 = vrot.slane %v1769_v61, 5  ;;  %v1775_v49 = vshll.u32 %v14342_v53, 16  ;;  %v1779_v54 = vshrl.u32 %v14342_v53, 16  ;;  %12363 = vmatpush3.bf16.msra.mxu1 %v12845_v50  ;;  %v17116_v50 = vld [vmem:[#allocation18_spill] sm:$0xff] }
 0x1c3   : > { %v1466_v21 = vmax.f32 %v17114_v63, %v1442_v48  ;;  %v1520_v9 = vmax.f32 %v1496_v37, 0.0  ;;  %v1759_v22 = vrot.slane %v1758_v0, 4  ;;  %v1440_v58 = vmax.f32 %v17115_v31, %v1383_v26  ;;  %v14364_v61 = vld [vmem:[#allocation2 + $0x34] sm:$0xf]  ;;  %12741 = vmatprep.subr.msk.bf16.mxu1 %vm2015_vm2, %v14166_v2  ;;  %v14371_v37 = vld [vmem:[%s16985_s3 + $0x28] sm:$0xff]  }
 0x1c4   : > { %v1518_v15 = vmax.f32 %v1494_v29, 0.0  ;;  %v1772_v56 = vor.u32 %v1771_v17, %v1768_v39  ;;  %v1777_v48 = vrot.slane %v1775_v49, 5  ;;  %v1781_v47 = vrot.slane %v1779_v54, 4  ;;  %v17117_v55 = vld [vmem:[#allocation30_spill] sm:$0xff]  ;;  %v14380_v39 = vld [vmem:[#allocation2 + $0x3c] sm:$0xf] }
 0x1c5   : > { %v1497_v1 = vadd.f32 %v14110_v46, %v1466_v21  ;;  %v12018_v25 = vpack.c.bf16 %v1520_v9, %v1520_v9  ;;  %v1764_v29 = vsel %vm14248_vm6, %v1759_v22, %v14134_v13  ;;  %v17118_v24 = vmax.f32 %v17116_v50, %v17117_v55  ;;  %v14385_v9 = vld [vmem:[#allocation2 + $0x40] sm:$0xf] }
 0x1c6   : > { %v12016_v60 = vpack.c.bf16 %v1518_v15, %v1518_v15  ;;  %v1773_v26 = vrot.slane %v1772_v56, 4  ;;  %v1790_v21 = vshrl.u32 %v14361_v57, 16  ;;  %v10924_v2 = vcombine.low %v1754_v41, %v1764_v29  ;;  %12365 = vmatpush3.bf16.msra.mxu1 %v14196_v28 }
 0x1c7   : > { %v1521_v33 = vmax.f32 %v1497_v1, 0.0  ;;  %v1464_v63 = vmax.f32 %v17118_v24, %v1440_v58  ;;  %1641 = vst.msk [vmem:[#allocation2 + $0x84] sm:$0xf] %vm1618_vm1, %v12018_v25  ;;  %v1782_v17 = vor.u32 %v1781_v47, %v1777_v48  ;;  %v1793_v49 = vshll.u32 %v14361_v57, 16  ;;  %12386 = vmatprep.subr.bf16.mxu1 %v14371_v37 }
 0x1c8   : > { %1639 = vst.msk [vmem:[#allocation2 + $0x78] sm:$0xf] %vm1618_vm1, %v12016_v60  ;;  %v1778_v13 = vsel %vm14248_vm6, %v1773_v26, %v1777_v48  ;;  %v1792_v1 = vrot.slane %v1790_v21, 4  ;;  %v1799_v54 = vshll.u32 %v14364_v61, 16  ;;  %12344 = vmatprep.mubr.msk.bf16.mxu1 %vm1984_vm5, %v10924_v2  ;;  %v1803_v56 = vshrl.u32 %v14364_v61, 16 }
 0x1c9   : > { %v12019_v0 = vpack.c.bf16 %v1521_v33, %v1521_v33  ;;  %v1495_v15 = vadd.f32 %v14110_v46, %v1464_v63  ;;  %v1783_v41 = vrot.slane %v1782_v17, 4  ;;  %v1795_v22 = vrot.slane %v1793_v49, 5  ;;  %v14399_v60 = vld [vmem:[#allocation2 + $0x48] sm:$0xf]  ;;  %v14404_v26 = vld [vmem:[#allocation2 + $0x4c] sm:$0xf] }
 0x1ca   : > { %v1814_v31 = vshrl.u32 %v14380_v39, 16  ;;  %v1801_v58 = vrot.slane %v1799_v54, 5  ;;  %v1817_v46 = vshll.u32 %v14380_v39, 16  ;;  %v1823_v25 = vshll.u32 %v14385_v9, 16  ;;  %v14408_v49 = vld [vmem:[#allocation2 + $0x54] sm:$0xf] }
 0x1cb   : > { %1642 = vst.msk [vmem:[#allocation2 + $0x88] sm:$0xf] %vm1618_vm1, %v12019_v0  ;;  %v1519_v48 = vmax.f32 %v1495_v15, 0.0  ;;  %v1788_v28 = vsel %vm14248_vm6, %v1783_v41, %v14136_v16  ;;  %v1796_v33 = vor.u32 %v1795_v22, %v1792_v1  ;;  %v1805_v47 = vrot.slane %v1803_v56, 4 }
 0x1cc   : > { %v1816_v29 = vrot.slane %v1814_v31, 4  ;;  %v10925_v50 = vcombine.low %v1778_v13, %v1788_v28  ;;  %v1819_v24 = vrot.slane %v1817_v46, 5  ;;  %v1825_v63 = vrot.slane %v1823_v25, 5  ;;  %v14417_v28 = vld [vmem:[#allocation2 + $0x58] sm:$0xf] }
 0x1cd   : > { %v12017_v55 = vpack.c.bf16 %v1519_v48, %v1519_v48  ;;  %v1797_v21 = vrot.slane %v1796_v33, 4  ;;  %v1806_v2 = vor.u32 %v1805_v47, %v1801_v58  ;;  %v1827_v0 = vshrl.u32 %v14385_v9, 16 }
 0x1ce   : > { %v1838_v17 = vshrl.u32 %v14399_v60, 16  ;;  %12345 = vmatmul.mubr.msk.bf16.gmra.mrb[4].mxu1 %vm1984_vm5, %v10925_v50  ;;  %v1820_v16 = vor.u32 %v1819_v24, %v1816_v29  ;;  %v1841_v15 = vshll.u32 %v14399_v60, 16  ;;  %v1847_v13 = vshll.u32 %v14404_v26, 16 }
 0x1cf   : > { %1640 = vst.msk [vmem:[#allocation2 + $0x7c] sm:$0xf] %vm1618_vm1, %v12017_v55  ;;  %v1851_v1 = vshrl.u32 %v14404_v26, 16  ;;  %v1802_v54 = vsel %vm14248_vm6, %v1797_v21, %v1801_v58  ;;  %v1807_v41 = vrot.slane %v1806_v2, 4  ;;  %v1829_v22 = vrot.slane %v1827_v0, 4 }
 0x1d0   : > { %v1840_v56 = vrot.slane %v1838_v17, 4  ;;  %v1821_v31 = vrot.slane %v1820_v16, 4  ;;  %v1843_v48 = vrot.slane %v1841_v15, 5  ;;  %v1849_v46 = vrot.slane %v1847_v13, 5  ;;  %v14424_v55 = vld [vmem:[#allocation2 + $0x60] sm:$0xf] }
 0x1d1   : > { %v1853_v25 = vrot.slane %v1851_v1, 4  ;;  %v1812_v33 = vsel %vm14248_vm6, %v1807_v41, %v14180_v36  ;;  %v1830_v47 = vor.u32 %v1829_v22, %v1825_v63  ;;  %v1862_v29 = vshrl.u32 %v14408_v49, 16  ;;  %v14432_v22 = vld [vmem:[#allocation2 + $0x6c] sm:$0xf] }
 0x1d2   : > { %v1865_v50 = vshll.u32 %v14408_v49, 16  ;;  %v10926_v58 = vcombine.low %v1802_v54, %v1812_v33  ;;  %v1826_v24 = vsel %vm14248_vm6, %v1821_v31, %v1825_v63  ;;  %v1844_v21 = vor.u32 %v1843_v48, %v1840_v56  ;;  %v14437_v31 = vld [vmem:[#allocation2 + $0x64] sm:$0xf] }
 0x1d3   : > { %v1854_v2 = vor.u32 %v1853_v25, %v1849_v46  ;;  %v1831_v0 = vrot.slane %v1830_v47, 4  ;;  %v1864_v17 = vrot.slane %v1862_v29, 4  ;;  %v1871_v15 = vshll.u32 %v14417_v28, 16 }
 0x1d4   : > { %v1867_v16 = vrot.slane %v1865_v50, 5  ;;  %12348 = vmatprep.mubr.msk.bf16.mxu1 %vm1984_vm5, %v10926_v58  ;;  %v1845_v36 = vrot.slane %v1844_v21, 4  ;;  %v1875_v1 = vshrl.u32 %v14417_v28, 16  ;;  %v1886_v41 = vshrl.u32 %v14424_v55, 16  ;;  %v14445_v50 = vld [vmem:[#allocation2 + $0x70] sm:$0xf] }
 0x1d5   : > { %v1855_v13 = vrot.slane %v1854_v2, 4  ;;  %v1836_v63 = vsel %vm14248_vm6, %v1831_v0, %v14182_v14  ;;  %v1873_v56 = vrot.slane %v1871_v15, 5  ;;  %v1889_v48 = vshll.u32 %v14424_v55, 16  ;;  %v2343_v2 = vld [vmem:[#allocation2] sm:$0xe] }
 0x1d6   : > { %v1868_v54 = vor.u32 %v1867_v16, %v1864_v17  ;;  %v10927_v25 = vcombine.low %v1826_v24, %v1836_v63  ;;  %v1850_v33 = vsel %vm14248_vm6, %v1845_v36, %v1849_v46  ;;  %v1877_v29 = vrot.slane %v1875_v1, 4 }
 0x1d7   : > { %v1860_v47 = vsel %vm14248_vm6, %v1855_v13, %v14189_v7  ;;  %v1888_v21 = vrot.slane %v1886_v41, 4  ;;  %v1891_v14 = vrot.slane %v1889_v48, 5  ;;  %v1895_v0 = vshll.u32 %v14437_v31, 16 }
 0x1d8   : > { %v10928_v58 = vcombine.low %v1850_v33, %v1860_v47  ;;  %12349 = vmatmul.mubr.msk.bf16.gmra.mrb[8].mxu1 %vm1984_vm5, %v10927_v25  ;;  %v1878_v24 = vor.u32 %v1877_v29, %v1873_v56  ;;  %v1899_v46 = vshrl.u32 %v14437_v31, 16  ;;  %v1910_v17 = vshrl.u32 %v14432_v22, 16 }
 0x1d9   : > { %v1869_v7 = vrot.slane %v1868_v54, 4  ;;  %v1892_v16 = vor.u32 %v1891_v14, %v1888_v21  ;;  %v1913_v15 = vshll.u32 %v14432_v22, 16  ;;  %v1919_v36 = vshll.u32 %v14445_v50, 16 }
 0x1da   : > { %12352 = vmatprep.mubr.msk.bf16.mxu1 %vm1984_vm5, %v10928_v58  ;;  %v1879_v13 = vrot.slane %v1878_v24, 4  ;;  %v1897_v1 = vrot.slane %v1895_v0, 5  ;;  %v1901_v41 = vrot.slane %v1899_v46, 4  ;;  %v1912_v63 = vrot.slane %v1910_v17, 4  ;;  %v2344_v24 = vld [vmem:[#allocation2 + $0xc] sm:$0xe] }
 0x1db   : > { %v1893_v48 = vrot.slane %v1892_v16, 4  ;;  %v1915_v25 = vrot.slane %v1913_v15, 5  ;;  %v1921_v33 = vrot.slane %v1919_v36, 5  ;;  %v1923_v47 = vshrl.u32 %v14445_v50, 16  ;;  %v2345_v15 = vld [vmem:[#allocation2 + $0x18] sm:$0xe] }
 0x1dc   : > { %v1884_v29 = vsel %vm14248_vm6, %v1879_v13, %v14191_v38  ;;  %v1902_v58 = vor.u32 %v1901_v41, %v1897_v1  ;;  %v1874_v54 = vsel %vm14248_vm6, %v1869_v7, %v1873_v56  ;;  %v2423_v0 = vrot.slane %v14144_v34, 5 }
 0x1dd   : > { %v1916_v21 = vor.u32 %v1915_v25, %v1912_v63  ;;  %v1925_v14 = vrot.slane %v1923_v47, 4  ;;  %v2385_v46 = vrot.slane %v14257_v19, 5  ;;  %v10929_v17 = vcombine.low %v1874_v54, %v1884_v29  ;;  %v2346_v63 = vld [vmem:[#allocation2 + $0x24] sm:$0xe]  ;;  %v12909_v47 = vld [vmem:[%s16987_s5 + $0x2c8] ss:$16 sps:$4 sm:$0xff]  }
 0x1de   : > { %v1903_v16 = vrot.slane %v1902_v58, 4  ;;  %v1898_v38 = vsel %vm14248_vm6, %v1893_v48, %v1897_v1  ;;  %v2437_v25 = vrot.slane %v14154_v11, 5  ;;  %v10968_v29 = vrot.slane %v2343_v2, 9 }
 0x1df   : > { %v1917_v36 = vrot.slane %v1916_v21, 4  ;;  %v1926_v43 = vor.u32 %v1925_v14, %v1921_v33  ;;  %v2378_v1 = vrot.slane %v14229_v8, 5  ;;  %v10969_v48 = vrot.slane %v2344_v24, 9  ;;  %v2347_v21 = vld [vmem:[#allocation2 + $0x30] sm:$0xe] }
 0x1e0   : > { %12353 = vmatmul.mubr.msk.bf16.gmra.mrb[12].mxu1 %vm1984_vm5, %v10929_v17  ;;  %v1908_v56 = vsel %vm14248_vm6, %v1903_v16, %v14198_v12  ;;  %v2387_v58 = vrot.slane %v2385_v46, 4  ;;  %v2399_v54 = vrot.slane %v14342_v53, 5  ;;  %v10945_v2 = vcombine.low %v14215_v10, %v14229_v8 }
 0x1e1   : > { %v10930_v7 = vcombine.low %v1898_v38, %v1908_v56  ;;  %v1922_v13 = vsel %vm14248_vm6, %v1917_v36, %v1921_v33  ;;  %v1927_v41 = vrot.slane %v1926_v43, 4  ;;  %v10970_v43 = vrot.slane %v2345_v15, 9 }
 0x1e2   : > { %v2392_v33 = vrot.slane %v14294_v23, 5  ;;  %v2380_v17 = vrot.slane %v2378_v1, 4  ;;  %v10971_v16 = vrot.slane %v2346_v63, 9  ;;  %v14490_v24 = vsel %vm14475_vm9, %v10968_v29, %v2378_v1 }
 0x1e3   : > { %12356 = vmatprep.mubr.msk.bf16.mxu1 %vm1984_vm5, %v10930_v7  ;;  %v1932_v12 = vsel %vm14248_vm6, %v1927_v41, %v14201_v30  ;;  %v14494_v36 = vsel %vm14475_vm9, %v10969_v48, %v2385_v46  ;;  %v14500_v30 = vsel %vm14475_vm9, %v2387_v58, %v2388_v51  ;;  %v2401_v38 = vrot.slane %v2399_v54, 4  ;;  %v2349_v7 = vld [vmem:[#allocation2 + $0x48] sm:$0xe]  ;;  %v2350_v58 = vld [vmem:[#allocation2 + $0x54] sm:$0xe] }
 0x1e4   : > { %v10931_v14 = vcombine.low %v1922_v13, %v1932_v12  ;;  %v2394_v15 = vrot.slane %v2392_v33, 4  ;;  %v14506_v10 = vsel %vm14475_vm9, %v2380_v17, %v2381_v5  ;;  %v10984_v8 = vcombine.low %v14494_v36, %v14500_v30  ;;  %v12864_v36 = vld [vmem:[#allocation2 + $0x3c] sm:$0xff]   ;;  %v14687_v30 = vld [vmem:[#allocation2 + $0x10] sm:$0xf] }
 0x1e5   : > { %v14512_v46 = vsel %vm14475_vm9, %v10970_v43, %v2392_v33  ;;  %v10983_v51 = vcombine.low %v14490_v24, %v14506_v10  ;;  %v14524_v5 = vsel %vm14475_vm9, %v10971_v16, %v2399_v54  ;;  %v2406_v56 = vrot.slane %v14364_v61, 5  ;;  %v14684_v24 = vld [vmem:[%s16985_s3 + $0x64] sm:$0xff]   ;;  %v2921_v10 = vld [vmem:[#allocation2 + $0xc] sm:$0xf] }
 0x1e6   : > { %v14520_v3 = vsel %vm14475_vm9, %v2394_v15, %v2395_v40  ;;  %v14534_v32 = vsel %vm14475_vm9, %v2401_v38, %v2402_v4  ;;  %v10972_v40 = vrot.slane %v2347_v21, 9  ;;  %v2413_v41 = vrot.slane %v14385_v9, 5  ;;  %v2351_v15 = vld [vmem:[#allocation2 + $0x60] sm:$0xe] }
 0x1e7   : > { %v10985_v13 = vcombine.low %v14512_v46, %v14520_v3  ;;  %v10986_v63 = vcombine.low %v14524_v5, %v14534_v32  ;;  %v2408_v29 = vrot.slane %v2406_v56, 4  ;;  %v10973_v1 = vrot.slane %v2348_v6, 9  ;;  %v12866_v5 = vld [vmem:[#allocation2 + $0x48] sm:$0xff]   ;;  %v12867_v32 = vld [vmem:[#allocation2 + $0x54] sm:$0xff]  }
 0x1e8   : > { %12357 = vmatmul.mubr.msk.bf16.gmra.mrb[16].mxu1 %vm1984_vm5, %v10931_v14  ;;  %v2420_v48 = vrot.slane %v14404_v26, 5  ;;  %v10946_v44 = vcombine.low %v14207_v27, %v14257_v19  ;;  %v2415_v12 = vrot.slane %v2413_v41, 4  ;;  %v10974_v43 = vrot.slane %v2349_v7, 9  ;;  %v2352_v7 = vld [vmem:[#allocation2 + $0x6c] sm:$0xe] }
 0x1e9   : > { %12366 = vmatprep.mubr.msk.bf16.mxu1 %vm1984_vm5, %v10945_v2  ;;  %v2427_v4 = vrot.slane %v14417_v28, 5  ;;  %v14546_v33 = vsel %vm14475_vm9, %v10972_v40, %v2406_v56  ;;  %v17121_v54 = vrot.slane %v14138_v18, 5  ;;  %v14556_v14 = vsel %vm14475_vm9, %v10973_v1, %v2413_v41  ;;  %v12849_v40 = vld [vmem:[%s16985_s3 + $0x30] sm:$0xff]  }
 0x1ea   : > { %v2422_v2 = vrot.slane %v2420_v48, 4  ;;  %v17122_v19 = vrot.slane %v14142_v20, 5  ;;  %v10975_v16 = vrot.slane %v2350_v58, 9  ;;  %v14570_v6 = vsel %vm14475_vm9, %v10974_v43, %v2420_v48 }
 0x1eb   : > { %v14552_v21 = vsel %vm14475_vm9, %v2408_v29, %v17121_v54  ;;  %v2429_v18 = vrot.slane %v2427_v4, 4  ;;  %v2434_v20 = vrot.slane %v14437_v31, 5  ;;  %v17123_v1 = vrot.slane %v14149_v42, 5 }
 0x1ec   : > { %v10987_v27 = vcombine.low %v14546_v33, %v14552_v21  ;;  %v14564_v17 = vsel %vm14475_vm9, %v2415_v12, %v17122_v19  ;;  %v2424_v56 = vsel %vm14475_vm9, %v2422_v2, %v2423_v0  ;;  %v2428_v29 = vsel %vm14475_vm9, %v10975_v16, %v2427_v4  ;;  %v12856_v19 = vld [vmem:[%s16985_s3 + $0x3c] sm:$0xff]   ;;  %v14700_v16 = vld [vmem:[#allocation2 + $0x28] sm:$0xf] }
 0x1ed   : > { %v10988_v38 = vcombine.low %v14556_v14, %v14564_v17  ;;  %v10989_v41 = vcombine.low %v14570_v6, %v2424_v56  ;;  %v2431_v34 = vsel %vm14475_vm9, %v2429_v18, %v17123_v1  ;;  %v2441_v48 = vrot.slane %v14445_v50, 5  ;;  %v14695_v21 = vld [vmem:[#allocation2 + $0x1c] sm:$0xf] }
 0x1ee   : > { %v10947_v0 = vcombine.low %v14292_v62, %v14294_v23  ;;  %v10990_v58 = vcombine.low %v2428_v29, %v2431_v34  ;;  %v10976_v12 = vrot.slane %v2351_v15, 9  ;;  %v2436_v43 = vrot.slane %v2434_v20, 4  ;;  %v12854_v62 = vld [vmem:[%s16985_s3 + $0x38] ss:$0 sps:$4 sm:$0x33]  }
 0x1ef   : > { %v10977_v54 = vrot.slane %v2352_v7, 9  ;;  %v2443_v14 = vrot.slane %v2441_v48, 4  ;;  %v10948_v11 = vcombine.low %v14324_v45, %v14342_v53  ;;  %v10949_v17 = vcombine.low %v14361_v57, %v14364_v61  ;;  %v12857_v61 = vld [vmem:[%s16985_s3 + $0x44] sm:$0xff]   ;;  %v14707_v29 = vld [vmem:[#allocation2 + $0x2c] sm:$0x1] }
 0x1f0   : > { %12367 = vmatmul.mubr.msk.bf16.vlgmr.msra.gmra.mrb[0].mxu1 %vm1984_vm5, %v10946_v44  ;;  %v2435_v42 = vsel %vm14475_vm9, %v10976_v12, %v2434_v20  ;;  %v2438_v4 = vsel %vm14475_vm9, %v2436_v43, %v2437_v25  ;;  %v2528_v25 = vsel %vm2015_vm2, %v12854_v62, 0  ;;  %v10950_v52 = vcombine.low %v14380_v39, %v14385_v9  ;;  %v12858_v39 = vld [vmem:[%s16985_s3 + $0x4c] ss:$0 sps:$4 sm:$0x33]   ;;  %v2927_v7 = vld [vmem:[#allocation2 + $0x24] sm:$0xf] }
 0x1f1   : > { %12387 = vmatpush3.bf16.msra.mxu1 %v14371_v37  ;;  %12370 = vmatprep.mubr.msk.bf16.mxu1 %vm1984_vm5, %v10947_v0  ;;  %v10991_v23 = vcombine.low %v2435_v42, %v2438_v4  ;;  %v2442_v44 = vsel %vm14475_vm9, %v10977_v54, %v2441_v48  ;;  %v2445_v37 = vsel %vm14475_vm9, %v2443_v14, %v2444_v35  ;;  %v2786_v9 = vsel %vm2015_vm2, %v12858_v39, 0  ;;  %v14712_v12 = vld [vmem:[#allocation2 + $0x20] sm:$0x1]  ;;  %v2930_v54 = vld [vmem:[#allocation2 + $0x30] sm:$0xf] }
 0x1f2   : > { %12388 = vmatprep.subr.bf16.mxu1 %v12849_v40  ;;  %v10992_v2 = vcombine.low %v2442_v44, %v2445_v37  ;;  %v10951_v35 = vcombine.low %v14399_v60, %v14404_v26  ;;  %v10952_v45 = vcombine.low %v14408_v49, %v14417_v28  ;;  %v10953_v53 = vcombine.low %v14424_v55, %v14437_v31  ;;  %v12860_v60 = vld [vmem:[%s16985_s3 + $0x50] sm:$0xff]   ;;  %v12861_v49 = vld [vmem:[#allocation2 + $0x18] sm:$0xff]   ;;  %v12862_v55 = vld [vmem:[#allocation2 + $0x24] sm:$0xff]  }
 0x1f3   : > { %v10954_v57 = vcombine.low %v14432_v22, %v14445_v50  ;;  %v12859_v26 = vld [vmem:[#allocation2 + $0xc] sm:$0xff]   ;;  %v12865_v28 = vld [vmem:[%s16985_s3 + $0x58] sm:$0xff]   ;;  %v12870_v22 = vld [vmem:[%s16985_s3 + $0x60] ss:$0 sps:$4 sm:$0x33]   ;;  %v2965_v46 = vshrl.u32 %v14687_v30, 16 }
 0x1f4   : > { %v12863_v31 = vld [vmem:[#allocation2 + $0x30] sm:$0xff]   ;;  %v3273_v50 = vsel %vm2015_vm2, %v12870_v22, 0  ;;  %v2955_v3 = vshll.u32 %v2921_v10, 16  ;;  %v2985_v56 = vshll.u32 %v14695_v21, 16  ;;  %v2989_v20 = vshrl.u32 %v14695_v21, 16  ;;  %v12868_v42 = vld [vmem:[#allocation2 + $0x60] sm:$0xff]  }
 0x1f5   : > { %12389 = vmatpush3.bf16.msra.mxu1 %v12849_v40  ;;  %v2967_v33 = vrot.slane %v2965_v46, 4  ;;  %v3009_v1 = vshll.u32 %v14700_v16, 16  ;;  %v3013_v34 = vshrl.u32 %v14700_v16, 16  ;;  %v3019_v48 = vshll.u32 %v14707_v29, 16  ;;  %v14714_v14 = vld [vmem:[#allocation2 + $0x34] sm:$0xf] }
 0x1f6   : > { %12742 = vmatprep.subr.msk.bf16.mxu1 %vm2015_vm2, %v12854_v62  ;;  %v2957_v15 = vrot.slane %v2955_v3, 5  ;;  %v3000_v43 = vshrl.u32 %v2927_v7, 16  ;;  %v14716_v62 = vrot.slane %v2985_v56, 5  ;;  %v3003_v44 = vshll.u32 %v2927_v7, 16  ;;  %v12869_v37 = vld [vmem:[#allocation2 + $0x6c] sm:$0xff]  }
 0x1f8   : > { %12371 = vmatmul.mubr.msk.bf16.gmra.mrb[4].mxu1 %vm1984_vm5, %v10948_v11 }
 0x1f9   : > { %12374 = vmatprep.mubr.msk.bf16.mxu1 %vm1984_vm5, %v10949_v17  ;;  %12391 = vmatpush3.bf16.msra.mxu1 %v2528_v25  ;;  %v14718_v25 = vrot.slane %v3009_v1, 5  ;;  %v2995_v17 = vshll.u32 %v14712_v12, 16 }
 0x1fa   : > { %12412 = vmatprep.subr.bf16.mxu1 %v12856_v19 }
 0x1fb   : > { %v2997_v3 = vrot.slane %v2995_v17, 5 }
 0x200   : > { %12375 = vmatmul.mubr.msk.bf16.gmra.mrb[8].mxu1 %vm1984_vm5, %v10950_v52  ;;  %v14722_v52 = vrot.slane %v3019_v48, 5  ;;  %v14750_v48 = vld [vmem:[#allocation2 + $0x4c] sm:$0xf] }
 0x201   : > { %12378 = vmatprep.mubr.msk.bf16.mxu1 %vm1984_vm5, %v10951_v35  ;;  %v3033_v35 = vshll.u32 %v14714_v14, 16  ;;  %v3085_v17 = vshrl.u32 %v14750_v48, 16 }
 0x208   : > { %12379 = vmatmul.mubr.msk.bf16.gmra.mrb[12].mxu1 %vm1984_vm5, %v10952_v45  ;;  %v3037_v45 = vshrl.u32 %v14714_v14, 16 }
 0x209   : > { %12382 = vmatprep.mubr.msk.bf16.mxu1 %vm1984_vm5, %v10953_v53 }
 0x210   : > { %12383 = vmatmul.mubr.msk.bf16.gmra.mrb[16].mxu1 %vm1984_vm5, %v10954_v57  ;;  %v3002_v57 = vrot.slane %v3000_v43, 4  ;;  %v14753_v43 = vld [vmem:[#allocation2 + $0x50] sm:$0x1] }
 0x211   : > { %12392 = vmatprep.mubr.msk.bf16.mxu1 %vm1984_vm5, %v10983_v51  ;;  %v2952_v51 = vshrl.u32 %v2921_v10, 16  ;;  %v3039_v10 = vrot.slane %v3037_v45, 4 }
 0x213   : > { %v2954_v18 = vrot.slane %v2952_v51, 4 }
 0x215   : > { %v2958_v0 = vor.u32 %v2957_v15, %v2954_v18 }
 0x217   : > { %v2959_v53 = vrot.slane %v2958_v0, 4 }
 0x218   : > { %12393 = vmatmul.mubr.msk.bf16.vlgmr.msra.gmra.mrb[0].mxu1 %vm1984_vm5, %v10984_v8  ;;  %v2961_v8 = vshll.u32 %v14687_v30, 16 }
 0x219   : > { %12413 = vmatpush3.bf16.msra.mxu1 %v12856_v19  ;;  %12396 = vmatprep.mubr.msk.bf16.mxu1 %vm1984_vm5, %v10985_v13  ;;  %v2924_v13 = vld [vmem:[#allocation2 + $0x18] sm:$0xf]  ;;  %v3015_v19 = vrot.slane %v3013_v34, 4 }
 0x21a   : > { %12414 = vmatprep.subr.bf16.mxu1 %v12857_v61  ;;  %v2976_v6 = vshrl.u32 %v2924_v13, 16 }
 0x21c   : > { %v2978_v4 = vrot.slane %v2976_v6, 4  ;;  %v14743_v6 = vld [vmem:[#allocation2 + $0x44] sm:$0x1] }
 0x21d   : > { %12415 = vmatpush3.bf16.msra.mxu1 %v12857_v61  ;;  %v14727_v61 = vld [vmem:[#allocation2 + $0x38] sm:$0x1] }
 0x21e   : > { %12743 = vmatprep.subr.msk.bf16.mxu1 %vm2015_vm2, %v12858_v39  ;;  %v14729_v39 = vld [vmem:[#allocation2 + $0x40] sm:$0xf] }
 0x21f   : > { %v3061_v46 = vshrl.u32 %v14729_v39, 16 }
 0x220   : > { %12397 = vmatmul.mubr.msk.bf16.gmra.mrb[4].mxu1 %vm1984_vm5, %v10986_v63  ;;  %v14693_v63 = vrot.slane %v2961_v8, 5  ;;  %v3057_v8 = vshll.u32 %v14729_v39, 16 }
 0x221   : > { %12400 = vmatprep.mubr.msk.bf16.mxu1 %vm1984_vm5, %v10987_v27  ;;  %12417 = vmatpush3.bf16.msra.mxu1 %v2786_v9  ;;  %v14698_v27 = vld [vmem:[#allocation2 + $0x14] sm:$0x1]  ;;  %v3063_v34 = vrot.slane %v3061_v46, 4  ;;  %v3087_v46 = vrot.slane %v3085_v17, 4 }
 0x222   : > { %12438 = vmatprep.subr.bf16.mxu1 %v12860_v60  ;;  %v2968_v40 = vor.u32 %v2967_v33, %v14693_v63  ;;  %v2964_v51 = vsel %vm14248_vm6, %v2959_v53, %v14693_v63  ;;  %v14748_v1 = vrot.slane %v3057_v8, 5 }
 0x224   : > { %v3064_v53 = vor.u32 %v3063_v34, %v14748_v1 }
 0x228   : > { %12401 = vmatmul.mubr.msk.bf16.gmra.mrb[8].mxu1 %vm1984_vm5, %v10988_v38  ;;  %v2971_v38 = vshll.u32 %v14698_v27, 16 }
 0x229   : > { %12404 = vmatprep.mubr.msk.bf16.mxu1 %vm1984_vm5, %v10989_v41  ;;  %v2979_v41 = vshll.u32 %v2924_v13, 16 }
 0x22b   : > { %v2981_v11 = vrot.slane %v2979_v41, 5 }
 0x230   : > { %12405 = vmatmul.mubr.msk.bf16.gmra.mrb[12].mxu1 %vm1984_vm5, %v10990_v58  ;;  %v2973_v58 = vrot.slane %v2971_v38, 5 }
 0x231   : > { %12408 = vmatprep.mubr.msk.bf16.mxu1 %vm1984_vm5, %v10991_v23  ;;  %v2991_v23 = vrot.slane %v2989_v20, 4 }
 0x233   : > { %v2992_v9 = vor.u32 %v2991_v23, %v14716_v62 }
 0x235   : > { %v2993_v33 = vrot.slane %v2992_v9, 4 }
 0x238   : > { %12409 = vmatmul.mubr.msk.bf16.gmra.mrb[16].mxu1 %vm1984_vm5, %v10992_v2  ;;  %v2969_v2 = vrot.slane %v2968_v40, 4  ;;  %v3067_v40 = vshll.u32 %v14743_v6, 16 }
 0x239   : > { %12418 = vmatprep.mubr.msk.bf16.mxu1 %vm1984_vm5, %v12859_v26  ;;  %v3024_v26 = vshrl.u32 %v2930_v54, 16 }
 0x23b   : > { %v3026_v15 = vrot.slane %v3024_v26, 4 }
 0x240   : > { %12419 = vmatmul.mubr.msk.bf16.vlgmr.msra.gmra.mrb[0].mxu1 %vm1984_vm5, %v12861_v49  ;;  %v3027_v49 = vshll.u32 %v2930_v54, 16  ;;  %v14755_v54 = vld [vmem:[#allocation2 + $0x58] sm:$0xf] }
 0x241   : > { %12439 = vmatpush3.bf16.msra.mxu1 %v12860_v60  ;;  %12422 = vmatprep.mubr.msk.bf16.mxu1 %vm1984_vm5, %v12862_v55  ;;  %v3005_v60 = vrot.slane %v3003_v44, 5  ;;  %v2974_v55 = vsel %vm14248_vm6, %v2969_v2, %v2973_v58  ;;  %v2936_v44 = vld [vmem:[#allocation2 + $0x48] sm:$0xf]  ;;  %v3109_v9 = vshrl.u32 %v14755_v54, 16 }
 0x242   : > { %12440 = vmatprep.subr.bf16.mxu1 %v12865_v28  ;;  %v3029_v38 = vrot.slane %v3027_v49, 5  ;;  %v11039_v56 = vcombine.low %v2964_v51, %v2974_v55  ;;  %v3072_v49 = vshrl.u32 %v2936_v44, 16  ;;  %v12873_v55 = vld [vmem:[%s16985_s3 + $0x6c] sm:$0xff]   ;;  %v14779_v51 = vld [vmem:[#allocation2 + $0x5c] sm:$0x1] }
 0x243   : > { %v3006_v18 = vor.u32 %v3005_v60, %v3002_v57  ;;  %v3105_v57 = vshll.u32 %v14755_v54, 16 }
 0x244   : > { %v3030_v23 = vor.u32 %v3029_v38, %v3026_v15  ;;  %v3074_v15 = vrot.slane %v3072_v49, 4 }
 0x245   : > { %12441 = vmatpush3.bf16.msra.mxu1 %v12865_v28  ;;  %v2933_v28 = vld [vmem:[#allocation2 + $0x3c] sm:$0xf] }
 0x246   : > { %12744 = vmatprep.subr.msk.bf16.mxu1 %vm2015_vm2, %v12870_v22  ;;  %v2982_v22 = vor.u32 %v2981_v11, %v2978_v4  ;;  %v3051_v13 = vshll.u32 %v2933_v28, 16  ;;  %v3007_v4 = vrot.slane %v3006_v18, 4 }
 0x248   : > { %12423 = vmatmul.mubr.msk.bf16.gmra.mrb[4].mxu1 %vm1984_vm5, %v12863_v31  ;;  %v3016_v31 = vor.u32 %v3015_v19, %v14718_v25  ;;  %v2983_v20 = vrot.slane %v2982_v22, 4  ;;  %v3053_v58 = vrot.slane %v3051_v13, 5  ;;  %v3081_v19 = vshll.u32 %v14750_v48, 16 }
 0x249   : > { %12426 = vmatprep.mubr.msk.bf16.mxu1 %vm1984_vm5, %v12864_v36  ;;  %12443 = vmatpush3.bf16.msra.mxu1 %v3273_v50  ;;  %v3043_v50 = vshll.u32 %v14727_v61, 16  ;;  %v14736_v36 = vrot.slane %v3033_v35, 5  ;;  %v2939_v35 = vld [vmem:[#allocation2 + $0x54] sm:$0xf]  ;;  %v3111_v13 = vrot.slane %v3109_v9, 4  ;;  %v14815_v9 = vld [vmem:[%s16985_s3 + $0x78] sm:$0xff]  }
 0x24a   : > { %12464 = vmatprep.subr.bf16.mxu1 %v14684_v24  ;;  %v3017_v7 = vrot.slane %v3016_v31, 4  ;;  %v2988_v2 = vsel %vm14248_vm6, %v2983_v20, %v14716_v62  ;;  %v3075_v62 = vshll.u32 %v2936_v44, 16  ;;  %v3096_v22 = vshrl.u32 %v2939_v35, 16  ;;  %v14791_v20 = vld [vmem:[#allocation2 + $0x70] sm:$0xf] }
 0x24b   : > { %v3040_v41 = vor.u32 %v3039_v10, %v14736_v36  ;;  %v3045_v63 = vrot.slane %v3043_v50, 5  ;;  %v3099_v31 = vshll.u32 %v2939_v35, 16  ;;  %v3069_v10 = vrot.slane %v3067_v40, 5 }
 0x24c   : > { %v3022_v11 = vsel %vm14248_vm6, %v3017_v7, %v14722_v52  ;;  %v3012_v52 = vsel %vm14248_vm6, %v3007_v4, %v14718_v25  ;;  %v14777_v8 = vrot.slane %v3081_v19, 5  ;;  %v3065_v25 = vrot.slane %v3064_v53, 4  ;;  %v2945_v4 = vld [vmem:[#allocation2 + $0x6c] sm:$0xf] }
 0x24d   : > { %v3041_v45 = vrot.slane %v3040_v41, 4  ;;  %v11041_v50 = vcombine.low %v3012_v52, %v3022_v11  ;;  %v3077_v38 = vrot.slane %v3075_v62, 5  ;;  %v3098_v41 = vrot.slane %v3096_v22, 4  ;;  %v14818_v22 = vld [vmem:[#allocation2 + $0x7c] sm:$0xf] }
 0x24e   : > { %v3153_v44 = vshll.u32 %v14791_v20, 16  ;;  %v3147_v53 = vshll.u32 %v2945_v4, 16 }
 0x24f   : > { %v3078_v11 = vor.u32 %v3077_v38, %v3074_v15 }
 0x250   : > { %12427 = vmatmul.mubr.msk.bf16.gmra.mrb[8].mxu1 %vm1984_vm5, %v12866_v5  ;;  %v3048_v5 = vshrl.u32 %v2933_v28, 16  ;;  %v3031_v28 = vrot.slane %v3030_v23, 4  ;;  %v3070_v23 = vsel %vm14248_vm6, %v3065_v25, %v3069_v10 }
 0x251   : > { %12430 = vmatprep.mubr.msk.bf16.mxu1 %vm1984_vm5, %v12867_v32  ;;  %v12871_v32 = vld [vmem:[#allocation2 + $0x78] sm:$0xff]  }
 0x252   : > { %v3050_v0 = vrot.slane %v3048_v5, 4  ;;  %v14784_v5 = vrot.slane %v3105_v57, 5  ;;  %v3036_v7 = vsel %vm14248_vm6, %v3031_v28, %v14736_v36  ;;  %v3155_v28 = vrot.slane %v3153_v44, 5 }
 0x254   : > { %v3054_v26 = vor.u32 %v3053_v58, %v3050_v0  ;;  %v3088_v0 = vor.u32 %v3087_v46, %v14777_v8  ;;  %v3112_v36 = vor.u32 %v3111_v13, %v14784_v5 }
 0x256   : > { %v3055_v18 = vrot.slane %v3054_v26, 4  ;;  %v3089_v26 = vrot.slane %v3088_v0, 4  ;;  %v3113_v62 = vrot.slane %v3112_v36, 4 }
 0x258   : > { %12431 = vmatmul.mubr.msk.bf16.gmra.mrb[12].mxu1 %vm1984_vm5, %v12868_v42  ;;  %v2998_v42 = vsel %vm14248_vm6, %v2993_v33, %v2997_v3  ;;  %v3046_v3 = vsel %vm14248_vm6, %v3041_v45, %v3045_v63  ;;  %v14786_v33 = vld [vmem:[#allocation2 + $0x64] sm:$0xf]  ;;  %v3101_v63 = vrot.slane %v3099_v31, 5  ;;  %v3144_v45 = vshrl.u32 %v2945_v4, 16 }
 0x259   : > { %12434 = vmatprep.mubr.msk.bf16.mxu1 %vm1984_vm5, %v12869_v37  ;;  %v3091_v37 = vshll.u32 %v14753_v43, 16  ;;  %v11040_v60 = vcombine.low %v2988_v2, %v2998_v42  ;;  %v11042_v34 = vcombine.low %v3036_v7, %v3046_v3  ;;  %v3129_v58 = vshll.u32 %v14786_v33, 16 }
 0x25a   : > { %v3133_v42 = vshrl.u32 %v14786_v33, 16  ;;  %v3060_v2 = vsel %vm14248_vm6, %v3055_v18, %v14748_v1  ;;  %v3102_v35 = vor.u32 %v3101_v63, %v3098_v41  ;;  %v3079_v31 = vrot.slane %v3078_v11, 4  ;;  %v2948_v18 = vld [vmem:[#allocation2 + $0x78] sm:$0xf] }
 0x25b   : > { %v3093_v40 = vrot.slane %v3091_v37, 5  ;;  %v3157_v37 = vshrl.u32 %v14791_v20, 16  ;;  %v3131_v49 = vrot.slane %v3129_v58, 5  ;;  %v3146_v13 = vrot.slane %v3144_v45, 4 }
 0x25c   : > { %v3135_v1 = vrot.slane %v3133_v42, 4  ;;  %v3103_v3 = vrot.slane %v3102_v35, 4  ;;  %v3177_v7 = vshll.u32 %v14818_v22, 16  ;;  %v3181_v41 = vshrl.u32 %v14818_v22, 16 }
 0x25d   : > { %v3094_v15 = vsel %vm14248_vm6, %v3089_v26, %v3093_v40  ;;  %v3084_v0 = vsel %vm14248_vm6, %v3079_v31, %v14777_v8  ;;  %v3168_v42 = vshrl.u32 %v2948_v18, 16  ;;  %v3171_v40 = vshll.u32 %v2948_v18, 16 }
 0x25e   : > { %v3136_v38 = vor.u32 %v3135_v1, %v3131_v49  ;;  %v11044_v4 = vcombine.low %v3084_v0, %v3094_v15  ;;  %v3179_v11 = vrot.slane %v3177_v7, 5  ;;  %v3453_v18 = vrot.slane %v14698_v27, 5 }
 0x25f   : > { %v3170_v45 = vrot.slane %v3168_v42, 4 }
 0x260   : > { %12435 = vmatmul.mubr.msk.bf16.gmra.mrb[16].mxu1 %vm1984_vm5, %v12871_v32  ;;  %v2942_v32 = vld [vmem:[#allocation2 + $0x60] sm:$0xf] }
 0x261   : > { %12444 = vmatprep.mubr.msk.bf16.mxu1 %vm1984_vm5, %v11039_v56  ;;  %v3115_v56 = vshll.u32 %v14779_v51, 16  ;;  %v3120_v19 = vshrl.u32 %v2942_v32, 16  ;;  %v3123_v17 = vshll.u32 %v2942_v32, 16  ;;  %v3149_v32 = vrot.slane %v3147_v53, 5 }
 0x262   : > { %v3173_v53 = vrot.slane %v3171_v40, 5  ;;  %v3467_v40 = vrot.slane %v14707_v29, 5 }
 0x263   : > { %v3117_v52 = vrot.slane %v3115_v56, 5  ;;  %v3122_v10 = vrot.slane %v3120_v19, 4  ;;  %v3125_v46 = vrot.slane %v3123_v17, 5  ;;  %v14827_v56 = vld [vmem:[#allocation2 + $0x74] sm:$0x1]  ;;  %v3150_v44 = vor.u32 %v3149_v32, %v3146_v13 }
 0x264   : > { %v3183_v19 = vrot.slane %v3181_v41, 4  ;;  %v3174_v31 = vor.u32 %v3173_v53, %v3170_v45  ;;  %v3464_v41 = vrot.slane %v14700_v16, 5  ;;  %v3410_v16 = vld [vmem:[#allocation2 + $0x24] sm:$0xe]  ;;  %v3412_v53 = vld [vmem:[#allocation2 + $0x3c] sm:$0xe] }
 0x265   : > { %v3118_v63 = vsel %vm14248_vm6, %v3113_v62, %v3117_v52  ;;  %v3126_v58 = vor.u32 %v3125_v46, %v3122_v10  ;;  %v3450_v52 = vrot.slane %v14687_v30, 5  ;;  %v3408_v30 = vld [vmem:[#allocation2 + $0xc] sm:$0xe] }
 0x266   : > { %v3184_v26 = vor.u32 %v3183_v19, %v3179_v11  ;;  %v3175_v15 = vrot.slane %v3174_v31, 4  ;;  %v11062_v7 = vrot.slane %v3408_v30, 9  ;;  %v3466_v42 = vrot.slane %v3464_v41, 4  ;;  %v12876_v19 = vld [vmem:[%s16985_s3 + $0x80] sm:$0xff]  }
 0x267   : > { %v3127_v8 = vrot.slane %v3126_v58, 4  ;;  %v3452_v32 = vrot.slane %v3450_v52, 4  ;;  %v3460_v58 = vrot.slane %v14712_v12, 5  ;;  %v3478_v12 = vrot.slane %v14729_v39, 5 }
 0x268   : > { %12445 = vmatmul.mubr.msk.bf16.vlgmr.msra.gmra.mrb[0].mxu1 %vm1984_vm5, %v11040_v60  ;;  %v11043_v60 = vcombine.low %v3060_v2, %v3070_v23  ;;  %v3108_v23 = vsel %vm14248_vm6, %v3103_v3, %v14784_v5  ;;  %v3137_v2 = vrot.slane %v3136_v38, 4  ;;  %v3457_v38 = vrot.slane %v14695_v21, 5  ;;  %v3409_v21 = vld [vmem:[#allocation2 + $0x18] sm:$0xe] }
 0x269   : > { %12465 = vmatpush3.bf16.msra.mxu1 %v14684_v24  ;;  %12448 = vmatprep.mubr.msk.bf16.mxu1 %vm1984_vm5, %v11041_v50  ;;  %v12874_v24 = vld [vmem:[%s16985_s3 + $0x74] ss:$0 sps:$4 sm:$0x33]   ;;  %v14821_v50 = vld [vmem:[#allocation2 + $0x68] sm:$0x1]  ;;  %v3451_v27 = vsel %vm14475_vm9, %v11062_v7, %v3450_v52  ;;  %v3480_v45 = vrot.slane %v3478_v12, 4 }
 0x26a   : > { %12466 = vmatprep.subr.bf16.mxu1 %v12873_v55  ;;  %v3600_v57 = vsel %vm2015_vm2, %v12874_v24, 0  ;;  %v3139_v25 = vshll.u32 %v14821_v50, 16  ;;  %v3459_v0 = vrot.slane %v3457_v38, 4  ;;  %v3481_v39 = vrot.slane %v14743_v6, 5 }
 0x26b   : > { %v3499_v30 = vrot.slane %v14786_v33, 5  ;;  %v3415_v33 = vld [vmem:[#allocation2 + $0x60] sm:$0xe] }
 0x26c   : > { %v3141_v36 = vrot.slane %v3139_v25, 5  ;;  %v3185_v25 = vrot.slane %v3184_v26, 4  ;;  %v3485_v26 = vrot.slane %v14750_v48, 5  ;;  %v3482_v6 = vsel %vm14475_vm9, %v3480_v45, %v3481_v39  ;;  %v14907_v48 = vld [vmem:[%s16985_s3 + $0x8c] sm:$0xff]   ;;  %v12884_v45 = vld [vmem:[%s16985_s3 + $0x94] sm:$0xff]  }
 0x26d   : > { %12467 = vmatpush3.bf16.msra.mxu1 %v12873_v55  ;;  %v3159_v55 = vrot.slane %v3157_v37, 4  ;;  %v11045_v37 = vcombine.low %v3108_v23, %v3118_v63  ;;  %v3180_v63 = vsel %vm14248_vm6, %v3175_v15, %v3179_v11  ;;  %v3461_v23 = vsel %vm14475_vm9, %v3459_v0, %v3460_v58  ;;  %v12881_v39 = vld [vmem:[#allocation2 + $0x30] sm:$0xff]  }
 0x26e   : > { %12745 = vmatprep.subr.msk.bf16.mxu1 %vm2015_vm2, %v12874_v24  ;;  %v3142_v5 = vsel %vm14248_vm6, %v3137_v2, %v3141_v36  ;;  %v3471_v36 = vrot.slane %v14714_v14, 5  ;;  %v3474_v14 = vrot.slane %v14727_v61, 5  ;;  %v11069_v0 = vrot.slane %v3415_v33, 9 }
 0x26f   : > { %v3160_v24 = vor.u32 %v3159_v55, %v3155_v28  ;;  %v3132_v55 = vsel %vm14248_vm6, %v3127_v8, %v3131_v49  ;;  %v3411_v8 = vld [vmem:[#allocation2 + $0x30] sm:$0xe] }
 0x270   : > { %12449 = vmatmul.mubr.msk.bf16.gmra.mrb[4].mxu1 %vm1984_vm5, %v11042_v34  ;;  %v3163_v34 = vshll.u32 %v14827_v56, 16  ;;  %v11046_v10 = vcombine.low %v3132_v55, %v3142_v5  ;;  %v11065_v5 = vrot.slane %v3411_v8, 9  ;;  %v12880_v8 = vld [vmem:[#allocation2 + $0x24] sm:$0xff]  }
 0x271   : > { %12452 = vmatprep.mubr.msk.bf16.mxu1 %vm1984_vm5, %v11043_v60  ;;  %12469 = vmatpush3.bf16.msra.mxu1 %v3600_v57  ;;  %v3161_v17 = vrot.slane %v3160_v24, 4  ;;  %v3151_v57 = vrot.slane %v3150_v44, 4  ;;  %v14842_v60 = vld [vmem:[#allocation2 + $0x80] sm:$0x1]  ;;  %v11064_v44 = vrot.slane %v3410_v16, 9 }
 0x272   : > { %12490 = vmatprep.subr.bf16.mxu1 %v14815_v9  ;;  %v3165_v35 = vrot.slane %v3163_v34, 5  ;;  %v3187_v1 = vshll.u32 %v14842_v60, 16 }
 0x273   : > { %v3156_v46 = vsel %vm14248_vm6, %v3151_v57, %v3155_v28  ;;  %v3454_v28 = vsel %vm14475_vm9, %v3452_v32, %v3453_v18  ;;  %v3465_v29 = vsel %vm14475_vm9, %v11064_v44, %v3464_v41  ;;  %v12877_v57 = vld [vmem:[%s16985_s3 + $0x88] ss:$0 sps:$4 sm:$0x33]   ;;  %v3414_v32 = vld [vmem:[#allocation2 + $0x54] sm:$0xe] }
 0x274   : > { %v3166_v62 = vsel %vm14248_vm6, %v3161_v17, %v3165_v35  ;;  %v3189_v13 = vrot.slane %v3187_v1, 5  ;;  %v11077_v34 = vcombine.low %v3451_v27, %v3454_v28  ;;  %v3473_v35 = vrot.slane %v3471_v36, 4  ;;  %v3417_v44 = vld [vmem:[#allocation2 + $0x78] sm:$0xe] }
 0x275   : > { %v11047_v3 = vcombine.low %v3156_v46, %v3166_v62  ;;  %v11066_v1 = vrot.slane %v3412_v53, 9  ;;  %v3472_v62 = vsel %vm14475_vm9, %v11065_v5, %v3471_v36  ;;  %v3858_v31 = vsel %vm2015_vm2, %v12877_v57, 0  ;;  %v12889_v53 = vld [vmem:[%s16985_s3 + $0x9c] ss:$0 sps:$4 sm:$0x33]  }
 0x276   : > { %v3190_v49 = vsel %vm14248_vm6, %v3185_v25, %v3189_v13  ;;  %v3475_v61 = vsel %vm14475_vm9, %v3473_v35, %v3474_v14  ;;  %v3487_v46 = vrot.slane %v3485_v26, 4  ;;  %v3495_v13 = vrot.slane %v14779_v51, 5  ;;  %v12878_v35 = vld [vmem:[#allocation2 + $0x18] sm:$0xff]   ;;  %v12900_v14 = vld [vmem:[%s16987_s5 + $0xa0] ss:$16 sps:$4 sm:$0xff]  }
 0x277   : > { %v11048_v24 = vcombine.low %v3180_v63, %v3190_v49  ;;  %v11080_v52 = vcombine.low %v3472_v62, %v3475_v61  ;;  %v3479_v55 = vsel %vm14475_vm9, %v11066_v1, %v3478_v12  ;;  %v11068_v49 = vrot.slane %v3414_v32, 9  ;;  %v12899_v12 = vld [vmem:[%s16987_s5 + $0x84] ss:$16 sps:$4 sm:$0xff]   ;;  %v3993_v1 = vld [vmem:[#allocation2 + $0x18] sm:$0xf] }
 0x278   : > { %12453 = vmatmul.mubr.msk.bf16.gmra.mrb[8].mxu1 %vm1984_vm5, %v11044_v4  ;;  %v11063_v4 = vrot.slane %v3409_v21, 9  ;;  %v3501_v63 = vrot.slane %v3499_v30, 4  ;;  %v3513_v21 = vrot.slane %v14818_v22, 5  ;;  %v3516_v36 = vrot.slane %v14842_v60, 5  ;;  %v12894_v22 = vld [vmem:[%s16987_s5 + $0x60] ss:$16 sps:$4 sm:$0xff]  }
 0x279   : > { %12456 = vmatprep.mubr.msk.bf16.mxu1 %vm1984_vm5, %v11045_v37  ;;  %v3468_v37 = vsel %vm14475_vm9, %v3466_v42, %v3467_v40  ;;  %v4345_v5 = vsel %vm2015_vm2, %v12889_v53, 0  ;;  %v14978_v61 = vld [vmem:[%s16985_s3 + $0xa0] sm:$0xff]   ;;  %v4027_v62 = vshll.u32 %v3993_v1, 16 }
 0x27a   : > { %v3458_v2 = vsel %vm14475_vm9, %v11063_v4, %v3457_v38  ;;  %v11079_v17 = vcombine.low %v3465_v29, %v3468_v37  ;;  %v3506_v38 = vrot.slane %v14791_v20, 5  ;;  %v3416_v20 = vld [vmem:[#allocation2 + $0x6c] sm:$0xe]  ;;  %v12896_v37 = vld [vmem:[%s16987_s5 + $0x64] ss:$16 sps:$4 sm:$0xff]  }
 0x27b   : > { %v11078_v11 = vcombine.low %v3458_v2, %v3461_v23  ;;  %v11070_v42 = vrot.slane %v3416_v20, 9  ;;  %v3515_v23 = vrot.slane %v3513_v21, 4  ;;  %4991 = vmatprep.subr.bf16.mxu0 %v12896_v37  ;;  %v11071_v2 = vrot.slane %v3417_v44, 9  ;;  %v12902_v29 = vld [vmem:[%s16987_s5 + $0xa4] ss:$16 sps:$4 sm:$0xff]  }
 0x27c   : > { %v3508_v27 = vrot.slane %v3506_v38, 4  ;;  %4992 = vmatpush1.bf16.msra.mxu0 %v12894_v22 }
 0x27d   : > { %v3517_v60 = vsel %vm14475_vm9, %v3515_v23, %v3516_v36  ;;  %4993 = vmatprep.subr.bf16.mxu0 %v12899_v12  ;;  %v4005_v23 = vld [vmem:[#allocation2 + $0x48] sm:$0xf]  ;;  %v12888_v36 = vld [vmem:[#allocation2 + $0x78] sm:$0xff]  }
 0x280   : > { %12457 = vmatmul.mubr.msk.bf16.gmra.mrb[12].mxu1 %vm1984_vm5, %v11046_v10  ;;  %v11081_v10 = vcombine.low %v3479_v55, %v3482_v6  ;;  %v14981_v6 = vld [vmem:[#allocation2 + $0x1c] sm:$0xf] }
 0x281   : > { %12460 = vmatprep.mubr.msk.bf16.mxu1 %vm1984_vm5, %v11047_v3  ;;  %v3413_v3 = vld [vmem:[#allocation2 + $0x48] sm:$0xe]  ;;  %v4037_v55 = vshrl.u32 %v14981_v6, 16 }
 0x282   : > { %v11067_v18 = vrot.slane %v3413_v3, 9 }
 0x284   : > { %v3486_v51 = vsel %vm14475_vm9, %v11067_v18, %v3485_v26  ;;  %v12883_v26 = vld [vmem:[#allocation2 + $0x48] sm:$0xff]   ;;  %v4039_v18 = vrot.slane %v4037_v55, 4 }
 0x288   : > { %12461 = vmatmul.mubr.msk.bf16.gmra.mrb[16].mxu1 %vm1984_vm5, %v11048_v24  ;;  %v3502_v24 = vrot.slane %v14821_v50, 5  ;;  %v3500_v50 = vsel %vm14475_vm9, %v11069_v0, %v3499_v30 }
 0x289   : > { %12470 = vmatprep.mubr.msk.bf16.mxu1 %vm1984_vm5, %v11077_v34  ;;  %v3509_v34 = vrot.slane %v14827_v56, 5  ;;  %v3507_v56 = vsel %vm14475_vm9, %v11070_v42, %v3506_v38  ;;  %v14997_v38 = vld [vmem:[#allocation2 + $0x34] sm:$0xf]  ;;  %v4002_v42 = vld [vmem:[#allocation2 + $0x3c] sm:$0xf] }
 0x28a   : > { %v3503_v58 = vsel %vm14475_vm9, %v3501_v63, %v3502_v24  ;;  %v4081_v20 = vshll.u32 %v14997_v38, 16  ;;  %v4085_v0 = vshrl.u32 %v14997_v38, 16 }
 0x28b   : > { %v3510_v40 = vsel %vm14475_vm9, %v3508_v27, %v3509_v34  ;;  %v11084_v16 = vcombine.low %v3500_v50, %v3503_v58  ;;  %v15005_v58 = vld [vmem:[#allocation2 + $0x40] sm:$0xf] }
 0x28c   : > { %v11085_v4 = vcombine.low %v3507_v56, %v3510_v40  ;;  %v12887_v40 = vld [vmem:[#allocation2 + $0x6c] sm:$0xff]   ;;  %v4105_v37 = vshll.u32 %v15005_v58, 16  ;;  %v4109_v12 = vshrl.u32 %v15005_v58, 16 }
 0x290   : > { %12471 = vmatmul.mubr.msk.bf16.vlgmr.msra.gmra.mrb[0].mxu1 %vm1984_vm5, %v11078_v11  ;;  %v12897_v11 = vld [vmem:[%s16987_s5 + $0x80] ss:$16 sps:$4 sm:$0xff]  }
 0x291   : > { %12491 = vmatpush3.bf16.msra.mxu1 %v14815_v9  ;;  %12474 = vmatprep.mubr.msk.bf16.mxu1 %vm1984_vm5, %v11079_v17  ;;  %v3492_v9 = vrot.slane %v14755_v54, 5  ;;  %v3488_v54 = vrot.slane %v14753_v43, 5 }
 0x292   : > { %12492 = vmatprep.subr.bf16.mxu1 %v12876_v19  ;;  %4994 = vmatpush1.bf16.msra.mxu0 %v12897_v11 }
 0x293   : > { %v3494_v25 = vrot.slane %v3492_v9, 4  ;;  %v3489_v15 = vsel %vm14475_vm9, %v3487_v46, %v3488_v54  ;;  %v3493_v28 = vsel %vm14475_vm9, %v11068_v49, %v3492_v9  ;;  %4995 = vmatprep.subr.bf16.mxu0 %v12902_v29  ;;  %v4024_v9 = vshrl.u32 %v3993_v1, 16  ;;  %v14995_v49 = vld [vmem:[#allocation2 + $0x20] sm:$0x1] }
 0x294   : > { %v11082_v7 = vcombine.low %v3486_v51, %v3489_v15  ;;  %v4029_v54 = vrot.slane %v4027_v62, 5  ;;  %v15016_v29 = vrot.slane %v4081_v20, 5  ;;  %v15025_v1 = vrot.slane %v4105_v37, 5 }
 0x295   : > { %12493 = vmatpush3.bf16.msra.mxu1 %v12876_v19  ;;  %v3496_v43 = vsel %vm14475_vm9, %v3494_v25, %v3495_v13  ;;  %v3514_v19 = vsel %vm14475_vm9, %v11071_v2, %v3513_v21  ;;  %v4026_v46 = vrot.slane %v4024_v9, 4  ;;  %v12886_v13 = vld [vmem:[#allocation2 + $0x60] sm:$0xff]   ;;  %v15007_v21 = vld [vmem:[#allocation2 + $0x2c] sm:$0x1]  ;;  %v4111_v9 = vrot.slane %v4109_v12, 4 }
 0x296   : > { %12746 = vmatprep.subr.msk.bf16.mxu1 %vm2015_vm2, %v12877_v57  ;;  %v11083_v41 = vcombine.low %v3493_v28, %v3496_v43  ;;  %v11086_v17 = vcombine.low %v3514_v19, %v3517_v60  ;;  %4996 = vmatpush1.bf16.msra.mxu0 %v12900_v14  ;;  %v12882_v57 = vld [vmem:[#allocation2 + $0x3c] sm:$0xff]   ;;  %v3999_v43 = vld [vmem:[#allocation2 + $0x30] sm:$0xf]  ;;  %v15013_v2 = vld [vmem:[#allocation2 + $0x4c] sm:$0xf]  ;;  %v4087_v19 = vrot.slane %v4085_v0, 4 }
 0x297   : > { %v4030_v51 = vor.u32 %v4029_v54, %v4026_v46  ;;  %v4072_v27 = vshrl.u32 %v3999_v43, 16  ;;  %v4075_v34 = vshll.u32 %v3999_v43, 16  ;;  %v4120_v14 = vshrl.u32 %v4005_v23, 16 }
 0x298   : > { %12475 = vmatmul.mubr.msk.bf16.gmra.mrb[4].mxu1 %vm1984_vm5, %v11080_v52  ;;  %v4033_v52 = vshll.u32 %v14981_v6, 16  ;;  %v4088_v55 = vor.u32 %v4087_v19, %v15016_v29 }
 0x299   : > { %12478 = vmatprep.mubr.msk.bf16.mxu1 %vm1984_vm5, %v11081_v10  ;;  %12495 = vmatpush3.bf16.msra.mxu1 %v3858_v31  ;;  %v14987_v31 = vld [vmem:[#allocation2 + $0x28] sm:$0xf]  ;;  %v12885_v10 = vld [vmem:[#allocation2 + $0x54] sm:$0xff]   ;;  %v4031_v50 = vrot.slane %v4030_v51, 4  ;;  %v4074_v60 = vrot.slane %v4072_v27, 4  ;;  %v4077_v11 = vrot.slane %v4075_v34, 5 }
 0x29a   : > { %12516 = vmatprep.subr.bf16.mxu1 %v14907_v48  ;;  %v4057_v3 = vshll.u32 %v14987_v31, 16  ;;  %v4061_v25 = vshrl.u32 %v14987_v31, 16  ;;  %v14991_v32 = vrot.slane %v4033_v52, 5  ;;  %v4122_v54 = vrot.slane %v4120_v14, 4  ;;  %v15046_v34 = vld [vmem:[#allocation2 + $0x64] sm:$0xf] }
 0x29b   : > { %v4078_v52 = vor.u32 %v4077_v11, %v4074_v60  ;;  %v4181_v37 = vshrl.u32 %v15046_v34, 16 }
 0x29c   : > { %v15000_v28 = vrot.slane %v4057_v3, 5  ;;  %v4040_v63 = vor.u32 %v4039_v18, %v14991_v32 }
 0x29e   : > { %v4041_v44 = vrot.slane %v4040_v63, 4  ;;  %v15040_v63 = vld [vmem:[#allocation2 + $0x58] sm:$0xf] }
 0x2a0   : > { %12479 = vmatmul.mubr.msk.bf16.gmra.mrb[8].mxu1 %vm1984_vm5, %v11082_v7  ;;  %v4043_v7 = vshll.u32 %v14995_v49, 16 }
 0x2a1   : > { %12482 = vmatprep.mubr.msk.bf16.mxu1 %vm1984_vm5, %v11083_v41  ;;  %v4063_v41 = vrot.slane %v4061_v25, 4  ;;  %v12890_v25 = vld [vmem:[#allocation2 + $0x84] sm:$0xff]  }
 0x2a3   : > { %v4064_v56 = vor.u32 %v4063_v41, %v15000_v28 }
 0x2a8   : > { %12483 = vmatmul.mubr.msk.bf16.gmra.mrb[12].mxu1 %vm1984_vm5, %v11084_v16  ;;  %v4045_v16 = vrot.slane %v4043_v7, 5  ;;  %v4112_v7 = vor.u32 %v4111_v9, %v15025_v1 }
 0x2a9   : > { %12486 = vmatprep.mubr.msk.bf16.mxu1 %vm1984_vm5, %v11085_v4  ;;  %v4067_v4 = vshll.u32 %v15007_v21, 16 }
 0x2b0   : > { %12487 = vmatmul.mubr.msk.bf16.gmra.mrb[16].mxu1 %vm1984_vm5, %v11086_v17  ;;  %v4096_v17 = vshrl.u32 %v4002_v42, 16 }
 0x2b1   : > { %12496 = vmatprep.mubr.msk.bf16.mxu1 %vm1984_vm5, %v12878_v35  ;;  %v4099_v35 = vshll.u32 %v4002_v42, 16  ;;  %v15049_v42 = vld [vmem:[#allocation2 + $0x50] sm:$0x1] }
 0x2b3   : > { %v4101_v46 = vrot.slane %v4099_v35, 5 }
 0x2b8   : > { %12497 = vmatmul.mubr.msk.bf16.vlgmr.msra.gmra.mrb[0].mxu1 %vm1984_vm5, %v12880_v8  ;;  %v4123_v8 = vshll.u32 %v4005_v23, 16  ;;  %v4011_v23 = vld [vmem:[#allocation2 + $0x60] sm:$0xf] }
 0x2b9   : > { %12517 = vmatpush3.bf16.msra.mxu1 %v14907_v48  ;;  %12500 = vmatprep.mubr.msk.bf16.mxu1 %vm1984_vm5, %v12881_v39  ;;  %v3996_v48 = vld [vmem:[#allocation2 + $0x24] sm:$0xf]  ;;  %v4069_v39 = vrot.slane %v4067_v4, 5  ;;  %v4153_v4 = vshll.u32 %v15040_v63, 16  ;;  %v4168_v14 = vshrl.u32 %v4011_v23, 16 }
 0x2ba   : > { %12518 = vmatprep.subr.bf16.mxu1 %v12884_v45  ;;  %v4048_v15 = vshrl.u32 %v3996_v48, 16  ;;  %v4051_v30 = vshll.u32 %v3996_v48, 16  ;;  %v4125_v3 = vrot.slane %v4123_v8, 5  ;;  %v4171_v8 = vshll.u32 %v4011_v23, 16 }
 0x2bc   : > { %v4050_v24 = vrot.slane %v4048_v15, 4  ;;  %v4053_v33 = vrot.slane %v4051_v30, 5  ;;  %v15034_v15 = vld [vmem:[#allocation2 + $0x44] sm:$0x1] }
 0x2bd   : > { %12519 = vmatpush3.bf16.msra.mxu1 %v12884_v45  ;;  %v4065_v45 = vrot.slane %v4064_v56, 4  ;;  %v4115_v41 = vshll.u32 %v15034_v15, 16  ;;  %v4139_v56 = vshll.u32 %v15049_v42, 16 }
 0x2be   : > { %12747 = vmatprep.subr.msk.bf16.mxu1 %vm2015_vm2, %v12889_v53  ;;  %v4054_v22 = vor.u32 %v4053_v33, %v4050_v24  ;;  %v4129_v53 = vshll.u32 %v15013_v2, 16  ;;  %v4079_v24 = vrot.slane %v4078_v52, 4  ;;  %v4089_v33 = vrot.slane %v4088_v55, 4 }
 0x2bf   : > { %v4070_v18 = vsel %vm14248_vm6, %v4065_v45, %v4069_v39  ;;  %v4141_v39 = vrot.slane %v4139_v56, 5  ;;  %v4183_v55 = vrot.slane %v4181_v37, 4 }
 0x2c0   : > { %12501 = vmatmul.mubr.msk.bf16.gmra.mrb[4].mxu1 %vm1984_vm5, %v12882_v57  ;;  %v4133_v57 = vshrl.u32 %v15013_v2, 16  ;;  %v4055_v62 = vrot.slane %v4054_v22, 4  ;;  %v15036_v30 = vrot.slane %v4129_v53, 5  ;;  %v4177_v22 = vshll.u32 %v15046_v34, 16  ;;  %v12892_v53 = vld [vmem:[%s16985_s3 + $0xa8] sm:$0xff]  }
 0x2c1   : > { %12504 = vmatprep.mubr.msk.bf16.mxu1 %vm1984_vm5, %v12883_v26  ;;  %12521 = vmatpush3.bf16.msra.mxu1 %v4345_v5  ;;  %v4046_v5 = vsel %vm14248_vm6, %v4041_v44, %v4045_v16  ;;  %v15023_v26 = vld [vmem:[#allocation2 + $0x38] sm:$0x1]  ;;  %v4117_v44 = vrot.slane %v4115_v41, 5  ;;  %v4084_v12 = vsel %vm14248_vm6, %v4079_v24, %v15016_v29 }
 0x2c2   : > { %12542 = vmatprep.subr.bf16.mxu1 %v14978_v61  ;;  %v4091_v48 = vshll.u32 %v15023_v26, 16  ;;  %v4135_v43 = vrot.slane %v4133_v57, 4  ;;  %v15065_v57 = vrot.slane %v4153_v4, 5  ;;  %v15071_v52 = vrot.slane %v4177_v22, 5 }
 0x2c4   : > { %v4093_v27 = vrot.slane %v4091_v48, 5  ;;  %v4136_v16 = vor.u32 %v4135_v43, %v15036_v30  ;;  %v15084_v43 = vld [vmem:[#allocation2 + $0x7c] sm:$0xf]  ;;  %v4184_v24 = vor.u32 %v4183_v55, %v15071_v52 }
 0x2c6   : > { %v4094_v60 = vsel %vm14248_vm6, %v4089_v33, %v4093_v27  ;;  %v4137_v45 = vrot.slane %v4136_v16, 4  ;;  %v4229_v16 = vshrl.u32 %v15084_v43, 16 }
 0x2c7   : > { %v11135_v9 = vcombine.low %v4084_v12, %v4094_v60  ;;  %v4185_v12 = vrot.slane %v4184_v24, 4 }
 0x2c8   : > { %12505 = vmatmul.mubr.msk.bf16.gmra.mrb[8].mxu1 %vm1984_vm5, %v12885_v10  ;;  %v4098_v10 = vrot.slane %v4096_v17, 4 }
 0x2c9   : > { %12508 = vmatprep.mubr.msk.bf16.mxu1 %vm1984_vm5, %v12886_v13  ;;  %v4036_v13 = vsel %vm14248_vm6, %v4031_v50, %v14991_v32  ;;  %v4060_v32 = vsel %vm14248_vm6, %v4055_v62, %v15000_v28  ;;  %v4008_v50 = vld [vmem:[#allocation2 + $0x54] sm:$0xf]  ;;  %v4157_v28 = vshrl.u32 %v15040_v63, 16  ;;  %v15069_v62 = vld [vmem:[#allocation2 + $0x5c] sm:$0x1] }
 0x2ca   : > { %v11133_v51 = vcombine.low %v4036_v13, %v4046_v5  ;;  %v11134_v20 = vcombine.low %v4060_v32, %v4070_v18  ;;  %v4102_v0 = vor.u32 %v4101_v46, %v4098_v10  ;;  %v4144_v11 = vshrl.u32 %v4008_v50, 16  ;;  %v4014_v32 = vld [vmem:[#allocation2 + $0x6c] sm:$0xf] }
 0x2cb   : > { %v4147_v19 = vshll.u32 %v4008_v50, 16  ;;  %v4159_v5 = vrot.slane %v4157_v28, 4  ;;  %v4163_v46 = vshll.u32 %v15069_v62, 16  ;;  %v4170_v13 = vrot.slane %v4168_v14, 4 }
 0x2cc   : > { %v4103_v17 = vrot.slane %v4102_v0, 4  ;;  %v4146_v48 = vrot.slane %v4144_v11, 4  ;;  %v4173_v18 = vrot.slane %v4171_v8, 5  ;;  %v4225_v50 = vshll.u32 %v15084_v43, 16  ;;  %v15104_v8 = vld [vmem:[#allocation2 + $0x88] sm:$0xf] }
 0x2cd   : > { %v4149_v10 = vrot.slane %v4147_v19, 5  ;;  %v4160_v41 = vor.u32 %v4159_v5, %v15065_v57  ;;  %v4192_v28 = vshrl.u32 %v4014_v32, 16  ;;  %v4195_v23 = vshll.u32 %v4014_v32, 16 }
 0x2ce   : > { %v4174_v4 = vor.u32 %v4173_v18, %v4170_v13  ;;  %v4231_v14 = vrot.slane %v4229_v16, 4  ;;  %v15114_v13 = vld [vmem:[#allocation2 + $0x80] sm:$0x1]  ;;  %v4249_v18 = vshll.u32 %v15104_v8, 16 }
 0x2cf   : > { %v4150_v0 = vor.u32 %v4149_v10, %v4146_v48  ;;  %v4197_v5 = vrot.slane %v4195_v23, 5  ;;  %v4020_v10 = vld [vmem:[#allocation2 + $0x84] sm:$0xf] }
 0x2d0   : > { %12509 = vmatmul.mubr.msk.bf16.gmra.mrb[12].mxu1 %vm1984_vm5, %v12887_v40  ;;  %v4126_v40 = vor.u32 %v4125_v3, %v4122_v54  ;;  %v15075_v54 = vld [vmem:[#allocation2 + $0x70] sm:$0xf]  ;;  %v4108_v3 = vsel %vm14248_vm6, %v4103_v17, %v15025_v1  ;;  %v4240_v24 = vshrl.u32 %v4020_v10, 16 }
 0x2d1   : > { %12512 = vmatprep.mubr.msk.bf16.mxu1 %vm1984_vm5, %v12888_v36  ;;  %v4113_v36 = vrot.slane %v4112_v7, 4  ;;  %v12893_v1 = vld [vmem:[%s16985_s3 + $0xb0] ss:$0 sps:$4 sm:$0x33]   ;;  %v4201_v27 = vshll.u32 %v15075_v54, 16  ;;  %v4151_v17 = vrot.slane %v4150_v0, 4 }
 0x2d2   : > { %v4127_v35 = vrot.slane %v4126_v40, 4  ;;  %v4165_v40 = vrot.slane %v4163_v46, 5  ;;  %v4672_v37 = vsel %vm2015_vm2, %v12893_v1, 0 }
 0x2d3   : > { %v4118_v29 = vsel %vm14248_vm6, %v4113_v36, %v4117_v44  ;;  %v4161_v36 = vrot.slane %v4160_v41, 4  ;;  %v4203_v11 = vrot.slane %v4201_v27, 5  ;;  %v4235_v41 = vshll.u32 %v15114_v13, 16 }
 0x2d4   : > { %v4132_v7 = vsel %vm14248_vm6, %v4127_v35, %v15036_v30  ;;  %v4017_v30 = vld [vmem:[#allocation2 + $0x78] sm:$0xf]  ;;  %v4227_v35 = vrot.slane %v4225_v50, 5  ;;  %v4251_v50 = vrot.slane %v4249_v18, 5 }
 0x2d5   : > { %v4216_v44 = vshrl.u32 %v4017_v30, 16  ;;  %v4219_v22 = vshll.u32 %v4017_v30, 16 }
 0x2d7   : > { %v4218_v55 = vrot.slane %v4216_v44, 4  ;;  %v4221_v48 = vrot.slane %v4219_v22, 5 }
 0x2d8   : > { %12513 = vmatmul.mubr.msk.bf16.gmra.mrb[16].mxu1 %vm1984_vm5, %v12890_v25  ;;  %v15082_v25 = vld [vmem:[#allocation2 + $0x68] sm:$0x1] }
 0x2d9   : > { %12522 = vmatprep.mubr.msk.bf16.mxu1 %vm1984_vm5, %v11133_v51  ;;  %v11136_v51 = vcombine.low %v4108_v3, %v4118_v29  ;;  %v4187_v33 = vshll.u32 %v15082_v25, 16  ;;  %v4222_v30 = vor.u32 %v4221_v48, %v4218_v55  ;;  %v4525_v55 = vrot.slane %v14995_v49, 5 }
 0x2db   : > { %v4189_v60 = vrot.slane %v4187_v33, 5  ;;  %v4243_v33 = vshll.u32 %v4020_v10, 16  ;;  %v4529_v10 = vrot.slane %v14987_v31, 5  ;;  %v4481_v31 = vld [vmem:[#allocation2 + $0x24] sm:$0xe] }
 0x2dd   : > { %v4190_v46 = vsel %vm14248_vm6, %v4185_v12, %v4189_v60  ;;  %v4245_v23 = vrot.slane %v4243_v33, 5  ;;  %v4522_v60 = vrot.slane %v14981_v6, 5  ;;  %v4480_v6 = vld [vmem:[#allocation2 + $0x18] sm:$0xe]  ;;  %v4543_v33 = vrot.slane %v15005_v58, 5 }
 0x2de   : > { %v4483_v58 = vld [vmem:[#allocation2 + $0x3c] sm:$0xe] }
 0x2e0   : > { %12523 = vmatmul.mubr.msk.bf16.vlgmr.msra.gmra.mrb[0].mxu1 %vm1984_vm5, %v11134_v20  ;;  %v4205_v20 = vshrl.u32 %v15075_v54, 16 }
 0x2e1   : > { %12543 = vmatpush3.bf16.msra.mxu1 %v14978_v61  ;;  %12526 = vmatprep.mubr.msk.bf16.mxu1 %vm1984_vm5, %v11135_v9  ;;  %v4142_v61 = vsel %vm14248_vm6, %v4137_v45, %v4141_v39  ;;  %v4175_v45 = vrot.slane %v4174_v4, 4  ;;  %v15107_v39 = vld [vmem:[#allocation2 + $0x74] sm:$0x1]  ;;  %v4166_v9 = vsel %vm14248_vm6, %v4161_v36, %v4165_v40  ;;  %v15127_v36 = vld [vmem:[#allocation2 + $0x8c] sm:$0x1] }
 0x2e2   : > { %12544 = vmatprep.subr.bf16.mxu1 %v12892_v53  ;;  %v11137_v56 = vcombine.low %v4132_v7, %v4142_v61  ;;  %v4207_v19 = vrot.slane %v4205_v20, 4  ;;  %v4211_v29 = vshll.u32 %v15107_v39, 16  ;;  %v4156_v7 = vsel %vm14248_vm6, %v4151_v17, %v15065_v57 }
 0x2e3   : > { %v4232_v61 = vor.u32 %v4231_v14, %v4227_v35  ;;  %v4180_v32 = vsel %vm14248_vm6, %v4175_v45, %v15071_v52  ;;  %v11138_v27 = vcombine.low %v4156_v7, %v4166_v9  ;;  %v4223_v52 = vrot.slane %v4222_v30, 4 }
 0x2e4   : > { %v4208_v3 = vor.u32 %v4207_v19, %v4203_v11  ;;  %v11139_v20 = vcombine.low %v4180_v32, %v4190_v46  ;;  %v4213_v40 = vrot.slane %v4211_v29, 5  ;;  %v4524_v29 = vrot.slane %v4522_v60, 4 }
 0x2e5   : > { %12545 = vmatpush3.bf16.msra.mxu1 %v12892_v53  ;;  %v4194_v53 = vrot.slane %v4192_v28, 4  ;;  %v4233_v57 = vrot.slane %v4232_v61, 4  ;;  %v4242_v28 = vrot.slane %v4240_v24, 4  ;;  %v4228_v45 = vsel %vm14248_vm6, %v4223_v52, %v4227_v35 }
 0x2e6   : > { %12748 = vmatprep.subr.msk.bf16.mxu1 %vm2015_vm2, %v12893_v1  ;;  %v4209_v0 = vrot.slane %v4208_v3, 4  ;;  %v11156_v46 = vrot.slane %v4480_v6, 9  ;;  %v4526_v35 = vsel %vm14475_vm9, %v4524_v29, %v4525_v55  ;;  %v4536_v3 = vrot.slane %v14997_v38, 5  ;;  %v4482_v38 = vld [vmem:[#allocation2 + $0x30] sm:$0xe] }
 0x2e7   : > { %v4198_v1 = vor.u32 %v4197_v5, %v4194_v53  ;;  %v4246_v17 = vor.u32 %v4245_v23, %v4242_v28  ;;  %v4531_v61 = vrot.slane %v4529_v10, 4  ;;  %v11157_v24 = vrot.slane %v4481_v31, 9 }
 0x2e8   : > { %12527 = vmatmul.mubr.msk.bf16.gmra.mrb[4].mxu1 %vm1984_vm5, %v11136_v51  ;;  %v4253_v51 = vshrl.u32 %v15104_v8, 16  ;;  %v4214_v44 = vsel %vm14248_vm6, %v4209_v0, %v4213_v40  ;;  %v4523_v49 = vsel %vm14475_vm9, %v11156_v46, %v4522_v60  ;;  %v4538_v32 = vrot.slane %v4536_v3, 4 }
 0x2e9   : > { %12530 = vmatprep.mubr.msk.bf16.mxu1 %vm1984_vm5, %v11137_v56  ;;  %12547 = vmatpush3.bf16.msra.mxu1 %v4672_v37  ;;  %v4237_v56 = vrot.slane %v4235_v41, 5  ;;  %v4199_v4 = vrot.slane %v4198_v1, 4  ;;  %v4259_v37 = vshll.u32 %v15127_v36, 16  ;;  %v4247_v48 = vrot.slane %v4246_v17, 4 }
 0x2ea   : > { %v4255_v16 = vrot.slane %v4253_v51, 4  ;;  %v11171_v7 = vcombine.low %v4523_v49, %v4526_v35  ;;  %v4532_v41 = vrot.slane %v15007_v21, 5  ;;  %v4539_v1 = vrot.slane %v15023_v26, 5 }
 0x2eb   : > { %v4238_v12 = vsel %vm14248_vm6, %v4233_v57, %v4237_v56  ;;  %v4204_v19 = vsel %vm14248_vm6, %v4199_v4, %v4203_v11  ;;  %v4261_v9 = vrot.slane %v4259_v37, 5  ;;  %v4252_v18 = vsel %vm14248_vm6, %v4247_v48, %v4251_v50 }
 0x2ec   : > { %v4256_v22 = vor.u32 %v4255_v16, %v4251_v50  ;;  %v11140_v14 = vcombine.low %v4204_v19, %v4214_v44  ;;  %v11141_v53 = vcombine.low %v4228_v45, %v4238_v12  ;;  %v4533_v59 = vsel %vm14475_vm9, %v4531_v61, %v4532_v41 }
 0x2ed   : > { %v4550_v21 = vrot.slane %v15013_v2, 5  ;;  %v4530_v30 = vsel %vm14475_vm9, %v11157_v24, %v4529_v10  ;;  %v4545_v50 = vrot.slane %v4543_v33, 4  ;;  %v4546_v16 = vrot.slane %v15034_v15, 5  ;;  %v4484_v2 = vld [vmem:[#allocation2 + $0x48] sm:$0xe] }
 0x2ee   : > { %v4257_v5 = vrot.slane %v4256_v22, 4  ;;  %v11172_v0 = vcombine.low %v4530_v30, %v4533_v59  ;;  %v4553_v56 = vrot.slane %v15049_v42, 5  ;;  %v11159_v4 = vrot.slane %v4483_v58, 9  ;;  %v12915_v30 = vld [vmem:[%s16987_s5 + $0x2e8] ss:$16 sps:$4 sm:$0xff]  }
 0x2ef   : > { %v4552_v57 = vrot.slane %v4550_v21, 4  ;;  %v4547_v28 = vsel %vm14475_vm9, %v4545_v50, %v4546_v16  ;;  %v4557_v23 = vrot.slane %v15040_v63, 5  ;;  %v11160_v52 = vrot.slane %v4484_v2, 9  ;;  %v4485_v63 = vld [vmem:[#allocation2 + $0x54] sm:$0xe] }
 0x2f0   : > { %12531 = vmatmul.mubr.msk.bf16.gmra.mrb[8].mxu1 %vm1984_vm5, %v11138_v27  ;;  %v4262_v11 = vsel %vm14248_vm6, %v4257_v5, %v4261_v9  ;;  %v11158_v27 = vrot.slane %v4482_v38, 9  ;;  %v4564_v15 = vrot.slane %v15046_v34, 5  ;;  %v4544_v22 = vsel %vm14475_vm9, %v11159_v4, %v4543_v33  ;;  %v4486_v34 = vld [vmem:[#allocation2 + $0x60] sm:$0xe] }
 0x2f1   : > { %12534 = vmatprep.mubr.msk.bf16.mxu1 %vm1984_vm5, %v11139_v20  ;;  %v11142_v51 = vcombine.low %v4252_v18, %v4262_v11  ;;  %v4540_v20 = vsel %vm14475_vm9, %v4538_v32, %v4539_v1  ;;  %v4554_v44 = vsel %vm14475_vm9, %v4552_v57, %v4553_v56  ;;  %v11174_v37 = vcombine.low %v4544_v22, %v4547_v28  ;;  %v4489_v1 = vld [vmem:[#allocation2 + $0x84] sm:$0xe] }
 0x2f2   : > { %v4537_v26 = vsel %vm14475_vm9, %v11158_v27, %v4536_v3  ;;  %v4551_v42 = vsel %vm14475_vm9, %v11160_v52, %v4550_v21  ;;  %v4559_v60 = vrot.slane %v4557_v23, 4  ;;  %v4560_v19 = vrot.slane %v15069_v62, 5  ;;  %v12905_v27 = vld [vmem:[%s16987_s5 + $0x2ac] ss:$16 sps:$4 sm:$0xff]  }
 0x2f3   : > { %v11173_v40 = vcombine.low %v4537_v26, %v4540_v20  ;;  %v11175_v12 = vcombine.low %v4551_v42, %v4554_v44  ;;  %v4566_v17 = vrot.slane %v4564_v15, 4  ;;  %v11161_v45 = vrot.slane %v4485_v63, 9  ;;  %6235 = vmatprep.subr.bf16.mxu1 %v12905_v27  ;;  %v12908_v20 = vld [vmem:[%s16987_s5 + $0x6c] ss:$16 sps:$4 sm:$0xff]  }
 0x2f4   : > { %v4571_v5 = vrot.slane %v15075_v54, 5  ;;  %v11162_v9 = vrot.slane %v4486_v34, 9  ;;  %v4578_v62 = vrot.slane %v15084_v43, 5  ;;  %v4574_v10 = vrot.slane %v15107_v39, 5  ;;  %v4487_v54 = vld [vmem:[#allocation2 + $0x6c] sm:$0xe]  ;;  %5032 = vmatprep.subr.bf16.mxu0 %v12908_v20 }
 0x2f5   : > { %v4558_v55 = vsel %vm14475_vm9, %v11161_v45, %v4557_v23  ;;  %v4581_v35 = vrot.slane %v15114_v13, 5  ;;  %v4488_v43 = vld [vmem:[#allocation2 + $0x78] sm:$0xe]  ;;  %v11163_v3 = vrot.slane %v4487_v54, 9  ;;  %v4588_v32 = vrot.slane %v15127_v36, 5 }
 0x2f6   : > { %v4573_v11 = vrot.slane %v4571_v5, 4  ;;  %v4580_v46 = vrot.slane %v4578_v62, 4  ;;  %v11164_v49 = vrot.slane %v4488_v43, 9  ;;  %v17124_v33 = vmov 0   ;;  %v12903_v36 = vld [vmem:[%s16987_s5 + $0x2a8] ss:$16 sps:$4 sm:$0xff]  }
 0x2f7   : > { %v4572_v39 = vsel %vm14475_vm9, %v11163_v3, %v4571_v5  ;;  %v12911_v21 = vld [vmem:[%s16987_s5 + $0x2cc] ss:$16 sps:$4 sm:$0xff]  }
 0x2f8   : > { %12535 = vmatmul.mubr.msk.bf16.gmra.mrb[12].mxu1 %vm1984_vm5, %v11140_v14  ;;  %v4567_v14 = vrot.slane %v15082_v25, 5  ;;  %v4565_v25 = vsel %vm14475_vm9, %v11162_v9, %v4564_v15  ;;  %v4575_v18 = vsel %vm14475_vm9, %v4573_v11, %v4574_v10  ;;  %v4579_v13 = vsel %vm14475_vm9, %v11164_v49, %v4578_v62  ;;  %v12923_v26 = vld [vmem:[%s16987_s5 + $0x30c] ss:$16 sps:$4 sm:$0xff]  }
 0x2f9   : > { %12538 = vmatprep.mubr.msk.bf16.mxu1 %vm1984_vm5, %v11141_v53  ;;  %v4561_v53 = vsel %vm14475_vm9, %v4559_v60, %v4560_v19  ;;  %v11178_v61 = vcombine.low %v4572_v39, %v4575_v18 }
 0x2fa   : > { %v4568_v29 = vsel %vm14475_vm9, %v4566_v17, %v4567_v14  ;;  %v11176_v48 = vcombine.low %v4558_v55, %v4561_v53 }
 0x2fb   : > { %v11177_v6 = vcombine.low %v4565_v25, %v4568_v29 }
 0x300   : > { %12539 = vmatmul.mubr.msk.bf16.gmra.mrb[16].mxu1 %vm1984_vm5, %v11142_v51  ;;  %v4585_v51 = vrot.slane %v15104_v8, 5  ;;  %v11165_v8 = vrot.slane %v4489_v1, 9 }
 0x301   : > { %12548 = vmatprep.mubr.msk.bf16.mxu1 %vm1984_vm5, %v11171_v7  ;;  %v4582_v7 = vsel %vm14475_vm9, %v4580_v46, %v4581_v35 }
 0x302   : > { %v11179_v41 = vcombine.low %v4579_v13, %v4582_v7  ;;  %v4587_v31 = vrot.slane %v4585_v51, 4  ;;  %v4586_v24 = vsel %vm14475_vm9, %v11165_v8, %v4585_v51 }
 0x304   : > { %v4589_v38 = vsel %vm14475_vm9, %v4587_v31, %v4588_v32  ;;  %v12906_v32 = vld [vmem:[%s16987_s5 + $0x68] ss:$16 sps:$4 sm:$0xff]  }
 0x305   : > { %v11180_v59 = vcombine.low %v4586_v24, %v4589_v38  ;;  %v12914_v24 = vld [vmem:[%s16987_s5 + $0x8c] ss:$16 sps:$4 sm:$0xff]  }
 0x308   : > { %12549 = vmatmul.mubr.msk.bf16.vlgmr.msra.gmra.mrb[0].mxu1 %vm1984_vm5, %v11172_v0  ;;  %v12917_v0 = vld [vmem:[%s16987_s5 + $0x2ec] ss:$16 sps:$4 sm:$0xff]  }
 0x309   : > { %12552 = vmatprep.mubr.msk.bf16.mxu1 %vm1984_vm5, %v11173_v40  ;;  %6236 = vmatpush1.bf16.msra.mxu1 %v12903_v36  ;;  %v15243_v40 = vld [vmem:[%s16986_s4] ss:$0 sm:$0xff] }
 0x30a   : > { %6237 = vmatprep.subr.bf16.mxu1 %v12911_v21 }
 0x30d   : > { %6238 = vmatpush1.bf16.msra.mxu1 %v12909_v47 }
 0x30e   : > { %6239 = vmatprep.subr.bf16.mxu1 %v12917_v0 }
 0x310   : > { %12553 = vmatmul.mubr.msk.bf16.gmra.mrb[4].mxu1 %vm1984_vm5, %v11174_v37 }
 0x311   : > { %12556 = vmatprep.mubr.msk.bf16.mxu1 %vm1984_vm5, %v11175_v12  ;;  %6240 = vmatpush1.bf16.msra.mxu1 %v12915_v30 }
 0x312   : > { %6412 = vmatprep.subr.bf16.mxu1 %v12923_v26 }
 0x318   : > { %12557 = vmatmul.mubr.msk.bf16.gmra.mrb[8].mxu1 %vm1984_vm5, %v11176_v48 }
 0x319   : > { %12560 = vmatprep.mubr.msk.bf16.mxu1 %vm1984_vm5, %v11177_v6 }
 0x320   : > { %12561 = vmatmul.mubr.msk.bf16.gmra.mrb[12].mxu1 %vm1984_vm5, %v11178_v61 }
 0x321   : > { %12564 = vmatprep.mubr.msk.bf16.mxu1 %vm1984_vm5, %v11179_v41 }
 0x328   : > { %12565 = vmatmul.mubr.msk.bf16.gmra.mrb[16].mxu1 %vm1984_vm5, %v11180_v59 }
 0x329   : > { %6267 = vmatprep.mubr.bf16.mxu1 %v17124_v33 }
 0x3db   : > { %v12550_v50 = vpop.f32.mrb[0].mxu1 }
 0x3dc   : > { %v4816_v16 = vadd.f32 %v12550_v50, %v15243_v40  ;;  %v4708_v58 = vpop.f32.mrb[1].mxu1 }
 0x3dd   : > { %v4814_v57 = vadd.f32 %v15243_v40, %v4708_v58  ;;  %v12551_v56 = vpop.f32.mrb[2].mxu1 }
 0x3de   : > { %v4817_v2 = vadd.f32 %v12551_v56, %v15243_v40  ;;  %v4711_v4 = vpop.f32.mrb[3].mxu1  ;;  %v4836_v23 = vmax.f32 %v4816_v16, 0.0  ;;  %v12912_v16 = vld [vmem:[%s16987_s5 + $0x88] ss:$16 sps:$4 sm:$0xff]   ;;  %v12920_v56 = vld [vmem:[%s16987_s5 + $0xac] ss:$16 sps:$4 sm:$0xff]  }
 0x3df   : > { %v4815_v28 = vadd.f32 %v15243_v40, %v4711_v4  ;;  %v4834_v44 = vmax.f32 %v4814_v57, 0.0 }
 0x3e0   : > { %v4837_v52 = vmax.f32 %v4817_v2, 0.0 }
 0x3e1   : > { %v4835_v15 = vmax.f32 %v4815_v28, 0.0 }
 0x3e2   : > { %v4855_v22 = vpack.c.bf16 %v4837_v52, %v4836_v23 }
 0x3e3   : > { %v4854_v37 = vpack.c.bf16 %v4835_v15, %v4834_v44  ;;  %v12554_v42 = vpop.f32.mrb[4].mxu1 }
 0x3e4   : > { %4865 = vst.msk [vmem:[#allocation3 + $0x8] sm:$0xff] %vm833_vm0, %v4855_v22  ;;  %v4820_v12 = vadd.f32 %v12554_v42, %v15243_v40  ;;  %v4724_v60 = vpop.f32.mrb[5].mxu1  ;;  %v12918_v42 = vld [vmem:[%s16987_s5 + $0xa8] ss:$16 sps:$4 sm:$0xff]  }
 0x3e5   : > { %4864 = vst.msk [vmem:[#allocation3] sm:$0xff] %vm833_vm0, %v4854_v37  ;;  %v4818_v19 = vadd.f32 %v15243_v40, %v4724_v60  ;;  %v12555_v63 = vpop.f32.mrb[6].mxu1  ;;  %v12926_v60 = vld [vmem:[%s16987_s5 + $0x4] ss:$16 sps:$4 sm:$0xff]  }
 0x3e6   : > { %v4821_v17 = vadd.f32 %v12555_v63, %v15243_v40  ;;  %v4727_v14 = vpop.f32.mrb[7].mxu1  ;;  %v4840_v45 = vmax.f32 %v4820_v12, 0.0  ;;  %v12921_v12 = vld [vmem:[%s16987_s5 + $0x308] ss:$16 sps:$4 sm:$0xff]  }
 0x3e7   : > { %v4819_v34 = vadd.f32 %v15243_v40, %v4727_v14  ;;  %v4838_v5 = vmax.f32 %v4818_v19, 0.0  ;;  %v12929_v14 = vld [vmem:[%s16987_s5 + $0x32c] ss:$16 sps:$4 sm:$0xff]  }
 0x3e8   : > { %v4841_v53 = vmax.f32 %v4821_v17, 0.0 }
 0x3e9   : > { %v4839_v9 = vmax.f32 %v4819_v34, 0.0 }
 0x3ea   : > { %v4857_v29 = vpack.c.bf16 %v4841_v53, %v4840_v45 }
 0x3eb   : > { %v4856_v62 = vpack.c.bf16 %v4839_v9, %v4838_v5  ;;  %v12558_v55 = vpop.f32.mrb[8].mxu1  ;;  %v4901_v48 = vld [vmem:[#allocation3 + $0x8] sm:$0x2] }
 0x3ec   : > { %4867 = vst.msk [vmem:[#allocation3 + $0x18] sm:$0xff] %vm833_vm0, %v4857_v29  ;;  %v4824_v25 = vadd.f32 %v12558_v55, %v15243_v40  ;;  %v4740_v6 = vpop.f32.mrb[9].mxu1  ;;  %v4900_v11 = vld [vmem:[#allocation3] sm:$0x2]  ;;  %v4908_v10 = vshrl.u32 %v4901_v48, 16 }
 0x3ed   : > { %4866 = vst.msk [vmem:[#allocation3 + $0x10] sm:$0xff] %vm833_vm0, %v4856_v62  ;;  %v4822_v54 = vadd.f32 %v15243_v40, %v4740_v6  ;;  %v12559_v46 = vpop.f32.mrb[10].mxu1  ;;  %v4903_v35 = vshrl.u32 %v4900_v11, 16 }
 0x3ee   : > { %v4825_v43 = vadd.f32 %v12559_v46, %v15243_v40  ;;  %v4743_v3 = vpop.f32.mrb[11].mxu1  ;;  %v4911_v18 = vmax.bf16 %v4908_v10, %v4901_v48  ;;  %v4844_v7 = vmax.f32 %v4824_v25, 0.0  ;;  %v12924_v48 = vld [vmem:[%s16987_s5] ss:$16 sps:$4 sm:$0xff]   ;;  %v12927_v25 = vld [vmem:[%s16987_s5 + $0x328] ss:$16 sps:$4 sm:$0xff]  }
 0x3ef   : > { %v4823_v51 = vadd.f32 %v15243_v40, %v4743_v3  ;;  %v4906_v49 = vmax.bf16 %v4903_v35, %v4900_v11  ;;  %v4842_v61 = vmax.f32 %v4822_v54, 0.0  ;;  %v12932_v11 = vld [vmem:[%s16987_s5 + $0x24] ss:$16 sps:$4 sm:$0xff]   ;;  %v12935_v10 = vld [vmem:[%s16987_s5 + $0x34c] ss:$16 sps:$4 sm:$0xff]  }
 0x3f0   : > { %v4845_v39 = vmax.f32 %v4825_v43, 0.0  ;;  %v4874_v35 = vld [vmem:[#allocation3] sm:$0x1] }
 0x3f1   : > { %v4843_v13 = vmax.f32 %v4823_v51, 0.0  ;;  %v4912_v41 = vmax.bf16 %v4911_v18, %v4906_v49  ;;  %v4876_v18 = vld [vmem:[#allocation3 + $0x8] sm:$0x1] }
 0x3f2   : > { %v4859_v31 = vpack.c.bf16 %v4845_v39, %v4844_v7  ;;  %v12930_v7 = vld [vmem:[%s16987_s5 + $0x20] ss:$16 sps:$4 sm:$0xff]   ;;  %v12933_v39 = vld [vmem:[%s16987_s5 + $0x348] ss:$16 sps:$4 sm:$0xff]  }
 0x3f3   : > { %v4858_v1 = vpack.c.bf16 %v4843_v13, %v4842_v61  ;;  %v12562_v8 = vpop.f32.mrb[12].mxu1  ;;  %v15264_v38 = vrot.slane %v4912_v41, 1  ;;  %v6104_v59 = vld [vmem:[#allocation3 + $0x18] sm:$0x4]  ;;  %v6281_v52 = vld [vmem:[#allocation3 + $0x18] sm:$0x8] }
 0x3f4   : > { %4869 = vst.msk [vmem:[#allocation3 + $0x28] sm:$0xff] %vm833_vm0, %v4859_v31  ;;  %v4828_v36 = vadd.f32 %v12562_v8, %v15243_v40  ;;  %v4756_v27 = vpop.f32.mrb[13].mxu1  ;;  %v6103_v20 = vld [vmem:[#allocation3 + $0x10] sm:$0x4]  ;;  %v6111_v47 = vshrl.u32 %v6104_v59, 16  ;;  %v6288_v45 = vshrl.u32 %v6281_v52, 16 }
 0x3f5   : > { %4868 = vst.msk [vmem:[#allocation3 + $0x20] sm:$0xff] %vm833_vm0, %v4858_v1  ;;  %v4826_v21 = vadd.f32 %v15243_v40, %v4756_v27  ;;  %v12563_v30 = vpop.f32.mrb[14].mxu1  ;;  %11219 = vmatmul.mubr.msk.bf16.vlgmr.msra.gmra.mrb[96].mxu0 %vm833_vm0, %v15264_v38  ;;  %v6106_v0 = vshrl.u32 %v6103_v20, 16  ;;  %v6280_v23 = vld [vmem:[#allocation3 + $0x10] sm:$0x8]  ;;  %v4878_v61 = vshrl.u32 %v4874_v35, 16 }
 0x3f6   : > { %v4829_v26 = vadd.f32 %v12563_v30, %v15243_v40  ;;  %5033 = vmatpush1.bf16.msra.mxu0 %v12906_v32  ;;  %v4759_v50 = vpop.f32.mrb[15].mxu1  ;;  %v6114_v58 = vmax.bf16 %v6111_v47, %v6104_v59  ;;  %5064 = vmatprep.mubr.bf16.mxu0 %v17124_v33  ;;  %v4848_v4 = vmax.f32 %v4828_v36, 0.0  ;;  %v6283_v34 = vshrl.u32 %v6280_v23, 16  ;;  %v12938_v41 = vld [vmem:[%s16987_s5 + $0x44] ss:$16 sps:$4 sm:$0xff]  }
 0x3f7   : > { %v4827_v57 = vadd.f32 %v15243_v40, %v4759_v50  ;;  %5034 = vmatprep.subr.bf16.mxu0 %v12914_v24  ;;  %v6109_v2 = vmax.bf16 %v6106_v0, %v6103_v20  ;;  %v4846_v44 = vmax.f32 %v4826_v21, 0.0  ;;  %v6291_v46 = vmax.bf16 %v6288_v45, %v6281_v52  ;;  %v12941_v32 = vld [vmem:[%s16987_s5 + $0x36c] ss:$16 sps:$4 sm:$0xff]   ;;  %v6457_v8 = vld [vmem:[#allocation3 + $0x10] sm:$0x10] }
 0x3f8   : > { %v4849_v28 = vmax.f32 %v4829_v26, 0.0  ;;  %v6286_v54 = vmax.bf16 %v6283_v34, %v6280_v23  ;;  %v4883_v1 = vshrl.u32 %v4876_v18, 16  ;;  %v12936_v24 = vld [vmem:[%s16987_s5 + $0x40] ss:$16 sps:$4 sm:$0xff]   ;;  %v12939_v59 = vld [vmem:[%s16987_s5 + $0x368] ss:$16 sps:$4 sm:$0xff]   ;;  %v4881_v36 = vmax.bf16 %v4878_v61, %v4874_v35 }
 0x3f9   : > { %v4847_v15 = vmax.f32 %v4827_v57, 0.0  ;;  %v6115_v22 = vmax.bf16 %v6114_v58, %v6109_v2  ;;  %v12944_v27 = vld [vmem:[%s16987_s5 + $0xc] ss:$16 sps:$4 sm:$0xff]   ;;  %v6460_v30 = vshrl.u32 %v6457_v8, 16  ;;  %v12942_v26 = vld [vmem:[%s16987_s5 + $0x8] ss:$16 sps:$4 sm:$0xff]  }
 0x3fa   : > { %v4861_v37 = vpack.c.bf16 %v4849_v28, %v4848_v4  ;;  %5035 = vmatpush1.bf16.msra.mxu0 %v12912_v16  ;;  %v6292_v31 = vmax.bf16 %v6291_v46, %v6286_v54  ;;  %v4886_v47 = vmax.bf16 %v4883_v1, %v4876_v18  ;;  %v12947_v21 = vld [vmem:[%s16987_s5 + $0x38c] ss:$16 sps:$4 sm:$0xff]   ;;  %v12945_v50 = vld [vmem:[%s16987_s5 + $0x388] ss:$16 sps:$4 sm:$0xff]   ;;  %v12960_v34 = vld [vmem:[%s16987_s5 + $0xc0] ss:$16 sps:$4 sm:$0xff]  }
 0x3fb   : > { %v4860_v19 = vpack.c.bf16 %v4847_v15, %v4846_v44  ;;  %v12566_v63 = vpop.f32.mrb[16].mxu1  ;;  %5036 = vmatprep.subr.bf16.mxu0 %v12920_v56  ;;  %v15293_v17 = vrot.slane %v6115_v22, 2  ;;  %v12950_v58 = vld [vmem:[%s16987_s5 + $0x2c] ss:$16 sps:$4 sm:$0xff]   ;;  %v6463_v56 = vmax.bf16 %v6460_v30, %v6457_v8  ;;  %v12948_v4 = vld [vmem:[%s16987_s5 + $0x28] ss:$16 sps:$4 sm:$0xff]  }
 0x3fc   : > { %4871 = vst.msk [vmem:[#allocation3 + $0x38] sm:$0xff] %vm833_vm0, %v4861_v37  ;;  %v4832_v53 = vadd.f32 %v12566_v63, %v15243_v40  ;;  %v4772_v5 = vpop.f32.mrb[17].mxu1  ;;  %v15345_v20 = vrot.slane %v6292_v31, 3  ;;  %v4887_v16 = vmax.bf16 %v4886_v47, %v4881_v36  ;;  %v12953_v57 = vld [vmem:[%s16987_s5 + $0x3ac] ss:$16 sps:$4 sm:$0xff]  }
 0x3fd   : > { %4870 = vst.msk [vmem:[#allocation3 + $0x30] sm:$0xff] %vm833_vm0, %v4860_v19  ;;  %v4830_v9 = vadd.f32 %v15243_v40, %v4772_v5  ;;  %v12567_v29 = vpop.f32.mrb[18].mxu1  ;;  %11390 = vmatmul.mubr.msk.bf16.vlgmr.msra.gmra.mrb[20].mxu1 %vm833_vm0, %v15293_v17  ;;  %v12951_v28 = vld [vmem:[%s16987_s5 + $0x3a8] ss:$16 sps:$4 sm:$0xff]   ;;  %v12956_v23 = vld [vmem:[%s16987_s5 + $0x4c] ss:$16 sps:$4 sm:$0xff]  }
 0x3fe   : > { %v4833_v62 = vadd.f32 %v12567_v29, %v15243_v40  ;;  %5037 = vmatpush1.bf16.msra.mxu0 %v12918_v42  ;;  %6413 = vmatpush1.bf16.msra.mxu1 %v12921_v12  ;;  %v4775_v55 = vpop.f32.mrb[19].mxu1  ;;  %v4852_v43 = vmax.f32 %v4832_v53, 0.0  ;;  %v12959_v44 = vld [vmem:[%s16987_s5 + $0x3cc] ss:$16 sps:$4 sm:$0xff]   ;;  %v12954_v15 = vld [vmem:[%s16987_s5 + $0x48] ss:$16 sps:$4 sm:$0xff]  }
 0x3ff   : > { %v4831_v6 = vadd.f32 %v15243_v40, %v4775_v55  ;;  %5136 = vmatprep.subr.bf16.mxu0 %v12926_v60  ;;  %6414 = vmatprep.subr.bf16.mxu1 %v12929_v14  ;;  %v4850_v51 = vmax.f32 %v4830_v9, 0.0  ;;  %v12957_v22 = vld [vmem:[%s16987_s5 + $0x3c8] ss:$16 sps:$4 sm:$0xff]   ;;  %v12962_v37 = vld [vmem:[%s16987_s5 + $0xc4] ss:$16 sps:$4 sm:$0xff]  }
 0x400   : > { %v4853_v3 = vmax.f32 %v4833_v62, 0.0  ;;  %6444 = vmatprep.mubr.bf16.mxu1 %v17124_v33  ;;  %v12965_v12 = vld [vmem:[%s16987_s5 + $0x3ec] ss:$16 sps:$4 sm:$0xff]   ;;  %v5218_v60 = vld [vmem:[#allocation3] sm:$0x4] }
 0x401   : > { %v4851_v40 = vmax.f32 %v4831_v6, 0.0  ;;  %11220 = vmatmul.mubr.msk.bf16.vlgmr.msra.gmra.mrb[100].mxu0 %vm833_vm0, %v15264_v38  ;;  %v6458_v38 = vld [vmem:[#allocation3 + $0x18] sm:$0x10]  ;;  %v6635_v19 = vld [vmem:[#allocation3 + $0x20] sm:$0x1]  ;;  %v5221_v5 = vshrl.u32 %v5218_v60, 16 }
 0x402   : > { %v4863_v49 = vpack.c.bf16 %v4853_v3, %v4852_v43  ;;  %5137 = vmatpush1.bf16.msra.mxu0 %v12924_v48  ;;  %6415 = vmatpush1.bf16.msra.mxu1 %v12927_v25  ;;  %v6465_v0 = vshrl.u32 %v6458_v38, 16  ;;  %v6637_v63 = vld [vmem:[#allocation3 + $0x28] sm:$0x1]  ;;  %v5219_v14 = vld [vmem:[#allocation3 + $0x8] sm:$0x4]  ;;  %v6639_v29 = vshrl.u32 %v6635_v19, 16 }
 0x403   : > { %v4862_v13 = vpack.c.bf16 %v4851_v40, %v4850_v51  ;;  %5138 = vmatprep.subr.bf16.mxu0 %v12932_v11  ;;  %6416 = vmatprep.subr.bf16.mxu1 %v12935_v10  ;;  %v12963_v45 = vld [vmem:[%s16987_s5 + $0x3e8] ss:$16 sps:$4 sm:$0xff]   ;;  %v12968_v53 = vld [vmem:[%s16987_s5 + $0xe4] ss:$16 sps:$4 sm:$0xff]   ;;  %v12971_v9 = vld [vmem:[%s16987_s5 + $0x40c] ss:$16 sps:$4 sm:$0xff]   ;;  %v5224_v6 = vmax.bf16 %v5221_v5, %v5218_v60 }
 0x404   : > { %4873 = vst.msk [vmem:[#allocation3 + $0x48] sm:$0xff] %vm833_vm0, %v4863_v49  ;;  %5168 = vmatprep.mubr.bf16.mxu0 %v17124_v33  ;;  %v6468_v2 = vmax.bf16 %v6465_v0, %v6458_v38  ;;  %v6644_v62 = vshrl.u32 %v6637_v63, 16  ;;  %v5226_v55 = vshrl.u32 %v5219_v14, 16  ;;  %v12966_v48 = vld [vmem:[%s16987_s5 + $0xe0] ss:$16 sps:$4 sm:$0xff]   ;;  %v6642_v10 = vmax.bf16 %v6639_v29, %v6635_v19 }
 0x405   : > { %4872 = vst.msk [vmem:[#allocation3 + $0x40] sm:$0xff] %vm833_vm0, %v4862_v13  ;;  %v12969_v25 = vld [vmem:[%s16987_s5 + $0x408] ss:$16 sps:$4 sm:$0xff]   ;;  %v12974_v11 = vld [vmem:[%s16987_s5 + $0x104] ss:$16 sps:$4 sm:$0xff]  }
 0x406   : > { %5139 = vmatpush1.bf16.msra.mxu0 %v12930_v7  ;;  %6417 = vmatpush1.bf16.msra.mxu1 %v12933_v39  ;;  %v6469_v52 = vmax.bf16 %v6468_v2, %v6463_v56  ;;  %v6647_v54 = vmax.bf16 %v6644_v62, %v6637_v63  ;;  %v12977_v46 = vld [vmem:[%s16987_s5 + $0x42c] ss:$16 sps:$4 sm:$0xff]   ;;  %v5229_v35 = vmax.bf16 %v5226_v55, %v5219_v14  ;;  %v6811_v43 = vld [vmem:[#allocation3 + $0x20] sm:$0x2]  ;;  %v6812_v3 = vld [vmem:[#allocation3 + $0x28] sm:$0x2] }
 0x407   : > { %5140 = vmatprep.subr.bf16.mxu0 %v12938_v41  ;;  %6589 = vmatprep.subr.bf16.mxu1 %v12941_v32  ;;  %v12972_v18 = vld [vmem:[%s16987_s5 + $0x100] ss:$16 sps:$4 sm:$0xff]   ;;  %v12975_v51 = vld [vmem:[%s16987_s5 + $0x428] ss:$16 sps:$4 sm:$0xff]   ;;  %v12980_v7 = vld [vmem:[%s16987_s5 + $0xcc] ss:$16 sps:$4 sm:$0xff]  }
 0x408   : > { %v15388_v42 = vrot.slane %v6469_v52, 4  ;;  %v15428_v40 = vmax.bf16 %v6647_v54, %v6642_v10  ;;  %v5230_v49 = vmax.bf16 %v5229_v35, %v5224_v6  ;;  %v12983_v39 = vld [vmem:[%s16987_s5 + $0x44c] ss:$16 sps:$4 sm:$0xff]   ;;  %v6814_v61 = vshrl.u32 %v6811_v43, 16  ;;  %v12978_v41 = vld [vmem:[%s16987_s5 + $0xc8] ss:$16 sps:$4 sm:$0xff]  }
 0x409   : > { %11416 = vmatmul.mubr.msk.bf16.vlgmr.msra.gmra.mrb[24].mxu1 %vm833_vm0, %v15345_v20  ;;  %v6819_v13 = vshrl.u32 %v6812_v3, 16  ;;  %v12981_v31 = vld [vmem:[%s16987_s5 + $0x448] ss:$16 sps:$4 sm:$0xff]   ;;  %v12986_v1 = vld [vmem:[%s16987_s5 + $0xec] ss:$16 sps:$4 sm:$0xff]  }
 0x40a   : > { %5141 = vmatpush1.bf16.msra.mxu0 %v12936_v24  ;;  %6590 = vmatpush1.bf16.msra.mxu1 %v12939_v59  ;;  %v5245_v32 = vrot.slane %v5230_v49, 2  ;;  %v12989_v8 = vld [vmem:[%s16987_s5 + $0x46c] ss:$16 sps:$4 sm:$0xff]   ;;  %v6817_v38 = vmax.bf16 %v6814_v61, %v6811_v43  ;;  %v12984_v59 = vld [vmem:[%s16987_s5 + $0xe8] ss:$16 sps:$4 sm:$0xff]  }
 0x40b   : > { %5177 = vmatprep.subr.bf16.mxu0 %v12944_v27  ;;  %6591 = vmatprep.subr.bf16.mxu1 %v12947_v21  ;;  %v6822_v24 = vmax.bf16 %v6819_v13, %v6812_v3  ;;  %v12987_v36 = vld [vmem:[%s16987_s5 + $0x468] ss:$16 sps:$4 sm:$0xff]   ;;  %v12992_v27 = vld [vmem:[%s16987_s5 + $0x10c] ss:$16 sps:$4 sm:$0xff]   ;;  %v6988_v30 = vld [vmem:[#allocation3 + $0x20] sm:$0x4] }
 0x40c   : > { %6621 = vmatprep.mubr.bf16.mxu1 %v17124_v33  ;;  %v12995_v21 = vld [vmem:[%s16987_s5 + $0x48c] ss:$16 sps:$4 sm:$0xff]   ;;  %v6989_v0 = vld [vmem:[#allocation3 + $0x28] sm:$0x4]  ;;  %v6991_v56 = vshrl.u32 %v6988_v30, 16 }
 0x40d   : > { %11233 = vmatmul.mubr.msk.bf16.vlgmr.msra.gmra.mrb[104].mxu0 %vm833_vm0, %v4887_v16  ;;  %v6823_v47 = vmax.bf16 %v6822_v24, %v6817_v38  ;;  %v6996_v2 = vshrl.u32 %v6989_v0, 16  ;;  %v12999_v52 = vld [vmem:[%s16987_s5 + $0x4a8] ss:$16 sps:$4 sm:$0xff]   ;;  %v13002_v19 = vld [vmem:[%s16987_s5 + $0x140] ss:$16 sps:$4 sm:$0xff]  }
 0x40e   : > { %5178 = vmatpush1.bf16.msra.mxu0 %v12942_v26  ;;  %6592 = vmatpush1.bf16.msra.mxu1 %v12945_v50  ;;  %v12990_v26 = vld [vmem:[%s16987_s5 + $0x108] ss:$16 sps:$4 sm:$0xff]   ;;  %v13010_v14 = vld [vmem:[%s16987_s5 + $0x164] ss:$16 sps:$4 sm:$0xff]   ;;  %v13008_v62 = vld [vmem:[%s16987_s5 + $0x160] ss:$16 sps:$4 sm:$0xff]  }
 0x40f   : > { %5179 = vmatprep.subr.bf16.mxu0 %v12950_v58  ;;  %6593 = vmatprep.subr.bf16.mxu1 %v12953_v57  ;;  %v12993_v50 = vld [vmem:[%s16987_s5 + $0x488] ss:$16 sps:$4 sm:$0xff]   ;;  %v15474_v58 = vrot.slane %v6823_v47, 1  ;;  %v13001_v57 = vld [vmem:[%s16987_s5 + $0x4ac] ss:$16 sps:$4 sm:$0xff]  }
 0x410   : > { %5209 = vmatprep.mubr.bf16.mxu0 %v17124_v33  ;;  %v13005_v63 = vld [vmem:[%s16987_s5 + $0x4c8] ss:$16 sps:$4 sm:$0xff]   ;;  %v13022_v3 = vld [vmem:[%s16987_s5 + $0x14c] ss:$16 sps:$4 sm:$0xff]   ;;  %v13034_v38 = vld [vmem:[%s16987_s5 + $0x184] ss:$16 sps:$4 sm:$0xff]  }
 0x411   : > { %v7166_v29 = vld [vmem:[#allocation3 + $0x28] sm:$0x8]  ;;  %v13028_v61 = vld [vmem:[%s16987_s5 + $0x16c] ss:$16 sps:$4 sm:$0xff]   ;;  %v5572_v47 = vld [vmem:[#allocation3] sm:$0x10] }
 0x412   : > { %5180 = vmatpush1.bf16.msra.mxu0 %v12948_v4  ;;  %6594 = vmatpush1.bf16.msra.mxu1 %v12951_v28  ;;  %v5395_v4 = vld [vmem:[#allocation3] sm:$0x8]  ;;  %v5396_v28 = vld [vmem:[#allocation3 + $0x8] sm:$0x8]  ;;  %v7173_v54 = vshrl.u32 %v7166_v29, 16 }
 0x413   : > { %5181 = vmatprep.subr.bf16.mxu0 %v12956_v23  ;;  %6766 = vmatprep.subr.bf16.mxu1 %v12959_v44  ;;  %v12996_v23 = vld [vmem:[%s16987_s5 + $0x120] ss:$16 sps:$4 sm:$0xff]   ;;  %v13004_v44 = vld [vmem:[%s16987_s5 + $0x144] ss:$16 sps:$4 sm:$0xff]   ;;  %v5403_v60 = vshrl.u32 %v5396_v28, 16 }
 0x414   : > { %v13011_v55 = vld [vmem:[%s16987_s5 + $0x4e8] ss:$16 sps:$4 sm:$0xff]   ;;  %v7176_v49 = vmax.bf16 %v7173_v54, %v7166_v29 }
 0x415   : > { %11442 = vmatmul.mubr.msk.bf16.vlgmr.msra.gmra.mrb[28].mxu1 %vm833_vm0, %v15388_v42  ;;  %v5406_v5 = vmax.bf16 %v5403_v60, %v5396_v28  ;;  %v13017_v35 = vld [vmem:[%s16987_s5 + $0x508] ss:$16 sps:$4 sm:$0xff]  }
 0x416   : > { %5182 = vmatpush1.bf16.msra.mxu0 %v12954_v15  ;;  %6767 = vmatpush1.bf16.msra.mxu1 %v12957_v22  ;;  %v13007_v15 = vld [vmem:[%s16987_s5 + $0x4cc] ss:$16 sps:$4 sm:$0xff]   ;;  %v6994_v22 = vmax.bf16 %v6991_v56, %v6988_v30  ;;  %v13032_v30 = vld [vmem:[%s16987_s5 + $0x180] ss:$16 sps:$4 sm:$0xff]   ;;  %v5575_v56 = vshrl.u32 %v5572_v47, 16 }
 0x417   : > { %5309 = vmatprep.subr.bf16.mxu0 %v12962_v37  ;;  %6768 = vmatprep.subr.bf16.mxu1 %v12965_v12  ;;  %v6999_v37 = vmax.bf16 %v6996_v2, %v6989_v0  ;;  %v5398_v12 = vshrl.u32 %v5395_v4, 16  ;;  %v13035_v0 = vld [vmem:[%s16987_s5 + $0x568] ss:$16 sps:$4 sm:$0xff]  }
 0x418   : > { %6798 = vmatprep.mubr.bf16.mxu1 %v17124_v33  ;;  %v13041_v28 = vld [vmem:[%s16987_s5 + $0x588] ss:$16 sps:$4 sm:$0xff]  }
 0x419   : > { %11234 = vmatmul.mubr.msk.bf16.vlgmr.msra.gmra.mrb[108].mxu0 %vm833_vm0, %v4887_v16  ;;  %v12998_v16 = vld [vmem:[%s16987_s5 + $0x124] ss:$16 sps:$4 sm:$0xff]  }
 0x41a   : > { %5310 = vmatpush1.bf16.msra.mxu0 %v12960_v34  ;;  %6769 = vmatpush1.bf16.msra.mxu1 %v12963_v45  ;;  %v7000_v34 = vmax.bf16 %v6999_v37, %v6994_v22  ;;  %v13013_v45 = vld [vmem:[%s16987_s5 + $0x4ec] ss:$16 sps:$4 sm:$0xff]   ;;  %v13044_v37 = vld [vmem:[%s16987_s5 + $0x1c0] ss:$16 sps:$4 sm:$0xff]  }
 0x41b   : > { %5311 = vmatprep.subr.bf16.mxu0 %v12968_v53  ;;  %6770 = vmatprep.subr.bf16.mxu1 %v12971_v9  ;;  %v5401_v53 = vmax.bf16 %v5398_v12, %v5395_v4  ;;  %v7165_v9 = vld [vmem:[#allocation3 + $0x20] sm:$0x8]  ;;  %v13047_v12 = vld [vmem:[%s16987_s5 + $0x5a8] ss:$16 sps:$4 sm:$0xff]  }
 0x41c   : > { %5341 = vmatprep.mubr.bf16.mxu0 %v17124_v33  ;;  %v7168_v10 = vshrl.u32 %v7165_v9, 16  ;;  %v13038_v4 = vld [vmem:[%s16987_s5 + $0x1a0] ss:$16 sps:$4 sm:$0xff]  }
 0x41d   : > { %v5407_v6 = vmax.bf16 %v5406_v5, %v5401_v53  ;;  %v13050_v53 = vld [vmem:[%s16987_s5 + $0x188] ss:$16 sps:$4 sm:$0xff]  }
 0x41e   : > { %5312 = vmatpush1.bf16.msra.mxu0 %v12966_v48  ;;  %6771 = vmatpush1.bf16.msra.mxu1 %v12969_v25  ;;  %v13016_v48 = vld [vmem:[%s16987_s5 + $0x12c] ss:$16 sps:$4 sm:$0xff]   ;;  %v15517_v25 = vrot.slane %v7000_v34, 2  ;;  %v7520_v34 = vld [vmem:[#allocation3 + $0x30] sm:$0x1] }
 0x41f   : > { %5313 = vmatprep.subr.bf16.mxu0 %v12974_v11  ;;  %6943 = vmatprep.subr.bf16.mxu1 %v12977_v46  ;;  %v13019_v11 = vld [vmem:[%s16987_s5 + $0x50c] ss:$16 sps:$4 sm:$0xff]   ;;  %v13014_v46 = vld [vmem:[%s16987_s5 + $0x128] ss:$16 sps:$4 sm:$0xff]   ;;  %v5422_v43 = vrot.slane %v5407_v6, 3 }
 0x420   : > { %v13053_v5 = vld [vmem:[%s16987_s5 + $0x5c8] ss:$16 sps:$4 sm:$0xff]  }
 0x421   : > { %11468 = vmatmul.mubr.msk.bf16.vlgmr.msra.gmra.mrb[32].mxu1 %vm833_vm0, %v15428_v40  ;;  %v13056_v6 = vld [vmem:[%s16987_s5 + $0x1a8] ss:$16 sps:$4 sm:$0xff]  }
 0x422   : > { %5314 = vmatpush1.bf16.msra.mxu0 %v12972_v18  ;;  %6944 = vmatpush1.bf16.msra.mxu1 %v12975_v51  ;;  %v13025_v18 = vld [vmem:[%s16987_s5 + $0x52c] ss:$16 sps:$4 sm:$0xff]   ;;  %v7171_v51 = vmax.bf16 %v7168_v10, %v7165_v9 }
 0x423   : > { %5350 = vmatprep.subr.bf16.mxu0 %v12980_v7  ;;  %6945 = vmatprep.subr.bf16.mxu1 %v12983_v39  ;;  %v13020_v7 = vld [vmem:[%s16987_s5 + $0x148] ss:$16 sps:$4 sm:$0xff]   ;;  %v13058_v9 = vld [vmem:[%s16987_s5 + $0x1ac] ss:$16 sps:$4 sm:$0xff]  }
 0x424   : > { %6975 = vmatprep.mubr.bf16.mxu1 %v17124_v33  ;;  %v13023_v39 = vld [vmem:[%s16987_s5 + $0x528] ss:$16 sps:$4 sm:$0xff]   ;;  %v7177_v13 = vmax.bf16 %v7176_v49, %v7171_v51  ;;  %v13064_v10 = vld [vmem:[%s16987_s5 + $0x1cc] ss:$16 sps:$4 sm:$0xff]  }
 0x425   : > { %11259 = vmatmul.mubr.msk.bf16.vlgmr.msra.gmra.mrb[112].mxu0 %vm833_vm0, %v5245_v32  ;;  %v13065_v51 = vld [vmem:[%s16987_s5 + $0x608] ss:$16 sps:$4 sm:$0xff]  }
 0x426   : > { %5351 = vmatpush1.bf16.msra.mxu0 %v12978_v41  ;;  %6946 = vmatpush1.bf16.msra.mxu1 %v12981_v31  ;;  %v13031_v41 = vld [vmem:[%s16987_s5 + $0x54c] ss:$16 sps:$4 sm:$0xff]   ;;  %v7342_v31 = vld [vmem:[#allocation3 + $0x20] sm:$0x10]  ;;  %v15560_v24 = vrot.slane %v7177_v13, 3 }
 0x427   : > { %5352 = vmatprep.subr.bf16.mxu0 %v12986_v1  ;;  %6947 = vmatprep.subr.bf16.mxu1 %v12989_v8  ;;  %v13026_v1 = vld [vmem:[%s16987_s5 + $0x168] ss:$16 sps:$4 sm:$0xff]  }
 0x428   : > { %5382 = vmatprep.mubr.bf16.mxu0 %v17124_v33  ;;  %v13029_v8 = vld [vmem:[%s16987_s5 + $0x548] ss:$16 sps:$4 sm:$0xff]  }
 0x42a   : > { %5353 = vmatpush1.bf16.msra.mxu0 %v12984_v59  ;;  %6948 = vmatpush1.bf16.msra.mxu1 %v12987_v36  ;;  %v13037_v59 = vld [vmem:[%s16987_s5 + $0x56c] ss:$16 sps:$4 sm:$0xff]   ;;  %v7345_v36 = vshrl.u32 %v7342_v31, 16 }
 0x42b   : > { %5354 = vmatprep.subr.bf16.mxu0 %v12992_v27  ;;  %7120 = vmatprep.subr.bf16.mxu1 %v12995_v21  ;;  %v5573_v21 = vld [vmem:[#allocation3 + $0x8] sm:$0x10] }
 0x42c   : > { %v5580_v2 = vshrl.u32 %v5573_v21, 16 }
 0x42d   : > { %11494 = vmatmul.mubr.msk.bf16.vlgmr.msra.gmra.mrb[36].mxu1 %vm833_vm0, %v15474_v58 }
 0x42e   : > { %5355 = vmatpush1.bf16.msra.mxu0 %v12990_v26  ;;  %7121 = vmatpush1.bf16.msra.mxu1 %v12993_v50  ;;  %v13040_v26 = vld [vmem:[%s16987_s5 + $0x1a4] ss:$16 sps:$4 sm:$0xff]   ;;  %v13043_v50 = vld [vmem:[%s16987_s5 + $0x58c] ss:$16 sps:$4 sm:$0xff]   ;;  %v5583_v22 = vmax.bf16 %v5580_v2, %v5573_v21  ;;  %v13083_v2 = vld [vmem:[%s16987_s5 + $0x668] ss:$16 sps:$4 sm:$0xff]  }
 0x42f   : > { %5486 = vmatprep.subr.bf16.mxu0 %v12998_v16  ;;  %7122 = vmatprep.subr.bf16.mxu1 %v13001_v57  ;;  %v7348_v16 = vmax.bf16 %v7345_v36, %v7342_v31  ;;  %v13071_v31 = vld [vmem:[%s16987_s5 + $0x628] ss:$16 sps:$4 sm:$0xff]  }
 0x430   : > { %7152 = vmatprep.mubr.bf16.mxu1 %v17124_v33  ;;  %v5752_v36 = vld [vmem:[#allocation3 + $0x18] sm:$0x1] }
 0x431   : > { %11260 = vmatmul.mubr.msk.bf16.vlgmr.msra.gmra.mrb[116].mxu0 %vm833_vm0, %v5245_v32  ;;  %v7343_v32 = vld [vmem:[#allocation3 + $0x28] sm:$0x10] }
 0x432   : > { %5487 = vmatpush1.bf16.msra.mxu0 %v12996_v23  ;;  %7123 = vmatpush1.bf16.msra.mxu1 %v12999_v52  ;;  %v7350_v27 = vshrl.u32 %v7343_v32, 16  ;;  %v13046_v23 = vld [vmem:[%s16987_s5 + $0x1c4] ss:$16 sps:$4 sm:$0xff]  }
 0x433   : > { %5488 = vmatprep.subr.bf16.mxu0 %v13004_v44  ;;  %7124 = vmatprep.subr.bf16.mxu1 %v13007_v15  ;;  %v13049_v44 = vld [vmem:[%s16987_s5 + $0x5ac] ss:$16 sps:$4 sm:$0xff]   ;;  %v5578_v15 = vmax.bf16 %v5575_v56, %v5572_v47  ;;  %v13077_v47 = vld [vmem:[%s16987_s5 + $0x648] ss:$16 sps:$4 sm:$0xff]   ;;  %v13080_v56 = vld [vmem:[%s16987_s5 + $0x220] ss:$16 sps:$4 sm:$0xff]  }
 0x434   : > { %5518 = vmatprep.mubr.bf16.mxu0 %v17124_v33  ;;  %v7353_v57 = vmax.bf16 %v7350_v27, %v7343_v32  ;;  %v13076_v32 = vld [vmem:[%s16987_s5 + $0x204] ss:$16 sps:$4 sm:$0xff]   ;;  %v13074_v27 = vld [vmem:[%s16987_s5 + $0x200] ss:$16 sps:$4 sm:$0xff]  }
 0x436   : > { %5489 = vmatpush1.bf16.msra.mxu0 %v13002_v19  ;;  %7125 = vmatpush1.bf16.msra.mxu1 %v13005_v63  ;;  %v7354_v52 = vmax.bf16 %v7353_v57, %v7348_v16  ;;  %v5584_v19 = vmax.bf16 %v5583_v22, %v5578_v15  ;;  %v13052_v63 = vld [vmem:[%s16987_s5 + $0x18c] ss:$16 sps:$4 sm:$0xff]   ;;  %v7873_v16 = vld [vmem:[#allocation3 + $0x30] sm:$0x4]  ;;  %v7874_v57 = vld [vmem:[#allocation3 + $0x38] sm:$0x4] }
 0x437   : > { %5490 = vmatprep.subr.bf16.mxu0 %v13010_v14  ;;  %7297 = vmatprep.subr.bf16.mxu1 %v13013_v45  ;;  %v13055_v14 = vld [vmem:[%s16987_s5 + $0x5cc] ss:$16 sps:$4 sm:$0xff]   ;;  %v7522_v45 = vld [vmem:[#allocation3 + $0x38] sm:$0x1]  ;;  %v7876_v15 = vshrl.u32 %v7873_v16, 16  ;;  %v7881_v22 = vshrl.u32 %v7874_v57, 16 }
 0x438   : > { %v15600_v60 = vrot.slane %v7354_v52, 4  ;;  %v5599_v29 = vrot.slane %v5584_v19, 4 }
 0x439   : > { %11520 = vmatmul.mubr.msk.bf16.vlgmr.msra.gmra.mrb[40].mxu1 %vm833_vm0, %v15517_v25 }
 0x43a   : > { %5491 = vmatpush1.bf16.msra.mxu0 %v13008_v62  ;;  %7298 = vmatpush1.bf16.msra.mxu1 %v13011_v55  ;;  %v13061_v62 = vld [vmem:[%s16987_s5 + $0x5ec] ss:$16 sps:$4 sm:$0xff]   ;;  %v7524_v55 = vshrl.u32 %v7520_v34, 16 }
 0x43b   : > { %5527 = vmatprep.subr.bf16.mxu0 %v13016_v48  ;;  %7299 = vmatprep.subr.bf16.mxu1 %v13019_v11  ;;  %v7529_v48 = vshrl.u32 %v7522_v45, 16  ;;  %v13059_v11 = vld [vmem:[%s16987_s5 + $0x5e8] ss:$16 sps:$4 sm:$0xff]  }
 0x43c   : > { %7329 = vmatprep.mubr.bf16.mxu1 %v17124_v33  ;;  %v7527_v54 = vmax.bf16 %v7524_v55, %v7520_v34  ;;  %v7879_v34 = vmax.bf16 %v7876_v15, %v7873_v16  ;;  %v8050_v55 = vld [vmem:[#allocation3 + $0x30] sm:$0x8]  ;;  %v13130_v15 = vld [vmem:[%s16987_s5 + $0x26c] ss:$16 sps:$4 sm:$0xff]  }
 0x43d   : > { %11285 = vmatmul.mubr.msk.bf16.vlgmr.msra.gmra.mrb[120].mxu0 %vm833_vm0, %v5422_v43 }
 0x43e   : > { %5528 = vmatpush1.bf16.msra.mxu0 %v13014_v46  ;;  %7300 = vmatpush1.bf16.msra.mxu1 %v13017_v35  ;;  %v7532_v46 = vmax.bf16 %v7529_v48, %v7522_v45  ;;  %v13067_v35 = vld [vmem:[%s16987_s5 + $0x60c] ss:$16 sps:$4 sm:$0xff]   ;;  %v7884_v45 = vmax.bf16 %v7881_v22, %v7874_v57  ;;  %v8051_v48 = vld [vmem:[#allocation3 + $0x38] sm:$0x8] }
 0x43f   : > { %5529 = vmatprep.subr.bf16.mxu0 %v13022_v3  ;;  %7301 = vmatprep.subr.bf16.mxu1 %v13025_v18  ;;  %v7697_v3 = vld [vmem:[#allocation3 + $0x38] sm:$0x2]  ;;  %v13133_v22 = vld [vmem:[%s16987_s5 + $0x76c] ss:$16 sps:$4 sm:$0xff]  }
 0x440   : > { %5559 = vmatprep.mubr.bf16.mxu0 %v17124_v33  ;;  %v13062_v18 = vld [vmem:[%s16987_s5 + $0x1c8] ss:$16 sps:$4 sm:$0xff]   ;;  %v15643_v49 = vmax.bf16 %v7532_v46, %v7527_v54  ;;  %v7704_v13 = vshrl.u32 %v7697_v3, 16  ;;  %v13109_v46 = vld [vmem:[%s16987_s5 + $0x6ec] ss:$16 sps:$4 sm:$0xff]  }
 0x442   : > { %5530 = vmatpush1.bf16.msra.mxu0 %v13020_v7  ;;  %7302 = vmatpush1.bf16.msra.mxu1 %v13023_v39  ;;  %v13070_v7 = vld [vmem:[%s16987_s5 + $0x1e4] ss:$16 sps:$4 sm:$0xff]   ;;  %v13073_v39 = vld [vmem:[%s16987_s5 + $0x62c] ss:$16 sps:$4 sm:$0xff]  }
 0x443   : > { %5531 = vmatprep.subr.bf16.mxu0 %v13028_v61  ;;  %7474 = vmatprep.subr.bf16.mxu1 %v13031_v41  ;;  %v13068_v41 = vld [vmem:[%s16987_s5 + $0x1e0] ss:$16 sps:$4 sm:$0xff]  }
 0x445   : > { %11546 = vmatmul.mubr.msk.bf16.vlgmr.msra.gmra.mrb[44].mxu1 %vm833_vm0, %v15560_v24 }
 0x446   : > { %5532 = vmatpush1.bf16.msra.mxu0 %v13026_v1  ;;  %7475 = vmatpush1.bf16.msra.mxu1 %v13029_v8  ;;  %v13079_v1 = vld [vmem:[%s16987_s5 + $0x64c] ss:$16 sps:$4 sm:$0xff]  }
 0x447   : > { %5663 = vmatprep.subr.bf16.mxu0 %v13034_v38  ;;  %7476 = vmatprep.subr.bf16.mxu1 %v13037_v59  ;;  %v7707_v38 = vmax.bf16 %v7704_v13, %v7697_v3  ;;  %v5750_v59 = vld [vmem:[#allocation3 + $0x10] sm:$0x1]  ;;  %v5926_v3 = vld [vmem:[#allocation3 + $0x10] sm:$0x2] }
 0x448   : > { %7506 = vmatprep.mubr.bf16.mxu1 %v17124_v33  ;;  %v5754_v21 = vshrl.u32 %v5750_v59, 16 }
 0x449   : > { %11286 = vmatmul.mubr.msk.bf16.vlgmr.msra.gmra.mrb[124].mxu0 %vm833_vm0, %v5422_v43  ;;  %v7696_v43 = vld [vmem:[#allocation3 + $0x30] sm:$0x2] }
 0x44a   : > { %5664 = vmatpush1.bf16.msra.mxu0 %v13032_v30  ;;  %7477 = vmatpush1.bf16.msra.mxu1 %v13035_v0  ;;  %v7699_v61 = vshrl.u32 %v7696_v43, 16  ;;  %v13082_v30 = vld [vmem:[%s16987_s5 + $0x224] ss:$16 sps:$4 sm:$0xff]  }
 0x44b   : > { %5665 = vmatprep.subr.bf16.mxu0 %v13040_v26  ;;  %7478 = vmatprep.subr.bf16.mxu1 %v13043_v50  ;;  %v13085_v26 = vld [vmem:[%s16987_s5 + $0x66c] ss:$16 sps:$4 sm:$0xff]   ;;  %v5759_v50 = vshrl.u32 %v5752_v36, 16 }
 0x44c   : > { %5695 = vmatprep.mubr.bf16.mxu0 %v17124_v33  ;;  %v7702_v8 = vmax.bf16 %v7699_v61, %v7696_v43  ;;  %v8058_v43 = vshrl.u32 %v8051_v48, 16  ;;  %v13115_v61 = vld [vmem:[%s16987_s5 + $0x70c] ss:$16 sps:$4 sm:$0xff]  }
 0x44d   : > { %v5762_v52 = vmax.bf16 %v5759_v50, %v5752_v36  ;;  %v13121_v36 = vld [vmem:[%s16987_s5 + $0x72c] ss:$16 sps:$4 sm:$0xff]  }
 0x44e   : > { %5666 = vmatpush1.bf16.msra.mxu0 %v13038_v4  ;;  %7479 = vmatpush1.bf16.msra.mxu1 %v13041_v28  ;;  %v7708_v0 = vmax.bf16 %v7707_v38, %v7702_v8  ;;  %v5757_v4 = vmax.bf16 %v5754_v21, %v5750_v59  ;;  %v13088_v28 = vld [vmem:[%s16987_s5 + $0x1ec] ss:$16 sps:$4 sm:$0xff]   ;;  %v13113_v8 = vld [vmem:[%s16987_s5 + $0x708] ss:$16 sps:$4 sm:$0xff]   ;;  %v13118_v38 = vld [vmem:[%s16987_s5 + $0x284] ss:$16 sps:$4 sm:$0xff]  }
 0x44f   : > { %5667 = vmatprep.subr.bf16.mxu0 %v13046_v23  ;;  %7651 = vmatprep.subr.bf16.mxu1 %v13049_v44  ;;  %v13091_v44 = vld [vmem:[%s16987_s5 + $0x68c] ss:$16 sps:$4 sm:$0xff]   ;;  %v8227_v21 = vld [vmem:[#allocation3 + $0x30] sm:$0x10] }
 0x450   : > { %v15689_v23 = vrot.slane %v7708_v0, 1  ;;  %v5763_v19 = vmax.bf16 %v5762_v52, %v5757_v4  ;;  %v13116_v0 = vld [vmem:[%s16987_s5 + $0x280] ss:$16 sps:$4 sm:$0xff]   ;;  %v13124_v50 = vld [vmem:[%s16987_s5 + $0x24c] ss:$16 sps:$4 sm:$0xff]  }
 0x451   : > { %11572 = vmatmul.mubr.msk.bf16.vlgmr.msra.gmra.mrb[48].mxu1 %vm833_vm0, %v15600_v60  ;;  %v13125_v52 = vld [vmem:[%s16987_s5 + $0x748] ss:$16 sps:$4 sm:$0xff]  }
 0x452   : > { %5668 = vmatpush1.bf16.msra.mxu0 %v13044_v37  ;;  %7652 = vmatpush1.bf16.msra.mxu1 %v13047_v12  ;;  %v13086_v37 = vld [vmem:[%s16987_s5 + $0x1e8] ss:$16 sps:$4 sm:$0xff]  }
 0x453   : > { %5704 = vmatprep.subr.bf16.mxu0 %v13052_v63  ;;  %7653 = vmatprep.subr.bf16.mxu1 %v13055_v14  ;;  %v13089_v12 = vld [vmem:[%s16987_s5 + $0x688] ss:$16 sps:$4 sm:$0xff]   ;;  %v13094_v63 = vld [vmem:[%s16987_s5 + $0x20c] ss:$16 sps:$4 sm:$0xff]  }
 0x454   : > { %7683 = vmatprep.mubr.bf16.mxu1 %v17124_v33  ;;  %v13097_v14 = vld [vmem:[%s16987_s5 + $0x6ac] ss:$16 sps:$4 sm:$0xff]  }
 0x455   : > { %11311 = vmatmul.mubr.msk.bf16.vlgmr.msra.gmra.mrb[128].mxu0 %vm833_vm0, %v5599_v29 }
 0x456   : > { %5705 = vmatpush1.bf16.msra.mxu0 %v13050_v53  ;;  %7654 = vmatpush1.bf16.msra.mxu1 %v13053_v5  ;;  %v13092_v53 = vld [vmem:[%s16987_s5 + $0x208] ss:$16 sps:$4 sm:$0xff]  }
 0x457   : > { %5706 = vmatprep.subr.bf16.mxu0 %v13058_v9  ;;  %7655 = vmatprep.subr.bf16.mxu1 %v13061_v62  ;;  %v13095_v5 = vld [vmem:[%s16987_s5 + $0x6a8] ss:$16 sps:$4 sm:$0xff]   ;;  %v13100_v9 = vld [vmem:[%s16987_s5 + $0x22c] ss:$16 sps:$4 sm:$0xff]  }
 0x458   : > { %5736 = vmatprep.mubr.bf16.mxu0 %v17124_v33  ;;  %v13103_v62 = vld [vmem:[%s16987_s5 + $0x6cc] ss:$16 sps:$4 sm:$0xff]  }
 0x45a   : > { %5707 = vmatpush1.bf16.msra.mxu0 %v13056_v6  ;;  %7656 = vmatpush1.bf16.msra.mxu1 %v13059_v11  ;;  %v13098_v6 = vld [vmem:[%s16987_s5 + $0x228] ss:$16 sps:$4 sm:$0xff]  }
 0x45b   : > { %5708 = vmatprep.subr.bf16.mxu0 %v13064_v10  ;;  %7828 = vmatprep.subr.bf16.mxu1 %v13067_v35  ;;  %v13101_v11 = vld [vmem:[%s16987_s5 + $0x6c8] ss:$16 sps:$4 sm:$0xff]   ;;  %v13106_v10 = vld [vmem:[%s16987_s5 + $0x244] ss:$16 sps:$4 sm:$0xff]   ;;  %v8053_v35 = vshrl.u32 %v8050_v55, 16 }
 0x45d   : > { %11598 = vmatmul.mubr.msk.bf16.vlgmr.msra.gmra.mrb[52].mxu1 %vm833_vm0, %v15643_v49  ;;  %v8056_v13 = vmax.bf16 %v8053_v35, %v8050_v55  ;;  %v8405_v55 = vld [vmem:[#allocation3 + $0x40] sm:$0x1] }
 0x45e   : > { %5709 = vmatpush1.bf16.msra.mxu0 %v13062_v18  ;;  %7829 = vmatpush1.bf16.msra.mxu1 %v13065_v51  ;;  %v5927_v18 = vld [vmem:[#allocation3 + $0x18] sm:$0x2]  ;;  %v13104_v51 = vld [vmem:[%s16987_s5 + $0x240] ss:$16 sps:$4 sm:$0xff]   ;;  %v8409_v35 = vshrl.u32 %v8405_v55, 16 }
 0x45f   : > { %5840 = vmatprep.subr.bf16.mxu0 %v13070_v7  ;;  %7830 = vmatprep.subr.bf16.mxu1 %v13073_v39  ;;  %v13107_v7 = vld [vmem:[%s16987_s5 + $0x6e8] ss:$16 sps:$4 sm:$0xff]   ;;  %v13112_v39 = vld [vmem:[%s16987_s5 + $0x264] ss:$16 sps:$4 sm:$0xff]  }
 0x460   : > { %7860 = vmatprep.mubr.bf16.mxu1 %v17124_v33 }
 0x461   : > { %11312 = vmatmul.mubr.msk.bf16.vlgmr.msra.gmra.mrb[132].mxu0 %vm833_vm0, %v5599_v29  ;;  %v7885_v29 = vmax.bf16 %v7884_v45, %v7879_v34  ;;  %v13139_v45 = vld [vmem:[%s16987_s5 + $0x78c] ss:$16 sps:$4 sm:$0xff]  }
 0x462   : > { %5841 = vmatpush1.bf16.msra.mxu0 %v13068_v41  ;;  %7831 = vmatpush1.bf16.msra.mxu1 %v13071_v31  ;;  %v8061_v41 = vmax.bf16 %v8058_v43, %v8051_v48  ;;  %v5929_v31 = vshrl.u32 %v5926_v3, 16  ;;  %v8407_v48 = vld [vmem:[#allocation3 + $0x48] sm:$0x1] }
 0x463   : > { %5842 = vmatprep.subr.bf16.mxu0 %v13076_v32  ;;  %7832 = vmatprep.subr.bf16.mxu1 %v13079_v1  ;;  %v15732_v54 = vrot.slane %v7885_v29, 2  ;;  %v5934_v32 = vshrl.u32 %v5927_v18, 16  ;;  %v13110_v1 = vld [vmem:[%s16987_s5 + $0x260] ss:$16 sps:$4 sm:$0xff]   ;;  %v13142_v29 = vld [vmem:[%s16987_s5 + $0x2a4] ss:$16 sps:$4 sm:$0xff]  }
 0x464   : > { %5872 = vmatprep.mubr.bf16.mxu0 %v17124_v33  ;;  %v8062_v59 = vmax.bf16 %v8061_v41, %v8056_v13  ;;  %v8414_v43 = vshrl.u32 %v8407_v48, 16  ;;  %v8581_v13 = vld [vmem:[#allocation3 + $0x40] sm:$0x2]  ;;  %v8582_v41 = vld [vmem:[#allocation3 + $0x48] sm:$0x2] }
 0x466   : > { %5843 = vmatpush1.bf16.msra.mxu0 %v13074_v27  ;;  %7833 = vmatpush1.bf16.msra.mxu1 %v13077_v47  ;;  %v5932_v27 = vmax.bf16 %v5929_v31, %v5926_v3  ;;  %v5937_v47 = vmax.bf16 %v5934_v32, %v5927_v18  ;;  %v15775_v16 = vrot.slane %v8062_v59, 3  ;;  %v13146_v3 = vld [vmem:[%s16987_s5 + $0x2c0] ss:$16 sps:$4 sm:$0xff]   ;;  %v13149_v18 = vld [vmem:[%s16987_s5 + $0x7c8] ss:$16 sps:$4 sm:$0xff]   ;;  %v8584_v59 = vshrl.u32 %v8581_v13, 16 }
 0x467   : > { %5844 = vmatprep.subr.bf16.mxu0 %v13082_v30  ;;  %8005 = vmatprep.subr.bf16.mxu1 %v13085_v26  ;;  %v8228_v30 = vld [vmem:[#allocation3 + $0x38] sm:$0x10]  ;;  %v13119_v26 = vld [vmem:[%s16987_s5 + $0x728] ss:$16 sps:$4 sm:$0xff]   ;;  %v13152_v31 = vld [vmem:[%s16987_s5 + $0x2e0] ss:$16 sps:$4 sm:$0xff]  }
 0x468   : > { %v5938_v57 = vmax.bf16 %v5937_v47, %v5932_v27  ;;  %v8235_v4 = vshrl.u32 %v8228_v30, 16  ;;  %v13155_v32 = vld [vmem:[%s16987_s5 + $0x7e8] ss:$16 sps:$4 sm:$0xff]   ;;  %v13158_v27 = vld [vmem:[%s16987_s5 + $0x300] ss:$16 sps:$4 sm:$0xff]  }
 0x469   : > { %11624 = vmatmul.mubr.msk.bf16.vlgmr.msra.gmra.mrb[56].mxu1 %vm833_vm0, %v15689_v23  ;;  %v13161_v47 = vld [vmem:[%s16987_s5 + $0x808] ss:$16 sps:$4 sm:$0xff]  }
 0x46a   : > { %5845 = vmatpush1.bf16.msra.mxu0 %v13080_v56  ;;  %8006 = vmatpush1.bf16.msra.mxu1 %v13083_v2  ;;  %v13127_v56 = vld [vmem:[%s16987_s5 + $0x74c] ss:$16 sps:$4 sm:$0xff]   ;;  %v8230_v2 = vshrl.u32 %v8227_v21, 16 }
 0x46b   : > { %5881 = vmatprep.subr.bf16.mxu0 %v13088_v28  ;;  %8007 = vmatprep.subr.bf16.mxu1 %v13091_v44  ;;  %v13122_v28 = vld [vmem:[%s16987_s5 + $0x248] ss:$16 sps:$4 sm:$0xff]   ;;  %v5953_v44 = vrot.slane %v5938_v57, 1 }
 0x46c   : > { %8037 = vmatprep.mubr.bf16.mxu1 %v17124_v33  ;;  %v13167_v57 = vld [vmem:[%s16987_s5 + $0x828] ss:$16 sps:$4 sm:$0xff]  }
 0x46d   : > { %11337 = vmatmul.mubr.msk.bf16.vlgmr.msra.gmra.mrb[136].mxu0 %vm833_vm0, %v5763_v19 }
 0x46e   : > { %5882 = vmatpush1.bf16.msra.mxu0 %v13086_v37  ;;  %8008 = vmatpush1.bf16.msra.mxu1 %v13089_v12  ;;  %v8233_v37 = vmax.bf16 %v8230_v2, %v8227_v21  ;;  %v8238_v12 = vmax.bf16 %v8235_v4, %v8228_v30  ;;  %v13166_v21 = vld [vmem:[%s16987_s5 + $0x324] ss:$16 sps:$4 sm:$0xff]   ;;  %v13169_v30 = vld [vmem:[%s16987_s5 + $0x82c] ss:$16 sps:$4 sm:$0xff]   ;;  %v8759_v4 = vld [vmem:[#allocation3 + $0x48] sm:$0x4] }
 0x46f   : > { %5883 = vmatprep.subr.bf16.mxu0 %v13094_v63  ;;  %8009 = vmatprep.subr.bf16.mxu1 %v13097_v14  ;;  %v13131_v63 = vld [vmem:[%s16987_s5 + $0x768] ss:$16 sps:$4 sm:$0xff]   ;;  %v13136_v14 = vld [vmem:[%s16987_s5 + $0x28c] ss:$16 sps:$4 sm:$0xff]  }
 0x470   : > { %5913 = vmatprep.mubr.bf16.mxu0 %v17124_v33  ;;  %v8239_v34 = vmax.bf16 %v8238_v12, %v8233_v37  ;;  %v13178_v37 = vld [vmem:[%s16987_s5 + $0x364] ss:$16 sps:$4 sm:$0xff]   ;;  %v13181_v12 = vld [vmem:[%s16987_s5 + $0x86c] ss:$16 sps:$4 sm:$0xff]  }
 0x472   : > { %5884 = vmatpush1.bf16.msra.mxu0 %v13092_v53  ;;  %8010 = vmatpush1.bf16.msra.mxu1 %v13095_v5  ;;  %v13134_v53 = vld [vmem:[%s16987_s5 + $0x288] ss:$16 sps:$4 sm:$0xff]  }
 0x473   : > { %5885 = vmatprep.subr.bf16.mxu0 %v13100_v9  ;;  %8182 = vmatprep.subr.bf16.mxu1 %v13103_v62  ;;  %v13137_v5 = vld [vmem:[%s16987_s5 + $0x788] ss:$16 sps:$4 sm:$0xff]   ;;  %v15815_v9 = vrot.slane %v8239_v34, 4  ;;  %v13145_v62 = vld [vmem:[%s16987_s5 + $0x7ac] ss:$16 sps:$4 sm:$0xff]  }
 0x474   : > { %v13184_v34 = vld [vmem:[%s16987_s5 + $0x384] ss:$16 sps:$4 sm:$0xff]  }
 0x475   : > { %11650 = vmatmul.mubr.msk.bf16.vlgmr.msra.gmra.mrb[60].mxu1 %vm833_vm0, %v15732_v54 }
 0x476   : > { %5886 = vmatpush1.bf16.msra.mxu0 %v13098_v6  ;;  %8183 = vmatpush1.bf16.msra.mxu1 %v13101_v11  ;;  %v13140_v6 = vld [vmem:[%s16987_s5 + $0x2a0] ss:$16 sps:$4 sm:$0xff]   ;;  %v13143_v11 = vld [vmem:[%s16987_s5 + $0x7a8] ss:$16 sps:$4 sm:$0xff]  }
 0x477   : > { %6017 = vmatprep.subr.bf16.mxu0 %v13106_v10  ;;  %8184 = vmatprep.subr.bf16.mxu1 %v13109_v46  ;;  %v13148_v10 = vld [vmem:[%s16987_s5 + $0x2c4] ss:$16 sps:$4 sm:$0xff]   ;;  %v13151_v46 = vld [vmem:[%s16987_s5 + $0x7cc] ss:$16 sps:$4 sm:$0xff]  }
 0x478   : > { %8214 = vmatprep.mubr.bf16.mxu1 %v17124_v33 }
 0x479   : > { %11338 = vmatmul.mubr.msk.bf16.vlgmr.msra.gmra.mrb[140].mxu0 %vm833_vm0, %v5763_v19  ;;  %v13128_v19 = vld [vmem:[%s16987_s5 + $0x268] ss:$16 sps:$4 sm:$0xff]  }
 0x47a   : > { %6018 = vmatpush1.bf16.msra.mxu0 %v13104_v51  ;;  %8185 = vmatpush1.bf16.msra.mxu1 %v13107_v7  ;;  %v13154_v51 = vld [vmem:[%s16987_s5 + $0x2e4] ss:$16 sps:$4 sm:$0xff]   ;;  %v8412_v7 = vmax.bf16 %v8409_v35, %v8405_v55 }
 0x47b   : > { %6019 = vmatprep.subr.bf16.mxu0 %v13112_v39  ;;  %8186 = vmatprep.subr.bf16.mxu1 %v13115_v61  ;;  %v8417_v39 = vmax.bf16 %v8414_v43, %v8407_v48  ;;  %v13157_v61 = vld [vmem:[%s16987_s5 + $0x7ec] ss:$16 sps:$4 sm:$0xff]   ;;  %v13190_v55 = vld [vmem:[%s16987_s5 + $0x3a4] ss:$16 sps:$4 sm:$0xff]  }
 0x47c   : > { %6049 = vmatprep.mubr.bf16.mxu0 %v17124_v33 }
 0x47e   : > { %6020 = vmatpush1.bf16.msra.mxu0 %v13110_v1  ;;  %8187 = vmatpush1.bf16.msra.mxu1 %v13113_v8  ;;  %v15858_v1 = vmax.bf16 %v8417_v39, %v8412_v7  ;;  %v13160_v8 = vld [vmem:[%s16987_s5 + $0x304] ss:$16 sps:$4 sm:$0xff]   ;;  %v13194_v7 = vld [vmem:[%s16987_s5 + $0x3c0] ss:$16 sps:$4 sm:$0xff]   ;;  %v13197_v39 = vld [vmem:[%s16987_s5 + $0x8c8] ss:$16 sps:$4 sm:$0xff]  }
 0x47f   : > { %6021 = vmatprep.subr.bf16.mxu0 %v13118_v38  ;;  %8359 = vmatprep.subr.bf16.mxu1 %v13121_v36  ;;  %v13163_v38 = vld [vmem:[%s16987_s5 + $0x80c] ss:$16 sps:$4 sm:$0xff]   ;;  %v8589_v36 = vshrl.u32 %v8582_v41, 16 }
 0x481   : > { %11676 = vmatmul.mubr.msk.bf16.vlgmr.msra.gmra.mrb[64].mxu1 %vm833_vm0, %v15775_v16 }
 0x482   : > { %6022 = vmatpush1.bf16.msra.mxu0 %v13116_v0  ;;  %8360 = vmatpush1.bf16.msra.mxu1 %v13119_v26  ;;  %v8587_v0 = vmax.bf16 %v8584_v59, %v8581_v13  ;;  %v8592_v26 = vmax.bf16 %v8589_v36, %v8582_v41  ;;  %v13205_v13 = vld [vmem:[%s16987_s5 + $0x8ec] ss:$16 sps:$4 sm:$0xff]   ;;  %v9112_v36 = vld [vmem:[#allocation3 + $0x40] sm:$0x10] }
 0x483   : > { %6058 = vmatprep.subr.bf16.mxu0 %v13124_v50  ;;  %8361 = vmatprep.subr.bf16.mxu1 %v13127_v56  ;;  %v13164_v50 = vld [vmem:[%s16987_s5 + $0x320] ss:$16 sps:$4 sm:$0xff]   ;;  %v13172_v56 = vld [vmem:[%s16987_s5 + $0x344] ss:$16 sps:$4 sm:$0xff]  }
 0x484   : > { %8391 = vmatprep.mubr.bf16.mxu1 %v17124_v33  ;;  %v8593_v2 = vmax.bf16 %v8592_v26, %v8587_v0  ;;  %v13214_v26 = vld [vmem:[%s16987_s5 + $0x424] ss:$16 sps:$4 sm:$0xff]  }
 0x485   : > { %11363 = vmatmul.mubr.msk.bf16.vlgmr.msra.gmra.mrb[144].mxu0 %vm833_vm0, %v5953_v44 }
 0x486   : > { %6059 = vmatpush1.bf16.msra.mxu0 %v13122_v28  ;;  %8362 = vmatpush1.bf16.msra.mxu1 %v13125_v52  ;;  %v8758_v28 = vld [vmem:[#allocation3 + $0x40] sm:$0x4] }
 0x487   : > { %6060 = vmatprep.subr.bf16.mxu0 %v13130_v15  ;;  %8363 = vmatprep.subr.bf16.mxu1 %v13133_v22  ;;  %v13170_v52 = vld [vmem:[%s16987_s5 + $0x340] ss:$16 sps:$4 sm:$0xff]   ;;  %v8766_v15 = vshrl.u32 %v8759_v4, 16  ;;  %v15902_v22 = vrot.slane %v8593_v2, 1  ;;  %v13215_v2 = vld [vmem:[%s16987_s5 + $0x928] ss:$16 sps:$4 sm:$0xff]  }
 0x488   : > { %6090 = vmatprep.mubr.bf16.mxu0 %v17124_v33 }
 0x48a   : > { %6061 = vmatpush1.bf16.msra.mxu0 %v13128_v19  ;;  %8364 = vmatpush1.bf16.msra.mxu1 %v13131_v63  ;;  %v8761_v19 = vshrl.u32 %v8758_v28, 16  ;;  %v13176_v63 = vld [vmem:[%s16987_s5 + $0x360] ss:$16 sps:$4 sm:$0xff]  }
 0x48b   : > { %6062 = vmatprep.subr.bf16.mxu0 %v13136_v14  ;;  %8536 = vmatprep.subr.bf16.mxu1 %v13139_v45  ;;  %v13179_v14 = vld [vmem:[%s16987_s5 + $0x868] ss:$16 sps:$4 sm:$0xff]   ;;  %v13187_v45 = vld [vmem:[%s16987_s5 + $0x88c] ss:$16 sps:$4 sm:$0xff]  }
 0x48d   : > { %11702 = vmatmul.mubr.msk.bf16.vlgmr.msra.gmra.mrb[68].mxu1 %vm833_vm0, %v15815_v9 }
 0x48e   : > { %6063 = vmatpush1.bf16.msra.mxu0 %v13134_v53  ;;  %8537 = vmatpush1.bf16.msra.mxu1 %v13137_v5  ;;  %v8764_v53 = vmax.bf16 %v8761_v19, %v8758_v28  ;;  %v8769_v5 = vmax.bf16 %v8766_v15, %v8759_v4  ;;  %v13223_v4 = vld [vmem:[%s16987_s5 + $0x94c] ss:$16 sps:$4 sm:$0xff]   ;;  %v13221_v15 = vld [vmem:[%s16987_s5 + $0x948] ss:$16 sps:$4 sm:$0xff]  }
 0x48f   : > { %6194 = vmatprep.subr.bf16.mxu0 %v13142_v29  ;;  %8538 = vmatprep.subr.bf16.mxu1 %v13145_v62  ;;  %v13182_v29 = vld [vmem:[%s16987_s5 + $0x380] ss:$16 sps:$4 sm:$0xff]   ;;  %v13185_v62 = vld [vmem:[%s16987_s5 + $0x888] ss:$16 sps:$4 sm:$0xff]  }
 0x490   : > { %8568 = vmatprep.mubr.bf16.mxu1 %v17124_v33  ;;  %v8770_v48 = vmax.bf16 %v8769_v5, %v8764_v53  ;;  %v13227_v53 = vld [vmem:[%s16987_s5 + $0x480] ss:$16 sps:$4 sm:$0xff]  }
 0x491   : > { %11364 = vmatmul.mubr.msk.bf16.vlgmr.msra.gmra.mrb[148].mxu0 %vm833_vm0, %v5953_v44  ;;  %v13173_v44 = vld [vmem:[%s16987_s5 + $0x848] ss:$16 sps:$4 sm:$0xff]  }
 0x492   : > { %6195 = vmatpush1.bf16.msra.mxu0 %v13140_v6  ;;  %8539 = vmatpush1.bf16.msra.mxu1 %v13143_v11  ;;  %v8936_v6 = vld [vmem:[#allocation3 + $0x48] sm:$0x8]  ;;  %v8935_v11 = vld [vmem:[#allocation3 + $0x40] sm:$0x8]  ;;  %v15946_v43 = vrot.slane %v8770_v48, 2 }
 0x493   : > { %6196 = vmatprep.subr.bf16.mxu0 %v13148_v10  ;;  %8540 = vmatprep.subr.bf16.mxu1 %v13151_v46  ;;  %v13188_v10 = vld [vmem:[%s16987_s5 + $0x3a0] ss:$16 sps:$4 sm:$0xff]   ;;  %v13191_v46 = vld [vmem:[%s16987_s5 + $0x8a8] ss:$16 sps:$4 sm:$0xff]   ;;  %v8943_v35 = vshrl.u32 %v8936_v6, 16 }
 0x494   : > { %6226 = vmatprep.mubr.bf16.mxu0 %v17124_v33 }
 0x496   : > { %6197 = vmatpush1.bf16.msra.mxu0 %v13146_v3  ;;  %8541 = vmatpush1.bf16.msra.mxu1 %v13149_v18  ;;  %v13196_v3 = vld [vmem:[%s16987_s5 + $0x3c4] ss:$16 sps:$4 sm:$0xff]   ;;  %v13199_v18 = vld [vmem:[%s16987_s5 + $0x8cc] ss:$16 sps:$4 sm:$0xff]  }
 0x497   : > { %6198 = vmatprep.subr.bf16.mxu0 %v13154_v51  ;;  %8713 = vmatprep.subr.bf16.mxu1 %v13157_v61  ;;  %v8938_v51 = vshrl.u32 %v8935_v11, 16  ;;  %v13202_v61 = vld [vmem:[%s16987_s5 + $0x3e4] ss:$16 sps:$4 sm:$0xff]  }
 0x499   : > { %11728 = vmatmul.mubr.msk.bf16.vlgmr.msra.gmra.mrb[72].mxu1 %vm833_vm0, %v15858_v1  ;;  %v8941_v41 = vmax.bf16 %v8938_v51, %v8935_v11 }
 0x49a   : > { %6199 = vmatpush1.bf16.msra.mxu0 %v13152_v31  ;;  %8714 = vmatpush1.bf16.msra.mxu1 %v13155_v32  ;;  %v8946_v31 = vmax.bf16 %v8943_v35, %v8936_v6  ;;  %v13200_v32 = vld [vmem:[%s16987_s5 + $0x3e0] ss:$16 sps:$4 sm:$0xff]  }
 0x49b   : > { %6371 = vmatprep.subr.bf16.mxu0 %v13160_v8  ;;  %8715 = vmatprep.subr.bf16.mxu1 %v13163_v38  ;;  %v13203_v8 = vld [vmem:[%s16987_s5 + $0x8e8] ss:$16 sps:$4 sm:$0xff]   ;;  %v13208_v38 = vld [vmem:[%s16987_s5 + $0x404] ss:$16 sps:$4 sm:$0xff]  }
 0x49c   : > { %8745 = vmatprep.mubr.bf16.mxu1 %v17124_v33  ;;  %v8947_v59 = vmax.bf16 %v8946_v31, %v8941_v41 }
 0x49d   : > { %11389 = vmatmul.mubr.msk.bf16.vlgmr.msra.gmra.mrb[152].mxu0 %vm833_vm0, %v15293_v17  ;;  %v13175_v17 = vld [vmem:[%s16987_s5 + $0x84c] ss:$16 sps:$4 sm:$0xff]  }
 0x49e   : > { %6372 = vmatpush1.bf16.msra.mxu0 %v13158_v27  ;;  %8716 = vmatpush1.bf16.msra.mxu1 %v13161_v47  ;;  %v9113_v27 = vld [vmem:[#allocation3 + $0x48] sm:$0x10]  ;;  %v13206_v47 = vld [vmem:[%s16987_s5 + $0x400] ss:$16 sps:$4 sm:$0xff]   ;;  %v15990_v0 = vrot.slane %v8947_v59, 3 }
 0x49f   : > { %6373 = vmatprep.subr.bf16.mxu0 %v13166_v21  ;;  %8717 = vmatprep.subr.bf16.mxu1 %v13169_v30  ;;  %v13209_v21 = vld [vmem:[%s16987_s5 + $0x908] ss:$16 sps:$4 sm:$0xff]   ;;  %v9115_v30 = vshrl.u32 %v9112_v36, 16 }
 0x4a0   : > { %6403 = vmatprep.mubr.bf16.mxu0 %v17124_v33 }
 0x4a1   : > { %v9118_v28 = vmax.bf16 %v9115_v30, %v9112_v36  ;;  %v13250_v30 = vld [vmem:[%s16987_s5 + $0x564] ss:$16 sps:$4 sm:$0xff]  }
 0x4a2   : > { %6374 = vmatpush1.bf16.msra.mxu0 %v13164_v50  ;;  %8718 = vmatpush1.bf16.msra.mxu1 %v13167_v57  ;;  %v13217_v50 = vld [vmem:[%s16987_s5 + $0x92c] ss:$16 sps:$4 sm:$0xff]   ;;  %v9120_v57 = vshrl.u32 %v9113_v27, 16 }
 0x4a3   : > { %6375 = vmatprep.subr.bf16.mxu0 %v13172_v56  ;;  %8890 = vmatprep.subr.bf16.mxu1 %v13175_v17  ;;  %v13212_v56 = vld [vmem:[%s16987_s5 + $0x420] ss:$16 sps:$4 sm:$0xff]   ;;  %v13220_v17 = vld [vmem:[%s16987_s5 + $0x444] ss:$16 sps:$4 sm:$0xff]  }
 0x4a5   : > { %11754 = vmatmul.mubr.msk.bf16.vlgmr.msra.gmra.mrb[76].mxu1 %vm833_vm0, %v15902_v22 }
 0x4a6   : > { %6376 = vmatpush1.bf16.msra.mxu0 %v13170_v52  ;;  %8891 = vmatpush1.bf16.msra.mxu1 %v13173_v44  ;;  %v9123_v52 = vmax.bf16 %v9120_v57, %v9113_v27  ;;  %v13218_v44 = vld [vmem:[%s16987_s5 + $0x440] ss:$16 sps:$4 sm:$0xff]  }
 0x4a7   : > { %6548 = vmatprep.subr.bf16.mxu0 %v13178_v37  ;;  %8892 = vmatprep.subr.bf16.mxu1 %v13181_v12  ;;  %v13226_v37 = vld [vmem:[%s16987_s5 + $0x464] ss:$16 sps:$4 sm:$0xff]  }
 0x4a8   : > { %8922 = vmatprep.mubr.bf16.mxu1 %v17124_v33  ;;  %v9124_v12 = vmax.bf16 %v9123_v52, %v9118_v28 }
 0x4a9   : > { %11415 = vmatmul.mubr.msk.bf16.vlgmr.msra.gmra.mrb[156].mxu0 %vm833_vm0, %v15345_v20  ;;  %v13193_v20 = vld [vmem:[%s16987_s5 + $0x8ac] ss:$16 sps:$4 sm:$0xff]  }
 0x4aa   : > { %6549 = vmatpush1.bf16.msra.mxu0 %v13176_v63  ;;  %8893 = vmatpush1.bf16.msra.mxu1 %v13179_v14  ;;  %v16028_v19 = vrot.slane %v9124_v12, 4  ;;  %v13229_v63 = vld [vmem:[%s16987_s5 + $0x484] ss:$16 sps:$4 sm:$0xff]   ;;  %v13254_v12 = vld [vmem:[%s16987_s5 + $0x5a0] ss:$16 sps:$4 sm:$0xff]  }
 0x4ab   : > { %6550 = vmatprep.subr.bf16.mxu0 %v13184_v34  ;;  %8894 = vmatprep.subr.bf16.mxu1 %v13187_v45 }
 0x4ac   : > { %6580 = vmatprep.mubr.bf16.mxu0 %v17124_v33 }
 0x4ae   : > { %6551 = vmatpush1.bf16.msra.mxu0 %v13182_v29  ;;  %8895 = vmatpush1.bf16.msra.mxu1 %v13185_v62  ;;  %v13232_v29 = vld [vmem:[%s16987_s5 + $0x4a4] ss:$16 sps:$4 sm:$0xff]   ;;  %v13230_v62 = vld [vmem:[%s16987_s5 + $0x4a0] ss:$16 sps:$4 sm:$0xff]  }
 0x4af   : > { %6552 = vmatprep.subr.bf16.mxu0 %v13190_v55  ;;  %9067 = vmatprep.subr.bf16.mxu1 %v13193_v20  ;;  %v13235_v55 = vld [vmem:[%s16987_s5 + $0x4c4] ss:$16 sps:$4 sm:$0xff]  }
 0x4b1   : > { %11780 = vmatmul.mubr.msk.bf16.vlgmr.msra.gmra.mrb[80].mxu1 %vm833_vm0, %v15946_v43 }
 0x4b2   : > { %6553 = vmatpush1.bf16.msra.mxu0 %v13188_v10  ;;  %9068 = vmatpush1.bf16.msra.mxu1 %v13191_v46  ;;  %v13238_v10 = vld [vmem:[%s16987_s5 + $0x4e4] ss:$16 sps:$4 sm:$0xff]  }
 0x4b3   : > { %6725 = vmatprep.subr.bf16.mxu0 %v13196_v3  ;;  %9069 = vmatprep.subr.bf16.mxu1 %v13199_v18  ;;  %v13236_v18 = vld [vmem:[%s16987_s5 + $0x4e0] ss:$16 sps:$4 sm:$0xff]  }
 0x4b4   : > { %9099 = vmatprep.mubr.bf16.mxu1 %v17124_v33 }
 0x4b5   : > { %11441 = vmatmul.mubr.msk.bf16.vlgmr.msra.gmra.mrb[160].mxu0 %vm833_vm0, %v15388_v42  ;;  %v13211_v42 = vld [vmem:[%s16987_s5 + $0x90c] ss:$16 sps:$4 sm:$0xff]  }
 0x4b6   : > { %6726 = vmatpush1.bf16.msra.mxu0 %v13194_v7  ;;  %9070 = vmatpush1.bf16.msra.mxu1 %v13197_v39  ;;  %v13241_v7 = vld [vmem:[%s16987_s5 + $0x504] ss:$16 sps:$4 sm:$0xff]   ;;  %v13239_v39 = vld [vmem:[%s16987_s5 + $0x500] ss:$16 sps:$4 sm:$0xff]  }
 0x4b7   : > { %6727 = vmatprep.subr.bf16.mxu0 %v13202_v61  ;;  %9071 = vmatprep.subr.bf16.mxu1 %v13205_v13  ;;  %v13244_v61 = vld [vmem:[%s16987_s5 + $0x524] ss:$16 sps:$4 sm:$0xff]  }
 0x4b8   : > { %6757 = vmatprep.mubr.bf16.mxu0 %v17124_v33 }
 0x4ba   : > { %6728 = vmatpush1.bf16.msra.mxu0 %v13200_v32  ;;  %9072 = vmatpush1.bf16.msra.mxu1 %v13203_v8  ;;  %v13247_v8 = vld [vmem:[%s16987_s5 + $0x544] ss:$16 sps:$4 sm:$0xff]  }
 0x4bb   : > { %6729 = vmatprep.subr.bf16.mxu0 %v13208_v38  ;;  %9244 = vmatprep.subr.bf16.mxu1 %v13211_v42 }
 0x4bd   : > { %11806 = vmatmul.mubr.msk.bf16.vlgmr.msra.gmra.mrb[84].mxu1 %vm833_vm0, %v15990_v0 }
 0x4be   : > { %6730 = vmatpush1.bf16.msra.mxu0 %v13206_v47  ;;  %9245 = vmatpush1.bf16.msra.mxu1 %v13209_v21  ;;  %v13245_v47 = vld [vmem:[%s16987_s5 + $0x540] ss:$16 sps:$4 sm:$0xff]  }
 0x4bf   : > { %6902 = vmatprep.subr.bf16.mxu0 %v13214_v26  ;;  %9246 = vmatprep.subr.bf16.mxu1 %v13217_v50  ;;  %v13248_v26 = vld [vmem:[%s16987_s5 + $0x560] ss:$16 sps:$4 sm:$0xff]   ;;  %v13253_v50 = vld [vmem:[%s16987_s5 + $0x584] ss:$16 sps:$4 sm:$0xff]  }
 0x4c0   : > { %9276 = vmatprep.mubr.bf16.mxu1 %v17124_v33 }
 0x4c1   : > { %11467 = vmatmul.mubr.msk.bf16.vlgmr.msra.gmra.mrb[164].mxu0 %vm833_vm0, %v15428_v40  ;;  %v13224_v40 = vld [vmem:[%s16987_s5 + $0x460] ss:$16 sps:$4 sm:$0xff]  }
 0x4c2   : > { %6903 = vmatpush1.bf16.msra.mxu0 %v13212_v56  ;;  %9247 = vmatpush1.bf16.msra.mxu1 %v13215_v2 }
 0x4c3   : > { %6904 = vmatprep.subr.bf16.mxu0 %v13220_v17  ;;  %9248 = vmatprep.subr.bf16.mxu1 %v13223_v4  ;;  %v13256_v4 = vld [vmem:[%s16987_s5 + $0x5a4] ss:$16 sps:$4 sm:$0xff]  }
 0x4c4   : > { %6934 = vmatprep.mubr.bf16.mxu0 %v17124_v33 }
 0x4c6   : > { %6905 = vmatpush1.bf16.msra.mxu0 %v13218_v44  ;;  %9249 = vmatpush1.bf16.msra.mxu1 %v13221_v15 }
 0x4c7   : > { %6906 = vmatprep.subr.bf16.mxu0 %v13226_v37 }
 0x4c8   : > { %v5025_v14 = vpop.f32.mrb[96].mxu0 }
 0x4c9   : > { %11832 = vmatmul.mubr.msk.bf16.vlgmr.msra.gmra.mrb[88].mxu1 %vm833_vm0, %v16028_v19  ;;  %v5027_v34 = vpop.f32.mrb[97].mxu0 }
 0x4ca   : > { %6907 = vmatpush1.bf16.msra.mxu0 %v13224_v40  ;;  %v5029_v45 = vpop.f32.mrb[98].mxu0 }
 0x4cb   : > { %v5030_v5 = vpop.f32.mrb[99].mxu0  ;;  %7079 = vmatprep.subr.bf16.mxu0 %v13229_v63  ;;  %v13259_v63 = vld [vmem:[%s16987_s5 + $0x5c4] ss:$16 sps:$4 sm:$0xff]  }
 0x4cd   : > { %11493 = vmatmul.mubr.msk.bf16.vlgmr.msra.gmra.mrb[168].mxu0 %vm833_vm0, %v15474_v58  ;;  %v13233_v58 = vld [vmem:[%s16987_s5 + $0x4c0] ss:$16 sps:$4 sm:$0xff]  }
 0x4ce   : > { %7080 = vmatpush1.bf16.msra.mxu0 %v13227_v53  ;;  %7111 = vmatprep.mubr.bf16.mxu0 %v17124_v33 }
 0x4cf   : > { %7081 = vmatprep.subr.bf16.mxu0 %v13232_v29 }
 0x4d0   : > { %v16050_v48 = vpop.f32.mrb[20].mxu1 }
 0x4d1   : > { %v16052_v20 = vpop.f32.mrb[21].mxu1 }
 0x4d2   : > { %7082 = vmatpush1.bf16.msra.mxu0 %v13230_v62  ;;  %v6273_v6 = vpop.f32.mrb[22].mxu1  ;;  %v13265_v62 = vld [vmem:[%s16987_s5 + $0x604] ss:$16 sps:$4 sm:$0xff]  }
 0x4d3   : > { %v6274_v11 = vpop.f32.mrb[23].mxu1  ;;  %7083 = vmatprep.subr.bf16.mxu0 %v13235_v55 }
 0x4d4   : > { %v5066_v46 = vpop.f32.mrb[100].mxu0 }
 0x4d5   : > { %v5068_v35 = vpop.f32.mrb[101].mxu0 }
 0x4d6   : > { %v5070_v3 = vpop.f32.mrb[102].mxu0  ;;  %7084 = vmatpush1.bf16.msra.mxu0 %v13233_v58 }
 0x4d7   : > { %v5071_v51 = vpop.f32.mrb[103].mxu0  ;;  %7256 = vmatprep.subr.bf16.mxu0 %v13238_v10  ;;  %v13268_v3 = vld [vmem:[%s16987_s5 + $0x624] ss:$16 sps:$4 sm:$0xff]  }
 0x4d8   : > { %v13271_v51 = vld [vmem:[%s16987_s5 + $0x644] ss:$16 sps:$4 sm:$0xff]  }
 0x4d9   : > { %11519 = vmatmul.mubr.msk.bf16.vlgmr.msra.gmra.mrb[172].mxu0 %vm833_vm0, %v15517_v25  ;;  %v13242_v25 = vld [vmem:[%s16987_s5 + $0x520] ss:$16 sps:$4 sm:$0xff]  }
 0x4da   : > { %7257 = vmatpush1.bf16.msra.mxu0 %v13236_v18  ;;  %7288 = vmatprep.mubr.bf16.mxu0 %v17124_v33  ;;  %v13266_v18 = vld [vmem:[%s16987_s5 + $0x620] ss:$16 sps:$4 sm:$0xff]  }
 0x4db   : > { %7258 = vmatprep.subr.bf16.mxu0 %v13241_v7 }
 0x4dc   : > { %v16075_v13 = vpop.f32.mrb[24].mxu1 }
 0x4dd   : > { %v16077_v41 = vpop.f32.mrb[25].mxu1 }
 0x4de   : > { %v6450_v31 = vpop.f32.mrb[26].mxu1  ;;  %7259 = vmatpush1.bf16.msra.mxu0 %v13239_v39 }
 0x4df   : > { %v6451_v32 = vpop.f32.mrb[27].mxu1  ;;  %7260 = vmatprep.subr.bf16.mxu0 %v13244_v61 }
 0x4e0   : > { %v5170_v38 = vpop.f32.mrb[104].mxu0 }
 0x4e1   : > { %v5171_v59 = vadd.f32 %v5170_v38, %v5025_v14  ;;  %v5172_v42 = vpop.f32.mrb[105].mxu0  ;;  %v13257_v14 = vld [vmem:[%s16987_s5 + $0x5c0] ss:$16 sps:$4 sm:$0xff]  }
 0x4e2   : > { %v5173_v36 = vadd.f32 %v5172_v42, %v5027_v34  ;;  %v5174_v27 = vpop.f32.mrb[106].mxu0  ;;  %7261 = vmatpush1.bf16.msra.mxu0 %v13242_v25  ;;  %v13262_v34 = vld [vmem:[%s16987_s5 + $0x5e4] ss:$16 sps:$4 sm:$0xff]  }
 0x4e3   : > { %v5175_v21 = vpop.f32.mrb[107].mxu0  ;;  %7433 = vmatprep.subr.bf16.mxu0 %v13247_v8  ;;  %v13274_v25 = vld [vmem:[%s16987_s5 + $0x664] ss:$16 sps:$4 sm:$0xff]  }
 0x4e4   : > { %v13275_v21 = vld [vmem:[%s16987_s5 + $0x680] ss:$16 sps:$4 sm:$0xff]  }
 0x4e5   : > { %11545 = vmatmul.mubr.msk.bf16.vlgmr.msra.gmra.mrb[176].mxu0 %vm833_vm0, %v15560_v24  ;;  %v13251_v24 = vld [vmem:[%s16987_s5 + $0x580] ss:$16 sps:$4 sm:$0xff]  }
 0x4e6   : > { %7434 = vmatpush1.bf16.msra.mxu0 %v13245_v47  ;;  %7465 = vmatprep.mubr.bf16.mxu0 %v17124_v33  ;;  %v13277_v47 = vld [vmem:[%s16987_s5 + $0x684] ss:$16 sps:$4 sm:$0xff]  }
 0x4e7   : > { %7435 = vmatprep.subr.bf16.mxu0 %v13250_v30  ;;  %v13280_v30 = vld [vmem:[%s16987_s5 + $0x6a4] ss:$16 sps:$4 sm:$0xff]  }
 0x4e8   : > { %v16100_v57 = vpop.f32.mrb[28].mxu1 }
 0x4e9   : > { %v16102_v56 = vpop.f32.mrb[29].mxu1 }
 0x4ea   : > { %v6627_v2 = vpop.f32.mrb[30].mxu1  ;;  %7436 = vmatpush1.bf16.msra.mxu0 %v13248_v26 }
 0x4eb   : > { %v6628_v17 = vpop.f32.mrb[31].mxu1  ;;  %7437 = vmatprep.subr.bf16.mxu0 %v13253_v50 }
 0x4ec   : > { %v5211_v28 = vpop.f32.mrb[108].mxu0  ;;  %v13283_v17 = vld [vmem:[%s16987_s5 + $0x6c4] ss:$16 sps:$4 sm:$0xff]  }
 0x4ed   : > { %v5212_v52 = vadd.f32 %v5211_v28, %v5066_v46  ;;  %v5213_v44 = vpop.f32.mrb[109].mxu0  ;;  %v13263_v46 = vld [vmem:[%s16987_s5 + $0x600] ss:$16 sps:$4 sm:$0xff]  }
 0x4ee   : > { %v5214_v15 = vadd.f32 %v5213_v44, %v5068_v35  ;;  %v5215_v37 = vpop.f32.mrb[110].mxu0  ;;  %7438 = vmatpush1.bf16.msra.mxu0 %v13251_v24 }
 0x4ef   : > { %v5216_v40 = vpop.f32.mrb[111].mxu0  ;;  %7610 = vmatprep.subr.bf16.mxu0 %v13256_v4  ;;  %v13281_v37 = vld [vmem:[%s16987_s5 + $0x6c0] ss:$16 sps:$4 sm:$0xff]  }
 0x4f0   : > { %v13286_v40 = vld [vmem:[%s16987_s5 + $0x6e4] ss:$16 sps:$4 sm:$0xff]  }
 0x4f1   : > { %11571 = vmatmul.mubr.msk.bf16.vlgmr.msra.gmra.mrb[180].mxu0 %vm833_vm0, %v15600_v60  ;;  %v13260_v60 = vld [vmem:[%s16987_s5 + $0x5e0] ss:$16 sps:$4 sm:$0xff]  }
 0x4f2   : > { %7611 = vmatpush1.bf16.msra.mxu0 %v13254_v12  ;;  %7642 = vmatprep.mubr.bf16.mxu0 %v17124_v33 }
 0x4f3   : > { %7612 = vmatprep.subr.bf16.mxu0 %v13259_v63  ;;  %v13284_v63 = vld [vmem:[%s16987_s5 + $0x6e0] ss:$16 sps:$4 sm:$0xff]  }
 0x4f4   : > { %v16125_v45 = vpop.f32.mrb[32].mxu1 }
 0x4f5   : > { %v16127_v53 = vpop.f32.mrb[33].mxu1 }
 0x4f6   : > { %v6804_v5 = vpop.f32.mrb[34].mxu1  ;;  %7613 = vmatpush1.bf16.msra.mxu0 %v13257_v14  ;;  %v13289_v14 = vld [vmem:[%s16987_s5 + $0x704] ss:$16 sps:$4 sm:$0xff]  }
 0x4f7   : > { %v6805_v29 = vpop.f32.mrb[35].mxu1  ;;  %7614 = vmatprep.subr.bf16.mxu0 %v13262_v34 }
 0x4f8   : > { %v5343_v55 = vpop.f32.mrb[112].mxu0 }
 0x4f9   : > { %v5391_v6 = vadd.f32 %v5343_v55, %v5171_v59  ;;  %v5345_v58 = vpop.f32.mrb[113].mxu0 }
 0x4fa   : > { %v5392_v11 = vadd.f32 %v5345_v58, %v5173_v36  ;;  %v5347_v10 = vpop.f32.mrb[114].mxu0  ;;  %7615 = vmatpush1.bf16.msra.mxu0 %v13260_v60  ;;  %v13272_v36 = vld [vmem:[%s16987_s5 + $0x660] ss:$16 sps:$4 sm:$0xff]  }
 0x4fb   : > { %v5348_v35 = vpop.f32.mrb[115].mxu0  ;;  %7787 = vmatprep.subr.bf16.mxu0 %v13265_v62  ;;  %v13292_v62 = vld [vmem:[%s16987_s5 + $0x724] ss:$16 sps:$4 sm:$0xff]  }
 0x4fd   : > { %11597 = vmatmul.mubr.msk.bf16.vlgmr.msra.gmra.mrb[184].mxu0 %vm833_vm0, %v15643_v49  ;;  %v13269_v49 = vld [vmem:[%s16987_s5 + $0x640] ss:$16 sps:$4 sm:$0xff]  }
 0x4fe   : > { %7788 = vmatpush1.bf16.msra.mxu0 %v13263_v46  ;;  %7819 = vmatprep.mubr.bf16.mxu0 %v17124_v33  ;;  %v13290_v46 = vld [vmem:[%s16987_s5 + $0x720] ss:$16 sps:$4 sm:$0xff]  }
 0x4ff   : > { %7789 = vmatprep.subr.bf16.mxu0 %v13268_v3  ;;  %v13295_v3 = vld [vmem:[%s16987_s5 + $0x744] ss:$16 sps:$4 sm:$0xff]  }
 0x500   : > { %v16150_v7 = vpop.f32.mrb[36].mxu1 }
 0x501   : > { %v16152_v39 = vpop.f32.mrb[37].mxu1 }
 0x502   : > { %v6981_v61 = vpop.f32.mrb[38].mxu1  ;;  %7790 = vmatpush1.bf16.msra.mxu0 %v13266_v18  ;;  %v13293_v18 = vld [vmem:[%s16987_s5 + $0x740] ss:$16 sps:$4 sm:$0xff]  }
 0x503   : > { %v6982_v31 = vpop.f32.mrb[39].mxu1  ;;  %7791 = vmatprep.subr.bf16.mxu0 %v13271_v51  ;;  %v13298_v51 = vld [vmem:[%s16987_s5 + $0x764] ss:$16 sps:$4 sm:$0xff]  }
 0x504   : > { %v5384_v32 = vpop.f32.mrb[116].mxu0 }
 0x505   : > { %v5393_v8 = vadd.f32 %v5384_v32, %v5212_v52  ;;  %v5386_v38 = vpop.f32.mrb[117].mxu0  ;;  %v13301_v32 = vld [vmem:[%s16987_s5 + $0x784] ss:$16 sps:$4 sm:$0xff]  }
 0x506   : > { %v5394_v59 = vadd.f32 %v5386_v38, %v5214_v15  ;;  %v5388_v42 = vpop.f32.mrb[118].mxu0  ;;  %7792 = vmatpush1.bf16.msra.mxu0 %v13269_v49 }
 0x507   : > { %v5389_v27 = vpop.f32.mrb[119].mxu0  ;;  %7964 = vmatprep.subr.bf16.mxu0 %v13274_v25 }
 0x508   : > { %v13299_v27 = vld [vmem:[%s16987_s5 + $0x780] ss:$16 sps:$4 sm:$0xff]  }
 0x509   : > { %11623 = vmatmul.mubr.msk.bf16.vlgmr.msra.gmra.mrb[188].mxu0 %vm833_vm0, %v15689_v23  ;;  %v13278_v23 = vld [vmem:[%s16987_s5 + $0x6a0] ss:$16 sps:$4 sm:$0xff]  }
 0x50a   : > { %7965 = vmatpush1.bf16.msra.mxu0 %v13272_v36  ;;  %7996 = vmatprep.mubr.bf16.mxu0 %v17124_v33 }
 0x50b   : > { %7966 = vmatprep.subr.bf16.mxu0 %v13277_v47 }
 0x50c   : > { %v16175_v26 = vpop.f32.mrb[40].mxu1 }
 0x50d   : > { %v16177_v50 = vpop.f32.mrb[41].mxu1 }
 0x50e   : > { %v7158_v2 = vpop.f32.mrb[42].mxu1  ;;  %7967 = vmatpush1.bf16.msra.mxu0 %v13275_v21  ;;  %v13304_v21 = vld [vmem:[%s16987_s5 + $0x7a4] ss:$16 sps:$4 sm:$0xff]  }
 0x50f   : > { %v7159_v24 = vpop.f32.mrb[43].mxu1  ;;  %7968 = vmatprep.subr.bf16.mxu0 %v13280_v30  ;;  %v13302_v30 = vld [vmem:[%s16987_s5 + $0x7a0] ss:$16 sps:$4 sm:$0xff]   ;;  %v13307_v2 = vld [vmem:[%s16987_s5 + $0x7c4] ss:$16 sps:$4 sm:$0xff]  }
 0x510   : > { %v5520_v4 = vpop.f32.mrb[120].mxu0 }
 0x511   : > { %v5568_v28 = vadd.f32 %v5520_v4, %v5391_v6  ;;  %v5522_v52 = vpop.f32.mrb[121].mxu0 }
 0x512   : > { %v5569_v44 = vadd.f32 %v5522_v52, %v5392_v11  ;;  %v5524_v15 = vpop.f32.mrb[122].mxu0  ;;  %7969 = vmatpush1.bf16.msra.mxu0 %v13278_v23 }
 0x513   : > { %v5525_v12 = vpop.f32.mrb[123].mxu0  ;;  %8141 = vmatprep.subr.bf16.mxu0 %v13283_v17 }
 0x515   : > { %11649 = vmatmul.mubr.msk.bf16.vlgmr.msra.gmra.mrb[192].mxu0 %vm833_vm0, %v15732_v54  ;;  %v13287_v54 = vld [vmem:[%s16987_s5 + $0x700] ss:$16 sps:$4 sm:$0xff]  }
 0x516   : > { %8142 = vmatpush1.bf16.msra.mxu0 %v13281_v37  ;;  %8173 = vmatprep.mubr.bf16.mxu0 %v17124_v33 }
 0x517   : > { %8143 = vmatprep.subr.bf16.mxu0 %v13286_v40  ;;  %v13308_v40 = vld [vmem:[%s16987_s5 + $0x7e0] ss:$16 sps:$4 sm:$0xff]  }
 0x518   : > { %v16200_v34 = vpop.f32.mrb[44].mxu1 }
 0x519   : > { %v16202_v5 = vpop.f32.mrb[45].mxu1 }
 0x51a   : > { %v7335_v60 = vpop.f32.mrb[46].mxu1  ;;  %8144 = vmatpush1.bf16.msra.mxu0 %v13284_v63 }
 0x51b   : > { %v7336_v29 = vpop.f32.mrb[47].mxu1  ;;  %8145 = vmatprep.subr.bf16.mxu0 %v13289_v14  ;;  %v13313_v14 = vld [vmem:[%s16987_s5 + $0x804] ss:$16 sps:$4 sm:$0xff]   ;;  %v13311_v60 = vld [vmem:[%s16987_s5 + $0x800] ss:$16 sps:$4 sm:$0xff]  }
 0x51c   : > { %v5561_v55 = vpop.f32.mrb[124].mxu0 }
 0x51d   : > { %v5570_v6 = vadd.f32 %v5561_v55, %v5393_v8  ;;  %v5563_v58 = vpop.f32.mrb[125].mxu0 }
 0x51e   : > { %v5571_v11 = vadd.f32 %v5563_v58, %v5394_v59  ;;  %v5565_v10 = vpop.f32.mrb[126].mxu0  ;;  %8146 = vmatpush1.bf16.msra.mxu0 %v13287_v54  ;;  %v13316_v54 = vld [vmem:[%s16987_s5 + $0x824] ss:$16 sps:$4 sm:$0xff]  }
 0x51f   : > { %v5566_v35 = vpop.f32.mrb[127].mxu0  ;;  %8318 = vmatprep.subr.bf16.mxu0 %v13292_v62  ;;  %v13319_v58 = vld [vmem:[%s16987_s5 + $0x844] ss:$16 sps:$4 sm:$0xff]  }
 0x521   : > { %11675 = vmatmul.mubr.msk.bf16.vlgmr.msra.gmra.mrb[196].mxu0 %vm833_vm0, %v15775_v16  ;;  %v13296_v16 = vld [vmem:[%s16987_s5 + $0x760] ss:$16 sps:$4 sm:$0xff]  }
 0x522   : > { %8319 = vmatpush1.bf16.msra.mxu0 %v13290_v46  ;;  %8350 = vmatprep.mubr.bf16.mxu0 %v17124_v33 }
 0x523   : > { %8320 = vmatprep.subr.bf16.mxu0 %v13295_v3 }
 0x524   : > { %v16225_v61 = vpop.f32.mrb[48].mxu1 }
 0x525   : > { %v16227_v49 = vpop.f32.mrb[49].mxu1 }
 0x526   : > { %v7512_v31 = vpop.f32.mrb[50].mxu1  ;;  %8321 = vmatpush1.bf16.msra.mxu0 %v13293_v18  ;;  %v13317_v18 = vld [vmem:[%s16987_s5 + $0x840] ss:$16 sps:$4 sm:$0xff]  }
 0x527   : > { %v7513_v25 = vpop.f32.mrb[51].mxu1  ;;  %8322 = vmatprep.subr.bf16.mxu0 %v13298_v51  ;;  %v13322_v31 = vld [vmem:[%s16987_s5 + $0x864] ss:$16 sps:$4 sm:$0xff]  }
 0x528   : > { %v5697_v8 = vpop.f32.mrb[128].mxu0  ;;  %v13325_v25 = vld [vmem:[%s16987_s5 + $0x884] ss:$16 sps:$4 sm:$0xff]  }
 0x529   : > { %v5745_v38 = vadd.f32 %v5697_v8, %v5568_v28  ;;  %v5699_v59 = vpop.f32.mrb[129].mxu0  ;;  %v13310_v28 = vld [vmem:[%s16987_s5 + $0x7e4] ss:$16 sps:$4 sm:$0xff]  }
 0x52a   : > { %v5746_v42 = vadd.f32 %v5699_v59, %v5569_v44  ;;  %v5701_v36 = vpop.f32.mrb[130].mxu0  ;;  %8323 = vmatpush1.bf16.msra.mxu0 %v13296_v16  ;;  %v13320_v16 = vld [vmem:[%s16987_s5 + $0x860] ss:$16 sps:$4 sm:$0xff]  }
 0x52b   : > { %v5702_v47 = vpop.f32.mrb[131].mxu0  ;;  %8495 = vmatprep.subr.bf16.mxu0 %v13301_v32 }
 0x52d   : > { %11701 = vmatmul.mubr.msk.bf16.vlgmr.msra.gmra.mrb[200].mxu0 %vm833_vm0, %v15815_v9  ;;  %v13305_v9 = vld [vmem:[%s16987_s5 + $0x7c0] ss:$16 sps:$4 sm:$0xff]  }
 0x52e   : > { %8496 = vmatpush1.bf16.msra.mxu0 %v13299_v27  ;;  %8527 = vmatprep.mubr.bf16.mxu0 %v17124_v33 }
 0x52f   : > { %8497 = vmatprep.subr.bf16.mxu0 %v13304_v21 }
 0x530   : > { %v16250_v23 = vpop.f32.mrb[52].mxu1 }
 0x531   : > { %v16252_v24 = vpop.f32.mrb[53].mxu1 }
 0x532   : > { %v7689_v17 = vpop.f32.mrb[54].mxu1  ;;  %8498 = vmatpush1.bf16.msra.mxu0 %v13302_v30 }
 0x533   : > { %v7690_v4 = vpop.f32.mrb[55].mxu1  ;;  %8499 = vmatprep.subr.bf16.mxu0 %v13307_v2  ;;  %v13326_v2 = vld [vmem:[%s16987_s5 + $0x8a0] ss:$16 sps:$4 sm:$0xff]  }
 0x534   : > { %v5738_v52 = vpop.f32.mrb[132].mxu0  ;;  %v13329_v4 = vld [vmem:[%s16987_s5 + $0x8c0] ss:$16 sps:$4 sm:$0xff]  }
 0x535   : > { %v5747_v44 = vadd.f32 %v5738_v52, %v5570_v6  ;;  %v5740_v15 = vpop.f32.mrb[133].mxu0 }
 0x536   : > { %v5748_v37 = vadd.f32 %v5740_v15, %v5571_v11  ;;  %v5742_v12 = vpop.f32.mrb[134].mxu0  ;;  %8500 = vmatpush1.bf16.msra.mxu0 %v13305_v9  ;;  %v13331_v9 = vld [vmem:[%s16987_s5 + $0x8c4] ss:$16 sps:$4 sm:$0xff]  }
 0x537   : > { %v5743_v63 = vpop.f32.mrb[135].mxu0  ;;  %8672 = vmatprep.subr.bf16.mxu0 %v13310_v28  ;;  %v13334_v28 = vld [vmem:[%s16987_s5 + $0x8e4] ss:$16 sps:$4 sm:$0xff]  }
 0x538   : > { %v13337_v12 = vld [vmem:[%s16987_s5 + $0x904] ss:$16 sps:$4 sm:$0xff]  }
 0x539   : > { %11727 = vmatmul.mubr.msk.bf16.vlgmr.msra.gmra.mrb[204].mxu0 %vm833_vm0, %v15858_v1  ;;  %v13314_v1 = vld [vmem:[%s16987_s5 + $0x820] ss:$16 sps:$4 sm:$0xff]  }
 0x53a   : > { %8673 = vmatpush1.bf16.msra.mxu0 %v13308_v40  ;;  %8704 = vmatprep.mubr.bf16.mxu0 %v17124_v33 }
 0x53b   : > { %8674 = vmatprep.subr.bf16.mxu0 %v13313_v14 }
 0x53c   : > { %v16275_v29 = vpop.f32.mrb[56].mxu1 }
 0x53d   : > { %v16277_v62 = vpop.f32.mrb[57].mxu1 }
 0x53e   : > { %v7866_v55 = vpop.f32.mrb[58].mxu1  ;;  %8675 = vmatpush1.bf16.msra.mxu0 %v13311_v60 }
 0x53f   : > { %v7867_v6 = vpop.f32.mrb[59].mxu1  ;;  %8676 = vmatprep.subr.bf16.mxu0 %v13316_v54  ;;  %v13335_v55 = vld [vmem:[%s16987_s5 + $0x900] ss:$16 sps:$4 sm:$0xff]  }
 0x540   : > { %v5874_v11 = vpop.f32.mrb[136].mxu0  ;;  %v13340_v6 = vld [vmem:[%s16987_s5 + $0x924] ss:$16 sps:$4 sm:$0xff]  }
 0x541   : > { %v5922_v10 = vadd.f32 %v5874_v11, %v5745_v38  ;;  %v5876_v46 = vpop.f32.mrb[137].mxu0  ;;  %v13343_v11 = vld [vmem:[%s16987_s5 + $0x944] ss:$16 sps:$4 sm:$0xff]  }
 0x542   : > { %v5923_v35 = vadd.f32 %v5876_v46, %v5746_v42  ;;  %v5878_v3 = vpop.f32.mrb[138].mxu0  ;;  %8677 = vmatpush1.bf16.msra.mxu0 %v13314_v1  ;;  %v13328_v42 = vld [vmem:[%s16987_s5 + $0x8a4] ss:$16 sps:$4 sm:$0xff]  }
 0x543   : > { %v5879_v51 = vpop.f32.mrb[139].mxu0  ;;  %8849 = vmatprep.subr.bf16.mxu0 %v13319_v58  ;;  %v13338_v58 = vld [vmem:[%s16987_s5 + $0x920] ss:$16 sps:$4 sm:$0xff]  }
 0x545   : > { %11753 = vmatmul.mubr.msk.bf16.vlgmr.msra.gmra.mrb[208].mxu0 %vm833_vm0, %v15902_v22  ;;  %v13323_v22 = vld [vmem:[%s16987_s5 + $0x880] ss:$16 sps:$4 sm:$0xff]  }
 0x546   : > { %8850 = vmatpush1.bf16.msra.mxu0 %v13317_v18  ;;  %8881 = vmatprep.mubr.bf16.mxu0 %v17124_v33 }
 0x547   : > { %8851 = vmatprep.subr.bf16.mxu0 %v13322_v31 }
 0x548   : > { %v16300_v32 = vpop.f32.mrb[60].mxu1 }
 0x549   : > { %v16302_v8 = vpop.f32.mrb[61].mxu1 }
 0x54a   : > { %v8043_v38 = vpop.f32.mrb[62].mxu1  ;;  %8852 = vmatpush1.bf16.msra.mxu0 %v13320_v16 }
 0x54b   : > { %v8044_v59 = vpop.f32.mrb[63].mxu1  ;;  %8853 = vmatprep.subr.bf16.mxu0 %v13325_v25 }
 0x54c   : > { %v5915_v36 = vpop.f32.mrb[140].mxu0 }
 0x54d   : > { %v5924_v27 = vadd.f32 %v5915_v36, %v5747_v44  ;;  %v5917_v47 = vpop.f32.mrb[141].mxu0 }
 0x54e   : > { %v5925_v21 = vadd.f32 %v5917_v47, %v5748_v37  ;;  %v5919_v30 = vpop.f32.mrb[142].mxu0  ;;  %8854 = vmatpush1.bf16.msra.mxu0 %v13323_v22 }
 0x54f   : > { %v5920_v17 = vpop.f32.mrb[143].mxu0  ;;  %9026 = vmatprep.subr.bf16.mxu0 %v13328_v42 }
 0x551   : > { %11779 = vmatmul.mubr.msk.bf16.vlgmr.msra.gmra.mrb[212].mxu0 %vm833_vm0, %v15946_v43  ;;  %v13332_v43 = vld [vmem:[%s16987_s5 + $0x8e0] ss:$16 sps:$4 sm:$0xff]  }
 0x552   : > { %9027 = vmatpush1.bf16.msra.mxu0 %v13326_v2  ;;  %9058 = vmatprep.mubr.bf16.mxu0 %v17124_v33 }
 0x553   : > { %9028 = vmatprep.subr.bf16.mxu0 %v13331_v9 }
 0x554   : > { %v16325_v52 = vpop.f32.mrb[64].mxu1 }
 0x555   : > { %v16327_v44 = vpop.f32.mrb[65].mxu1 }
 0x556   : > { %v8220_v15 = vpop.f32.mrb[66].mxu1  ;;  %9029 = vmatpush1.bf16.msra.mxu0 %v13329_v4 }
 0x557   : > { %v8221_v37 = vpop.f32.mrb[67].mxu1  ;;  %9030 = vmatprep.subr.bf16.mxu0 %v13334_v28 }
 0x558   : > { %v6051_v40 = vpop.f32.mrb[144].mxu0 }
 0x559   : > { %v6099_v63 = vadd.f32 %v6051_v40, %v5922_v10  ;;  %v6053_v14 = vpop.f32.mrb[145].mxu0 }
 0x55a   : > { %v6100_v60 = vadd.f32 %v6053_v14, %v5923_v35  ;;  %v6055_v54 = vpop.f32.mrb[146].mxu0  ;;  %9031 = vmatpush1.bf16.msra.mxu0 %v13332_v43 }
 0x55b   : > { %v6056_v1 = vpop.f32.mrb[147].mxu0  ;;  %9203 = vmatprep.subr.bf16.mxu0 %v13337_v12 }
 0x55d   : > { %11805 = vmatmul.mubr.msk.bf16.vlgmr.msra.gmra.mrb[216].mxu0 %vm833_vm0, %v15990_v0  ;;  %v13341_v0 = vld [vmem:[%s16987_s5 + $0x940] ss:$16 sps:$4 sm:$0xff]  }
 0x55e   : > { %9204 = vmatpush1.bf16.msra.mxu0 %v13335_v55  ;;  %9235 = vmatprep.mubr.bf16.mxu0 %v17124_v33 }
 0x55f   : > { %9205 = vmatprep.subr.bf16.mxu0 %v13340_v6 }
 0x560   : > { %v8393_v10 = vpop.f32.mrb[68].mxu1 }
 0x561   : > { %v8395_v46 = vpop.f32.mrb[69].mxu1 }
 0x562   : > { %v8397_v35 = vpop.f32.mrb[70].mxu1  ;;  %9206 = vmatpush1.bf16.msra.mxu0 %v13338_v58 }
 0x563   : > { %v8398_v3 = vpop.f32.mrb[71].mxu1  ;;  %9207 = vmatprep.subr.bf16.mxu0 %v13343_v11 }
 0x564   : > { %v6092_v18 = vpop.f32.mrb[148].mxu0 }
 0x565   : > { %v6101_v51 = vadd.f32 %v6092_v18, %v5924_v27  ;;  %v6094_v31 = vpop.f32.mrb[149].mxu0 }
 0x566   : > { %v6102_v16 = vadd.f32 %v6094_v31, %v5925_v21  ;;  %v6096_v33 = vpop.f32.mrb[150].mxu0  ;;  %9208 = vmatpush1.bf16.msra.mxu0 %v13341_v0 }
 0x567   : > { %v6278_v25 = vadd.f32 %v16050_v48, %v6101_v51  ;;  %v6097_v38 = vpop.f32.mrb[151].mxu0 }
 0x568   : > { %v6279_v22 = vadd.f32 %v16052_v20, %v6102_v16 }
 0x569   : > { %v6455_v59 = vadd.f32 %v16075_v13, %v6278_v25  ;;  %11831 = vmatmul.mubr.msk.bf16.vlgmr.msra.gmra.mrb[220].mxu0 %vm833_vm0, %v16028_v19 }
 0x56a   : > { %v6456_v42 = vadd.f32 %v16077_v41, %v6279_v22 }
 0x56b   : > { %v6632_v36 = vadd.f32 %v16100_v57, %v6455_v59  ;;  %v13350_v59 = vld [vmem:[%s16990_s8 + $0x20] ss:$16 sps:$4 sm:$0xff]  }
 0x56c   : > { %v6633_v27 = vadd.f32 %v16102_v56, %v6456_v42  ;;  %v8570_v47 = vpop.f32.mrb[72].mxu1  ;;  %v13352_v42 = vld [vmem:[%s16990_s8 + $0x24] ss:$16 sps:$4 sm:$0xff]  }
 0x56d   : > { %v6809_v21 = vadd.f32 %v16125_v45, %v6632_v36  ;;  %v8572_v30 = vpop.f32.mrb[73].mxu1  ;;  %v13353_v36 = vld [vmem:[%s16990_s8 + $0x28] ss:$16 sps:$4 sm:$0xff]  }
 0x56e   : > { %v6810_v48 = vadd.f32 %v16127_v53, %v6633_v27  ;;  %v8574_v2 = vpop.f32.mrb[74].mxu1  ;;  %v13355_v27 = vld [vmem:[%s16990_s8 + $0x2c] ss:$16 sps:$4 sm:$0xff]  }
 0x56f   : > { %v6986_v20 = vadd.f32 %v16150_v7, %v6809_v21  ;;  %v8575_v17 = vpop.f32.mrb[75].mxu1 }
 0x570   : > { %v6987_v13 = vadd.f32 %v16152_v39, %v6810_v48  ;;  %v6228_v9 = vpop.f32.mrb[152].mxu0  ;;  %v13361_v48 = vld [vmem:[%s16990_s8 + $0x4c] ss:$16 sps:$4 sm:$0xff]   ;;  %v13359_v17 = vld [vmem:[%s16990_s8 + $0x48] ss:$16 sps:$4 sm:$0xff]  }
 0x571   : > { %v7163_v19 = vadd.f32 %v16175_v26, %v6986_v20  ;;  %v6276_v41 = vadd.f32 %v6228_v9, %v6099_v63  ;;  %v6230_v4 = vpop.f32.mrb[153].mxu0 }
 0x572   : > { %v7164_v57 = vadd.f32 %v16177_v50, %v6987_v13  ;;  %v6277_v56 = vadd.f32 %v6230_v4, %v6100_v60  ;;  %v6232_v28 = vpop.f32.mrb[154].mxu0  ;;  %v13364_v13 = vld [vmem:[%s16990_s8 + $0x64] ss:$16 sps:$4 sm:$0xff]  }
 0x573   : > { %v7340_v45 = vadd.f32 %v16200_v34, %v7163_v19  ;;  %v6233_v15 = vpop.f32.mrb[155].mxu0 }
 0x574   : > { %v7341_v53 = vadd.f32 %v16202_v5, %v7164_v57  ;;  %v13365_v15 = vld [vmem:[%s16990_s8 + $0x68] ss:$16 sps:$4 sm:$0xff]  }
 0x575   : > { %v7517_v43 = vadd.f32 %v16225_v61, %v7340_v45 }
 0x576   : > { %v7518_v7 = vadd.f32 %v16227_v49, %v7341_v53 }
 0x577   : > { %v7694_v39 = vadd.f32 %v16250_v23, %v7517_v43 }
 0x578   : > { %v7695_v37 = vadd.f32 %v16252_v24, %v7518_v7  ;;  %v8747_v26 = vpop.f32.mrb[76].mxu1 }
 0x579   : > { %v7871_v12 = vadd.f32 %v16275_v29, %v7694_v39  ;;  %v8749_v40 = vpop.f32.mrb[77].mxu1  ;;  %v13368_v39 = vld [vmem:[%s16990_s8 + $0x80] ss:$16 sps:$4 sm:$0xff]  }
 0x57a   : > { %v7872_v50 = vadd.f32 %v16277_v62, %v7695_v37  ;;  %v8751_v63 = vpop.f32.mrb[78].mxu1  ;;  %v13370_v37 = vld [vmem:[%s16990_s8 + $0x84] ss:$16 sps:$4 sm:$0xff]  }
 0x57b   : > { %v8048_v34 = vadd.f32 %v16300_v32, %v7871_v12  ;;  %v8752_v14 = vpop.f32.mrb[79].mxu1  ;;  %v13344_v32 = vld [vmem:[%s16990_s8] ss:$16 sps:$4 sm:$0xff]   ;;  %v13373_v12 = vld [vmem:[%s16990_s8 + $0x8c] ss:$16 sps:$4 sm:$0xff]  }
 0x57c   : > { %v8049_v5 = vadd.f32 %v16302_v8, %v7872_v50  ;;  %v6405_v60 = vpop.f32.mrb[156].mxu0  ;;  %v13346_v8 = vld [vmem:[%s16990_s8 + $0x4] ss:$16 sps:$4 sm:$0xff]   ;;  %v13374_v63 = vld [vmem:[%s16990_s8 + $0xa0] ss:$16 sps:$4 sm:$0xff]  }
 0x57d   : > { %v8225_v61 = vadd.f32 %v16325_v52, %v8048_v34  ;;  %v6453_v49 = vadd.f32 %v6405_v60, %v6276_v41  ;;  %v6407_v54 = vpop.f32.mrb[157].mxu0  ;;  %v13347_v52 = vld [vmem:[%s16990_s8 + $0x8] ss:$16 sps:$4 sm:$0xff]   ;;  %10140 = vmatprep.subr.bf16.mxu0 %v13346_v8  ;;  %v13367_v41 = vld [vmem:[%s16990_s8 + $0x6c] ss:$16 sps:$4 sm:$0xff]  }
 0x57e   : > { %v8226_v23 = vadd.f32 %v16327_v44, %v8049_v5  ;;  %v6454_v24 = vadd.f32 %v6407_v54, %v6277_v56  ;;  %v6409_v55 = vpop.f32.mrb[158].mxu0  ;;  %10141 = vmatpush1.bf16.msra.mxu0 %v13344_v32  ;;  %v13362_v56 = vld [vmem:[%s16990_s8 + $0x60] ss:$16 sps:$4 sm:$0xff]   ;;  %v13379_v34 = vld [vmem:[%s16990_s8 + $0xac] ss:$16 sps:$4 sm:$0xff]  }
 0x57f   : > { %v8402_v1 = vadd.f32 %v8393_v10, %v8225_v61  ;;  %v6410_v29 = vpop.f32.mrb[159].mxu0  ;;  %v13349_v10 = vld [vmem:[%s16990_s8 + $0xc] ss:$16 sps:$4 sm:$0xff]   ;;  %10142 = vmatprep.subr.bf16.mxu0 %v13352_v42  ;;  %v13377_v60 = vld [vmem:[%s16990_s8 + $0xa8] ss:$16 sps:$4 sm:$0xff]  }
 0x580   : > { %v8403_v6 = vadd.f32 %v8395_v46, %v8226_v23  ;;  %10222 = vmatprep.subr.bf16.mxu1 %v13349_v10  ;;  %v13382_v61 = vld [vmem:[%s16990_s8 + $0xc4] ss:$16 sps:$4 sm:$0xff]   ;;  %v13385_v23 = vld [vmem:[%s16990_s8 + $0xcc] ss:$16 sps:$4 sm:$0xff]   ;;  %v13386_v8 = vld [vmem:[%s16990_s8 + $0xe0] ss:$16 sps:$4 sm:$0xff]  }
 0x581   : > { %v8579_v58 = vadd.f32 %v8570_v47, %v8402_v1  ;;  %10223 = vmatpush1.bf16.msra.mxu1 %v13347_v52  ;;  %v13358_v47 = vld [vmem:[%s16990_s8 + $0x44] ss:$16 sps:$4 sm:$0xff]   ;;  %v13380_v1 = vld [vmem:[%s16990_s8 + $0xc0] ss:$16 sps:$4 sm:$0xff]  }
 0x582   : > { %v8580_v62 = vadd.f32 %v8572_v30, %v8403_v6  ;;  %10224 = vmatprep.subr.bf16.mxu1 %v13355_v27  ;;  %10143 = vmatpush1.bf16.msra.mxu0 %v13350_v59  ;;  %v13356_v30 = vld [vmem:[%s16990_s8 + $0x40] ss:$16 sps:$4 sm:$0xff]   ;;  %v13388_v52 = vld [vmem:[%s16990_s8 + $0xe4] ss:$16 sps:$4 sm:$0xff]  }
 0x583   : > { %v8756_v11 = vadd.f32 %v8747_v26, %v8579_v58  ;;  %10144 = vmatprep.subr.bf16.mxu0 %v13358_v47  ;;  %v13371_v26 = vld [vmem:[%s16990_s8 + $0x88] ss:$16 sps:$4 sm:$0xff]   ;;  %v13394_v10 = vld [vmem:[%s16990_s8 + $0x104] ss:$16 sps:$4 sm:$0xff]  }
 0x584   : > { %v8757_v44 = vadd.f32 %v8749_v40, %v8580_v62  ;;  %v8924_v35 = vpop.f32.mrb[80].mxu1  ;;  %v13376_v40 = vld [vmem:[%s16990_s8 + $0xa4] ss:$16 sps:$4 sm:$0xff]   ;;  %v13383_v58 = vld [vmem:[%s16990_s8 + $0xc8] ss:$16 sps:$4 sm:$0xff]  }
 0x585   : > { %v8933_v46 = vadd.f32 %v8924_v35, %v8756_v11  ;;  %v8926_v0 = vpop.f32.mrb[81].mxu1  ;;  %10225 = vmatpush1.bf16.msra.mxu1 %v13353_v36  ;;  %v13391_v35 = vld [vmem:[%s16990_s8 + $0xec] ss:$16 sps:$4 sm:$0xff]   ;;  %v13404_v36 = vld [vmem:[%s16990_s8 + $0x140] ss:$16 sps:$4 sm:$0xff]  }
 0x586   : > { %v8934_v3 = vadd.f32 %v8926_v0, %v8757_v44  ;;  %v8928_v18 = vpop.f32.mrb[82].mxu1  ;;  %10226 = vmatprep.subr.bf16.mxu1 %v13361_v48  ;;  %10145 = vmatpush1.bf16.msra.mxu0 %v13356_v30  ;;  %v13389_v44 = vld [vmem:[%s16990_s8 + $0xe8] ss:$16 sps:$4 sm:$0xff]   ;;  %v13397_v0 = vld [vmem:[%s16990_s8 + $0x10c] ss:$16 sps:$4 sm:$0xff]  }
 0x587   : > { %v8929_v51 = vpop.f32.mrb[83].mxu1  ;;  %10146 = vmatprep.subr.bf16.mxu0 %v13364_v13  ;;  %v13400_v18 = vld [vmem:[%s16990_s8 + $0x124] ss:$16 sps:$4 sm:$0xff]   ;;  %v13407_v47 = vld [vmem:[%s16990_s8 + $0x148] ss:$16 sps:$4 sm:$0xff]  }
 0x588   : > { %v6582_v31 = vpop.f32.mrb[160].mxu0  ;;  %v13403_v51 = vld [vmem:[%s16990_s8 + $0x12c] ss:$16 sps:$4 sm:$0xff]   ;;  %v13406_v27 = vld [vmem:[%s16990_s8 + $0x144] ss:$16 sps:$4 sm:$0xff]  }
 0x589   : > { %v6630_v16 = vadd.f32 %v6582_v31, %v6453_v49  ;;  %v6584_v33 = vpop.f32.mrb[161].mxu0  ;;  %10227 = vmatpush1.bf16.msra.mxu1 %v13359_v17  ;;  %v13412_v30 = vld [vmem:[%s16990_s8 + $0x164] ss:$16 sps:$4 sm:$0xff]   ;;  %v13410_v48 = vld [vmem:[%s16990_s8 + $0x160] ss:$16 sps:$4 sm:$0xff]  }
 0x58a   : > { %v6631_v25 = vadd.f32 %v6584_v33, %v6454_v24  ;;  %v6586_v38 = vpop.f32.mrb[162].mxu0  ;;  %10228 = vmatprep.subr.bf16.mxu1 %v13367_v41  ;;  %10147 = vmatpush1.bf16.msra.mxu0 %v13362_v56  ;;  %v13418_v17 = vld [vmem:[%s16990_s8 + $0x184] ss:$16 sps:$4 sm:$0xff]   ;;  %v13421_v13 = vld [vmem:[%s16990_s8 + $0x18c] ss:$16 sps:$4 sm:$0xff]  }
 0x58b   : > { %v6587_v22 = vpop.f32.mrb[163].mxu0  ;;  %10148 = vmatprep.subr.bf16.mxu0 %v13370_v37  ;;  %v13401_v38 = vld [vmem:[%s16990_s8 + $0x128] ss:$16 sps:$4 sm:$0xff]  }
 0x58d   : > { %10229 = vmatpush1.bf16.msra.mxu1 %v13365_v15 }
 0x58e   : > { %10230 = vmatprep.subr.bf16.mxu1 %v13373_v12  ;;  %10149 = vmatpush1.bf16.msra.mxu0 %v13368_v39  ;;  %v13424_v39 = vld [vmem:[%s16990_s8 + $0x1a4] ss:$16 sps:$4 sm:$0xff]   ;;  %v13425_v12 = vld [vmem:[%s16990_s8 + $0x1a8] ss:$16 sps:$4 sm:$0xff]  }
 0x58f   : > { %10150 = vmatprep.subr.bf16.mxu0 %v13376_v40  ;;  %v13427_v40 = vld [vmem:[%s16990_s8 + $0x1ac] ss:$16 sps:$4 sm:$0xff]  }
 0x590   : > { %v9101_v21 = vpop.f32.mrb[84].mxu1 }
 0x591   : > { %v9110_v2 = vadd.f32 %v9101_v21, %v8933_v46  ;;  %v9103_v20 = vpop.f32.mrb[85].mxu1  ;;  %10231 = vmatpush1.bf16.msra.mxu1 %v13371_v26  ;;  %v13392_v46 = vld [vmem:[%s16990_s8 + $0x100] ss:$16 sps:$4 sm:$0xff]   ;;  %v13409_v21 = vld [vmem:[%s16990_s8 + $0x14c] ss:$16 sps:$4 sm:$0xff]  }
 0x592   : > { %v9111_v9 = vadd.f32 %v9103_v20, %v8934_v3  ;;  %v9105_v19 = vpop.f32.mrb[86].mxu1  ;;  %10232 = vmatprep.subr.bf16.mxu1 %v13379_v34  ;;  %10151 = vmatpush1.bf16.msra.mxu0 %v13374_v63  ;;  %v13395_v3 = vld [vmem:[%s16990_s8 + $0x108] ss:$16 sps:$4 sm:$0xff]   ;;  %v13430_v63 = vld [vmem:[%s16990_s8 + $0x1c4] ss:$16 sps:$4 sm:$0xff]  }
 0x593   : > { %v9106_v4 = vpop.f32.mrb[87].mxu1  ;;  %10152 = vmatprep.subr.bf16.mxu0 %v13382_v61  ;;  %v13413_v20 = vld [vmem:[%s16990_s8 + $0x168] ss:$16 sps:$4 sm:$0xff]   ;;  %v13416_v19 = vld [vmem:[%s16990_s8 + $0x180] ss:$16 sps:$4 sm:$0xff]  }
 0x594   : > { %v6759_v57 = vpop.f32.mrb[164].mxu0  ;;  %v13428_v34 = vld [vmem:[%s16990_s8 + $0x1c0] ss:$16 sps:$4 sm:$0xff]   ;;  %v13436_v61 = vld [vmem:[%s16990_s8 + $0x1e4] ss:$16 sps:$4 sm:$0xff]  }
 0x595   : > { %v6807_v28 = vadd.f32 %v6759_v57, %v6630_v16  ;;  %v6761_v45 = vpop.f32.mrb[165].mxu0  ;;  %10233 = vmatpush1.bf16.msra.mxu1 %v13377_v60  ;;  %v13398_v16 = vld [vmem:[%s16990_s8 + $0x120] ss:$16 sps:$4 sm:$0xff]   ;;  %v13419_v57 = vld [vmem:[%s16990_s8 + $0x188] ss:$16 sps:$4 sm:$0xff]  }
 0x596   : > { %v6808_v53 = vadd.f32 %v6761_v45, %v6631_v25  ;;  %v6763_v43 = vpop.f32.mrb[166].mxu0  ;;  %10234 = vmatprep.subr.bf16.mxu1 %v13385_v23  ;;  %10153 = vmatpush1.bf16.msra.mxu0 %v13380_v1  ;;  %v13431_v60 = vld [vmem:[%s16990_s8 + $0x1c8] ss:$16 sps:$4 sm:$0xff]   ;;  %v13434_v23 = vld [vmem:[%s16990_s8 + $0x1e0] ss:$16 sps:$4 sm:$0xff]  }
 0x597   : > { %v6764_v7 = vpop.f32.mrb[167].mxu0  ;;  %10154 = vmatprep.subr.bf16.mxu0 %v13388_v52  ;;  %v13445_v1 = vld [vmem:[%s16990_s8 + $0x20c] ss:$16 sps:$4 sm:$0xff]  }
 0x598   : > { %v13422_v7 = vld [vmem:[%s16990_s8 + $0x1a0] ss:$16 sps:$4 sm:$0xff]  }
 0x599   : > { %10235 = vmatpush1.bf16.msra.mxu1 %v13383_v58 }
 0x59a   : > { %10236 = vmatprep.subr.bf16.mxu1 %v13391_v35  ;;  %10155 = vmatpush1.bf16.msra.mxu0 %v13386_v8 }
 0x59b   : > { %10156 = vmatprep.subr.bf16.mxu0 %v13394_v10 }
 0x59c   : > { %v9278_v50 = vpop.f32.mrb[88].mxu1 }
 0x59d   : > { %v16448_v14 = vadd.f32 %v9278_v50, %v9110_v2  ;;  %v9280_v5 = vpop.f32.mrb[89].mxu1  ;;  %10237 = vmatpush1.bf16.msra.mxu1 %v13389_v44  ;;  %v13415_v2 = vld [vmem:[%s16990_s8 + $0x16c] ss:$16 sps:$4 sm:$0xff]  }
 0x59e   : > { %v16456_v49 = vadd.f32 %v9280_v5, %v9111_v9  ;;  %v9282_v54 = vpop.f32.mrb[90].mxu1  ;;  %10238 = vmatprep.subr.bf16.mxu1 %v13397_v0  ;;  %10157 = vmatpush1.bf16.msra.mxu0 %v13392_v46  ;;  %v13433_v5 = vld [vmem:[%s16990_s8 + $0x1cc] ss:$16 sps:$4 sm:$0xff]  }
 0x59f   : > { %v9283_v24 = vpop.f32.mrb[91].mxu1  ;;  %10158 = vmatprep.subr.bf16.mxu0 %v13400_v18  ;;  %v13439_v54 = vld [vmem:[%s16990_s8 + $0x1ec] ss:$16 sps:$4 sm:$0xff]  }
 0x5a0   : > { %v6936_v55 = vpop.f32.mrb[168].mxu0  ;;  %v13437_v24 = vld [vmem:[%s16990_s8 + $0x1e8] ss:$16 sps:$4 sm:$0xff]  }
 0x5a1   : > { %v6984_v29 = vadd.f32 %v6936_v55, %v6807_v28  ;;  %v6938_v6 = vpop.f32.mrb[169].mxu0  ;;  %10239 = vmatpush1.bf16.msra.mxu1 %v13395_v3  ;;  %v13442_v55 = vld [vmem:[%s16990_s8 + $0x204] ss:$16 sps:$4 sm:$0xff]  }
 0x5a2   : > { %v6985_v62 = vadd.f32 %v6938_v6, %v6808_v53  ;;  %v6940_v11 = vpop.f32.mrb[170].mxu0  ;;  %10240 = vmatprep.subr.bf16.mxu1 %v13403_v51  ;;  %10159 = vmatpush1.bf16.msra.mxu0 %v13398_v16 }
 0x5a3   : > { %v6941_v32 = vpop.f32.mrb[171].mxu0  ;;  %10160 = vmatprep.subr.bf16.mxu0 %v13406_v27 }
 0x5a5   : > { %10241 = vmatpush1.bf16.msra.mxu1 %v13401_v38 }
 0x5a6   : > { %10242 = vmatprep.subr.bf16.mxu1 %v13409_v21  ;;  %10161 = vmatpush1.bf16.msra.mxu0 %v13404_v36 }
 0x5a7   : > { %10162 = vmatprep.subr.bf16.mxu0 %v13412_v30 }
 0x5a9   : > { %10243 = vmatpush1.bf16.msra.mxu1 %v13407_v47 }
 0x5aa   : > { %10244 = vmatprep.subr.bf16.mxu1 %v13415_v2  ;;  %10163 = vmatpush1.bf16.msra.mxu0 %v13410_v48 }
 0x5ab   : > { %10164 = vmatprep.subr.bf16.mxu0 %v13418_v17 }
 0x5ac   : > { %v7113_v31 = vpop.f32.mrb[172].mxu0 }
 0x5ad   : > { %v7161_v33 = vadd.f32 %v7113_v31, %v6984_v29  ;;  %v7115_v25 = vpop.f32.mrb[173].mxu0  ;;  %10245 = vmatpush1.bf16.msra.mxu1 %v13413_v20 }
 0x5ae   : > { %v7162_v22 = vadd.f32 %v7115_v25, %v6985_v62  ;;  %v7117_v59 = vpop.f32.mrb[174].mxu0  ;;  %10246 = vmatprep.subr.bf16.mxu1 %v13421_v13  ;;  %10165 = vmatpush1.bf16.msra.mxu0 %v13416_v19 }
 0x5af   : > { %v7118_v42 = vpop.f32.mrb[175].mxu0  ;;  %10166 = vmatprep.subr.bf16.mxu0 %v13424_v39 }
 0x5b1   : > { %10247 = vmatpush1.bf16.msra.mxu1 %v13419_v57 }
 0x5b2   : > { %10248 = vmatprep.subr.bf16.mxu1 %v13427_v40  ;;  %10167 = vmatpush1.bf16.msra.mxu0 %v13422_v7 }
 0x5b3   : > { %10168 = vmatprep.subr.bf16.mxu0 %v13430_v63 }
 0x5b5   : > { %10249 = vmatpush1.bf16.msra.mxu1 %v13425_v12 }
 0x5b6   : > { %10250 = vmatprep.subr.bf16.mxu1 %v13433_v5  ;;  %10169 = vmatpush1.bf16.msra.mxu0 %v13428_v34 }
 0x5b7   : > { %10170 = vmatprep.subr.bf16.mxu0 %v13436_v61 }
 0x5b8   : > { %v7290_v9 = vpop.f32.mrb[176].mxu0 }
 0x5b9   : > { %v7338_v41 = vadd.f32 %v7290_v9, %v7161_v33  ;;  %v7292_v4 = vpop.f32.mrb[177].mxu0  ;;  %10251 = vmatpush1.bf16.msra.mxu1 %v13431_v60 }
 0x5ba   : > { %v7339_v56 = vadd.f32 %v7292_v4, %v7162_v22  ;;  %v7294_v28 = vpop.f32.mrb[178].mxu0  ;;  %10252 = vmatprep.subr.bf16.mxu1 %v13439_v54  ;;  %10171 = vmatpush1.bf16.msra.mxu0 %v13434_v23  ;;  %v16589_v54 = vld [vmem:[%s16988_s6] sm:$0xf] }
 0x5bb   : > { %v7295_v45 = vpop.f32.mrb[179].mxu0  ;;  %10181 = vmatprep.subr.bf16.mxu0 %v13442_v55 }
 0x5bd   : > { %10253 = vmatpush1.bf16.msra.mxu1 %v13437_v24 }
 0x5be   : > { %10263 = vmatprep.subr.bf16.mxu1 %v13445_v1  ;;  %v9319_v1 = vld [vmem:[%s467_s1] sm:$0xf]  ;;  %s458_s1 = scalar_lea.vmem [#allocation4], %s457_s22 }
 0x5bf   : > { %s10707_s23 = sshll.u32 %s458_s1, 4  ;;  %s16942_s23 = int_to_ptr.vmem [resolvable:$true] %s10707_s23 }
 0x5c0   : > { %s13572_s17 = scalar_lea.vmem %s16942_s23, 16  ;;  %p13579_p0 = scmp.lt.s32.totalorder %s16942_s23, %s13577_s15 }
 0x5c1   : > { %p13573_p11 = scmp.ne.s32.totalorder %s16942_s23, %s13572_s17  ;;  %p13580_p1 = scmp.lt.s32.totalorder %s13578_s20, %s13572_s17 }
 0x5c3   : > { %p13574_p12 = pnand %p13573_p11, %p13746_p5  ;;  %p13581_p2 = por %p13580_p1, %p13579_p0 }
 0x5c4   : > { %v7467_v15 = vpop.f32.mrb[180].mxu0 }
 0x5c5   : > { %v7515_v53 = vadd.f32 %v7467_v15, %v7338_v41  ;;  %v7469_v43 = vpop.f32.mrb[181].mxu0  ;;  %p13575_p13 = pneg %p13574_p12 }
 0x5c6   : > { %v7516_v37 = vadd.f32 %v7469_v43, %v7339_v56  ;;  %v7471_v26 = vpop.f32.mrb[182].mxu0 }
 0x5c7   : > { %v7472_v50 = vpop.f32.mrb[183].mxu0  ;;  %v9291_v26 = vlaneseq  ;;  %p13582_p3 = pnand %p13581_p2, %p13575_p13 }
 0x5c9   : > { %v16582_v40 = vshrl.u32 %v9291_v26, 7 }
 0x5cb   : > { %v9305_v61 = vsub.s32 3, %v16582_v40  ;;  %v16597_v23 = vsub.s32 0, %v16582_v40  ;;  %v9297_v24 = vsub.s32 1, %v16582_v40 }
 0x5cd   : > { %v9306_v55 = vrot.slane %v16589_v54, %v9305_v61 }
 0x5d0   : > { %v7644_v29 = vpop.f32.mrb[184].mxu0 }
 0x5d1   : > { %v7692_v6 = vadd.f32 %v7644_v29, %v7515_v53  ;;  %v7646_v58 = vpop.f32.mrb[185].mxu0  ;;  %v9294_v29 = vrot.slane %v16589_v54, %v16597_v23 }
 0x5d2   : > { %v7693_v62 = vadd.f32 %v7646_v58, %v7516_v37  ;;  %v7648_v11 = vpop.f32.mrb[186].mxu0  ;;  %v9298_v58 = vrot.slane %v16589_v54, %v9297_v24 }
 0x5d3   : > { %v7649_v32 = vpop.f32.mrb[187].mxu0  ;;  %v9314_v11 = vadd.f32 %v9306_v55, %v16456_v49  ;;  %v13485_v55 = vld [vmem:[%s16990_s8 + $0x2e8] ss:$16 sps:$4 sm:$0xff]  }
 0x5dc   : > { %v7821_v8 = vpop.f32.mrb[188].mxu0 }
 0x5dd   : > { %v7869_v52 = vadd.f32 %v7821_v8, %v7692_v6  ;;  %v7823_v44 = vpop.f32.mrb[189].mxu0 }
 0x5de   : > { %v7870_v35 = vadd.f32 %v7823_v44, %v7693_v62  ;;  %v7825_v10 = vpop.f32.mrb[190].mxu0  ;;  %v16608_v62 = vunpack.c.l.bf16 %v9319_v1  ;;  %v16613_v44 = vsub.s32 2, %v16582_v40  ;;  %v13490_v1 = vld [vmem:[%s16990_s8 + $0x304] ss:$16 sps:$4 sm:$0xff]  }
 0x5df   : > { %v7826_v46 = vpop.f32.mrb[191].mxu0 }
 0x5e8   : > { %v7998_v0 = vpop.f32.mrb[192].mxu0 }
 0x5e9   : > { %v8046_v3 = vadd.f32 %v7998_v0, %v7869_v52  ;;  %v8000_v18 = vpop.f32.mrb[193].mxu0  ;;  %v9336_v52 = vsub.s32 6, %v16582_v40  ;;  %v9325_v0 = vrot.slane %v16608_v62, %v16597_v23 }
 0x5ea   : > { %v8047_v51 = vadd.f32 %v8000_v18, %v7870_v35  ;;  %v8002_v31 = vpop.f32.mrb[194].mxu0 }
 0x5eb   : > { %v8003_v16 = vpop.f32.mrb[195].mxu0  ;;  %v9318_v31 = vmax.f32 %v9314_v11, 0.0  ;;  %v13496_v11 = vld [vmem:[%s16990_s8 + $0x324] ss:$16 sps:$4 sm:$0xff]  }
 0x5ec   : > { %v9337_v16 = vrot.slane %v16608_v62, %v9336_v52 }
 0x5f4   : > { %v8175_v33 = vpop.f32.mrb[196].mxu0 }
 0x5f5   : > { %v8223_v25 = vadd.f32 %v8175_v33, %v8046_v3  ;;  %v8177_v38 = vpop.f32.mrb[197].mxu0 }
 0x5f6   : > { %v8224_v22 = vadd.f32 %v8177_v38, %v8047_v51  ;;  %v8179_v59 = vpop.f32.mrb[198].mxu0  ;;  %v9329_v51 = vrot.slane %v16608_v62, %v16613_v44 }
 0x5f7   : > { %v8180_v42 = vpop.f32.mrb[199].mxu0 }
 0x5f8   : > { %v13440_v42 = vld [vmem:[%s16990_s8 + $0x200] ss:$16 sps:$4 sm:$0xff]  }
 0x600   : > { %v8352_v36 = vpop.f32.mrb[200].mxu0 }
 0x601   : > { %v8400_v27 = vadd.f32 %v8352_v36, %v8223_v25  ;;  %v8354_v47 = vpop.f32.mrb[201].mxu0  ;;  %v13443_v36 = vld [vmem:[%s16990_s8 + $0x208] ss:$16 sps:$4 sm:$0xff]  }
 0x602   : > { %v8401_v21 = vadd.f32 %v8354_v47, %v8224_v22  ;;  %v8356_v30 = vpop.f32.mrb[202].mxu0  ;;  %v9345_v22 = vmul.f32 %v9337_v16, %v9318_v31  ;;  %v13448_v47 = vld [vmem:[%s16990_s8 + $0x224] ss:$16 sps:$4 sm:$0xff]   ;;  %v13506_v31 = vld [vmem:[%s16990_s8 + $0x360] ss:$16 sps:$4 sm:$0xff]  }
 0x603   : > { %v8357_v48 = vpop.f32.mrb[203].mxu0  ;;  %v13514_v16 = vld [vmem:[%s16990_s8 + $0x384] ss:$16 sps:$4 sm:$0xff]  }
 0x604   : > { %v9349_v30 = vpack.c.bf16 %v9345_v22, %v9345_v22  ;;  %v13446_v48 = vld [vmem:[%s16990_s8 + $0x220] ss:$16 sps:$4 sm:$0xff]   ;;  %v9302_v22 = vrot.slane %v16589_v54, %v16613_v44  ;;  %v13521_v54 = vld [vmem:[%s16990_s8 + $0x3a8] ss:$16 sps:$4 sm:$0xff]  }
 0x60c   : > { %v8529_v2 = vpop.f32.mrb[204].mxu0 }
 0x60d   : > { %v8577_v20 = vadd.f32 %v8529_v2, %v8400_v27  ;;  %v8531_v17 = vpop.f32.mrb[205].mxu0  ;;  %v13449_v2 = vld [vmem:[%s16990_s8 + $0x228] ss:$16 sps:$4 sm:$0xff]  }
 0x60e   : > { %v8578_v13 = vadd.f32 %v8531_v17, %v8401_v21  ;;  %v8533_v9 = vpop.f32.mrb[206].mxu0  ;;  %v13451_v21 = vld [vmem:[%s16990_s8 + $0x22c] ss:$16 sps:$4 sm:$0xff]  }
 0x60f   : > { %v8534_v19 = vpop.f32.mrb[207].mxu0  ;;  %v13457_v17 = vld [vmem:[%s16990_s8 + $0x24c] ss:$16 sps:$4 sm:$0xff]   ;;  %v13455_v9 = vld [vmem:[%s16990_s8 + $0x248] ss:$16 sps:$4 sm:$0xff]  }
 0x610   : > { %v13460_v19 = vld [vmem:[%s16990_s8 + $0x264] ss:$16 sps:$4 sm:$0xff]  }
 0x618   : > { %v8706_v41 = vpop.f32.mrb[208].mxu0 }
 0x619   : > { %v8754_v4 = vadd.f32 %v8706_v41, %v8577_v20  ;;  %v8708_v57 = vpop.f32.mrb[209].mxu0  ;;  %v13454_v20 = vld [vmem:[%s16990_s8 + $0x244] ss:$16 sps:$4 sm:$0xff]   ;;  %v13463_v41 = vld [vmem:[%s16990_s8 + $0x26c] ss:$16 sps:$4 sm:$0xff]  }
 0x61a   : > { %v8755_v56 = vadd.f32 %v8708_v57, %v8578_v13  ;;  %v8710_v28 = vpop.f32.mrb[210].mxu0  ;;  %v13452_v13 = vld [vmem:[%s16990_s8 + $0x240] ss:$16 sps:$4 sm:$0xff]   ;;  %v13461_v57 = vld [vmem:[%s16990_s8 + $0x268] ss:$16 sps:$4 sm:$0xff]  }
 0x61b   : > { %v8711_v45 = vpop.f32.mrb[211].mxu0  ;;  %v13469_v28 = vld [vmem:[%s16990_s8 + $0x28c] ss:$16 sps:$4 sm:$0xff]  }
 0x61c   : > { %v13464_v45 = vld [vmem:[%s16990_s8 + $0x280] ss:$16 sps:$4 sm:$0xff]  }
 0x624   : > { %v8883_v15 = vpop.f32.mrb[212].mxu0 }
 0x625   : > { %v8931_v53 = vadd.f32 %v8883_v15, %v8754_v4  ;;  %v8885_v43 = vpop.f32.mrb[213].mxu0  ;;  %v13458_v4 = vld [vmem:[%s16990_s8 + $0x260] ss:$16 sps:$4 sm:$0xff]   ;;  %v13467_v15 = vld [vmem:[%s16990_s8 + $0x288] ss:$16 sps:$4 sm:$0xff]  }
 0x626   : > { %v8932_v7 = vadd.f32 %v8885_v43, %v8755_v56  ;;  %v8887_v39 = vpop.f32.mrb[214].mxu0  ;;  %v13466_v56 = vld [vmem:[%s16990_s8 + $0x284] ss:$16 sps:$4 sm:$0xff]   ;;  %v13475_v43 = vld [vmem:[%s16990_s8 + $0x2ac] ss:$16 sps:$4 sm:$0xff]  }
 0x627   : > { %v8888_v37 = vpop.f32.mrb[215].mxu0  ;;  %v13473_v39 = vld [vmem:[%s16990_s8 + $0x2a8] ss:$16 sps:$4 sm:$0xff]  }
 0x628   : > { %v13478_v37 = vld [vmem:[%s16990_s8 + $0x2c4] ss:$16 sps:$4 sm:$0xff]  }
 0x630   : > { %v9060_v12 = vpop.f32.mrb[216].mxu0 }
 0x631   : > { %v9108_v50 = vadd.f32 %v9060_v12, %v8931_v53  ;;  %v9062_v63 = vpop.f32.mrb[217].mxu0  ;;  %v13472_v53 = vld [vmem:[%s16990_s8 + $0x2a4] ss:$16 sps:$4 sm:$0xff]   ;;  %v13481_v12 = vld [vmem:[%s16990_s8 + $0x2cc] ss:$16 sps:$4 sm:$0xff]  }
 0x632   : > { %v9109_v34 = vadd.f32 %v9062_v63, %v8932_v7  ;;  %v9064_v5 = vpop.f32.mrb[218].mxu0  ;;  %v13470_v7 = vld [vmem:[%s16990_s8 + $0x2a0] ss:$16 sps:$4 sm:$0xff]   ;;  %v13479_v63 = vld [vmem:[%s16990_s8 + $0x2c8] ss:$16 sps:$4 sm:$0xff]  }
 0x633   : > { %v9065_v60 = vpop.f32.mrb[219].mxu0  ;;  %v13487_v5 = vld [vmem:[%s16990_s8 + $0x2ec] ss:$16 sps:$4 sm:$0xff]  }
 0x634   : > { %v13482_v60 = vld [vmem:[%s16990_s8 + $0x2e0] ss:$16 sps:$4 sm:$0xff]  }
 0x63c   : > { %v9237_v6 = vpop.f32.mrb[220].mxu0 }
 0x63d   : > { %v9285_v32 = vadd.f32 %v9237_v6, %v9108_v50  ;;  %v9239_v8 = vpop.f32.mrb[221].mxu0  ;;  %v13476_v50 = vld [vmem:[%s16990_s8 + $0x2c0] ss:$16 sps:$4 sm:$0xff]  }
 0x63e   : > { %v9286_v35 = vadd.f32 %v9239_v8, %v9109_v34  ;;  %v9241_v10 = vpop.f32.mrb[222].mxu0  ;;  %v13484_v34 = vld [vmem:[%s16990_s8 + $0x2e4] ss:$16 sps:$4 sm:$0xff]   ;;  %v13488_v6 = vld [vmem:[%s16990_s8 + $0x300] ss:$16 sps:$4 sm:$0xff]  }
 0x63f   : > { %v9311_v46 = vadd.f32 %v9294_v29, %v9285_v32  ;;  %v9242_v3 = vpop.f32.mrb[223].mxu0  ;;  %v13493_v29 = vld [vmem:[%s16990_s8 + $0x30c] ss:$16 sps:$4 sm:$0xff]   ;;  %v13494_v8 = vld [vmem:[%s16990_s8 + $0x320] ss:$16 sps:$4 sm:$0xff]  }
 0x640   : > { %v9312_v18 = vadd.f32 %v9298_v58, %v9286_v35  ;;  %v13491_v58 = vld [vmem:[%s16990_s8 + $0x308] ss:$16 sps:$4 sm:$0xff]   ;;  %v13499_v32 = vld [vmem:[%s16990_s8 + $0x32c] ss:$16 sps:$4 sm:$0xff]   ;;  %v13502_v10 = vld [vmem:[%s16990_s8 + $0x344] ss:$16 sps:$4 sm:$0xff]  }
 0x641   : > { %v9315_v49 = vmax.f32 %v9311_v46, 0.0  ;;  %v13497_v35 = vld [vmem:[%s16990_s8 + $0x328] ss:$16 sps:$4 sm:$0xff]   ;;  %v13505_v46 = vld [vmem:[%s16990_s8 + $0x34c] ss:$16 sps:$4 sm:$0xff]  }
 0x642   : > { %v9316_v33 = vmax.f32 %v9312_v18, 0.0  ;;  %v13503_v3 = vld [vmem:[%s16990_s8 + $0x348] ss:$16 sps:$4 sm:$0xff]   ;;  %v13508_v18 = vld [vmem:[%s16990_s8 + $0x364] ss:$16 sps:$4 sm:$0xff]  }
 0x643   : > { %v9342_v25 = vmul.f32 %v9325_v0, %v9315_v49  ;;  %v13500_v0 = vld [vmem:[%s16990_s8 + $0x340] ss:$16 sps:$4 sm:$0xff]   ;;  %v13509_v49 = vld [vmem:[%s16990_s8 + $0x368] ss:$16 sps:$4 sm:$0xff]  }
 0x644   : > { %v9343_v38 = vmul.f32 %v9329_v51, %v9316_v33  ;;  %v13511_v51 = vld [vmem:[%s16990_s8 + $0x36c] ss:$16 sps:$4 sm:$0xff]  }
 0x645   : > { %v9346_v27 = vpack.c.bf16 %v9342_v25, %v9342_v25  ;;  %v13517_v33 = vld [vmem:[%s16990_s8 + $0x38c] ss:$16 sps:$4 sm:$0xff]   ;;  %v13512_v25 = vld [vmem:[%s16990_s8 + $0x380] ss:$16 sps:$4 sm:$0xff]  }
 0x646   : > { %v9347_v59 = vpack.c.bf16 %v9343_v38, %v9343_v38  ;;  %v13515_v38 = vld [vmem:[%s16990_s8 + $0x388] ss:$16 sps:$4 sm:$0xff]  }
 0x648   : > { %10172 = vmatprep.mubr.bf16.mxu0 %v9347_v59  ;;  %10254 = vmatprep.mubr.bf16.mxu1 %v9347_v59  ;;  %v13520_v59 = vld [vmem:[%s16990_s8 + $0x3a4] ss:$16 sps:$4 sm:$0xff]  }
 0x649   : > { %10173 = vmatmul.mubr.bf16.vlgmr.msra.gmra.mrb[224].mxu0 %v9346_v27  ;;  %10255 = vmatmul.mubr.bf16.vlgmr.msra.gmra.mrb[92].mxu1 %v9346_v27  ;;  %v9313_v27 = vadd.f32 %v9302_v22, %v16448_v14  ;;  %v13527_v14 = vld [vmem:[%s16990_s8 + $0x3c8] ss:$16 sps:$4 sm:$0xff]  }
 0x64a   : > { %10182 = vmatpush1.bf16.msra.mxu0 %v13440_v42  ;;  %10264 = vmatpush1.bf16.msra.mxu1 %v13443_v36  ;;  %v13523_v42 = vld [vmem:[%s16990_s8 + $0x3ac] ss:$16 sps:$4 sm:$0xff]   ;;  %v13518_v36 = vld [vmem:[%s16990_s8 + $0x3a0] ss:$16 sps:$4 sm:$0xff]  }
 0x64b   : > { %10213 = vmatprep.mubr.bf16.mxu0 %v9349_v30  ;;  %10295 = vmatprep.mubr.bf16.mxu1 %v9349_v30  ;;  %v13529_v30 = vld [vmem:[%s16990_s8 + $0x3cc] ss:$16 sps:$4 sm:$0xff]  }
 0x64c   : > { %10183 = vmatprep.subr.bf16.mxu0 %v13448_v47  ;;  %10265 = vmatprep.subr.bf16.mxu1 %v13451_v21  ;;  %v9332_v47 = vsub.s32 4, %v16582_v40  ;;  %v13526_v21 = vld [vmem:[%s16990_s8 + $0x3c4] ss:$16 sps:$4 sm:$0xff]  }
 0x64e   : > { %10184 = vmatpush1.bf16.msra.mxu0 %v13446_v48  ;;  %10266 = vmatpush1.bf16.msra.mxu1 %v13449_v2  ;;  %v13524_v48 = vld [vmem:[%s16990_s8 + $0x3c0] ss:$16 sps:$4 sm:$0xff]   ;;  %v9317_v2 = vmax.f32 %v9313_v27, 0.0 }
 0x64f   : > { %10185 = vmatprep.subr.bf16.mxu0 %v13454_v20  ;;  %10267 = vmatprep.subr.bf16.mxu1 %v13457_v17  ;;  %v9333_v20 = vrot.slane %v16608_v62, %v9332_v47  ;;  %v13532_v17 = vld [vmem:[%s16990_s8 + $0x3e4] ss:$16 sps:$4 sm:$0xff]   ;;  %v13533_v62 = vld [vmem:[%s16990_s8 + $0x3e8] ss:$16 sps:$4 sm:$0xff]  }
 0x652   : > { %10186 = vmatpush1.bf16.msra.mxu0 %v13452_v13  ;;  %10268 = vmatpush1.bf16.msra.mxu1 %v13455_v9  ;;  %v13535_v13 = vld [vmem:[%s16990_s8 + $0x3ec] ss:$16 sps:$4 sm:$0xff]   ;;  %v13530_v9 = vld [vmem:[%s16990_s8 + $0x3e0] ss:$16 sps:$4 sm:$0xff]  }
 0x653   : > { %10187 = vmatprep.subr.bf16.mxu0 %v13460_v19  ;;  %10269 = vmatprep.subr.bf16.mxu1 %v13463_v41  ;;  %v9344_v19 = vmul.f32 %v9333_v20, %v9317_v2  ;;  %v13536_v41 = vld [vmem:[%s16993_s11 + $0x40] sm:$0xff]  }
 0x656   : > { %10188 = vmatpush1.bf16.msra.mxu0 %v13458_v4  ;;  %10270 = vmatpush1.bf16.msra.mxu1 %v13461_v57  ;;  %v13537_v4 = vld [vmem:[%s16993_s11 + $0xc0] sm:$0xff]  }
 0x657   : > { %10189 = vmatprep.subr.bf16.mxu0 %v13466_v56  ;;  %10271 = vmatprep.subr.bf16.mxu1 %v13469_v28  ;;  %v13538_v57 = vld [vmem:[%s16993_s11] sm:$0xff]   ;;  %v9348_v28 = vpack.c.bf16 %v9344_v19, %v9344_v19 }
 0x658   : > { %v13539_v56 = vld [vmem:[%s16993_s11 + $0x80] sm:$0xff]  }
 0x65a   : > { %10190 = vmatpush1.bf16.msra.mxu0 %v13464_v45  ;;  %10272 = vmatpush1.bf16.msra.mxu1 %v13467_v15  ;;  %v13540_v45 = vld [vmem:[%s16993_s11 + $0x48] sm:$0xff]  }
 0x65b   : > { %10191 = vmatprep.subr.bf16.mxu0 %v13472_v53  ;;  %10273 = vmatprep.subr.bf16.mxu1 %v13475_v43  ;;  %v13541_v15 = vld [vmem:[%s16993_s11 + $0xc8] sm:$0xff]  }
 0x65c   : > { %v13542_v53 = vld [vmem:[%s16993_s11 + $0x8] sm:$0xff]  }
 0x65d   : > { %v13543_v43 = vld [vmem:[%s16993_s11 + $0x88] sm:$0xff]  }
 0x65e   : > { %10192 = vmatpush1.bf16.msra.mxu0 %v13470_v7  ;;  %10274 = vmatpush1.bf16.msra.mxu1 %v13473_v39  ;;  %v13544_v7 = vld [vmem:[%s16993_s11 + $0x50] sm:$0xff]  }
 0x65f   : > { %10193 = vmatprep.subr.bf16.mxu0 %v13478_v37  ;;  %10275 = vmatprep.subr.bf16.mxu1 %v13481_v12  ;;  %v13545_v39 = vld [vmem:[%s16993_s11 + $0xd0] sm:$0xff]  }
 0x660   : > { %v13546_v37 = vld [vmem:[%s16993_s11 + $0x10] sm:$0xff]  }
 0x661   : > { %v13547_v12 = vld [vmem:[%s16993_s11 + $0x90] sm:$0xff]  }
 0x662   : > { %10194 = vmatpush1.bf16.msra.mxu0 %v13476_v50  ;;  %10276 = vmatpush1.bf16.msra.mxu1 %v13479_v63  ;;  %v13548_v50 = vld [vmem:[%s16993_s11 + $0x58] sm:$0xff]  }
 0x663   : > { %10195 = vmatprep.subr.bf16.mxu0 %v13484_v34  ;;  %10277 = vmatprep.subr.bf16.mxu1 %v13487_v5  ;;  %v13549_v63 = vld [vmem:[%s16993_s11 + $0xd8] sm:$0xff]  }
 0x664   : > { %v13550_v34 = vld [vmem:[%s16993_s11 + $0x18] sm:$0xff]  }
 0x665   : > { %v13551_v5 = vld [vmem:[%s16993_s11 + $0x98] sm:$0xff]  }
 0x666   : > { %10196 = vmatpush1.bf16.msra.mxu0 %v13482_v60  ;;  %10278 = vmatpush1.bf16.msra.mxu1 %v13485_v55  ;;  %v13552_v60 = vld [vmem:[%s16993_s11 + $0x60] sm:$0xff]  }
 0x667   : > { %10197 = vmatprep.subr.bf16.mxu0 %v13490_v1  ;;  %10279 = vmatprep.subr.bf16.mxu1 %v13493_v29  ;;  %v13553_v55 = vld [vmem:[%s16993_s11 + $0xe0] sm:$0xff]  }
 0x668   : > { %v13554_v1 = vld [vmem:[%s16993_s11 + $0x20] sm:$0xff]  }
 0x669   : > { %v13555_v29 = vld [vmem:[%s16993_s11 + $0xa0] sm:$0xff]  }
 0x66a   : > { %10198 = vmatpush1.bf16.msra.mxu0 %v13488_v6  ;;  %10280 = vmatpush1.bf16.msra.mxu1 %v13491_v58  ;;  %v13556_v6 = vld [vmem:[%s16993_s11 + $0x68] sm:$0xff]  }
 0x66b   : > { %10199 = vmatprep.subr.bf16.mxu0 %v13496_v11  ;;  %10281 = vmatprep.subr.bf16.mxu1 %v13499_v32  ;;  %v13557_v58 = vld [vmem:[%s16993_s11 + $0xe8] sm:$0xff]  }
 0x66c   : > { %v13558_v11 = vld [vmem:[%s16993_s11 + $0x28] sm:$0xff]  }
 0x66d   : > { %v13559_v32 = vld [vmem:[%s16993_s11 + $0xa8] sm:$0xff]  }
 0x66e   : > { %10200 = vmatpush1.bf16.msra.mxu0 %v13494_v8  ;;  %10282 = vmatpush1.bf16.msra.mxu1 %v13497_v35  ;;  %v13560_v8 = vld [vmem:[%s16993_s11 + $0x70] sm:$0xff]  }
 0x66f   : > { %10201 = vmatprep.subr.bf16.mxu0 %v13502_v10  ;;  %10283 = vmatprep.subr.bf16.mxu1 %v13505_v46  ;;  %v13561_v35 = vld [vmem:[%s16993_s11 + $0xf0] sm:$0xff]  }
 0x670   : > { %v13562_v10 = vld [vmem:[%s16993_s11 + $0x30] sm:$0xff]  }
 0x671   : > { %v13563_v46 = vld [vmem:[%s16993_s11 + $0xb0] sm:$0xff]  }
 0x672   : > { %10202 = vmatpush1.bf16.msra.mxu0 %v13500_v0  ;;  %10284 = vmatpush1.bf16.msra.mxu1 %v13503_v3  ;;  %v13564_v0 = vld [vmem:[%s16993_s11 + $0x78] sm:$0xff]  }
 0x673   : > { %10203 = vmatprep.subr.bf16.mxu0 %v13508_v18  ;;  %10285 = vmatprep.subr.bf16.mxu1 %v13511_v51  ;;  %v13565_v3 = vld [vmem:[%s16993_s11 + $0xf8] sm:$0xff]  }
 0x674   : > { %v13566_v18 = vld [vmem:[%s16993_s11 + $0x38] sm:$0xff]  }
 0x675   : > { %v13567_v51 = vld [vmem:[%s16993_s11 + $0xb8] sm:$0xff]  }
 0x676   : > { %10204 = vmatpush1.bf16.msra.mxu0 %v13506_v31  ;;  %10286 = vmatpush1.bf16.msra.mxu1 %v13509_v49  ;;  %v9478_v31 = vld [vmem:[%s16991_s9] sm:$0xf] }
 0x677   : > { %10205 = vmatprep.subr.bf16.mxu0 %v13514_v16  ;;  %10287 = vmatprep.subr.bf16.mxu1 %v13517_v33  ;;  %v10308_v49 = vld [vmem:[%s471_s16] sm:$0xf]  ;;  %v10123_v16 = vrot.slane %v9478_v31, %v16597_v23  ;;  %v10135_v22 = vrot.slane %v9478_v31, %v9305_v61  ;;  %s16940_s16 = scalar_lea.hbm %s16995_s13, %s11993_s0 }
 0x678   : > { %v10309_v33 = vunpack.c.l.bf16 %v10308_v49 }
 0x67a   : > { %10206 = vmatpush1.bf16.msra.mxu0 %v13512_v25  ;;  %10288 = vmatpush1.bf16.msra.mxu1 %v13515_v38  ;;  %v10131_v25 = vrot.slane %v9478_v31, %v16613_v44  ;;  %v10127_v38 = vrot.slane %v9478_v31, %v9297_v24  ;;  %v10318_v2 = vrot.slane %v10309_v33, %v16613_v44 }
 0x67b   : > { %10207 = vmatprep.subr.bf16.mxu0 %v13520_v59  ;;  %10289 = vmatprep.subr.bf16.mxu1 %v13523_v42  ;;  %v10326_v24 = vrot.slane %v10309_v33, %v9336_v52 }
 0x67e   : > { %10208 = vmatpush1.bf16.msra.mxu0 %v13518_v36  ;;  %10290 = vmatpush1.bf16.msra.mxu1 %v13521_v54  ;;  %v10314_v54 = vrot.slane %v10309_v33, %v16597_v23 }
 0x67f   : > { %10209 = vmatprep.subr.bf16.mxu0 %v13526_v21  ;;  %10291 = vmatprep.subr.bf16.mxu1 %v13529_v30  ;;  %v10322_v21 = vrot.slane %v10309_v33, %v9332_v47 }
 0x682   : > { %10210 = vmatpush1.bf16.msra.mxu0 %v13524_v48  ;;  %10292 = vmatpush1.bf16.msra.mxu1 %v13527_v14 }
 0x683   : > { %10211 = vmatprep.subr.bf16.mxu0 %v13532_v17  ;;  %10293 = vmatprep.subr.bf16.mxu1 %v13535_v13 }
 0x686   : > { %10212 = vmatpush1.bf16.msra.mxu0 %v13530_v9  ;;  %10294 = vmatpush1.bf16.msra.mxu1 %v13533_v62 }
 0x687   : > { %12188 = vmatprep.subr.bf16.mxu0 %v13536_v41  ;;  %12210 = vmatprep.subr.bf16.mxu1 %v13537_v4 }
 0x689   : > { %10214 = vmatmul.mubr.bf16.vlgmr.msra.gmra.mrb[224].mxu0 %v9348_v28  ;;  %10296 = vmatmul.mubr.bf16.vlgmr.msra.gmra.mrb[92].mxu1 %v9348_v28 }
 0x68a   : > { %12189 = vmatpush3.bf16.msra.mxu0 %v13538_v57  ;;  %12211 = vmatpush3.bf16.msra.mxu1 %v13539_v56 }
 0x68b   : > { %12190 = vmatprep.subr.bf16.mxu0 %v13540_v45  ;;  %12212 = vmatprep.subr.bf16.mxu1 %v13541_v15 }
 0x68e   : > { %12191 = vmatpush3.bf16.msra.mxu0 %v13542_v53  ;;  %12213 = vmatpush3.bf16.msra.mxu1 %v13543_v43  ;;  %v10403_v53 = vld [vmem:[%s16994_s12] sm:$0x1] }
 0x68f   : > { %12192 = vmatprep.subr.bf16.mxu0 %v13544_v7  ;;  %12214 = vmatprep.subr.bf16.mxu1 %v13545_v39  ;;  %v10677_v39 = vand.u32 127, %v9291_v26 }
 0x691   : > { %vm10678_vm10 = vcmp.lt.s32.totalorder %v10677_v39, 4 }
 0x692   : > { %12193 = vmatpush3.bf16.msra.mxu0 %v13546_v37  ;;  %12215 = vmatpush3.bf16.msra.mxu1 %v13547_v12 }
 0x693   : > { %12194 = vmatprep.subr.bf16.mxu0 %v13548_v50  ;;  %12216 = vmatprep.subr.bf16.mxu1 %v13549_v63 }
 0x696   : > { %12195 = vmatpush3.bf16.msra.mxu0 %v13550_v34  ;;  %12217 = vmatpush3.bf16.msra.mxu1 %v13551_v5 }
 0x697   : > { %12196 = vmatprep.subr.bf16.mxu0 %v13552_v60  ;;  %12218 = vmatprep.subr.bf16.mxu1 %v13553_v55 }
 0x69a   : > { %12197 = vmatpush3.bf16.msra.mxu0 %v13554_v1  ;;  %12219 = vmatpush3.bf16.msra.mxu1 %v13555_v29 }
 0x69b   : > { %12198 = vmatprep.subr.bf16.mxu0 %v13556_v6  ;;  %12220 = vmatprep.subr.bf16.mxu1 %v13557_v58 }
 0x69e   : > { %12199 = vmatpush3.bf16.msra.mxu0 %v13558_v11  ;;  %12221 = vmatpush3.bf16.msra.mxu1 %v13559_v32 }
 0x69f   : > { %12200 = vmatprep.subr.bf16.mxu0 %v13560_v8  ;;  %12222 = vmatprep.subr.bf16.mxu1 %v13561_v35 }
 0x6a2   : > { %12201 = vmatpush3.bf16.msra.mxu0 %v13562_v10  ;;  %12223 = vmatpush3.bf16.msra.mxu1 %v13563_v46 }
 0x6a3   : > { %12202 = vmatprep.subr.bf16.mxu0 %v13564_v0  ;;  %12224 = vmatprep.subr.bf16.mxu1 %v13565_v3 }
 0x6a6   : > { %12203 = vmatpush3.bf16.msra.mxu0 %v13566_v18  ;;  %12225 = vmatpush3.bf16.msra.mxu1 %v13567_v51 }
 0x75c   : > { %v10215_v59 = vpop.f32.mrb[224].mxu0  ;;  %v10297_v42 = vpop.f32.mrb[92].mxu1 }
 0x75d   : > { %v12568_v36 = vadd.f32 %v10215_v59, %v10123_v16  ;;  %v12570_v27 = vadd.f32 %v10297_v42, %v10131_v25  ;;  %v10217_v30 = vpop.f32.mrb[225].mxu0  ;;  %v10299_v48 = vpop.f32.mrb[93].mxu1 }
 0x75e   : > { %v12569_v14 = vadd.f32 %v10217_v30, %v10127_v38  ;;  %v12571_v20 = vadd.f32 %v10299_v48, %v10135_v22  ;;  %v10219_v17 = vpop.f32.mrb[226].mxu0  ;;  %v10301_v61 = vpop.f32.mrb[94].mxu1 }
 0x75f   : > { %v10304_v13 = vmax.f32 %v12568_v36, 0.0  ;;  %v10306_v9 = vmax.f32 %v12570_v27, 0.0  ;;  %v10220_v62 = vpop.f32.mrb[227].mxu0  ;;  %v10302_v19 = vpop.f32.mrb[95].mxu1 }
 0x760   : > { %v10305_v23 = vmax.f32 %v12569_v14, 0.0  ;;  %v10307_v41 = vmax.f32 %v12571_v20, 0.0 }
 0x761   : > { %v10331_v4 = vmul.f32 %v10314_v54, %v10304_v13  ;;  %v10333_v57 = vmul.f32 %v10322_v21, %v10306_v9 }
 0x762   : > { %v10332_v47 = vmul.f32 %v10318_v2, %v10305_v23  ;;  %v10334_v56 = vmul.f32 %v10326_v24, %v10307_v41 }
 0x763   : > { %v10335_v15 = vpack.c.bf16 %v10331_v4, %v10331_v4  ;;  %v10337_v44 = vpack.c.bf16 %v10333_v57, %v10333_v57 }
 0x764   : > { %v10336_v28 = vpack.c.bf16 %v10332_v47, %v10332_v47  ;;  %v10338_v45 = vpack.c.bf16 %v10334_v56, %v10334_v56 }
 0x766   : > { %10628 = vmatprep.mubr.bf16.mxu0 %v10336_v28  ;;  %10668 = vmatprep.mubr.bf16.mxu1 %v10338_v45 }
 0x767   : > { %10629 = vmatmul.mubr.bf16.vlgmr.msra.gmra.mrb[228].mxu0 %v10335_v15  ;;  %10669 = vmatmul.mubr.bf16.vlgmr.msra.gmra.mrb[96].mxu1 %v10337_v44 }
 0x83a   : > { %v12204_v40 = vpop.f32.mrb[228].mxu0  ;;  %v12226_v52 = vpop.f32.mrb[96].mxu1 }
 0x83b   : > { %v12205_v43 = vpop.f32.mrb[229].mxu0  ;;  %v12227_v7 = vpop.f32.mrb[97].mxu1 }
 0x83c   : > { %v12206_v37 = vadd.f32 %v12205_v43, %v12204_v40  ;;  %v12228_v12 = vadd.f32 %v12227_v7, %v12226_v52  ;;  %v12207_v50 = vpop.f32.mrb[230].mxu0  ;;  %v12229_v63 = vpop.f32.mrb[98].mxu1 }
 0x83d   : > { %v12208_v34 = vpop.f32.mrb[231].mxu0  ;;  %v12230_v5 = vpop.f32.mrb[99].mxu1 }
 0x83e   : > { %v10631_v60 = vadd.f32 %v12206_v37, %v10403_v53 }
 0x840   : > { %v10671_v55 = vadd.f32 %v12228_v12, %v10631_v60 }
 0x842   : > { %v10679_v1 = vsel %vm10678_vm10, %v10671_v55, -1e+30 }
 0x843   : > { %v10681_v29 = vsel %vm10680_vm11, %v10679_v1, -inf }
 0x844   : > { %10682 = vmax.xlane.f32.xlu0 %v10681_v29 }
 0x8d1   : > { %v10683_v6 = vpop.xlane.xlu0 %10682 }
 0x8d2   : > { %v10684_v58 = vsub.f32 %v10679_v1, %v10683_v6 }
 0x8d4   : > { %v10685_v11 = vmul.f32 1.442695, %v10684_v58 }
 0x8d6   : > { %13568 = vpow2.f32 %v10685_v11 }
 0x8e0   : > { %v13569_v26 = vpop.eup %13568 }
 0x8e1   : > { %v10687_v32 = vsel %vm10680_vm11, %v13569_v26, 0.0 }
 0x8e2   : > { %10688 = vadd.xlane.f32.xlu0 %v10687_v32 }
 0x96f   : > { %v10689_v8 = vpop.xlane.xlu0 %10688 }
 0x970   : > { %13570 = vlog2.f32 %v10689_v8 }
 0x97a   : > { %v13571_v35 = vpop.eup %13570 }
 0x97b   : > { %v10691_v10 = vmul.f32 0.6931472, %v13571_v35 }
 0x97d   : > { %v10692_v46 = vsub.f32 %v10684_v58, %v10691_v10 }
 0x97f   : > { %10693 = vst [vmem:[%s458_s1] sm:$0x1] %v10692_v46 }
 0x980   : > { %13585 = shalt.err (!%p13582_p3)
}
 0x981   : > { %s13586_s22 = scalar_lea.hbm %s16940_s16, 16  ;;  %s13590_s24 = scalar_lea.hbm %s16995_s13, 32 }
 0x982   : > { %p13587_p4 = scmp.ne.s32.totalorder %s16940_s16, %s13586_s22  ;;  %p13591_p9 = scmp.lt.u32.totalorder %s16940_s16, %s16995_s13 }
 0x983   : > { %p13592_p10 = scmp.lt.u32.totalorder %s13590_s24, %s13586_s22  ;;  %p13594_p12 = scmp.lt.u32.totalorder %s13586_s22, %s16940_s16 }
 0x984   : > { %p13588_p7 = pnand %p13587_p4, %p13746_p5 }
 0x985   : > { %p13593_p11 = por %p13592_p10, %p13591_p9 }
 0x986   : > { %p13589_p8 = pneg %p13588_p7 }
 0x987   : > { %p13595_p13 = por %p13594_p12, %p13593_p11 }
 0x989   : > { %p13596_p0 = pnand %p13595_p13, %p13589_p8 }
 0x98b   : > { %13599 = shalt.err (!%p13596_p0)
}
 0x98c   : > { %12750 = dma.vmem_to_hbm [thread:$0]  (%p13746_p5), %s16942_s23, 16, %s16940_s16, %s10695_s21  }
 0x98d PF: > { %p12756_p1 = scmp.ge.s32.totalorder %s13634_s28, 2  ;;  %s10719_s17 = sand.u32 1, %s13622_s25  }
 0x98e   : > { %s10720_s15 = scalar_lea.sflag [#allocation5], %s10719_s17 }
 0x98f   : > { %p12753_p2 = pnand %p12756_p1, %p13750_p6 }
 0x991   : > { %13617 = dma.done.wait (!%p12753_p2), %s10720_s15, 16  }
 0x992   : > { %13619 = vsyncadd (!%p12753_p2), %s10720_s15, 4294967280  ;;  %s17126_s20 = sld [smem:[#allocation7_spill]]  ;;  %p23_p3 = scmp.ge.s32.totalorder %s13733_s14, 4  }
 0x993   : > { %s17127_s25 = smov %s13626_s26  ;;  %s17128_s26 = smov %s13630_s27 }
 0x994   : > { %s17130_s28 = smov %s13733_s14  ;;  %25 = sbr.rel (!%p23_p3) target bundleno = 6 (0x6), region = 156 }
 0x998   : > { %s17129_s27 = smov %s17126_s20 }
 0x99b   :  { %10724 = vsyncpa [#allocation5], 1 }
 0x99c   :  { %10726 = vsyncpa [#allocation5 + $0x1], 1 }

</bundles_post_ra>
